<compile_context>
chip_gen: v7x
topology: tpu7x:2x2x1
jax: 0.10.0
libtpu: 0.0.40
codegen_flags: <defaults>
</compile_context>

<pallas_src>
import jax
import jax.numpy as jnp
from jax.experimental import pallas as pl
from jax.experimental.pallas import tpu as pltpu

EPS = 1e-5

# Layer widths and offsets into the packed gamma/beta array (all 128-aligned
# starts except the tail, which is the final 10-wide layer).
N0, N1, N2, N3, N4 = 1024, 2048, 512, 256, 10
OFF1, OFF2, OFF3, OFF4 = 0, N1, N1 + N2, N1 + N2 + N3          # 0, 2048, 2560, 2816
GB_TOTAL = N1 + N2 + N3 + N4                                   # 2826


def _bn_relu(y, gb):
    """Training-mode BatchNorm1d (+affine) followed by ReLU.  y: (B, N) f32, gb: (2, N)."""
    gamma = gb[0:1, :]
    beta = gb[1:2, :]
    mu = jnp.mean(y, axis=0, keepdims=True)
    var = jnp.mean(jnp.square(y - mu), axis=0, keepdims=True)
    return jnp.maximum((y - mu) * jax.lax.rsqrt(var + EPS) * gamma + beta, 0.0)


def fused_mlp_kernel(x_ref, w1_ref, w2_ref, w3_ref, w4_ref, gb_ref, o_ref):
    # All weights + activations resident in VMEM; straight-line, no grid carry.
    a0 = x_ref[...]                                                        # bf16 (B, 1024)

    y1 = jnp.dot(a0, w1_ref[...], preferred_element_type=jnp.float32)     # (B, 2048) f32
    a1 = _bn_relu(y1, gb_ref[:, OFF1:OFF1 + N1]).astype(jnp.bfloat16)

    y2 = jnp.dot(a1, w2_ref[...], preferred_element_type=jnp.float32)     # (B, 512) f32
    a2 = _bn_relu(y2, gb_ref[:, OFF2:OFF2 + N2]).astype(jnp.bfloat16)

    y3 = jnp.dot(a2, w3_ref[...], preferred_element_type=jnp.float32)     # (B, 256) f32
    a3 = _bn_relu(y3, gb_ref[:, OFF3:OFF3 + N3]).astype(jnp.bfloat16)

    y4 = jnp.dot(a3, w4_ref[...], preferred_element_type=jnp.float32)     # (B, 10) f32
    # Last dim 10 < 128 -> masked partial store; 320 B written once, harmless.
    o_ref[...] = _bn_relu(y4, gb_ref[:, OFF4:OFF4 + N4]).astype(o_ref.dtype)


def mlp_forward(x_bf16, ws, gb):
    """x_bf16: (B, 1024) bf16.  ws: [W^T bf16 (K, N)] x4.  gb: (2, 2826) f32."""
    w1, w2, w3, w4 = ws
    B = x_bf16.shape[0]

    # Weight-DMA-bound roofline hints for XLA's scheduler.
    weight_bytes = 2 * (N0 * N1 + N1 * N2 + N2 * N3 + N3 * N4)            # bf16
    flops = 2 * B * (N0 * N1 + N1 * N2 + N2 * N3 + N3 * N4)
    bytes_accessed = (weight_bytes + B * N0 * 2 + 2 * GB_TOTAL * 4 + B * N4 * 4)

    return pl.pallas_call(
        fused_mlp_kernel,
        out_shape=jax.ShapeDtypeStruct((B, N4), jnp.float32),
        grid_spec=pltpu.PrefetchScalarGridSpec(
            num_scalar_prefetch=0,
            grid=(1,),
            in_specs=[
                pl.BlockSpec((B, N0), lambda i: (0, 0)),          # x (bf16, resident)
                pl.BlockSpec((N0, N1), lambda i: (0, 0)),         # W1^T, one contiguous 4 MiB DMA
                pl.BlockSpec((N1, N2), lambda i: (0, 0)),         # W2^T, 2 MiB
                pl.BlockSpec((N2, N3), lambda i: (0, 0)),         # W3^T, 0.25 MiB
                pl.BlockSpec((N3, N4), lambda i: (0, 0)),         # W4^T, ~5 KiB
                pl.BlockSpec((2, GB_TOTAL), lambda i: (0, 0)),    # packed gamma/beta, one DMA
            ],
            out_specs=pl.BlockSpec((B, N4), lambda i: (0, 0)),
        ),
        compiler_params=pltpu.CompilerParams(
            dimension_semantics=("arbitrary",),
            # ~6.3 MiB of blocks (<= ~13 MiB with default double buffering);
            # explicit cap keeps us portable from v5e (16 MiB scoped default)
            # up to v7x (64 MiB physical).
            vmem_limit_bytes=32 * 1024 * 1024,
        ),
        cost_estimate=pl.CostEstimate(
            flops=flops,
            transcendentals=GB_TOTAL,          # one rsqrt per BN feature
            bytes_accessed=bytes_accessed,
        ),
    )(x_bf16, w1, w2, w3, w4, gb)


def init_params(key):
    """Deterministic synthetic parameters with the shapes implied by __init__.

    Weights are stored pre-transposed as (in, out) and cast to bf16; all
    gamma/beta pairs are packed into a single (2, 2826) f32 array.
    The Linear bias is omitted: it cancels exactly under training-mode BN.
    """
    dims = [(N0, N1), (N1, N2), (N2, N3), (N3, N4)]
    ws, gammas, betas = [], [], []
    for (fan_in, fan_out) in dims:
        key, kw, kg, kb = jax.random.split(key, 4)
        bound = 1.0 / jnp.sqrt(fan_in)
        w_t = jax.random.uniform(kw, (fan_in, fan_out), jnp.float32, -bound, bound)
        ws.append(w_t.astype(jnp.bfloat16))
        gammas.append(1.0 + 0.1 * jax.random.normal(kg, (fan_out,), jnp.float32))
        betas.append(0.1 * jax.random.normal(kb, (fan_out,), jnp.float32))
    gb = jnp.stack([jnp.concatenate(gammas), jnp.concatenate(betas)], axis=0)  # (2, 2826)
    return ws, gb


def mlp_reference(x, ws, gb):
    """Pure-JAX reference emulating the kernel's dtype choices
    (bf16 weights/activations, f32 matmul accumulation and BN stats)."""
    spans = [(OFF1, OFF1 + N1), (OFF2, OFF2 + N2), (OFF3, OFF3 + N3), (OFF4, OFF4 + N4)]
    a = x.astype(jnp.bfloat16).astype(jnp.float32)
    for i, (w_bf, (lo, hi)) in enumerate(zip(ws, spans)):
        y = a @ w_bf.astype(jnp.float32)
        mu = jnp.mean(y, axis=0, keepdims=True)
        var = jnp.mean(jnp.square(y - mu), axis=0, keepdims=True)
        y = (y - mu) * jax.lax.rsqrt(var + EPS) * gb[0:1, lo:hi] + gb[1:2, lo:hi]
        a = jnp.maximum(y, 0.0)
        if i < len(ws) - 1:
            a = a.astype(jnp.bfloat16).astype(jnp.float32)
    return a


if __name__ == "__main__":
    key = jax.random.PRNGKey(0)
    key, kx = jax.random.split(key)
    # NOTE: with B=8 only 8 MXU rows are fed; this workload is weight-DMA /
    # launch bound by construction.  Feature dim is fixed at 1024 by the module.
    B = 8
    X = jax.random.normal(kx, (B, N0), jnp.float32)

    ws, gb = init_params(key)

    out = jax.block_until_ready(mlp_forward(X.astype(jnp.bfloat16), ws, gb))
    ref = mlp_reference(X, ws, gb)

    assert out.shape == (B, N4), out.shape
    assert bool(jnp.all(out >= 0.0)), "ReLU output must be non-negative"
    assert jnp.allclose(out, ref, atol=1e-2, rtol=1e-2), (
        "mismatch vs reference: max abs diff = "
        f"{float(jnp.max(jnp.abs(out - ref)))}")

    print("KERNEL_OK")
</pallas_src>

<mosaic_0001>
module attributes {stable_mosaic.version = 11 : i64} {
  func.func @fused_mlp_kernel(%arg0: i32, %arg1: memref<8x1024xbf16, #tpu.memory_space<vmem>>, %arg2: memref<1024x2048xbf16, #tpu.memory_space<vmem>>, %arg3: memref<2048x512xbf16, #tpu.memory_space<vmem>>, %arg4: memref<512x256xbf16, #tpu.memory_space<vmem>>, %arg5: memref<256x10xbf16, #tpu.memory_space<vmem>>, %arg6: memref<2x2826xf32, #tpu.memory_space<vmem>>, %arg7: memref<8x10xf32, #tpu.memory_space<vmem>>) attributes {dimension_semantics = [#tpu.dimension_semantics<arbitrary>], iteration_bounds = array<i64: 1>, scalar_prefetch = 0 : i64, scratch_operands = 0 : i64, tpu.core_type = #tpu.core_type<tc>, window_params = [{pipeline_mode = #tpu.pipeline_mode<synchronous>, transform_indices = @transform_0, window_bounds = array<i64: 8, 1024>}, {pipeline_mode = #tpu.pipeline_mode<synchronous>, transform_indices = @transform_1, window_bounds = array<i64: 1024, 2048>}, {pipeline_mode = #tpu.pipeline_mode<synchronous>, transform_indices = @transform_2, window_bounds = array<i64: 2048, 512>}, {pipeline_mode = #tpu.pipeline_mode<synchronous>, transform_indices = @transform_3, window_bounds = array<i64: 512, 256>}, {pipeline_mode = #tpu.pipeline_mode<synchronous>, transform_indices = @transform_4, window_bounds = array<i64: 256, 10>}, {pipeline_mode = #tpu.pipeline_mode<synchronous>, transform_indices = @transform_5, window_bounds = array<i64: 2, 2826>}, {pipeline_mode = #tpu.pipeline_mode<synchronous>, transform_indices = @transform_6, window_bounds = array<i64: 8, 10>}]} {
    %c0 = arith.constant 0 : index
    %c0_0 = arith.constant 0 : index
    %0 = vector.load %arg1[%c0, %c0_0] : memref<8x1024xbf16, #tpu.memory_space<vmem>>, vector<8x1024xbf16>
    %c0_1 = arith.constant 0 : index
    %c0_2 = arith.constant 0 : index
    %1 = vector.load %arg2[%c0_1, %c0_2] : memref<1024x2048xbf16, #tpu.memory_space<vmem>>, vector<1024x2048xbf16>
    %cst = arith.constant dense<0.000000e+00> : vector<8x2048xf32>
    %2 = tpu.matmul %0, %1, %cst {dimension_numbers = #tpu.dot_dimension_numbers<[1], [0], [0], [1], [0, 0, 1, 1], [], []>} : vector<8x1024xbf16>, vector<1024x2048xbf16>, vector<8x2048xf32> -> vector<8x2048xf32>
    %c0_3 = arith.constant 0 : index
    %c0_4 = arith.constant 0 : index
    %3 = vector.load %arg6[%c0_3, %c0_4] : memref<2x2826xf32, #tpu.memory_space<vmem>>, vector<2x2048xf32>
    %4 = vector.extract_strided_slice %3 {offsets = [0, 0], sizes = [1, 2048], strides = [1, 1]} : vector<2x2048xf32> to vector<1x2048xf32>
    %5 = vector.extract_strided_slice %3 {offsets = [1, 0], sizes = [1, 2048], strides = [1, 1]} : vector<2x2048xf32> to vector<1x2048xf32>
    %cst_5 = arith.constant dense<0.000000e+00> : vector<2048xf32>
    %6 = vector.multi_reduction <add>, %2, %cst_5 [0] : vector<8x2048xf32> to vector<2048xf32>
    %7 = vector.shape_cast %6 : vector<2048xf32> to vector<1x2048xf32>
    %cst_6 = arith.constant 8.000000e+00 : f32
    %8 = vector.broadcast %cst_6 : f32 to vector<1x2048xf32>
    %9 = arith.divf %7, %8 : vector<1x2048xf32>
    %10 = vector.broadcast %9 : vector<1x2048xf32> to vector<8x2048xf32>
    %11 = arith.subf %2, %10 : vector<8x2048xf32>
    %12 = arith.mulf %11, %11 : vector<8x2048xf32>
    %cst_7 = arith.constant dense<0.000000e+00> : vector<2048xf32>
    %13 = vector.multi_reduction <add>, %12, %cst_7 [0] : vector<8x2048xf32> to vector<2048xf32>
    %14 = vector.shape_cast %13 : vector<2048xf32> to vector<1x2048xf32>
    %cst_8 = arith.constant 8.000000e+00 : f32
    %15 = vector.broadcast %cst_8 : f32 to vector<1x2048xf32>
    %16 = arith.divf %14, %15 : vector<1x2048xf32>
    %17 = vector.broadcast %9 : vector<1x2048xf32> to vector<8x2048xf32>
    %18 = arith.subf %2, %17 : vector<8x2048xf32>
    %cst_9 = arith.constant 9.99999974E-6 : f32
    %19 = vector.broadcast %cst_9 : f32 to vector<1x2048xf32>
    %20 = arith.addf %16, %19 : vector<1x2048xf32>
    %21 = math.rsqrt %20 : vector<1x2048xf32>
    %22 = vector.broadcast %21 : vector<1x2048xf32> to vector<8x2048xf32>
    %23 = arith.mulf %18, %22 : vector<8x2048xf32>
    %24 = vector.broadcast %4 : vector<1x2048xf32> to vector<8x2048xf32>
    %25 = arith.mulf %23, %24 : vector<8x2048xf32>
    %26 = vector.broadcast %5 : vector<1x2048xf32> to vector<8x2048xf32>
    %27 = arith.addf %25, %26 : vector<8x2048xf32>
    %cst_10 = arith.constant 0.000000e+00 : f32
    %28 = vector.broadcast %cst_10 : f32 to vector<8x2048xf32>
    %29 = arith.maximumf %27, %28 : vector<8x2048xf32>
    %30 = arith.truncf %29 : vector<8x2048xf32> to vector<8x2048xbf16>
    %c0_11 = arith.constant 0 : index
    %c0_12 = arith.constant 0 : index
    %31 = vector.load %arg3[%c0_11, %c0_12] : memref<2048x512xbf16, #tpu.memory_space<vmem>>, vector<2048x512xbf16>
    %cst_13 = arith.constant dense<0.000000e+00> : vector<8x512xf32>
    %32 = tpu.matmul %30, %31, %cst_13 {dimension_numbers = #tpu.dot_dimension_numbers<[1], [0], [0], [1], [0, 0, 1, 1], [], []>} : vector<8x2048xbf16>, vector<2048x512xbf16>, vector<8x512xf32> -> vector<8x512xf32>
    %c0_14 = arith.constant 0 : index
    %c2048 = arith.constant 2048 : index
    %33 = vector.load %arg6[%c0_14, %c2048] : memref<2x2826xf32, #tpu.memory_space<vmem>>, vector<2x512xf32>
    %34 = vector.extract_strided_slice %33 {offsets = [0, 0], sizes = [1, 512], strides = [1, 1]} : vector<2x512xf32> to vector<1x512xf32>
    %35 = vector.extract_strided_slice %33 {offsets = [1, 0], sizes = [1, 512], strides = [1, 1]} : vector<2x512xf32> to vector<1x512xf32>
    %cst_15 = arith.constant dense<0.000000e+00> : vector<512xf32>
    %36 = vector.multi_reduction <add>, %32, %cst_15 [0] : vector<8x512xf32> to vector<512xf32>
    %37 = vector.shape_cast %36 : vector<512xf32> to vector<1x512xf32>
    %cst_16 = arith.constant 8.000000e+00 : f32
    %38 = vector.broadcast %cst_16 : f32 to vector<1x512xf32>
    %39 = arith.divf %37, %38 : vector<1x512xf32>
    %40 = vector.broadcast %39 : vector<1x512xf32> to vector<8x512xf32>
    %41 = arith.subf %32, %40 : vector<8x512xf32>
    %42 = arith.mulf %41, %41 : vector<8x512xf32>
    %cst_17 = arith.constant dense<0.000000e+00> : vector<512xf32>
    %43 = vector.multi_reduction <add>, %42, %cst_17 [0] : vector<8x512xf32> to vector<512xf32>
    %44 = vector.shape_cast %43 : vector<512xf32> to vector<1x512xf32>
    %cst_18 = arith.constant 8.000000e+00 : f32
    %45 = vector.broadcast %cst_18 : f32 to vector<1x512xf32>
    %46 = arith.divf %44, %45 : vector<1x512xf32>
    %47 = vector.broadcast %39 : vector<1x512xf32> to vector<8x512xf32>
    %48 = arith.subf %32, %47 : vector<8x512xf32>
    %cst_19 = arith.constant 9.99999974E-6 : f32
    %49 = vector.broadcast %cst_19 : f32 to vector<1x512xf32>
    %50 = arith.addf %46, %49 : vector<1x512xf32>
    %51 = math.rsqrt %50 : vector<1x512xf32>
    %52 = vector.broadcast %51 : vector<1x512xf32> to vector<8x512xf32>
    %53 = arith.mulf %48, %52 : vector<8x512xf32>
    %54 = vector.broadcast %34 : vector<1x512xf32> to vector<8x512xf32>
    %55 = arith.mulf %53, %54 : vector<8x512xf32>
    %56 = vector.broadcast %35 : vector<1x512xf32> to vector<8x512xf32>
    %57 = arith.addf %55, %56 : vector<8x512xf32>
    %cst_20 = arith.constant 0.000000e+00 : f32
    %58 = vector.broadcast %cst_20 : f32 to vector<8x512xf32>
    %59 = arith.maximumf %57, %58 : vector<8x512xf32>
    %60 = arith.truncf %59 : vector<8x512xf32> to vector<8x512xbf16>
    %c0_21 = arith.constant 0 : index
    %c0_22 = arith.constant 0 : index
    %61 = vector.load %arg4[%c0_21, %c0_22] : memref<512x256xbf16, #tpu.memory_space<vmem>>, vector<512x256xbf16>
    %cst_23 = arith.constant dense<0.000000e+00> : vector<8x256xf32>
    %62 = tpu.matmul %60, %61, %cst_23 {dimension_numbers = #tpu.dot_dimension_numbers<[1], [0], [0], [1], [0, 0, 1, 1], [], []>} : vector<8x512xbf16>, vector<512x256xbf16>, vector<8x256xf32> -> vector<8x256xf32>
    %c0_24 = arith.constant 0 : index
    %c2560 = arith.constant 2560 : index
    %63 = vector.load %arg6[%c0_24, %c2560] : memref<2x2826xf32, #tpu.memory_space<vmem>>, vector<2x256xf32>
    %64 = vector.extract_strided_slice %63 {offsets = [0, 0], sizes = [1, 256], strides = [1, 1]} : vector<2x256xf32> to vector<1x256xf32>
    %65 = vector.extract_strided_slice %63 {offsets = [1, 0], sizes = [1, 256], strides = [1, 1]} : vector<2x256xf32> to vector<1x256xf32>
    %cst_25 = arith.constant dense<0.000000e+00> : vector<256xf32>
    %66 = vector.multi_reduction <add>, %62, %cst_25 [0] : vector<8x256xf32> to vector<256xf32>
    %67 = vector.shape_cast %66 : vector<256xf32> to vector<1x256xf32>
    %cst_26 = arith.constant 8.000000e+00 : f32
    %68 = vector.broadcast %cst_26 : f32 to vector<1x256xf32>
    %69 = arith.divf %67, %68 : vector<1x256xf32>
    %70 = vector.broadcast %69 : vector<1x256xf32> to vector<8x256xf32>
    %71 = arith.subf %62, %70 : vector<8x256xf32>
    %72 = arith.mulf %71, %71 : vector<8x256xf32>
    %cst_27 = arith.constant dense<0.000000e+00> : vector<256xf32>
    %73 = vector.multi_reduction <add>, %72, %cst_27 [0] : vector<8x256xf32> to vector<256xf32>
    %74 = vector.shape_cast %73 : vector<256xf32> to vector<1x256xf32>
    %cst_28 = arith.constant 8.000000e+00 : f32
    %75 = vector.broadcast %cst_28 : f32 to vector<1x256xf32>
    %76 = arith.divf %74, %75 : vector<1x256xf32>
    %77 = vector.broadcast %69 : vector<1x256xf32> to vector<8x256xf32>
    %78 = arith.subf %62, %77 : vector<8x256xf32>
    %cst_29 = arith.constant 9.99999974E-6 : f32
    %79 = vector.broadcast %cst_29 : f32 to vector<1x256xf32>
    %80 = arith.addf %76, %79 : vector<1x256xf32>
    %81 = math.rsqrt %80 : vector<1x256xf32>
    %82 = vector.broadcast %81 : vector<1x256xf32> to vector<8x256xf32>
    %83 = arith.mulf %78, %82 : vector<8x256xf32>
    %84 = vector.broadcast %64 : vector<1x256xf32> to vector<8x256xf32>
    %85 = arith.mulf %83, %84 : vector<8x256xf32>
    %86 = vector.broadcast %65 : vector<1x256xf32> to vector<8x256xf32>
    %87 = arith.addf %85, %86 : vector<8x256xf32>
    %cst_30 = arith.constant 0.000000e+00 : f32
    %88 = vector.broadcast %cst_30 : f32 to vector<8x256xf32>
    %89 = arith.maximumf %87, %88 : vector<8x256xf32>
    %90 = arith.truncf %89 : vector<8x256xf32> to vector<8x256xbf16>
    %c0_31 = arith.constant 0 : index
    %c0_32 = arith.constant 0 : index
    %91 = vector.load %arg5[%c0_31, %c0_32] : memref<256x10xbf16, #tpu.memory_space<vmem>>, vector<256x10xbf16>
    %cst_33 = arith.constant dense<0.000000e+00> : vector<8x10xf32>
    %92 = tpu.matmul %90, %91, %cst_33 {dimension_numbers = #tpu.dot_dimension_numbers<[1], [0], [0], [1], [0, 0, 1, 1], [], []>} : vector<8x256xbf16>, vector<256x10xbf16>, vector<8x10xf32> -> vector<8x10xf32>
    %c0_34 = arith.constant 0 : index
    %c2816 = arith.constant 2816 : index
    %93 = vector.load %arg6[%c0_34, %c2816] : memref<2x2826xf32, #tpu.memory_space<vmem>>, vector<2x10xf32>
    %94 = vector.extract_strided_slice %93 {offsets = [0, 0], sizes = [1, 10], strides = [1, 1]} : vector<2x10xf32> to vector<1x10xf32>
    %95 = vector.extract_strided_slice %93 {offsets = [1, 0], sizes = [1, 10], strides = [1, 1]} : vector<2x10xf32> to vector<1x10xf32>
    %cst_35 = arith.constant dense<0.000000e+00> : vector<10xf32>
    %96 = vector.multi_reduction <add>, %92, %cst_35 [0] : vector<8x10xf32> to vector<10xf32>
    %97 = vector.shape_cast %96 : vector<10xf32> to vector<1x10xf32>
    %cst_36 = arith.constant 8.000000e+00 : f32
    %98 = vector.broadcast %cst_36 : f32 to vector<1x10xf32>
    %99 = arith.divf %97, %98 : vector<1x10xf32>
    %100 = vector.broadcast %99 : vector<1x10xf32> to vector<8x10xf32>
    %101 = arith.subf %92, %100 : vector<8x10xf32>
    %102 = arith.mulf %101, %101 : vector<8x10xf32>
    %cst_37 = arith.constant dense<0.000000e+00> : vector<10xf32>
    %103 = vector.multi_reduction <add>, %102, %cst_37 [0] : vector<8x10xf32> to vector<10xf32>
    %104 = vector.shape_cast %103 : vector<10xf32> to vector<1x10xf32>
    %cst_38 = arith.constant 8.000000e+00 : f32
    %105 = vector.broadcast %cst_38 : f32 to vector<1x10xf32>
    %106 = arith.divf %104, %105 : vector<1x10xf32>
    %107 = vector.broadcast %99 : vector<1x10xf32> to vector<8x10xf32>
    %108 = arith.subf %92, %107 : vector<8x10xf32>
    %cst_39 = arith.constant 9.99999974E-6 : f32
    %109 = vector.broadcast %cst_39 : f32 to vector<1x10xf32>
    %110 = arith.addf %106, %109 : vector<1x10xf32>
    %111 = math.rsqrt %110 : vector<1x10xf32>
    %112 = vector.broadcast %111 : vector<1x10xf32> to vector<8x10xf32>
    %113 = arith.mulf %108, %112 : vector<8x10xf32>
    %114 = vector.broadcast %94 : vector<1x10xf32> to vector<8x10xf32>
    %115 = arith.mulf %113, %114 : vector<8x10xf32>
    %116 = vector.broadcast %95 : vector<1x10xf32> to vector<8x10xf32>
    %117 = arith.addf %115, %116 : vector<8x10xf32>
    %cst_40 = arith.constant 0.000000e+00 : f32
    %118 = vector.broadcast %cst_40 : f32 to vector<8x10xf32>
    %119 = arith.maximumf %117, %118 : vector<8x10xf32>
    %c0_41 = arith.constant 0 : index
    %c0_42 = arith.constant 0 : index
    %120 = vector.load %arg7[%c0_41, %c0_42] : memref<8x10xf32, #tpu.memory_space<vmem>>, vector<8x10xf32>
    tpu.vector_store %arg7[%c0_41, %c0_42], %119 {strides = array<i32>} : memref<8x10xf32, #tpu.memory_space<vmem>>, vector<8x10xf32>,
    return
  }
  func.func @transform_0(%arg0: i32) -> (i32, i32) {
    %c0_i32 = arith.constant 0 : i32
    %c0_i32_0 = arith.constant 0 : i32
    %c0_i32_1 = arith.constant 0 : i32
    return %c0_i32, %c0_i32_0 : i32, i32
  }
  func.func @transform_1(%arg0: i32) -> (i32, i32) {
    %c0_i32 = arith.constant 0 : i32
    %c0_i32_0 = arith.constant 0 : i32
    %c0_i32_1 = arith.constant 0 : i32
    return %c0_i32, %c0_i32_0 : i32, i32
  }
  func.func @transform_2(%arg0: i32) -> (i32, i32) {
    %c0_i32 = arith.constant 0 : i32
    %c0_i32_0 = arith.constant 0 : i32
    %c0_i32_1 = arith.constant 0 : i32
    return %c0_i32, %c0_i32_0 : i32, i32
  }
  func.func @transform_3(%arg0: i32) -> (i32, i32) {
    %c0_i32 = arith.constant 0 : i32
    %c0_i32_0 = arith.constant 0 : i32
    %c0_i32_1 = arith.constant 0 : i32
    return %c0_i32, %c0_i32_0 : i32, i32
  }
  func.func @transform_4(%arg0: i32) -> (i32, i32) {
    %c0_i32 = arith.constant 0 : i32
    %c0_i32_0 = arith.constant 0 : i32
    %c0_i32_1 = arith.constant 0 : i32
    return %c0_i32, %c0_i32_0 : i32, i32
  }
  func.func @transform_5(%arg0: i32) -> (i32, i32) {
    %c0_i32 = arith.constant 0 : i32
    %c0_i32_0 = arith.constant 0 : i32
    %c0_i32_1 = arith.constant 0 : i32
    return %c0_i32, %c0_i32_0 : i32, i32
  }
  func.func @transform_6(%arg0: i32) -> (i32, i32) {
    %c0_i32 = arith.constant 0 : i32
    %c0_i32_0 = arith.constant 0 : i32
    %c0_i32_1 = arith.constant 0 : i32
    return %c0_i32, %c0_i32_0 : i32, i32
  }
}

</mosaic_0001>

<bundles_post_ra>
// kernel: tpu_custom_call.1
= control target key start
LH: loop header
LB: loop body
LE: loop exit
PB: predicated region body
PF: predicated region fallthrough
CT: control target
= control target key end

     0   :  { %11 = vsyncpa [#allocation3], 0  ;;  %s16469_s0 = inlined_call_operand.hbm [shape: bf16[8,1024], index: 0, kind: input, shape index: {}]   ;;  %s16470_s1 = inlined_call_operand.hbm [shape: bf16[1024,2048], index: 1, kind: input, shape index: {}]   ;;  %s16471_s2 = inlined_call_operand.hbm [shape: bf16[2048,512], index: 2, kind: input, shape index: {}]   ;;  %s16472_s3 = inlined_call_operand.hbm [shape: bf16[512,256], index: 3, kind: input, shape index: {}]   ;;  %s16473_s4 = inlined_call_operand.vmem [shape: bf16[256,10], index: 4, kind: input, shape index: {}]   ;;  %s16474_s5 = inlined_call_operand.hbm [shape: f32[2,2826], index: 5, kind: input, shape index: {}]   ;;  %s16475_s6 = inlined_call_operand.hbm [shape: f32[8,10], index: 6, kind: output, shape index: {}]  }
   0x1   :  { %12 = vsyncpa [#allocation6], 0 }
   0x2   :  { %13 = vsyncpa [#allocation9], 0 }
   0x3   :  { %14 = vsyncpa [#allocation4], 0  ;;  %s15792_s21 = smov [#allocation5]   ;;  %s15652_s25 = scalar_lea.hbm %s16470_s1, 131072 }
   0x4   :  { %s30_s22 = sshll.u32 %s15792_s21, 4  ;;  %p15653_p0 = scmp.ne.s32.totalorder %s16470_s1, %s15652_s25  ;;  %s31_s22 = int_to_ptr.vmem [resolvable:$true] %s30_s22 }
   0x5   :  { %p15656_p1 = scmp.lt.u32.totalorder %s15652_s25, %s16470_s1 }
   0x7   :  { %p15658_p2 = pnand %p15656_p1, %p15653_p0 }
   0x9   :  { %15661 = shalt.err (!%p15658_p2)
}
   0xa   :  { %s15662_s30 = scalar_lea.vmem %s31_s22, 131072  ;;  %p15667_p4 = scmp.lt.s32.totalorder %s31_s22, %s31_s22 }
   0xb   :  { %p15663_p3 = scmp.ne.s32.totalorder %s31_s22, %s15662_s30  ;;  %p15668_p5 = scmp.lt.s32.totalorder %s15662_s30, %s15662_s30 }
   0xd   :  { %p15669_p6 = por %p15668_p5, %p15667_p4 }
   0xf   :  { %p15670_p7 = pnand %p15669_p6, %p15663_p3 }
  0x11   :  { %15673 = shalt.err (!%p15670_p7)
}
  0x12   :  { %s15793_s7 = smov 1024   ;;  %s15794_s8 = smov 64  }
  0x13   :  { %36 = dma.hbm_to_vmem [thread:$0]  %s16470_s1, 131072, %s31_s22, [#allocation6], %s15793_s7, %s15793_s7, %s15794_s8  }
  0x14   :  { %s15795_s11 = smov [#allocation8]   ;;  %s15674_s15 = scalar_lea.hbm %s16472_s3, 8192 }
  0x15   :  { %s54_s12 = sshll.u32 %s15795_s11, 4  ;;  %p15675_p8 = scmp.ne.s32.totalorder %s16472_s3, %s15674_s15  ;;  %s55_s12 = int_to_ptr.vmem [resolvable:$true] %s54_s12 }
  0x16   :  { %p15678_p9 = scmp.lt.u32.totalorder %s15674_s15, %s16472_s3 }
  0x18   :  { %p15680_p10 = pnand %p15678_p9, %p15675_p8 }
  0x1a   :  { %15683 = shalt.err (!%p15680_p10)
}
  0x1b   :  { %s15684_s20 = scalar_lea.vmem %s55_s12, 8192  ;;  %p15689_p12 = scmp.lt.s32.totalorder %s55_s12, %s55_s12 }
  0x1c   :  { %p15685_p11 = scmp.ne.s32.totalorder %s55_s12, %s15684_s20  ;;  %p15690_p13 = scmp.lt.s32.totalorder %s15684_s20, %s15684_s20 }
  0x1e   :  { %p15691_p0 = por %p15690_p13, %p15689_p12 }
  0x20   :  { %p15692_p1 = pnand %p15691_p0, %p15685_p11 }
  0x22   :  { %15695 = shalt.err (!%p15692_p1)
}
  0x23   :  { %s15796_s1 = smov 128   ;;  %s15797_s21 = smov 8  }
  0x24   :  { %60 = dma.hbm_to_vmem [thread:$0]  %s16472_s3, 8192, %s55_s12, [#allocation9], %s15796_s1, %s15796_s1, %s15797_s21  }
  0x25   :  { %s15798_s24 = smov [#allocation2]   ;;  %s15799_s26 = smov [#allocation7]  }
  0x26   :  { %s21_s25 = sshll.u32 %s15798_s24, 4  ;;  %s42_s27 = sshll.u32 %s15799_s26, 4  ;;  %s22_s25 = int_to_ptr.vmem [resolvable:$true] %s21_s25  ;;  %s15863_s27 = int_to_ptr.vmem [resolvable:$true] %s42_s27 }
  0x27   :  { %s15696_s30 = scalar_lea.hbm %s16469_s0, 512 }
  0x28   :  { %p15697_p2 = scmp.ne.s32.totalorder %s16469_s0, %s15696_s30  ;;  %p15700_p3 = scmp.lt.u32.totalorder %s15696_s30, %s16469_s0 }
  0x2a   :  { %p15702_p4 = pnand %p15700_p3, %p15697_p2 }
  0x2c   :  { %15705 = shalt.err (!%p15702_p4)
}
  0x2d   :  { %s15706_s3 = scalar_lea.vmem %s22_s25, 512  ;;  %p15711_p6 = scmp.lt.s32.totalorder %s22_s25, %s22_s25 }
  0x2e   :  { %p15707_p5 = scmp.ne.s32.totalorder %s22_s25, %s15706_s3  ;;  %p15712_p7 = scmp.lt.s32.totalorder %s15706_s3, %s15706_s3 }
  0x30   :  { %p15713_p8 = por %p15712_p7, %p15711_p6 }
  0x32   :  { %p15714_p9 = pnand %p15713_p8, %p15707_p5 }
  0x34   :  { %15717 = shalt.err (!%p15714_p9)
}
  0x35   :  { %24 = dma.hbm_to_vmem [thread:$0]  %s16469_s0, 512, %s22_s25, [#allocation3]  }
  0x36   :  { %s15718_s15 = scalar_lea.hbm %s16471_s2, 65536 }
  0x37   :  { %p15719_p10 = scmp.ne.s32.totalorder %s16471_s2, %s15718_s15  ;;  %p15722_p11 = scmp.lt.u32.totalorder %s15718_s15, %s16471_s2 }
  0x39   :  { %p15724_p12 = pnand %p15722_p11, %p15719_p10 }
  0x3b   :  { %15727 = shalt.err (!%p15724_p12)
}
  0x3c   :  { %s15728_s20 = scalar_lea.vmem %s15863_s27, 65536  ;;  %p15733_p0 = scmp.lt.s32.totalorder %s15863_s27, %s15863_s27 }
  0x3d   :  { %p15729_p13 = scmp.ne.s32.totalorder %s15863_s27, %s15728_s20  ;;  %p15734_p1 = scmp.lt.s32.totalorder %s15728_s20, %s15728_s20 }
  0x3f   :  { %p15735_p2 = por %p15734_p1, %p15733_p0 }
  0x41   :  { %p15736_p3 = pnand %p15735_p2, %p15729_p13 }
  0x43   :  { %15739 = shalt.err (!%p15736_p3)
}
  0x44   :  { %s15800_s0 = smov 256   ;;  %s15801_s1 = smov 16  }
  0x45   :  { %48 = dma.hbm_to_vmem [thread:$0]  %s16471_s2, 65536, %s15863_s27, [#allocation6], %s15800_s0, %s15800_s0, %s15801_s1  }
  0x46   :  { %s15802_s23 = smov [#allocation10]   ;;  %s15740_s28 = scalar_lea.hbm %s16474_s5, 736 }
  0x47   :  { %s69_s24 = sshll.u32 %s15802_s23, 4  ;;  %p15741_p4 = scmp.ne.s32.totalorder %s16474_s5, %s15740_s28  ;;  %s70_s24 = int_to_ptr.vmem [resolvable:$true] %s69_s24 }
  0x48   :  { %p15744_p5 = scmp.lt.u32.totalorder %s15740_s28, %s16474_s5 }
  0x4a   :  { %p15746_p6 = pnand %p15744_p5, %p15741_p4 }
  0x4c   :  { %15749 = shalt.err (!%p15746_p6)
}
  0x4d   :  { %s15750_s9 = scalar_lea.vmem %s70_s24, 736  ;;  %p15755_p8 = scmp.lt.s32.totalorder %s70_s24, %s70_s24 }
  0x4e   :  { %p15751_p7 = scmp.ne.s32.totalorder %s70_s24, %s15750_s9  ;;  %p15756_p9 = scmp.lt.s32.totalorder %s15750_s9, %s15750_s9 }
  0x50   :  { %p15757_p10 = por %p15756_p9, %p15755_p8 }
  0x52   :  { %p15758_p11 = pnand %p15757_p10, %p15751_p7 }
  0x54   :  { %15761 = shalt.err (!%p15758_p11)
}
  0x55   :  { %72 = dma.hbm_to_vmem [thread:$0]  %s16474_s5, 736, %s70_s24, [#allocation9]  }
  0x56   :  { %15784 = dma.done.wait [#allocation3], 512  }
  0x57   :  { %15785 = vsyncadd [#allocation3], 4294966784 }
  0x58   :  { %15786 = dma.done.wait [#allocation6], 196608  }
  0x59   :  { %15787 = vsyncadd [#allocation6], 4294770688 }
  0x5a   :  { %15788 = dma.done.wait [#allocation9], 8928  }
  0x5b   :  { %15789 = vsyncadd [#allocation9], 4294958368  ;;  %v93_v0 = vld [vmem:[#allocation5] sm:$0xff]  ;;  %v15908_v54 = vld [vmem:[#allocation2 + $0x8] sm:$0xff]  ;;  %vm12855_vm0 = vcmask 80896  }
  0x5c   :  { %v101_v1 = vld [vmem:[#allocation5 + $0x40] sm:$0xff]  ;;  %v15916_v61 = vcombine.high %v15908_v54, %v15908_v54 }
  0x5d   :  { %v349_v2 = vld [vmem:[#allocation5 + $0x800] sm:$0xff]  ;;  %v12915_v3 = vcombine.high %v93_v0, %v101_v1  ;;  %v12914_v5 = vcombine.low %v93_v0, %v101_v1 }
  0x5e   :  { %v357_v4 = vld [vmem:[#allocation5 + $0x840] sm:$0xff]  ;;  %6338 = vmatprep.mubr.bf16.mxu0 %v15916_v61 }
  0x5f   :  { %v109_v6 = vld [vmem:[#allocation5 + $0x80] sm:$0xff]  ;;  %v13171_v8 = vcombine.high %v349_v2, %v357_v4  ;;  %v13170_v9 = vcombine.low %v349_v2, %v357_v4  ;;  %6265 = vmatprep.subr.bf16.mxu1 %v12915_v3 }
  0x60   :  { %v117_v7 = vld [vmem:[#allocation5 + $0xc0] sm:$0xff]  ;;  %6266 = vmatpush1.bf16.msra.mxu1 %v12914_v5 }
  0x61   :  { %v12931_v10 = vcombine.high %v109_v6, %v117_v7  ;;  %v365_v11 = vld [vmem:[#allocation5 + $0x880] sm:$0xff]  ;;  %6306 = vmatprep.subr.bf16.mxu0 %v13171_v8  ;;  %v12930_v18 = vcombine.low %v109_v6, %v117_v7 }
  0x62   :  { %v373_v12 = vld [vmem:[#allocation5 + $0x8c0] sm:$0xff]  ;;  %6307 = vmatpush1.bf16.msra.mxu0 %v13170_v9 }
  0x63   :  { %v125_v13 = vld [vmem:[#allocation5 + $0x100] sm:$0xff]  ;;  %v13187_v14 = vcombine.high %v365_v11, %v373_v12  ;;  %6267 = vmatprep.subr.bf16.mxu1 %v12931_v10  ;;  %v13186_v19 = vcombine.low %v365_v11, %v373_v12 }
  0x64   :  { %v133_v15 = vld [vmem:[#allocation5 + $0x140] sm:$0xff]  ;;  %6268 = vmatpush1.bf16.msra.mxu1 %v12930_v18 }
  0x65   :  { %v381_v16 = vld [vmem:[#allocation5 + $0x900] sm:$0xff]  ;;  %v12947_v20 = vcombine.high %v125_v13, %v133_v15  ;;  %6308 = vmatprep.subr.bf16.mxu0 %v13187_v14  ;;  %v12946_v26 = vcombine.low %v125_v13, %v133_v15 }
  0x66   :  { %v389_v17 = vld [vmem:[#allocation5 + $0x940] sm:$0xff]  ;;  %6309 = vmatpush1.bf16.msra.mxu0 %v13186_v19 }
  0x67   :  { %v13203_v21 = vcombine.high %v381_v16, %v389_v17  ;;  %v141_v22 = vld [vmem:[#allocation5 + $0x180] sm:$0xff]  ;;  %6269 = vmatprep.subr.bf16.mxu1 %v12947_v20  ;;  %v13202_v27 = vcombine.low %v381_v16, %v389_v17 }
  0x68   :  { %v149_v23 = vld [vmem:[#allocation5 + $0x1c0] sm:$0xff]  ;;  %6270 = vmatpush1.bf16.msra.mxu1 %v12946_v26 }
  0x69   :  { %v397_v24 = vld [vmem:[#allocation5 + $0x980] sm:$0xff]  ;;  %v12963_v28 = vcombine.high %v141_v22, %v149_v23  ;;  %6310 = vmatprep.subr.bf16.mxu0 %v13203_v21  ;;  %v12962_v34 = vcombine.low %v141_v22, %v149_v23 }
  0x6a   :  { %v405_v25 = vld [vmem:[#allocation5 + $0x9c0] sm:$0xff]  ;;  %6311 = vmatpush1.bf16.msra.mxu0 %v13202_v27 }
  0x6b   :  { %v13219_v29 = vcombine.high %v397_v24, %v405_v25  ;;  %v157_v30 = vld [vmem:[#allocation5 + $0x200] sm:$0xff]  ;;  %6271 = vmatprep.subr.bf16.mxu1 %v12963_v28  ;;  %v13218_v35 = vcombine.low %v397_v24, %v405_v25 }
  0x6c   :  { %v165_v31 = vld [vmem:[#allocation5 + $0x240] sm:$0xff]  ;;  %6272 = vmatpush1.bf16.msra.mxu1 %v12962_v34 }
  0x6d   :  { %v413_v32 = vld [vmem:[#allocation5 + $0xa00] sm:$0xff]  ;;  %v12979_v36 = vcombine.high %v157_v30, %v165_v31  ;;  %6312 = vmatprep.subr.bf16.mxu0 %v13219_v29  ;;  %v12978_v42 = vcombine.low %v157_v30, %v165_v31 }
  0x6e   :  { %v421_v33 = vld [vmem:[#allocation5 + $0xa40] sm:$0xff]  ;;  %6313 = vmatpush1.bf16.msra.mxu0 %v13218_v35 }
  0x6f   :  { %v13235_v37 = vcombine.high %v413_v32, %v421_v33  ;;  %v173_v38 = vld [vmem:[#allocation5 + $0x280] sm:$0xff]  ;;  %6273 = vmatprep.subr.bf16.mxu1 %v12979_v36  ;;  %v13234_v43 = vcombine.low %v413_v32, %v421_v33 }
  0x70   :  { %v181_v39 = vld [vmem:[#allocation5 + $0x2c0] sm:$0xff]  ;;  %6274 = vmatpush1.bf16.msra.mxu1 %v12978_v42 }
  0x71   :  { %v429_v40 = vld [vmem:[#allocation5 + $0xa80] sm:$0xff]  ;;  %v12995_v44 = vcombine.high %v173_v38, %v181_v39  ;;  %6314 = vmatprep.subr.bf16.mxu0 %v13235_v37  ;;  %v12994_v50 = vcombine.low %v173_v38, %v181_v39 }
  0x72   :  { %v437_v41 = vld [vmem:[#allocation5 + $0xac0] sm:$0xff]  ;;  %6315 = vmatpush1.bf16.msra.mxu0 %v13234_v43 }
  0x73   :  { %v13251_v45 = vcombine.high %v429_v40, %v437_v41  ;;  %v189_v46 = vld [vmem:[#allocation5 + $0x300] sm:$0xff]  ;;  %6275 = vmatprep.subr.bf16.mxu1 %v12995_v44  ;;  %v13250_v51 = vcombine.low %v429_v40, %v437_v41 }
  0x74   :  { %v197_v47 = vld [vmem:[#allocation5 + $0x340] sm:$0xff]  ;;  %6276 = vmatpush1.bf16.msra.mxu1 %v12994_v50 }
  0x75   :  { %v445_v48 = vld [vmem:[#allocation5 + $0xb00] sm:$0xff]  ;;  %v13011_v52 = vcombine.high %v189_v46, %v197_v47  ;;  %6316 = vmatprep.subr.bf16.mxu0 %v13251_v45  ;;  %v13010_v62 = vcombine.low %v189_v46, %v197_v47 }
  0x76   :  { %v453_v49 = vld [vmem:[#allocation5 + $0xb40] sm:$0xff]  ;;  %6317 = vmatpush1.bf16.msra.mxu0 %v13250_v51 }
  0x77   :  { %v15906_v53 = vld [vmem:[#allocation2] sm:$0xff]  ;;  %v13267_v55 = vcombine.high %v445_v48, %v453_v49  ;;  %6277 = vmatprep.subr.bf16.mxu1 %v13011_v52  ;;  %v13266_v63 = vcombine.low %v445_v48, %v453_v49 }
  0x78   :  { %v205_v56 = vld [vmem:[#allocation5 + $0x380] sm:$0xff]  ;;  %v15912_v58 = vcombine.high %v15906_v53, %v15906_v53  ;;  %6278 = vmatpush1.bf16.msra.mxu1 %v13010_v62 }
  0x79   :  { %v213_v57 = vld [vmem:[#allocation5 + $0x3c0] sm:$0xff]  ;;  %6318 = vmatprep.subr.bf16.mxu0 %v13267_v55 }
  0x7a   :  { %v461_v59 = vld [vmem:[#allocation5 + $0xb80] sm:$0xff]  ;;  %6297 = vmatprep.mubr.bf16.mxu1 %v15912_v58  ;;  %v13027_v0 = vcombine.high %v205_v56, %v213_v57  ;;  %v13026_v6 = vcombine.low %v205_v56, %v213_v57  ;;  %6319 = vmatpush1.bf16.msra.mxu0 %v13266_v63 }
  0x7b   :  { %v469_v60 = vld [vmem:[#allocation5 + $0xbc0] sm:$0xff] }
  0x7c   :  { %v13283_v1 = vcombine.high %v461_v59, %v469_v60  ;;  %v221_v2 = vld [vmem:[#allocation5 + $0x400] sm:$0xff]  ;;  %6279 = vmatprep.subr.bf16.mxu1 %v13027_v0  ;;  %v13282_v7 = vcombine.low %v461_v59, %v469_v60 }
  0x7d   :  { %v229_v3 = vld [vmem:[#allocation5 + $0x440] sm:$0xff]  ;;  %6280 = vmatpush1.bf16.msra.mxu1 %v13026_v6  ;;  %v94_v6 = vld [vmem:[#allocation5 + $0x8] sm:$0xff] }
  0x7e   :  { %v477_v4 = vld [vmem:[#allocation5 + $0xc00] sm:$0xff]  ;;  %v13043_v8 = vcombine.high %v221_v2, %v229_v3  ;;  %6320 = vmatprep.subr.bf16.mxu0 %v13283_v1  ;;  %v13042_v14 = vcombine.low %v221_v2, %v229_v3 }
  0x7f   :  { %v485_v5 = vld [vmem:[#allocation5 + $0xc40] sm:$0xff]  ;;  %6321 = vmatpush1.bf16.msra.mxu0 %v13282_v7  ;;  %v102_v7 = vld [vmem:[#allocation5 + $0x48] sm:$0xff] }
  0x80   :  { %v13299_v9 = vcombine.high %v477_v4, %v485_v5  ;;  %v237_v10 = vld [vmem:[#allocation5 + $0x480] sm:$0xff]  ;;  %6281 = vmatprep.subr.bf16.mxu1 %v13043_v8  ;;  %v13298_v15 = vcombine.low %v477_v4, %v485_v5 }
  0x81   :  { %v245_v11 = vld [vmem:[#allocation5 + $0x4c0] sm:$0xff]  ;;  %6282 = vmatpush1.bf16.msra.mxu1 %v13042_v14  ;;  %v110_v14 = vld [vmem:[#allocation5 + $0x88] sm:$0xff] }
  0x82   :  { %v493_v12 = vld [vmem:[#allocation5 + $0xc80] sm:$0xff]  ;;  %v13059_v16 = vcombine.high %v237_v10, %v245_v11  ;;  %6322 = vmatprep.subr.bf16.mxu0 %v13299_v9  ;;  %v13058_v22 = vcombine.low %v237_v10, %v245_v11 }
  0x83   :  { %v501_v13 = vld [vmem:[#allocation5 + $0xcc0] sm:$0xff]  ;;  %6323 = vmatpush1.bf16.msra.mxu0 %v13298_v15  ;;  %v118_v15 = vld [vmem:[#allocation5 + $0xc8] sm:$0xff] }
  0x84   :  { %v13315_v17 = vcombine.high %v493_v12, %v501_v13  ;;  %v253_v18 = vld [vmem:[#allocation5 + $0x500] sm:$0xff]  ;;  %6283 = vmatprep.subr.bf16.mxu1 %v13059_v16  ;;  %v13314_v23 = vcombine.low %v493_v12, %v501_v13  ;;  %v12917_v12 = vcombine.high %v94_v6, %v102_v7  ;;  %v15922_v16 = vcombine.low %v15906_v53, %v15906_v53  ;;  %v126_v53 = vld [vmem:[#allocation5 + $0x108] sm:$0xff] }
  0x85   :  { %v261_v19 = vld [vmem:[#allocation5 + $0x540] sm:$0xff]  ;;  %6284 = vmatpush1.bf16.msra.mxu1 %v13058_v22 }
  0x86   :  { %v509_v20 = vld [vmem:[#allocation5 + $0xd00] sm:$0xff]  ;;  %v13075_v24 = vcombine.high %v253_v18, %v261_v19  ;;  %6324 = vmatprep.subr.bf16.mxu0 %v13315_v17  ;;  %v13074_v30 = vcombine.low %v253_v18, %v261_v19  ;;  %v15924_v19 = vld [vmem:[#allocation2 + $0x10] sm:$0xff] }
  0x87   :  { %v517_v21 = vld [vmem:[#allocation5 + $0xd40] sm:$0xff]  ;;  %6325 = vmatpush1.bf16.msra.mxu0 %v13314_v23  ;;  %v12933_v23 = vcombine.high %v110_v14, %v118_v15 }
  0x88   :  { %v13331_v25 = vcombine.high %v509_v20, %v517_v21  ;;  %v269_v26 = vld [vmem:[#allocation5 + $0x580] sm:$0xff]  ;;  %6285 = vmatprep.subr.bf16.mxu1 %v13075_v24  ;;  %v13330_v31 = vcombine.low %v509_v20, %v517_v21  ;;  %v12916_v20 = vcombine.low %v94_v6, %v102_v7  ;;  %v15928_v21 = vcombine.low %v15908_v54, %v15908_v54  ;;  %v214_v7 = vld [vmem:[#allocation5 + $0x3c8] sm:$0xff] }
  0x89   :  { %v277_v27 = vld [vmem:[#allocation5 + $0x5c0] sm:$0xff]  ;;  %6286 = vmatpush1.bf16.msra.mxu1 %v13074_v30  ;;  %v12932_v54 = vcombine.low %v110_v14, %v118_v15  ;;  %v230_v15 = vld [vmem:[#allocation5 + $0x448] sm:$0xff] }
  0x8a   :  { %v525_v28 = vld [vmem:[#allocation5 + $0xd80] sm:$0xff]  ;;  %v13091_v32 = vcombine.high %v269_v26, %v277_v27  ;;  %6326 = vmatprep.subr.bf16.mxu0 %v13331_v25  ;;  %v13090_v38 = vcombine.low %v269_v26, %v277_v27  ;;  %v134_v27 = vld [vmem:[#allocation5 + $0x148] sm:$0xff] }
  0x8b   :  { %v533_v29 = vld [vmem:[#allocation5 + $0xdc0] sm:$0xff]  ;;  %6327 = vmatpush1.bf16.msra.mxu0 %v13330_v31  ;;  %v12949_v30 = vcombine.high %v126_v53, %v134_v27 }
  0x8c   :  { %v13347_v33 = vcombine.high %v525_v28, %v533_v29  ;;  %v285_v34 = vld [vmem:[#allocation5 + $0x600] sm:$0xff]  ;;  %6287 = vmatprep.subr.bf16.mxu1 %v13091_v32  ;;  %v13346_v39 = vcombine.low %v525_v28, %v533_v29  ;;  %v15932_v28 = vcombine.high %v15924_v19, %v15924_v19 }
  0x8d   :  { %v293_v35 = vld [vmem:[#allocation5 + $0x640] sm:$0xff]  ;;  %6288 = vmatpush1.bf16.msra.mxu1 %v13090_v38 }
  0x8e   :  { %v541_v36 = vld [vmem:[#allocation5 + $0xe00] sm:$0xff]  ;;  %v13107_v40 = vcombine.high %v285_v34, %v293_v35  ;;  %6328 = vmatprep.subr.bf16.mxu0 %v13347_v33  ;;  %v13106_v46 = vcombine.low %v285_v34, %v293_v35  ;;  %v142_v33 = vld [vmem:[#allocation5 + $0x188] sm:$0xff] }
  0x8f   :  { %v549_v37 = vld [vmem:[#allocation5 + $0xe40] sm:$0xff]  ;;  %6329 = vmatpush1.bf16.msra.mxu0 %v13346_v39  ;;  %v150_v35 = vld [vmem:[#allocation5 + $0x1c8] sm:$0xff] }
  0x90   :  { %v13363_v41 = vcombine.high %v541_v36, %v549_v37  ;;  %v301_v42 = vld [vmem:[#allocation5 + $0x680] sm:$0xff]  ;;  %6289 = vmatprep.subr.bf16.mxu1 %v13107_v40  ;;  %v13362_v47 = vcombine.low %v541_v36, %v549_v37  ;;  %v12948_v36 = vcombine.low %v126_v53, %v134_v27  ;;  %v12965_v38 = vcombine.high %v142_v33, %v150_v35 }
  0x91   :  { %v309_v43 = vld [vmem:[#allocation5 + $0x6c0] sm:$0xff]  ;;  %6290 = vmatpush1.bf16.msra.mxu1 %v13106_v46 }
  0x92   :  { %v557_v44 = vld [vmem:[#allocation5 + $0xe80] sm:$0xff]  ;;  %v13123_v48 = vcombine.high %v301_v42, %v309_v43  ;;  %6330 = vmatprep.subr.bf16.mxu0 %v13363_v41  ;;  %v13122_v56 = vcombine.low %v301_v42, %v309_v43  ;;  %v158_v41 = vld [vmem:[#allocation5 + $0x208] sm:$0xff] }
  0x93   :  { %v565_v45 = vld [vmem:[#allocation5 + $0xec0] sm:$0xff]  ;;  %6331 = vmatpush1.bf16.msra.mxu0 %v13362_v47  ;;  %v166_v43 = vld [vmem:[#allocation5 + $0x248] sm:$0xff] }
  0x94   :  { %v13379_v49 = vcombine.high %v557_v44, %v565_v45  ;;  %v317_v50 = vld [vmem:[#allocation5 + $0x700] sm:$0xff]  ;;  %6291 = vmatprep.subr.bf16.mxu1 %v13123_v48  ;;  %v13378_v57 = vcombine.low %v557_v44, %v565_v45  ;;  %v12964_v44 = vcombine.low %v142_v33, %v150_v35  ;;  %v12981_v46 = vcombine.high %v158_v41, %v166_v43  ;;  %v262_v33 = vld [vmem:[#allocation5 + $0x548] sm:$0xff] }
  0x95   :  { %v325_v51 = vld [vmem:[#allocation5 + $0x740] sm:$0xff]  ;;  %6292 = vmatpush1.bf16.msra.mxu1 %v13122_v56 }
  0x96   :  { %v573_v52 = vld [vmem:[#allocation5 + $0xf00] sm:$0xff]  ;;  %v13139_v59 = vcombine.high %v317_v50, %v325_v51  ;;  %6332 = vmatprep.subr.bf16.mxu0 %v13379_v49  ;;  %v13138_v2 = vcombine.low %v317_v50, %v325_v51  ;;  %v174_v49 = vld [vmem:[#allocation5 + $0x288] sm:$0xff] }
  0x97   :  { %v581_v55 = vld [vmem:[#allocation5 + $0xf40] sm:$0xff]  ;;  %6333 = vmatpush1.bf16.msra.mxu0 %v13378_v57  ;;  %v182_v51 = vld [vmem:[#allocation5 + $0x2c8] sm:$0xff] }
  0x98   :  { %v13395_v60 = vcombine.high %v573_v52, %v581_v55  ;;  %v333_v62 = vld [vmem:[#allocation5 + $0x780] sm:$0xff]  ;;  %6293 = vmatprep.subr.bf16.mxu1 %v13139_v59  ;;  %v13394_v3 = vcombine.low %v573_v52, %v581_v55  ;;  %v12980_v52 = vcombine.low %v158_v41, %v166_v43  ;;  %v12997_v56 = vcombine.high %v174_v49, %v182_v51  ;;  %v278_v41 = vld [vmem:[#allocation5 + $0x5c8] sm:$0xff] }
  0x99   :  { %v341_v63 = vld [vmem:[#allocation5 + $0x7c0] sm:$0xff]  ;;  %6294 = vmatpush1.bf16.msra.mxu1 %v13138_v2 }
  0x9a   :  { %v589_v0 = vld [vmem:[#allocation5 + $0xf80] sm:$0xff]  ;;  %v13155_v4 = vcombine.high %v333_v62, %v341_v63  ;;  %6334 = vmatprep.subr.bf16.mxu0 %v13395_v60  ;;  %v13154_v10 = vcombine.low %v333_v62, %v341_v63  ;;  %v190_v60 = vld [vmem:[#allocation5 + $0x308] sm:$0xff] }
  0x9b   :  { %v597_v1 = vld [vmem:[#allocation5 + $0xfc0] sm:$0xff]  ;;  %6335 = vmatpush1.bf16.msra.mxu0 %v13394_v3  ;;  %v198_v63 = vld [vmem:[#allocation5 + $0x348] sm:$0xff] }
  0x9c   :  { %v13411_v5 = vcombine.high %v589_v0, %v597_v1  ;;  %v605_v8 = vld [vmem:[#allocation5 + $0x1000] sm:$0xff]  ;;  %6295 = vmatprep.subr.bf16.mxu1 %v13155_v4  ;;  %v13410_v11 = vcombine.low %v589_v0, %v597_v1  ;;  %v12996_v0 = vcombine.low %v174_v49, %v182_v51  ;;  %v13013_v2 = vcombine.high %v190_v60, %v198_v63  ;;  %v294_v49 = vld [vmem:[#allocation5 + $0x648] sm:$0xff] }
  0x9d   :  { %v613_v9 = vld [vmem:[#allocation5 + $0x1040] sm:$0xff]  ;;  %6296 = vmatpush1.bf16.msra.mxu1 %v13154_v10 }
  0x9e   :  { %6336 = vmatprep.subr.bf16.mxu0 %v13411_v5  ;;  %v13427_v13 = vcombine.high %v605_v8, %v613_v9  ;;  %v621_v17 = vld [vmem:[#allocation5 + $0x1080] sm:$0xff]  ;;  %v13426_v22 = vcombine.low %v605_v8, %v613_v9  ;;  %6429 = vmatprep.subr.bf16.mxu1 %v12917_v12  ;;  %v206_v5 = vld [vmem:[#allocation5 + $0x388] sm:$0xff]  ;;  %v13012_v8 = vcombine.low %v190_v60, %v198_v63 }
  0x9f   :  { %v629_v18 = vld [vmem:[#allocation5 + $0x10c0] sm:$0xff]  ;;  %6337 = vmatpush1.bf16.msra.mxu0 %v13410_v11  ;;  %v13029_v10 = vcombine.high %v206_v5, %v214_v7  ;;  %v310_v60 = vld [vmem:[#allocation5 + $0x6c8] sm:$0xff] }
  0xa0   :  { %v637_v24 = vld [vmem:[#allocation5 + $0x1100] sm:$0xff]  ;;  %6347 = vmatprep.subr.bf16.mxu0 %v13427_v13  ;;  %v13443_v26 = vcombine.high %v621_v17, %v629_v18  ;;  %6298 = vmatmul.mubr.bf16.vlgmr.msra.gmra.mrb[0].mxu1 %v15922_v16  ;;  %v13442_v29 = vcombine.low %v621_v17, %v629_v18  ;;  %v222_v13 = vld [vmem:[#allocation5 + $0x408] sm:$0xff]  ;;  %v13028_v17 = vcombine.low %v206_v5, %v214_v7 }
  0xa1   :  { %v645_v25 = vld [vmem:[#allocation5 + $0x1140] sm:$0xff]  ;;  %6430 = vmatpush1.bf16.msra.mxu1 %v12916_v20  ;;  %6461 = vmatprep.mubr.bf16.mxu1 %v15912_v58  ;;  %v13045_v20 = vcombine.high %v222_v13, %v230_v15  ;;  %v13044_v53 = vcombine.low %v222_v13, %v230_v15  ;;  %v326_v5 = vld [vmem:[#allocation5 + $0x748] sm:$0xff] }
  0xa2   :  { %6339 = vmatmul.mubr.bf16.vlgmr.msra.gmra.mrb[0].mxu0 %v15928_v21  ;;  %6431 = vmatprep.subr.bf16.mxu1 %v12933_v23  ;;  %v653_v31 = vld [vmem:[#allocation5 + $0x1180] sm:$0xff]  ;;  %v13459_v34 = vcombine.high %v637_v24, %v645_v25  ;;  %v13458_v37 = vcombine.low %v637_v24, %v645_v25  ;;  %v238_v24 = vld [vmem:[#allocation5 + $0x488] sm:$0xff] }
  0xa3   :  { %6348 = vmatpush1.bf16.msra.mxu0 %v13426_v22  ;;  %v661_v32 = vld [vmem:[#allocation5 + $0x11c0] sm:$0xff]  ;;  %6379 = vmatprep.mubr.bf16.mxu0 %v15932_v28  ;;  %v342_v13 = vld [vmem:[#allocation5 + $0x7c8] sm:$0xff] }
  0xa4   :  { %6349 = vmatprep.subr.bf16.mxu0 %v13443_v26  ;;  %v669_v39 = vld [vmem:[#allocation5 + $0x1200] sm:$0xff]  ;;  %v13475_v42 = vcombine.high %v653_v31, %v661_v32  ;;  %v13474_v45 = vcombine.low %v653_v31, %v661_v32  ;;  %v246_v26 = vld [vmem:[#allocation5 + $0x4c8] sm:$0xff] }
  0xa5   :  { %6432 = vmatpush1.bf16.msra.mxu1 %v12932_v54  ;;  %v677_v40 = vld [vmem:[#allocation5 + $0x1240] sm:$0xff]  ;;  %v13061_v54 = vcombine.high %v238_v24, %v246_v26  ;;  %v254_v31 = vld [vmem:[#allocation5 + $0x508] sm:$0xff] }
  0xa6   :  { %6433 = vmatprep.subr.bf16.mxu1 %v12949_v30  ;;  %v685_v47 = vld [vmem:[#allocation5 + $0x1280] sm:$0xff]  ;;  %v13491_v50 = vcombine.high %v669_v39, %v677_v40  ;;  %v13490_v55 = vcombine.low %v669_v39, %v677_v40  ;;  %v270_v39 = vld [vmem:[#allocation5 + $0x588] sm:$0xff] }
  0xa7   :  { %6350 = vmatpush1.bf16.msra.mxu0 %v13442_v29  ;;  %v693_v48 = vld [vmem:[#allocation5 + $0x12c0] sm:$0xff] }
  0xa8   :  { %6351 = vmatprep.subr.bf16.mxu0 %v13459_v34  ;;  %v701_v57 = vld [vmem:[#allocation5 + $0x1300] sm:$0xff]  ;;  %v13507_v62 = vcombine.high %v685_v47, %v693_v48  ;;  %v13506_v1 = vcombine.low %v685_v47, %v693_v48  ;;  %v13060_v34 = vcombine.low %v238_v24, %v246_v26  ;;  %v286_v47 = vld [vmem:[#allocation5 + $0x608] sm:$0xff] }
  0xa9   :  { %6434 = vmatpush1.bf16.msra.mxu1 %v12948_v36  ;;  %v709_v59 = vld [vmem:[#allocation5 + $0x1340] sm:$0xff]  ;;  %v13077_v36 = vcombine.high %v254_v31, %v262_v33  ;;  %v358_v24 = vld [vmem:[#allocation5 + $0x848] sm:$0xff] }
  0xaa   :  { %6435 = vmatprep.subr.bf16.mxu1 %v12965_v38  ;;  %v717_v3 = vld [vmem:[#allocation5 + $0x1380] sm:$0xff]  ;;  %v13523_v6 = vcombine.high %v701_v57, %v709_v59  ;;  %v13522_v9 = vcombine.low %v701_v57, %v709_v59  ;;  %v302_v57 = vld [vmem:[#allocation5 + $0x688] sm:$0xff] }
  0xab   :  { %6352 = vmatpush1.bf16.msra.mxu0 %v13458_v37  ;;  %v725_v4 = vld [vmem:[#allocation5 + $0x13c0] sm:$0xff] }
  0xac   :  { %6353 = vmatprep.subr.bf16.mxu0 %v13475_v42  ;;  %v733_v11 = vld [vmem:[#allocation5 + $0x1400] sm:$0xff]  ;;  %v13539_v14 = vcombine.high %v717_v3, %v725_v4  ;;  %v13538_v18 = vcombine.low %v717_v3, %v725_v4  ;;  %v13076_v42 = vcombine.low %v254_v31, %v262_v33  ;;  %v318_v3 = vld [vmem:[#allocation5 + $0x708] sm:$0xff] }
  0xad   :  { %6436 = vmatpush1.bf16.msra.mxu1 %v12964_v44  ;;  %v741_v12 = vld [vmem:[#allocation5 + $0x1440] sm:$0xff]  ;;  %v13093_v44 = vcombine.high %v270_v39, %v278_v41 }
  0xae   :  { %6437 = vmatprep.subr.bf16.mxu1 %v12981_v46  ;;  %v749_v22 = vld [vmem:[#allocation5 + $0x1480] sm:$0xff]  ;;  %v13555_v25 = vcombine.high %v733_v11, %v741_v12  ;;  %v13554_v27 = vcombine.low %v733_v11, %v741_v12  ;;  %v334_v11 = vld [vmem:[#allocation5 + $0x788] sm:$0xff] }
  0xaf   :  { %6354 = vmatpush1.bf16.msra.mxu0 %v13474_v45  ;;  %v757_v23 = vld [vmem:[#allocation5 + $0x14c0] sm:$0xff] }
  0xb0   :  { %6355 = vmatprep.subr.bf16.mxu0 %v13491_v50  ;;  %v765_v29 = vld [vmem:[#allocation5 + $0x1500] sm:$0xff]  ;;  %v13571_v32 = vcombine.high %v749_v22, %v757_v23  ;;  %v13570_v35 = vcombine.low %v749_v22, %v757_v23  ;;  %v13092_v50 = vcombine.low %v270_v39, %v278_v41  ;;  %v350_v22 = vld [vmem:[#allocation5 + $0x808] sm:$0xff] }
  0xb1   :  { %6438 = vmatpush1.bf16.msra.mxu1 %v12980_v52  ;;  %v773_v30 = vld [vmem:[#allocation5 + $0x1540] sm:$0xff]  ;;  %v13109_v52 = vcombine.high %v286_v47, %v294_v49  ;;  %v13172_v33 = vcombine.low %v350_v22, %v358_v24  ;;  %v382_v39 = vld [vmem:[#allocation5 + $0x908] sm:$0xff] }
  0xb2   :  { %6439 = vmatprep.subr.bf16.mxu1 %v12997_v56  ;;  %v781_v37 = vld [vmem:[#allocation5 + $0x1580] sm:$0xff]  ;;  %v13587_v40 = vcombine.high %v765_v29, %v773_v30  ;;  %v13586_v43 = vcombine.low %v765_v29, %v773_v30  ;;  %v366_v29 = vld [vmem:[#allocation5 + $0x888] sm:$0xff] }
  0xb3   :  { %6356 = vmatpush1.bf16.msra.mxu0 %v13490_v55  ;;  %v789_v38 = vld [vmem:[#allocation5 + $0x15c0] sm:$0xff]  ;;  %v374_v30 = vld [vmem:[#allocation5 + $0x8c8] sm:$0xff] }
  0xb4   :  { %6357 = vmatprep.subr.bf16.mxu0 %v13507_v62  ;;  %v797_v45 = vld [vmem:[#allocation5 + $0x1600] sm:$0xff]  ;;  %v13603_v48 = vcombine.high %v781_v37, %v789_v38  ;;  %v13602_v51 = vcombine.low %v781_v37, %v789_v38  ;;  %v13108_v62 = vcombine.low %v286_v47, %v294_v49  ;;  %v390_v41 = vld [vmem:[#allocation5 + $0x948] sm:$0xff] }
  0xb5   :  { %6440 = vmatpush1.bf16.msra.mxu1 %v12996_v0  ;;  %v805_v46 = vld [vmem:[#allocation5 + $0x1640] sm:$0xff]  ;;  %v13125_v0 = vcombine.high %v302_v57, %v310_v60  ;;  %v398_v47 = vld [vmem:[#allocation5 + $0x988] sm:$0xff] }
  0xb6   :  { %6441 = vmatprep.subr.bf16.mxu1 %v13013_v2  ;;  %v813_v55 = vld [vmem:[#allocation5 + $0x1680] sm:$0xff]  ;;  %v13619_v59 = vcombine.high %v797_v45, %v805_v46  ;;  %v13618_v63 = vcombine.low %v797_v45, %v805_v46  ;;  %v406_v49 = vld [vmem:[#allocation5 + $0x9c8] sm:$0xff] }
  0xb7   :  { %6358 = vmatpush1.bf16.msra.mxu0 %v13506_v1  ;;  %v821_v56 = vld [vmem:[#allocation5 + $0x16c0] sm:$0xff] }
  0xb8   :  { %6359 = vmatprep.subr.bf16.mxu0 %v13523_v6  ;;  %v829_v1 = vld [vmem:[#allocation5 + $0x1700] sm:$0xff]  ;;  %v13635_v4 = vcombine.high %v813_v55, %v821_v56  ;;  %v13124_v6 = vcombine.low %v302_v57, %v310_v60  ;;  %v13634_v7 = vcombine.low %v813_v55, %v821_v56  ;;  %v414_v57 = vld [vmem:[#allocation5 + $0xa08] sm:$0xff] }
  0xb9   :  { %6442 = vmatpush1.bf16.msra.mxu1 %v13012_v8  ;;  %v837_v2 = vld [vmem:[#allocation5 + $0x1740] sm:$0xff]  ;;  %v13141_v8 = vcombine.high %v318_v3, %v326_v5  ;;  %v422_v60 = vld [vmem:[#allocation5 + $0xa48] sm:$0xff] }
  0xba   :  { %6443 = vmatprep.subr.bf16.mxu1 %v13029_v10  ;;  %v853_v10 = vld [vmem:[#allocation5 + $0x17c0] sm:$0xff]  ;;  %v13651_v12 = vcombine.high %v829_v1, %v837_v2  ;;  %v13650_v15 = vcombine.low %v829_v1, %v837_v2 }
  0xbb   :  { %6360 = vmatpush1.bf16.msra.mxu0 %v13522_v9  ;;  %v845_v9 = vld [vmem:[#allocation5 + $0x1780] sm:$0xff] }
  0xbc   :  { %6361 = vmatprep.subr.bf16.mxu0 %v13539_v14  ;;  %v13140_v14 = vcombine.low %v318_v3, %v326_v5  ;;  %v13667_v23 = vcombine.high %v845_v9, %v853_v10  ;;  %v13666_v26 = vcombine.low %v845_v9, %v853_v10  ;;  %v893_v37 = vld [vmem:[#allocation5 + $0x1900] sm:$0xff]  ;;  %v430_v3 = vld [vmem:[#allocation5 + $0xa88] sm:$0xff] }
  0xbd   :  { %6444 = vmatpush1.bf16.msra.mxu1 %v13028_v17  ;;  %v13157_v17 = vcombine.high %v334_v11, %v342_v13  ;;  %v901_v38 = vld [vmem:[#allocation5 + $0x1940] sm:$0xff]  ;;  %v438_v5 = vld [vmem:[#allocation5 + $0xac8] sm:$0xff] }
  0xbe   :  { %6445 = vmatprep.subr.bf16.mxu1 %v13045_v20  ;;  %v869_v20 = vld [vmem:[#allocation5 + $0x1840] sm:$0xff] }
  0xbf   :  { %6362 = vmatpush1.bf16.msra.mxu0 %v13538_v18  ;;  %v861_v18 = vld [vmem:[#allocation5 + $0x1800] sm:$0xff] }
  0xc0   :  { %6363 = vmatprep.subr.bf16.mxu0 %v13555_v25  ;;  %v13156_v25 = vcombine.low %v334_v11, %v342_v13  ;;  %v13683_v31 = vcombine.high %v861_v18, %v869_v20  ;;  %v909_v45 = vld [vmem:[#allocation5 + $0x1980] sm:$0xff]  ;;  %v446_v11 = vld [vmem:[#allocation5 + $0xb08] sm:$0xff] }
  0xc1   :  { %6446 = vmatpush1.bf16.msra.mxu1 %v13044_v53  ;;  %v13173_v53 = vcombine.high %v350_v22, %v358_v24  ;;  %v917_v46 = vld [vmem:[#allocation5 + $0x19c0] sm:$0xff]  ;;  %v454_v13 = vld [vmem:[#allocation5 + $0xb48] sm:$0xff] }
  0xc2   :  { %6447 = vmatprep.subr.bf16.mxu1 %v13061_v54  ;;  %v885_v54 = vld [vmem:[#allocation5 + $0x18c0] sm:$0xff]  ;;  %v462_v22 = vld [vmem:[#allocation5 + $0xb88] sm:$0xff] }
  0xc3   :  { %6364 = vmatpush1.bf16.msra.mxu0 %v13554_v27  ;;  %v877_v27 = vld [vmem:[#allocation5 + $0x1880] sm:$0xff]  ;;  %v470_v24 = vld [vmem:[#allocation5 + $0xbc8] sm:$0xff] }
  0xc4   :  { %6365 = vmatprep.subr.bf16.mxu0 %v13571_v32  ;;  %v15938_v32 = vld [vmem:[#allocation2 + $0x18] sm:$0xff]  ;;  %v925_v55 = vld [vmem:[#allocation5 + $0x1a00] sm:$0xff] }
  0xc5   :  { %6448 = vmatpush1.bf16.msra.mxu1 %v13060_v34  ;;  %v15942_v34 = vcombine.low %v15924_v19, %v15924_v19  ;;  %v13188_v19 = vcombine.low %v366_v29, %v374_v30  ;;  %v933_v56 = vld [vmem:[#allocation5 + $0x1a40] sm:$0xff] }
  0xc6   :  { %6449 = vmatprep.subr.bf16.mxu1 %v13077_v36  ;;  %v13189_v36 = vcombine.high %v366_v29, %v374_v30  ;;  %v941_v1 = vld [vmem:[#allocation5 + $0x1a80] sm:$0xff]  ;;  %v478_v29 = vld [vmem:[#allocation5 + $0xc08] sm:$0xff] }
  0xc7   :  { %6366 = vmatpush1.bf16.msra.mxu0 %v13570_v35  ;;  %v13682_v35 = vcombine.low %v861_v18, %v869_v20  ;;  %v949_v2 = vld [vmem:[#allocation5 + $0x1ac0] sm:$0xff] }
  0xc8   :  { %6367 = vmatprep.subr.bf16.mxu0 %v13587_v40  ;;  %v13699_v40 = vcombine.high %v877_v27, %v885_v54  ;;  %v957_v9 = vld [vmem:[#allocation5 + $0x1b00] sm:$0xff] }
  0xc9   :  { %6450 = vmatpush1.bf16.msra.mxu1 %v13076_v42  ;;  %v15946_v42 = vcombine.high %v15938_v32, %v15938_v32  ;;  %v965_v10 = vld [vmem:[#allocation5 + $0x1b40] sm:$0xff] }
  0xca   :  { %6451 = vmatprep.subr.bf16.mxu1 %v13093_v44  ;;  %v13205_v44 = vcombine.high %v382_v39, %v390_v41  ;;  %v973_v18 = vld [vmem:[#allocation5 + $0x1b80] sm:$0xff] }
  0xcb   :  { %6368 = vmatpush1.bf16.msra.mxu0 %v13586_v43  ;;  %v13698_v43 = vcombine.low %v877_v27, %v885_v54  ;;  %v981_v20 = vld [vmem:[#allocation5 + $0x1bc0] sm:$0xff] }
  0xcc   :  { %6369 = vmatprep.subr.bf16.mxu0 %v13603_v48  ;;  %v13715_v48 = vcombine.high %v893_v37, %v901_v38  ;;  %v989_v27 = vld [vmem:[#allocation5 + $0x1c00] sm:$0xff]  ;;  %v13795_v30 = vcombine.high %v973_v18, %v981_v20 }
  0xcd   :  { %6452 = vmatpush1.bf16.msra.mxu1 %v13092_v50  ;;  %v13204_v50 = vcombine.low %v382_v39, %v390_v41  ;;  %v997_v54 = vld [vmem:[#allocation5 + $0x1c40] sm:$0xff]  ;;  %v494_v39 = vld [vmem:[#allocation5 + $0xc88] sm:$0xff] }
  0xce   :  { %6453 = vmatprep.subr.bf16.mxu1 %v13109_v52  ;;  %v13221_v52 = vcombine.high %v398_v47, %v406_v49  ;;  %v502_v41 = vld [vmem:[#allocation5 + $0xcc8] sm:$0xff] }
  0xcf   :  { %6370 = vmatpush1.bf16.msra.mxu0 %v13602_v51  ;;  %v13714_v51 = vcombine.low %v893_v37, %v901_v38  ;;  %v1005_v37 = vld [vmem:[#allocation5 + $0x1c80] sm:$0xff] }
  0xd0   :  { %6371 = vmatprep.subr.bf16.mxu0 %v13619_v59  ;;  %v13731_v59 = vcombine.high %v909_v45, %v917_v46  ;;  %v1013_v38 = vld [vmem:[#allocation5 + $0x1cc0] sm:$0xff] }
  0xd1   :  { %6454 = vmatpush1.bf16.msra.mxu1 %v13108_v62  ;;  %v13220_v62 = vcombine.low %v398_v47, %v406_v49  ;;  %v510_v47 = vld [vmem:[#allocation5 + $0xd08] sm:$0xff] }
  0xd2   :  { %6455 = vmatprep.subr.bf16.mxu1 %v13125_v0  ;;  %v13237_v0 = vcombine.high %v414_v57, %v422_v60  ;;  %v518_v49 = vld [vmem:[#allocation5 + $0xd48] sm:$0xff] }
  0xd3   :  { %6372 = vmatpush1.bf16.msra.mxu0 %v13618_v63  ;;  %v13730_v63 = vcombine.low %v909_v45, %v917_v46  ;;  %v1021_v45 = vld [vmem:[#allocation5 + $0x1d00] sm:$0xff] }
  0xd4   :  { %6373 = vmatprep.subr.bf16.mxu0 %v13635_v4  ;;  %v13747_v4 = vcombine.high %v925_v55, %v933_v56  ;;  %v1029_v46 = vld [vmem:[#allocation5 + $0x1d40] sm:$0xff] }
  0xd5   :  { %6456 = vmatpush1.bf16.msra.mxu1 %v13124_v6  ;;  %v13236_v6 = vcombine.low %v414_v57, %v422_v60  ;;  %v526_v57 = vld [vmem:[#allocation5 + $0xd88] sm:$0xff] }
  0xd6   :  { %6457 = vmatprep.subr.bf16.mxu1 %v13141_v8  ;;  %v13253_v8 = vcombine.high %v430_v3, %v438_v5  ;;  %v534_v60 = vld [vmem:[#allocation5 + $0xdc8] sm:$0xff] }
  0xd7   :  { %6374 = vmatpush1.bf16.msra.mxu0 %v13634_v7  ;;  %v13746_v7 = vcombine.low %v925_v55, %v933_v56  ;;  %v1037_v55 = vld [vmem:[#allocation5 + $0x1d80] sm:$0xff] }
  0xd8   :  { %6375 = vmatprep.subr.bf16.mxu0 %v13651_v12  ;;  %v13763_v12 = vcombine.high %v941_v1, %v949_v2  ;;  %v1045_v56 = vld [vmem:[#allocation5 + $0x1dc0] sm:$0xff] }
  0xd9   :  { %6458 = vmatpush1.bf16.msra.mxu1 %v13140_v14  ;;  %v13252_v14 = vcombine.low %v430_v3, %v438_v5  ;;  %v542_v3 = vld [vmem:[#allocation5 + $0xe08] sm:$0xff] }
  0xda   :  { %6459 = vmatprep.subr.bf16.mxu1 %v13157_v17  ;;  %v13269_v17 = vcombine.high %v446_v11, %v454_v13  ;;  %v550_v5 = vld [vmem:[#allocation5 + $0xe48] sm:$0xff] }
  0xdb   :  { %6376 = vmatpush1.bf16.msra.mxu0 %v13650_v15  ;;  %v13762_v15 = vcombine.low %v941_v1, %v949_v2  ;;  %v1053_v1 = vld [vmem:[#allocation5 + $0x1e00] sm:$0xff] }
  0xdc   :  { %6377 = vmatprep.subr.bf16.mxu0 %v13667_v23  ;;  %v13779_v23 = vcombine.high %v957_v9, %v965_v10  ;;  %v1061_v2 = vld [vmem:[#allocation5 + $0x1e40] sm:$0xff] }
  0xdd   :  { %6460 = vmatpush1.bf16.msra.mxu1 %v13156_v25  ;;  %v13268_v25 = vcombine.low %v446_v11, %v454_v13  ;;  %v558_v11 = vld [vmem:[#allocation5 + $0xe88] sm:$0xff] }
  0xde   :  { %6470 = vmatprep.subr.bf16.mxu1 %v13173_v53  ;;  %v13285_v53 = vcombine.high %v462_v22, %v470_v24  ;;  %v566_v13 = vld [vmem:[#allocation5 + $0xec8] sm:$0xff] }
  0xdf   :  { %6378 = vmatpush1.bf16.msra.mxu0 %v13666_v26  ;;  %v13778_v26 = vcombine.low %v957_v9, %v965_v10  ;;  %v1069_v9 = vld [vmem:[#allocation5 + $0x1e80] sm:$0xff] }
  0xe0   :  { %6388 = vmatprep.subr.bf16.mxu0 %v13683_v31  ;;  %6462 = vmatmul.mubr.bf16.vlgmr.msra.gmra.mrb[4].mxu1 %v15922_v16  ;;  %v486_v31 = vld [vmem:[#allocation5 + $0xc48] sm:$0xff]  ;;  %v1077_v10 = vld [vmem:[#allocation5 + $0x1ec0] sm:$0xff] }
  0xe1   :  { %6471 = vmatpush1.bf16.msra.mxu1 %v13172_v33  ;;  %6502 = vmatprep.mubr.bf16.mxu1 %v15916_v61  ;;  %v13284_v33 = vcombine.low %v462_v22, %v470_v24  ;;  %v574_v22 = vld [vmem:[#allocation5 + $0xf08] sm:$0xff] }
  0xe2   :  { %6380 = vmatmul.mubr.bf16.vlgmr.msra.gmra.mrb[0].mxu0 %v15942_v34  ;;  %6472 = vmatprep.subr.bf16.mxu1 %v13189_v36  ;;  %v13301_v36 = vcombine.high %v478_v29, %v486_v31  ;;  %v582_v24 = vld [vmem:[#allocation5 + $0xf48] sm:$0xff] }
  0xe3   :  { %6389 = vmatpush1.bf16.msra.mxu0 %v13682_v35  ;;  %6420 = vmatprep.mubr.bf16.mxu0 %v15946_v42  ;;  %v13794_v35 = vcombine.low %v973_v18, %v981_v20  ;;  %v1085_v18 = vld [vmem:[#allocation5 + $0x1f00] sm:$0xff] }
  0xe4   :  { %6390 = vmatprep.subr.bf16.mxu0 %v13699_v40  ;;  %v13811_v40 = vcombine.high %v989_v27, %v997_v54  ;;  %v1093_v20 = vld [vmem:[#allocation5 + $0x1f40] sm:$0xff] }
  0xe5   :  { %6473 = vmatpush1.bf16.msra.mxu1 %v13188_v19  ;;  %v13300_v19 = vcombine.low %v478_v29, %v486_v31  ;;  %v590_v29 = vld [vmem:[#allocation5 + $0xf88] sm:$0xff] }
  0xe6   :  { %6474 = vmatprep.subr.bf16.mxu1 %v13205_v44  ;;  %v13317_v44 = vcombine.high %v494_v39, %v502_v41  ;;  %v598_v31 = vld [vmem:[#allocation5 + $0xfc8] sm:$0xff] }
  0xe7   :  { %6391 = vmatpush1.bf16.msra.mxu0 %v13698_v43  ;;  %v13810_v43 = vcombine.low %v989_v27, %v997_v54  ;;  %v1101_v27 = vld [vmem:[#allocation5 + $0x1f80] sm:$0xff] }
  0xe8   :  { %6392 = vmatprep.subr.bf16.mxu0 %v13715_v48  ;;  %v13827_v48 = vcombine.high %v1005_v37, %v1013_v38  ;;  %v1109_v54 = vld [vmem:[#allocation5 + $0x1fc0] sm:$0xff] }
  0xe9   :  { %6475 = vmatpush1.bf16.msra.mxu1 %v13204_v50  ;;  %v13316_v50 = vcombine.low %v494_v39, %v502_v41  ;;  %v95_v39 = vld [vmem:[#allocation5 + $0x10] sm:$0xff] }
  0xea   :  { %6476 = vmatprep.subr.bf16.mxu1 %v13221_v52  ;;  %v13333_v52 = vcombine.high %v510_v47, %v518_v49  ;;  %v103_v41 = vld [vmem:[#allocation5 + $0x50] sm:$0xff] }
  0xeb   :  { %6393 = vmatpush1.bf16.msra.mxu0 %v13714_v51  ;;  %v13826_v51 = vcombine.low %v1005_v37, %v1013_v38  ;;  %v606_v37 = vld [vmem:[#allocation5 + $0x1008] sm:$0xff] }
  0xec   :  { %6394 = vmatprep.subr.bf16.mxu0 %v13731_v59  ;;  %v13843_v59 = vcombine.high %v1021_v45, %v1029_v46  ;;  %v614_v38 = vld [vmem:[#allocation5 + $0x1048] sm:$0xff] }
  0xed   :  { %6477 = vmatpush1.bf16.msra.mxu1 %v13220_v62  ;;  %v13332_v62 = vcombine.low %v510_v47, %v518_v49  ;;  %v111_v47 = vld [vmem:[#allocation5 + $0x90] sm:$0xff] }
  0xee   :  { %6478 = vmatprep.subr.bf16.mxu1 %v13237_v0  ;;  %v13349_v0 = vcombine.high %v526_v57, %v534_v60  ;;  %v119_v49 = vld [vmem:[#allocation5 + $0xd0] sm:$0xff] }
  0xef   :  { %6395 = vmatpush1.bf16.msra.mxu0 %v13730_v63  ;;  %v13842_v63 = vcombine.low %v1021_v45, %v1029_v46  ;;  %v622_v45 = vld [vmem:[#allocation5 + $0x1088] sm:$0xff] }
  0xf0   :  { %6396 = vmatprep.subr.bf16.mxu0 %v13747_v4  ;;  %v13859_v4 = vcombine.high %v1037_v55, %v1045_v56  ;;  %v630_v46 = vld [vmem:[#allocation5 + $0x10c8] sm:$0xff] }
  0xf1   :  { %6479 = vmatpush1.bf16.msra.mxu1 %v13236_v6  ;;  %v13348_v6 = vcombine.low %v526_v57, %v534_v60  ;;  %v646_v57 = vld [vmem:[#allocation5 + $0x1148] sm:$0xff]  ;;  %v12935_v60 = vcombine.high %v111_v47, %v119_v49 }
  0xf2   :  { %6480 = vmatprep.subr.bf16.mxu1 %v13253_v8  ;;  %v13365_v8 = vcombine.high %v542_v3, %v550_v5 }
  0xf3   :  { %6397 = vmatpush1.bf16.msra.mxu0 %v13746_v7  ;;  %v13858_v7 = vcombine.low %v1037_v55, %v1045_v56  ;;  %v13445_v55 = vcombine.high %v622_v45, %v630_v46  ;;  %v638_v56 = vld [vmem:[#allocation5 + $0x1108] sm:$0xff] }
  0xf4   :  { %6398 = vmatprep.subr.bf16.mxu0 %v13763_v12  ;;  %v13875_v12 = vcombine.high %v1053_v1, %v1061_v2 }
  0xf5   :  { %6481 = vmatpush1.bf16.msra.mxu1 %v13252_v14  ;;  %v13364_v14 = vcombine.low %v542_v3, %v550_v5  ;;  %v143_v3 = vld [vmem:[#allocation5 + $0x190] sm:$0xff] }
  0xf6   :  { %6482 = vmatprep.subr.bf16.mxu1 %v13269_v17  ;;  %v13381_v17 = vcombine.high %v558_v11, %v566_v13  ;;  %v151_v5 = vld [vmem:[#allocation5 + $0x1d0] sm:$0xff] }
  0xf7   :  { %6399 = vmatpush1.bf16.msra.mxu0 %v13762_v15  ;;  %v13874_v15 = vcombine.low %v1053_v1, %v1061_v2  ;;  %v654_v1 = vld [vmem:[#allocation5 + $0x1188] sm:$0xff] }
  0xf8   :  { %6400 = vmatprep.subr.bf16.mxu0 %v13779_v23  ;;  %v13891_v23 = vcombine.high %v1069_v9, %v1077_v10  ;;  %v662_v2 = vld [vmem:[#allocation5 + $0x11c8] sm:$0xff] }
  0xf9   :  { %6483 = vmatpush1.bf16.msra.mxu1 %v13268_v25  ;;  %v13380_v25 = vcombine.low %v558_v11, %v566_v13  ;;  %v159_v11 = vld [vmem:[#allocation5 + $0x210] sm:$0xff] }
  0xfa   :  { %6484 = vmatprep.subr.bf16.mxu1 %v13285_v53  ;;  %v13397_v53 = vcombine.high %v574_v22, %v582_v24  ;;  %v167_v13 = vld [vmem:[#allocation5 + $0x250] sm:$0xff] }
  0xfb   :  { %6401 = vmatpush1.bf16.msra.mxu0 %v13778_v26  ;;  %v13890_v26 = vcombine.low %v1069_v9, %v1077_v10  ;;  %v670_v9 = vld [vmem:[#allocation5 + $0x1208] sm:$0xff] }
  0xfc   :  { %6402 = vmatprep.subr.bf16.mxu0 %v13795_v30  ;;  %v13907_v30 = vcombine.high %v1085_v18, %v1093_v20  ;;  %v678_v10 = vld [vmem:[#allocation5 + $0x1248] sm:$0xff] }
  0xfd   :  { %6485 = vmatpush1.bf16.msra.mxu1 %v13284_v33  ;;  %v13396_v33 = vcombine.low %v574_v22, %v582_v24  ;;  %v175_v22 = vld [vmem:[#allocation5 + $0x290] sm:$0xff] }
  0xfe   :  { %6486 = vmatprep.subr.bf16.mxu1 %v13301_v36  ;;  %v13413_v36 = vcombine.high %v590_v29, %v598_v31  ;;  %v183_v24 = vld [vmem:[#allocation5 + $0x2d0] sm:$0xff] }
  0xff   :  { %6403 = vmatpush1.bf16.msra.mxu0 %v13794_v35  ;;  %v13906_v35 = vcombine.low %v1085_v18, %v1093_v20  ;;  %v686_v18 = vld [vmem:[#allocation5 + $0x1288] sm:$0xff] }
 0x100   :  { %6404 = vmatprep.subr.bf16.mxu0 %v13811_v40  ;;  %v13923_v40 = vcombine.high %v1101_v27, %v1109_v54  ;;  %v694_v20 = vld [vmem:[#allocation5 + $0x12c8] sm:$0xff] }
 0x101   :  { %6487 = vmatpush1.bf16.msra.mxu1 %v13300_v19  ;;  %v13412_v19 = vcombine.low %v590_v29, %v598_v31  ;;  %v191_v29 = vld [vmem:[#allocation5 + $0x310] sm:$0xff] }
 0x102   :  { %6488 = vmatprep.subr.bf16.mxu1 %v13317_v44  ;;  %v13429_v44 = vcombine.high %v606_v37, %v614_v38  ;;  %v199_v31 = vld [vmem:[#allocation5 + $0x350] sm:$0xff] }
 0x103   :  { %6405 = vmatpush1.bf16.msra.mxu0 %v13810_v43  ;;  %v13922_v43 = vcombine.low %v1101_v27, %v1109_v54  ;;  %v702_v27 = vld [vmem:[#allocation5 + $0x1308] sm:$0xff] }
 0x104   :  { %6406 = vmatprep.subr.bf16.mxu0 %v13827_v48  ;;  %v12919_v48 = vcombine.high %v95_v39, %v103_v41  ;;  %v710_v54 = vld [vmem:[#allocation5 + $0x1348] sm:$0xff] }
 0x105   :  { %6489 = vmatpush1.bf16.msra.mxu1 %v13316_v50  ;;  %v15954_v50 = vcombine.low %v15938_v32, %v15938_v32  ;;  %v12934_v32 = vcombine.low %v111_v47, %v119_v49  ;;  %v223_v47 = vld [vmem:[#allocation5 + $0x410] sm:$0xff] }
 0x106   :  { %6490 = vmatprep.subr.bf16.mxu1 %v13333_v52  ;;  %v12918_v52 = vcombine.low %v95_v39, %v103_v41  ;;  %v207_v39 = vld [vmem:[#allocation5 + $0x390] sm:$0xff] }
 0x107   :  { %6407 = vmatpush1.bf16.msra.mxu0 %v13826_v51  ;;  %v13428_v51 = vcombine.low %v606_v37, %v614_v38  ;;  %v718_v37 = vld [vmem:[#allocation5 + $0x1388] sm:$0xff]  ;;  %v215_v41 = vld [vmem:[#allocation5 + $0x3d0] sm:$0xff] }
 0x108   :  { %6408 = vmatprep.subr.bf16.mxu0 %v13843_v59  ;;  %v127_v59 = vld [vmem:[#allocation5 + $0x110] sm:$0xff]  ;;  %v726_v38 = vld [vmem:[#allocation5 + $0x13c8] sm:$0xff] }
 0x109   :  { %6491 = vmatpush1.bf16.msra.mxu1 %v13332_v62  ;;  %v135_v62 = vld [vmem:[#allocation5 + $0x150] sm:$0xff] }
 0x10a   :  { %6492 = vmatprep.subr.bf16.mxu1 %v13349_v0  ;;  %v13461_v0 = vcombine.high %v638_v56, %v646_v57  ;;  %v231_v49 = vld [vmem:[#allocation5 + $0x450] sm:$0xff] }
 0x10b   :  { %6409 = vmatpush1.bf16.msra.mxu0 %v13842_v63  ;;  %v13444_v63 = vcombine.low %v622_v45, %v630_v46  ;;  %v734_v45 = vld [vmem:[#allocation5 + $0x1408] sm:$0xff] }
 0x10c   :  { %6410 = vmatprep.subr.bf16.mxu0 %v13859_v4  ;;  %v12951_v4 = vcombine.high %v127_v59, %v135_v62  ;;  %v742_v46 = vld [vmem:[#allocation5 + $0x1448] sm:$0xff] }
 0x10d   :  { %6493 = vmatpush1.bf16.msra.mxu1 %v13348_v6  ;;  %v13460_v6 = vcombine.low %v638_v56, %v646_v57  ;;  %v750_v56 = vld [vmem:[#allocation5 + $0x1488] sm:$0xff] }
 0x10e   :  { %6494 = vmatprep.subr.bf16.mxu1 %v13365_v8  ;;  %v13477_v8 = vcombine.high %v654_v1, %v662_v2  ;;  %v758_v57 = vld [vmem:[#allocation5 + $0x14c8] sm:$0xff] }
 0x10f   :  { %6411 = vmatpush1.bf16.msra.mxu0 %v13858_v7  ;;  %v12950_v7 = vcombine.low %v127_v59, %v135_v62  ;;  %v239_v59 = vld [vmem:[#allocation5 + $0x490] sm:$0xff] }
 0x110   :  { %6412 = vmatprep.subr.bf16.mxu0 %v13875_v12  ;;  %v12967_v12 = vcombine.high %v143_v3, %v151_v5  ;;  %v247_v62 = vld [vmem:[#allocation5 + $0x4d0] sm:$0xff] }
 0x111   :  { %6495 = vmatpush1.bf16.msra.mxu1 %v13364_v14  ;;  %v13476_v14 = vcombine.low %v654_v1, %v662_v2  ;;  %v766_v1 = vld [vmem:[#allocation5 + $0x1508] sm:$0xff] }
 0x112   :  { %6496 = vmatprep.subr.bf16.mxu1 %v13381_v17  ;;  %v13493_v17 = vcombine.high %v670_v9, %v678_v10  ;;  %v774_v2 = vld [vmem:[#allocation5 + $0x1548] sm:$0xff] }
 0x113   :  { %6413 = vmatpush1.bf16.msra.mxu0 %v13874_v15  ;;  %v12966_v15 = vcombine.low %v143_v3, %v151_v5  ;;  %v255_v3 = vld [vmem:[#allocation5 + $0x510] sm:$0xff] }
 0x114   :  { %6414 = vmatprep.subr.bf16.mxu0 %v13891_v23  ;;  %v12983_v23 = vcombine.high %v159_v11, %v167_v13  ;;  %v263_v5 = vld [vmem:[#allocation5 + $0x550] sm:$0xff] }
 0x115   :  { %6497 = vmatpush1.bf16.msra.mxu1 %v13380_v25  ;;  %v13492_v25 = vcombine.low %v670_v9, %v678_v10  ;;  %v782_v9 = vld [vmem:[#allocation5 + $0x1588] sm:$0xff] }
 0x116   :  { %6498 = vmatprep.subr.bf16.mxu1 %v13397_v53  ;;  %v13509_v53 = vcombine.high %v686_v18, %v694_v20  ;;  %v790_v10 = vld [vmem:[#allocation5 + $0x15c8] sm:$0xff] }
 0x117   :  { %6415 = vmatpush1.bf16.msra.mxu0 %v13890_v26  ;;  %v12982_v26 = vcombine.low %v159_v11, %v167_v13  ;;  %v271_v11 = vld [vmem:[#allocation5 + $0x590] sm:$0xff] }
 0x118   :  { %6416 = vmatprep.subr.bf16.mxu0 %v13907_v30  ;;  %v12999_v30 = vcombine.high %v175_v22, %v183_v24  ;;  %v279_v13 = vld [vmem:[#allocation5 + $0x5d0] sm:$0xff] }
 0x119   :  { %6499 = vmatpush1.bf16.msra.mxu1 %v13396_v33  ;;  %v13508_v33 = vcombine.low %v686_v18, %v694_v20  ;;  %v798_v18 = vld [vmem:[#allocation5 + $0x1608] sm:$0xff] }
 0x11a   :  { %6500 = vmatprep.subr.bf16.mxu1 %v13413_v36  ;;  %v13525_v36 = vcombine.high %v702_v27, %v710_v54  ;;  %v806_v20 = vld [vmem:[#allocation5 + $0x1648] sm:$0xff] }
 0x11b   :  { %6417 = vmatpush1.bf16.msra.mxu0 %v13906_v35  ;;  %v12998_v35 = vcombine.low %v175_v22, %v183_v24  ;;  %v287_v22 = vld [vmem:[#allocation5 + $0x610] sm:$0xff] }
 0x11c   :  { %6418 = vmatprep.subr.bf16.mxu0 %v13923_v40  ;;  %v13015_v40 = vcombine.high %v191_v29, %v199_v31  ;;  %v295_v24 = vld [vmem:[#allocation5 + $0x650] sm:$0xff] }
 0x11d   :  { %6501 = vmatpush1.bf16.msra.mxu1 %v13412_v19  ;;  %v13524_v19 = vcombine.low %v702_v27, %v710_v54  ;;  %v814_v27 = vld [vmem:[#allocation5 + $0x1688] sm:$0xff] }
 0x11e   :  { %6511 = vmatprep.subr.bf16.mxu1 %v13429_v44  ;;  %v13541_v44 = vcombine.high %v718_v37, %v726_v38  ;;  %v822_v54 = vld [vmem:[#allocation5 + $0x16c8] sm:$0xff] }
 0x11f   :  { %6419 = vmatpush1.bf16.msra.mxu0 %v13922_v43  ;;  %v13014_v43 = vcombine.low %v191_v29, %v199_v31  ;;  %v303_v29 = vld [vmem:[#allocation5 + $0x690] sm:$0xff] }
 0x120   :  { %6593 = vmatprep.subr.bf16.mxu0 %v12919_v48  ;;  %6503 = vmatmul.mubr.bf16.vlgmr.msra.gmra.mrb[4].mxu1 %v15928_v21  ;;  %v13031_v48 = vcombine.high %v207_v39, %v215_v41  ;;  %v311_v31 = vld [vmem:[#allocation5 + $0x6d0] sm:$0xff] }
 0x121   :  { %6512 = vmatpush1.bf16.msra.mxu1 %v13428_v51  ;;  %6543 = vmatprep.mubr.bf16.mxu1 %v15932_v28  ;;  %v13540_v51 = vcombine.low %v718_v37, %v726_v38  ;;  %v830_v37 = vld [vmem:[#allocation5 + $0x1708] sm:$0xff] }
 0x122   :  { %6421 = vmatmul.mubr.bf16.vlgmr.msra.gmra.mrb[0].mxu0 %v15954_v50  ;;  %6513 = vmatprep.subr.bf16.mxu1 %v13445_v55  ;;  %v13557_v55 = vcombine.high %v734_v45, %v742_v46  ;;  %v838_v38 = vld [vmem:[#allocation5 + $0x1748] sm:$0xff] }
 0x123   :  { %6594 = vmatpush1.bf16.msra.mxu0 %v12918_v52  ;;  %6625 = vmatprep.mubr.bf16.mxu0 %v15912_v58  ;;  %v13030_v52 = vcombine.low %v207_v39, %v215_v41  ;;  %v319_v39 = vld [vmem:[#allocation5 + $0x710] sm:$0xff] }
 0x124   :  { %6595 = vmatprep.subr.bf16.mxu0 %v12935_v60  ;;  %v13047_v60 = vcombine.high %v223_v47, %v231_v49  ;;  %v327_v41 = vld [vmem:[#allocation5 + $0x750] sm:$0xff] }
 0x125   :  { %6514 = vmatpush1.bf16.msra.mxu1 %v13444_v63  ;;  %v13556_v63 = vcombine.low %v734_v45, %v742_v46  ;;  %v846_v45 = vld [vmem:[#allocation5 + $0x1788] sm:$0xff] }
 0x126   :  { %6515 = vmatprep.subr.bf16.mxu1 %v13461_v0  ;;  %v13573_v0 = vcombine.high %v750_v56, %v758_v57  ;;  %v854_v46 = vld [vmem:[#allocation5 + $0x17c8] sm:$0xff] }
 0x127   :  { %6596 = vmatpush1.bf16.msra.mxu0 %v12934_v32  ;;  %v13046_v32 = vcombine.low %v223_v47, %v231_v49  ;;  %v335_v47 = vld [vmem:[#allocation5 + $0x790] sm:$0xff] }
 0x128   :  { %6597 = vmatprep.subr.bf16.mxu0 %v12951_v4  ;;  %v13063_v4 = vcombine.high %v239_v59, %v247_v62  ;;  %v343_v49 = vld [vmem:[#allocation5 + $0x7d0] sm:$0xff] }
 0x129   :  { %6516 = vmatpush1.bf16.msra.mxu1 %v13460_v6  ;;  %v13572_v6 = vcombine.low %v750_v56, %v758_v57  ;;  %v862_v56 = vld [vmem:[#allocation5 + $0x1808] sm:$0xff] }
 0x12a   :  { %6517 = vmatprep.subr.bf16.mxu1 %v13477_v8  ;;  %v13589_v8 = vcombine.high %v766_v1, %v774_v2  ;;  %v870_v57 = vld [vmem:[#allocation5 + $0x1848] sm:$0xff] }
 0x12b   :  { %6598 = vmatpush1.bf16.msra.mxu0 %v12950_v7  ;;  %v13062_v7 = vcombine.low %v239_v59, %v247_v62  ;;  %v351_v59 = vld [vmem:[#allocation5 + $0x810] sm:$0xff] }
 0x12c   :  { %6599 = vmatprep.subr.bf16.mxu0 %v12967_v12  ;;  %v13079_v12 = vcombine.high %v255_v3, %v263_v5  ;;  %v359_v62 = vld [vmem:[#allocation5 + $0x850] sm:$0xff] }
 0x12d   :  { %6518 = vmatpush1.bf16.msra.mxu1 %v13476_v14  ;;  %v13588_v14 = vcombine.low %v766_v1, %v774_v2  ;;  %v878_v1 = vld [vmem:[#allocation5 + $0x1888] sm:$0xff] }
 0x12e   :  { %6519 = vmatprep.subr.bf16.mxu1 %v13493_v17  ;;  %v13605_v17 = vcombine.high %v782_v9, %v790_v10  ;;  %v886_v2 = vld [vmem:[#allocation5 + $0x18c8] sm:$0xff] }
 0x12f   :  { %6600 = vmatpush1.bf16.msra.mxu0 %v12966_v15  ;;  %v13078_v15 = vcombine.low %v255_v3, %v263_v5  ;;  %v367_v3 = vld [vmem:[#allocation5 + $0x890] sm:$0xff] }
 0x130   :  { %6601 = vmatprep.subr.bf16.mxu0 %v12983_v23  ;;  %v13095_v23 = vcombine.high %v271_v11, %v279_v13  ;;  %v375_v5 = vld [vmem:[#allocation5 + $0x8d0] sm:$0xff] }
 0x131   :  { %6520 = vmatpush1.bf16.msra.mxu1 %v13492_v25  ;;  %v13604_v25 = vcombine.low %v782_v9, %v790_v10  ;;  %v894_v9 = vld [vmem:[#allocation5 + $0x1908] sm:$0xff] }
 0x132   :  { %6521 = vmatprep.subr.bf16.mxu1 %v13509_v53  ;;  %v13621_v53 = vcombine.high %v798_v18, %v806_v20  ;;  %v902_v10 = vld [vmem:[#allocation5 + $0x1948] sm:$0xff] }
 0x133   :  { %6602 = vmatpush1.bf16.msra.mxu0 %v12982_v26  ;;  %v13094_v26 = vcombine.low %v271_v11, %v279_v13  ;;  %v383_v11 = vld [vmem:[#allocation5 + $0x910] sm:$0xff] }
 0x134   :  { %6603 = vmatprep.subr.bf16.mxu0 %v12999_v30  ;;  %v13111_v30 = vcombine.high %v287_v22, %v295_v24  ;;  %v391_v13 = vld [vmem:[#allocation5 + $0x950] sm:$0xff] }
 0x135   :  { %6522 = vmatpush1.bf16.msra.mxu1 %v13508_v33  ;;  %v13620_v33 = vcombine.low %v798_v18, %v806_v20  ;;  %v910_v18 = vld [vmem:[#allocation5 + $0x1988] sm:$0xff] }
 0x136   :  { %6523 = vmatprep.subr.bf16.mxu1 %v13525_v36  ;;  %v13637_v36 = vcombine.high %v814_v27, %v822_v54  ;;  %v918_v20 = vld [vmem:[#allocation5 + $0x19c8] sm:$0xff] }
 0x137   :  { %6604 = vmatpush1.bf16.msra.mxu0 %v12998_v35  ;;  %v13110_v35 = vcombine.low %v287_v22, %v295_v24  ;;  %v399_v22 = vld [vmem:[#allocation5 + $0x990] sm:$0xff] }
 0x138   :  { %6605 = vmatprep.subr.bf16.mxu0 %v13015_v40  ;;  %v13127_v40 = vcombine.high %v303_v29, %v311_v31  ;;  %v407_v24 = vld [vmem:[#allocation5 + $0x9d0] sm:$0xff] }
 0x139   :  { %6524 = vmatpush1.bf16.msra.mxu1 %v13524_v19  ;;  %v13636_v19 = vcombine.low %v814_v27, %v822_v54  ;;  %v926_v27 = vld [vmem:[#allocation5 + $0x1a08] sm:$0xff] }
 0x13a   :  { %6525 = vmatprep.subr.bf16.mxu1 %v13541_v44  ;;  %v13653_v44 = vcombine.high %v830_v37, %v838_v38  ;;  %v934_v54 = vld [vmem:[#allocation5 + $0x1a48] sm:$0xff] }
 0x13b   :  { %6606 = vmatpush1.bf16.msra.mxu0 %v13014_v43  ;;  %v13126_v43 = vcombine.low %v303_v29, %v311_v31  ;;  %v415_v29 = vld [vmem:[#allocation5 + $0xa10] sm:$0xff] }
 0x13c   :  { %6607 = vmatprep.subr.bf16.mxu0 %v13031_v48  ;;  %v13143_v48 = vcombine.high %v319_v39, %v327_v41  ;;  %v423_v31 = vld [vmem:[#allocation5 + $0xa50] sm:$0xff] }
 0x13d   :  { %6526 = vmatpush1.bf16.msra.mxu1 %v13540_v51  ;;  %v13652_v51 = vcombine.low %v830_v37, %v838_v38  ;;  %v942_v37 = vld [vmem:[#allocation5 + $0x1a88] sm:$0xff] }
 0x13e   :  { %6527 = vmatprep.subr.bf16.mxu1 %v13557_v55  ;;  %v13669_v55 = vcombine.high %v846_v45, %v854_v46  ;;  %v950_v38 = vld [vmem:[#allocation5 + $0x1ac8] sm:$0xff] }
 0x13f   :  { %6608 = vmatpush1.bf16.msra.mxu0 %v13030_v52  ;;  %v13142_v52 = vcombine.low %v319_v39, %v327_v41  ;;  %v431_v39 = vld [vmem:[#allocation5 + $0xa90] sm:$0xff] }
 0x140   :  { %6609 = vmatprep.subr.bf16.mxu0 %v13047_v60  ;;  %v13159_v60 = vcombine.high %v335_v47, %v343_v49  ;;  %v439_v41 = vld [vmem:[#allocation5 + $0xad0] sm:$0xff] }
 0x141   :  { %6528 = vmatpush1.bf16.msra.mxu1 %v13556_v63  ;;  %v13668_v63 = vcombine.low %v846_v45, %v854_v46  ;;  %v958_v45 = vld [vmem:[#allocation5 + $0x1b08] sm:$0xff] }
 0x142   :  { %6529 = vmatprep.subr.bf16.mxu1 %v13573_v0  ;;  %v13685_v0 = vcombine.high %v862_v56, %v870_v57  ;;  %v966_v46 = vld [vmem:[#allocation5 + $0x1b48] sm:$0xff] }
 0x143   :  { %6610 = vmatpush1.bf16.msra.mxu0 %v13046_v32  ;;  %v13158_v32 = vcombine.low %v335_v47, %v343_v49  ;;  %v447_v47 = vld [vmem:[#allocation5 + $0xb10] sm:$0xff] }
 0x144   :  { %6611 = vmatprep.subr.bf16.mxu0 %v13063_v4  ;;  %v13175_v4 = vcombine.high %v351_v59, %v359_v62  ;;  %v455_v49 = vld [vmem:[#allocation5 + $0xb50] sm:$0xff] }
 0x145   :  { %6530 = vmatpush1.bf16.msra.mxu1 %v13572_v6  ;;  %v13684_v6 = vcombine.low %v862_v56, %v870_v57  ;;  %v974_v56 = vld [vmem:[#allocation5 + $0x1b88] sm:$0xff] }
 0x146   :  { %6531 = vmatprep.subr.bf16.mxu1 %v13589_v8  ;;  %v13701_v8 = vcombine.high %v878_v1, %v886_v2  ;;  %v982_v57 = vld [vmem:[#allocation5 + $0x1bc8] sm:$0xff] }
 0x147   :  { %6612 = vmatpush1.bf16.msra.mxu0 %v13062_v7  ;;  %v13174_v7 = vcombine.low %v351_v59, %v359_v62  ;;  %v463_v59 = vld [vmem:[#allocation5 + $0xb90] sm:$0xff]  ;;  %v13271_v62 = vcombine.high %v447_v47, %v455_v49 }
 0x148   :  { %6613 = vmatprep.subr.bf16.mxu0 %v13079_v12  ;;  %v13191_v12 = vcombine.high %v367_v3, %v375_v5 }
 0x149   :  { %6532 = vmatpush1.bf16.msra.mxu1 %v13588_v14  ;;  %v13700_v14 = vcombine.low %v878_v1, %v886_v2  ;;  %v13780_v1 = vcombine.low %v958_v45, %v966_v46 }
 0x14a   :  { %6533 = vmatprep.subr.bf16.mxu1 %v13605_v17  ;;  %v13717_v17 = vcombine.high %v894_v9, %v902_v10 }
 0x14b   :  { %6614 = vmatpush1.bf16.msra.mxu0 %v13078_v15  ;;  %v13190_v15 = vcombine.low %v367_v3, %v375_v5  ;;  %v13270_v3 = vcombine.low %v447_v47, %v455_v49  ;;  %v990_v5 = vld [vmem:[#allocation5 + $0x1c08] sm:$0xff] }
 0x14c   :  { %6615 = vmatprep.subr.bf16.mxu0 %v13095_v23  ;;  %v13207_v23 = vcombine.high %v383_v11, %v391_v13  ;;  %v1070_v49 = vld [vmem:[#allocation5 + $0x1e88] sm:$0xff] }
 0x14d   :  { %6534 = vmatpush1.bf16.msra.mxu1 %v13604_v25  ;;  %v13716_v25 = vcombine.low %v894_v9, %v902_v10  ;;  %v487_v9 = vld [vmem:[#allocation5 + $0xc50] sm:$0xff]  ;;  %v13796_v10 = vcombine.low %v974_v56, %v982_v57 }
 0x14e   :  { %6535 = vmatprep.subr.bf16.mxu1 %v13621_v53  ;;  %v13733_v53 = vcombine.high %v910_v18, %v918_v20 }
 0x14f   :  { %6616 = vmatpush1.bf16.msra.mxu0 %v13094_v26  ;;  %v13206_v26 = vcombine.low %v383_v11, %v391_v13  ;;  %v1006_v13 = vld [vmem:[#allocation5 + $0x1c88] sm:$0xff] }
 0x150   :  { %6617 = vmatprep.subr.bf16.mxu0 %v13111_v30  ;;  %v13223_v30 = vcombine.high %v399_v22, %v407_v24 }
 0x151   :  { %6536 = vmatpush1.bf16.msra.mxu1 %v13620_v33  ;;  %v13732_v33 = vcombine.low %v910_v18, %v918_v20  ;;  %v503_v18 = vld [vmem:[#allocation5 + $0xcd0] sm:$0xff] }
 0x152   :  { %6537 = vmatprep.subr.bf16.mxu1 %v13637_v36  ;;  %v13749_v36 = vcombine.high %v926_v27, %v934_v54 }
 0x153   :  { %6618 = vmatpush1.bf16.msra.mxu0 %v13110_v35  ;;  %v13222_v35 = vcombine.low %v399_v22, %v407_v24  ;;  %v1022_v24 = vld [vmem:[#allocation5 + $0x1d08] sm:$0xff] }
 0x154   :  { %6619 = vmatprep.subr.bf16.mxu0 %v13127_v40  ;;  %v13239_v40 = vcombine.high %v415_v29, %v423_v31 }
 0x155   :  { %6538 = vmatpush1.bf16.msra.mxu1 %v13636_v19  ;;  %v13748_v19 = vcombine.low %v926_v27, %v934_v54  ;;  %v519_v27 = vld [vmem:[#allocation5 + $0xd50] sm:$0xff] }
 0x156   :  { %6539 = vmatprep.subr.bf16.mxu1 %v13653_v44  ;;  %v13765_v44 = vcombine.high %v942_v37, %v950_v38 }
 0x157   :  { %6620 = vmatpush1.bf16.msra.mxu0 %v13126_v43  ;;  %v13238_v43 = vcombine.low %v415_v29, %v423_v31  ;;  %v1038_v31 = vld [vmem:[#allocation5 + $0x1d88] sm:$0xff] }
 0x158   :  { %6621 = vmatprep.subr.bf16.mxu0 %v13143_v48  ;;  %v13255_v48 = vcombine.high %v431_v39, %v439_v41 }
 0x159   :  { %6540 = vmatpush1.bf16.msra.mxu1 %v13652_v51  ;;  %v13764_v51 = vcombine.low %v942_v37, %v950_v38  ;;  %v535_v37 = vld [vmem:[#allocation5 + $0xdd0] sm:$0xff] }
 0x15a   :  { %6541 = vmatprep.subr.bf16.mxu1 %v13669_v55  ;;  %v13781_v55 = vcombine.high %v958_v45, %v966_v46  ;;  %v551_v45 = vld [vmem:[#allocation5 + $0xe50] sm:$0xff] }
 0x15b   :  { %6622 = vmatpush1.bf16.msra.mxu0 %v13142_v52  ;;  %v13254_v52 = vcombine.low %v431_v39, %v439_v41  ;;  %v1054_v41 = vld [vmem:[#allocation5 + $0x1e08] sm:$0xff] }
 0x15c   :  { %6623 = vmatprep.subr.bf16.mxu0 %v13159_v60 }
 0x15d   :  { %6542 = vmatpush1.bf16.msra.mxu1 %v13668_v63  ;;  %v471_v63 = vld [vmem:[#allocation5 + $0xbd0] sm:$0xff] }
 0x15e   :  { %6552 = vmatprep.subr.bf16.mxu1 %v13685_v0  ;;  %v13286_v11 = vcombine.low %v463_v59, %v471_v63 }
 0x15f   :  { %6624 = vmatpush1.bf16.msra.mxu0 %v13158_v32 }
 0x160   :  { %6634 = vmatprep.subr.bf16.mxu0 %v13175_v4  ;;  %6544 = vmatmul.mubr.bf16.vlgmr.msra.gmra.mrb[4].mxu1 %v15942_v34  ;;  %v13797_v4 = vcombine.high %v974_v56, %v982_v57  ;;  %v567_v56 = vld [vmem:[#allocation5 + $0xed0] sm:$0xff] }
 0x161   :  { %6553 = vmatpush1.bf16.msra.mxu1 %v13684_v6  ;;  %6584 = vmatprep.mubr.bf16.mxu1 %v15946_v42  ;;  %v998_v6 = vld [vmem:[#allocation5 + $0x1c48] sm:$0xff] }
 0x162   :  { %6626 = vmatmul.mubr.bf16.vlgmr.msra.gmra.mrb[4].mxu0 %v15922_v16  ;;  %6554 = vmatprep.subr.bf16.mxu1 %v13701_v8  ;;  %v13287_v8 = vcombine.high %v463_v59, %v471_v63  ;;  %v13812_v20 = vcombine.low %v990_v5, %v998_v6  ;;  %v1086_v63 = vld [vmem:[#allocation5 + $0x1f08] sm:$0xff] }
 0x163   :  { %6635 = vmatpush1.bf16.msra.mxu0 %v13174_v7  ;;  %6666 = vmatprep.mubr.bf16.mxu0 %v15916_v61  ;;  %v479_v7 = vld [vmem:[#allocation5 + $0xc10] sm:$0xff] }
 0x164   :  { %6636 = vmatprep.subr.bf16.mxu0 %v13191_v12  ;;  %v13813_v12 = vcombine.high %v990_v5, %v998_v6  ;;  %v13302_v22 = vcombine.low %v479_v7, %v487_v9 }
 0x165   :  { %6555 = vmatpush1.bf16.msra.mxu1 %v13700_v14  ;;  %v1014_v14 = vld [vmem:[#allocation5 + $0x1cc8] sm:$0xff] }
 0x166   :  { %6556 = vmatprep.subr.bf16.mxu1 %v13717_v17  ;;  %v13303_v17 = vcombine.high %v479_v7, %v487_v9  ;;  %v13828_v54 = vcombine.low %v1006_v13, %v1014_v14  ;;  %v1102_v7 = vld [vmem:[#allocation5 + $0x1f88] sm:$0xff]  ;;  %v591_v9 = vld [vmem:[#allocation5 + $0xf90] sm:$0xff] }
 0x167   :  { %6637 = vmatpush1.bf16.msra.mxu0 %v13190_v15  ;;  %v495_v15 = vld [vmem:[#allocation5 + $0xc90] sm:$0xff] }
 0x168   :  { %6638 = vmatprep.subr.bf16.mxu0 %v13207_v23  ;;  %v13829_v23 = vcombine.high %v1006_v13, %v1014_v14  ;;  %v13318_v29 = vcombine.low %v495_v15, %v503_v18 }
 0x169   :  { %6557 = vmatpush1.bf16.msra.mxu1 %v13716_v25  ;;  %v1030_v25 = vld [vmem:[#allocation5 + $0x1d48] sm:$0xff] }
 0x16a   :  { %6558 = vmatprep.subr.bf16.mxu1 %v13733_v53  ;;  %v13319_v53 = vcombine.high %v495_v15, %v503_v18  ;;  %v13844_v38 = vcombine.low %v1022_v24, %v1030_v25  ;;  %v607_v15 = vld [vmem:[#allocation5 + $0x1010] sm:$0xff]  ;;  %v96_v18 = vld [vmem:[#allocation5 + $0x18] sm:$0xff] }
 0x16b   :  { %6639 = vmatpush1.bf16.msra.mxu0 %v13206_v26  ;;  %v511_v26 = vld [vmem:[#allocation5 + $0xd10] sm:$0xff] }
 0x16c   :  { %6640 = vmatprep.subr.bf16.mxu0 %v13223_v30  ;;  %v13845_v30 = vcombine.high %v1022_v24, %v1030_v25  ;;  %v13334_v39 = vcombine.low %v511_v26, %v519_v27 }
 0x16d   :  { %6559 = vmatpush1.bf16.msra.mxu1 %v13732_v33  ;;  %v1046_v33 = vld [vmem:[#allocation5 + $0x1dc8] sm:$0xff] }
 0x16e   :  { %6560 = vmatprep.subr.bf16.mxu1 %v13749_v36  ;;  %v13335_v36 = vcombine.high %v511_v26, %v519_v27  ;;  %v13860_v46 = vcombine.low %v1038_v31, %v1046_v33  ;;  %v623_v26 = vld [vmem:[#allocation5 + $0x1090] sm:$0xff]  ;;  %v112_v27 = vld [vmem:[#allocation5 + $0x98] sm:$0xff] }
 0x16f   :  { %6641 = vmatpush1.bf16.msra.mxu0 %v13222_v35  ;;  %v527_v35 = vld [vmem:[#allocation5 + $0xd90] sm:$0xff] }
 0x170   :  { %6642 = vmatprep.subr.bf16.mxu0 %v13239_v40  ;;  %v13861_v40 = vcombine.high %v1038_v31, %v1046_v33  ;;  %v13350_v47 = vcombine.low %v527_v35, %v535_v37 }
 0x171   :  { %6561 = vmatpush1.bf16.msra.mxu1 %v13748_v19  ;;  %v1062_v19 = vld [vmem:[#allocation5 + $0x1e48] sm:$0xff] }
 0x172   :  { %6562 = vmatprep.subr.bf16.mxu1 %v13765_v44  ;;  %v13351_v44 = vcombine.high %v527_v35, %v535_v37  ;;  %v13876_v57 = vcombine.low %v1054_v41, %v1062_v19  ;;  %v639_v35 = vld [vmem:[#allocation5 + $0x1110] sm:$0xff]  ;;  %v128_v37 = vld [vmem:[#allocation5 + $0x118] sm:$0xff] }
 0x173   :  { %6643 = vmatpush1.bf16.msra.mxu0 %v13238_v43  ;;  %v15964_v60 = vpop.f32.mrb[0].mxu1  ;;  %v543_v43 = vld [vmem:[#allocation5 + $0xe10] sm:$0xff] }
 0x174   :  { %6644 = vmatprep.subr.bf16.mxu0 %v13255_v48  ;;  %v15966_v32 = vpop.f32.mrb[1].mxu1  ;;  %v13877_v48 = vcombine.high %v1054_v41, %v1062_v19  ;;  %v13366_v59 = vcombine.low %v543_v43, %v551_v45 }
 0x175   :  { %v6303_v0 = vpop.f32.mrb[2].mxu1  ;;  %6563 = vmatpush1.bf16.msra.mxu1 %v13764_v51  ;;  %v1078_v51 = vld [vmem:[#allocation5 + $0x1ec8] sm:$0xff] }
 0x176   :  { %v6304_v2 = vpop.f32.mrb[3].mxu1  ;;  %6564 = vmatprep.subr.bf16.mxu1 %v13781_v55  ;;  %v13367_v55 = vcombine.high %v543_v43, %v551_v45  ;;  %v1094_v0 = vld [vmem:[#allocation5 + $0x1f48] sm:$0xff]  ;;  %v655_v43 = vld [vmem:[#allocation5 + $0x1190] sm:$0xff]  ;;  %v144_v45 = vld [vmem:[#allocation5 + $0x198] sm:$0xff] }
 0x177   :  { %6645 = vmatpush1.bf16.msra.mxu0 %v13254_v52  ;;  %v559_v52 = vld [vmem:[#allocation5 + $0xe90] sm:$0xff]  ;;  %v13909_v6 = vcombine.high %v1086_v63, %v1094_v0 }
 0x178   :  { %6646 = vmatprep.subr.bf16.mxu0 %v13271_v62  ;;  %v13893_v62 = vcombine.high %v1070_v49, %v1078_v51  ;;  %v13383_v2 = vcombine.high %v559_v52, %v567_v56  ;;  %v13382_v5 = vcombine.low %v559_v52, %v567_v56  ;;  %v671_v52 = vld [vmem:[#allocation5 + $0x1210] sm:$0xff]  ;;  %v160_v56 = vld [vmem:[#allocation5 + $0x218] sm:$0xff] }
 0x179   :  { %6565 = vmatpush1.bf16.msra.mxu1 %v13780_v1  ;;  %v575_v1 = vld [vmem:[#allocation5 + $0xf10] sm:$0xff] }
 0x17a   :  { %6566 = vmatprep.subr.bf16.mxu1 %v13797_v4  ;;  %v13892_v4 = vcombine.low %v1070_v49, %v1078_v51 }
 0x17b   :  { %6647 = vmatpush1.bf16.msra.mxu0 %v13270_v3  ;;  %v583_v3 = vld [vmem:[#allocation5 + $0xf50] sm:$0xff] }
 0x17c   :  { %6648 = vmatprep.subr.bf16.mxu0 %v13287_v8  ;;  %v1110_v8 = vld [vmem:[#allocation5 + $0x1fc8] sm:$0xff]  ;;  %v13398_v13 = vcombine.low %v575_v1, %v583_v3 }
 0x17d   :  { %6567 = vmatpush1.bf16.msra.mxu1 %v13796_v10  ;;  %v13399_v10 = vcombine.high %v575_v1, %v583_v3  ;;  %v13925_v14 = vcombine.high %v1102_v7, %v1110_v8  ;;  %v687_v1 = vld [vmem:[#allocation5 + $0x1290] sm:$0xff]  ;;  %v176_v3 = vld [vmem:[#allocation5 + $0x298] sm:$0xff] }
 0x17e   :  { %6568 = vmatprep.subr.bf16.mxu1 %v13813_v12  ;;  %v13908_v12 = vcombine.low %v1086_v63, %v1094_v0 }
 0x17f   :  { %6649 = vmatpush1.bf16.msra.mxu0 %v13286_v11  ;;  %v599_v11 = vld [vmem:[#allocation5 + $0xfd0] sm:$0xff] }
 0x180   :  { %6650 = vmatprep.subr.bf16.mxu0 %v13303_v17  ;;  %v615_v17 = vld [vmem:[#allocation5 + $0x1050] sm:$0xff]  ;;  %v13414_v24 = vcombine.low %v591_v9, %v599_v11 }
 0x181   :  { %6569 = vmatpush1.bf16.msra.mxu1 %v13812_v20  ;;  %v13415_v20 = vcombine.high %v591_v9, %v599_v11  ;;  %v13430_v31 = vcombine.low %v607_v15, %v615_v17  ;;  %v703_v9 = vld [vmem:[#allocation5 + $0x1310] sm:$0xff]  ;;  %v192_v11 = vld [vmem:[#allocation5 + $0x318] sm:$0xff] }
 0x182   :  { %6570 = vmatprep.subr.bf16.mxu1 %v13829_v23  ;;  %v13924_v23 = vcombine.low %v1102_v7, %v1110_v8 }
 0x183   :  { %6651 = vmatpush1.bf16.msra.mxu0 %v13302_v22  ;;  %v104_v22 = vld [vmem:[#allocation5 + $0x58] sm:$0xff] }
 0x184   :  { %6652 = vmatprep.subr.bf16.mxu0 %v13319_v53  ;;  %v12921_v25 = vcombine.high %v96_v18, %v104_v22  ;;  %v631_v53 = vld [vmem:[#allocation5 + $0x10d0] sm:$0xff] }
 0x185   :  { %6571 = vmatpush1.bf16.msra.mxu1 %v13828_v54  ;;  %v13431_v54 = vcombine.high %v607_v15, %v615_v17  ;;  %v13446_v41 = vcombine.low %v623_v26, %v631_v53 }
 0x186   :  { %6572 = vmatprep.subr.bf16.mxu1 %v13845_v30  ;;  %v12920_v30 = vcombine.low %v96_v18, %v104_v22  ;;  %v719_v18 = vld [vmem:[#allocation5 + $0x1390] sm:$0xff]  ;;  %v208_v22 = vld [vmem:[#allocation5 + $0x398] sm:$0xff] }
 0x187   :  { %6653 = vmatpush1.bf16.msra.mxu0 %v13318_v29  ;;  %v120_v29 = vld [vmem:[#allocation5 + $0xd8] sm:$0xff] }
 0x188   :  { %6654 = vmatprep.subr.bf16.mxu0 %v13335_v36  ;;  %v12937_v33 = vcombine.high %v112_v27, %v120_v29  ;;  %v647_v36 = vld [vmem:[#allocation5 + $0x1150] sm:$0xff] }
 0x189   :  { %6573 = vmatpush1.bf16.msra.mxu1 %v13844_v38  ;;  %v13447_v38 = vcombine.high %v623_v26, %v631_v53  ;;  %v13462_v49 = vcombine.low %v639_v35, %v647_v36 }
 0x18a   :  { %6574 = vmatprep.subr.bf16.mxu1 %v13861_v40  ;;  %v12936_v40 = vcombine.low %v112_v27, %v120_v29  ;;  %v735_v27 = vld [vmem:[#allocation5 + $0x1410] sm:$0xff]  ;;  %v224_v29 = vld [vmem:[#allocation5 + $0x418] sm:$0xff] }
 0x18b   :  { %6655 = vmatpush1.bf16.msra.mxu0 %v13334_v39  ;;  %v136_v39 = vld [vmem:[#allocation5 + $0x158] sm:$0xff] }
 0x18c   :  { %6656 = vmatprep.subr.bf16.mxu0 %v13351_v44  ;;  %v12953_v19 = vcombine.high %v128_v37, %v136_v39  ;;  %v663_v44 = vld [vmem:[#allocation5 + $0x11d0] sm:$0xff] }
 0x18d   :  { %6575 = vmatpush1.bf16.msra.mxu1 %v13860_v46  ;;  %v13463_v46 = vcombine.high %v639_v35, %v647_v36  ;;  %v13478_v63 = vcombine.low %v655_v43, %v663_v44 }
 0x18e   :  { %6576 = vmatprep.subr.bf16.mxu1 %v13877_v48  ;;  %v12952_v48 = vcombine.low %v128_v37, %v136_v39  ;;  %v751_v37 = vld [vmem:[#allocation5 + $0x1490] sm:$0xff]  ;;  %v240_v39 = vld [vmem:[#allocation5 + $0x498] sm:$0xff] }
 0x18f   :  { %6657 = vmatpush1.bf16.msra.mxu0 %v13350_v47  ;;  %v152_v47 = vld [vmem:[#allocation5 + $0x1d8] sm:$0xff] }
 0x190   :  { %6658 = vmatprep.subr.bf16.mxu0 %v13367_v55  ;;  %v12969_v51 = vcombine.high %v144_v45, %v152_v47  ;;  %v679_v55 = vld [vmem:[#allocation5 + $0x1250] sm:$0xff] }
 0x191   :  { %6577 = vmatpush1.bf16.msra.mxu1 %v13876_v57  ;;  %v13479_v57 = vcombine.high %v655_v43, %v663_v44  ;;  %v13494_v7 = vcombine.low %v671_v52, %v679_v55 }
 0x192   :  { %6578 = vmatprep.subr.bf16.mxu1 %v13893_v62  ;;  %v12968_v62 = vcombine.low %v144_v45, %v152_v47  ;;  %v767_v45 = vld [vmem:[#allocation5 + $0x1510] sm:$0xff]  ;;  %v256_v47 = vld [vmem:[#allocation5 + $0x518] sm:$0xff] }
 0x193   :  { %6659 = vmatpush1.bf16.msra.mxu0 %v13366_v59  ;;  %v168_v59 = vld [vmem:[#allocation5 + $0x258] sm:$0xff] }
 0x194   :  { %6660 = vmatprep.subr.bf16.mxu0 %v13383_v2  ;;  %v12985_v0 = vcombine.high %v160_v56, %v168_v59  ;;  %v695_v2 = vld [vmem:[#allocation5 + $0x12d0] sm:$0xff] }
 0x195   :  { %6579 = vmatpush1.bf16.msra.mxu1 %v13892_v4  ;;  %v13495_v4 = vcombine.high %v671_v52, %v679_v55  ;;  %v13510_v15 = vcombine.low %v687_v1, %v695_v2 }
 0x196   :  { %6580 = vmatprep.subr.bf16.mxu1 %v13909_v6  ;;  %v12984_v6 = vcombine.low %v160_v56, %v168_v59  ;;  %v783_v56 = vld [vmem:[#allocation5 + $0x1590] sm:$0xff]  ;;  %v272_v59 = vld [vmem:[#allocation5 + $0x598] sm:$0xff] }
 0x197   :  { %6661 = vmatpush1.bf16.msra.mxu0 %v13382_v5  ;;  %v184_v5 = vld [vmem:[#allocation5 + $0x2d8] sm:$0xff] }
 0x198   :  { %6662 = vmatprep.subr.bf16.mxu0 %v13399_v10  ;;  %v13001_v8 = vcombine.high %v176_v3, %v184_v5  ;;  %v711_v10 = vld [vmem:[#allocation5 + $0x1350] sm:$0xff] }
 0x199   :  { %6581 = vmatpush1.bf16.msra.mxu1 %v13908_v12  ;;  %v13511_v12 = vcombine.high %v687_v1, %v695_v2  ;;  %v13526_v26 = vcombine.low %v703_v9, %v711_v10 }
 0x19a   :  { %6582 = vmatprep.subr.bf16.mxu1 %v13925_v14  ;;  %v13000_v14 = vcombine.low %v176_v3, %v184_v5  ;;  %v799_v3 = vld [vmem:[#allocation5 + $0x1610] sm:$0xff]  ;;  %v288_v5 = vld [vmem:[#allocation5 + $0x618] sm:$0xff] }
 0x19b   :  { %6663 = vmatpush1.bf16.msra.mxu0 %v13398_v13  ;;  %v200_v13 = vld [vmem:[#allocation5 + $0x358] sm:$0xff] }
 0x19c   :  { %6664 = vmatprep.subr.bf16.mxu0 %v13415_v20  ;;  %v13017_v17 = vcombine.high %v192_v11, %v200_v13  ;;  %v727_v20 = vld [vmem:[#allocation5 + $0x13d0] sm:$0xff] }
 0x19d   :  { %6583 = vmatpush1.bf16.msra.mxu1 %v13924_v23  ;;  %v13527_v23 = vcombine.high %v703_v9, %v711_v10  ;;  %v13542_v35 = vcombine.low %v719_v18, %v727_v20 }
 0x19e   :  { %6757 = vmatprep.subr.bf16.mxu1 %v12921_v25  ;;  %v13016_v25 = vcombine.low %v192_v11, %v200_v13  ;;  %v815_v11 = vld [vmem:[#allocation5 + $0x1690] sm:$0xff]  ;;  %v304_v13 = vld [vmem:[#allocation5 + $0x698] sm:$0xff] }
 0x19f   :  { %6665 = vmatpush1.bf16.msra.mxu0 %v13414_v24  ;;  %v216_v24 = vld [vmem:[#allocation5 + $0x3d8] sm:$0xff] }
 0x1a0   :  { %6675 = vmatprep.subr.bf16.mxu0 %v13431_v54  ;;  %6585 = vmatmul.mubr.bf16.vlgmr.msra.gmra.mrb[4].mxu1 %v15954_v50  ;;  %v13033_v53 = vcombine.high %v208_v22, %v216_v24  ;;  %v743_v54 = vld [vmem:[#allocation5 + $0x1450] sm:$0xff] }
 0x1a1   :  { %6758 = vmatpush1.bf16.msra.mxu1 %v12920_v30  ;;  %6789 = vmatprep.mubr.bf16.mxu1 %v15912_v58  ;;  %v13543_v30 = vcombine.high %v719_v18, %v727_v20  ;;  %v13558_v43 = vcombine.low %v735_v27, %v743_v54 }
 0x1a2   :  { %6667 = vmatmul.mubr.bf16.vlgmr.msra.gmra.mrb[4].mxu0 %v15928_v21  ;;  %6759 = vmatprep.subr.bf16.mxu1 %v12937_v33  ;;  %v13032_v33 = vcombine.low %v208_v22, %v216_v24  ;;  %v320_v22 = vld [vmem:[#allocation5 + $0x718] sm:$0xff] }
 0x1a3   :  { %6676 = vmatpush1.bf16.msra.mxu0 %v13430_v31  ;;  %6707 = vmatprep.mubr.bf16.mxu0 %v15932_v28  ;;  %v232_v31 = vld [vmem:[#allocation5 + $0x458] sm:$0xff] }
 0x1a4   :  { %6677 = vmatprep.subr.bf16.mxu0 %v13447_v38  ;;  %v13049_v36 = vcombine.high %v224_v29, %v232_v31  ;;  %v759_v38 = vld [vmem:[#allocation5 + $0x14d0] sm:$0xff]  ;;  %v328_v24 = vld [vmem:[#allocation5 + $0x758] sm:$0xff] }
 0x1a5   :  { %6760 = vmatpush1.bf16.msra.mxu1 %v12936_v40  ;;  %v13559_v40 = vcombine.high %v735_v27, %v743_v54  ;;  %v13574_v52 = vcombine.low %v751_v37, %v759_v38  ;;  %v13145_v54 = vcombine.high %v320_v22, %v328_v24 }
 0x1a6   :  { %6761 = vmatprep.subr.bf16.mxu1 %v12953_v19  ;;  %v13048_v19 = vcombine.low %v224_v29, %v232_v31  ;;  %v344_v31 = vld [vmem:[#allocation5 + $0x7d8] sm:$0xff] }
 0x1a7   :  { %6678 = vmatpush1.bf16.msra.mxu0 %v13446_v41  ;;  %v248_v41 = vld [vmem:[#allocation5 + $0x4d8] sm:$0xff] }
 0x1a8   :  { %6679 = vmatprep.subr.bf16.mxu0 %v13463_v46  ;;  %v13065_v44 = vcombine.high %v240_v39, %v248_v41  ;;  %v775_v46 = vld [vmem:[#allocation5 + $0x1550] sm:$0xff] }
 0x1a9   :  { %6762 = vmatpush1.bf16.msra.mxu1 %v12952_v48  ;;  %v13575_v48 = vcombine.high %v751_v37, %v759_v38  ;;  %v13590_v1 = vcombine.low %v767_v45, %v775_v46 }
 0x1aa   :  { %6763 = vmatprep.subr.bf16.mxu1 %v12969_v51  ;;  %v13064_v51 = vcombine.low %v240_v39, %v248_v41  ;;  %v360_v41 = vld [vmem:[#allocation5 + $0x858] sm:$0xff] }
 0x1ab   :  { %6680 = vmatpush1.bf16.msra.mxu0 %v13462_v49  ;;  %v264_v49 = vld [vmem:[#allocation5 + $0x558] sm:$0xff] }
 0x1ac   :  { %6681 = vmatprep.subr.bf16.mxu0 %v13479_v57  ;;  %v13081_v55 = vcombine.high %v256_v47, %v264_v49  ;;  %v791_v57 = vld [vmem:[#allocation5 + $0x15d0] sm:$0xff] }
 0x1ad   :  { %6764 = vmatpush1.bf16.msra.mxu1 %v12968_v62  ;;  %v13591_v62 = vcombine.high %v767_v45, %v775_v46  ;;  %v13606_v9 = vcombine.low %v783_v56, %v791_v57 }
 0x1ae   :  { %6765 = vmatprep.subr.bf16.mxu1 %v12985_v0  ;;  %v13080_v0 = vcombine.low %v256_v47, %v264_v49  ;;  %v376_v49 = vld [vmem:[#allocation5 + $0x8d8] sm:$0xff] }
 0x1af   :  { %6682 = vmatpush1.bf16.msra.mxu0 %v13478_v63  ;;  %v280_v63 = vld [vmem:[#allocation5 + $0x5d8] sm:$0xff] }
 0x1b0   :  { %6683 = vmatprep.subr.bf16.mxu0 %v13495_v4  ;;  %v13097_v2 = vcombine.high %v272_v59, %v280_v63  ;;  %v807_v4 = vld [vmem:[#allocation5 + $0x1650] sm:$0xff] }
 0x1b1   :  { %6766 = vmatpush1.bf16.msra.mxu1 %v12984_v6  ;;  %v13607_v6 = vcombine.high %v783_v56, %v791_v57  ;;  %v13622_v18 = vcombine.low %v799_v3, %v807_v4 }
 0x1b2   :  { %6767 = vmatprep.subr.bf16.mxu1 %v13001_v8  ;;  %v13096_v8 = vcombine.low %v272_v59, %v280_v63  ;;  %v392_v63 = vld [vmem:[#allocation5 + $0x958] sm:$0xff] }
 0x1b3   :  { %6684 = vmatpush1.bf16.msra.mxu0 %v13494_v7  ;;  %v296_v7 = vld [vmem:[#allocation5 + $0x658] sm:$0xff] }
 0x1b4   :  { %6685 = vmatprep.subr.bf16.mxu0 %v13511_v12  ;;  %v13113_v10 = vcombine.high %v288_v5, %v296_v7  ;;  %v823_v12 = vld [vmem:[#allocation5 + $0x16d0] sm:$0xff] }
 0x1b5   :  { %6768 = vmatpush1.bf16.msra.mxu1 %v13000_v14  ;;  %v13623_v14 = vcombine.high %v799_v3, %v807_v4  ;;  %v13638_v27 = vcombine.low %v815_v11, %v823_v12 }
 0x1b6   :  { %6769 = vmatprep.subr.bf16.mxu1 %v13017_v17  ;;  %v13112_v17 = vcombine.low %v288_v5, %v296_v7  ;;  %v408_v7 = vld [vmem:[#allocation5 + $0x9d8] sm:$0xff] }
 0x1b7   :  { %6686 = vmatpush1.bf16.msra.mxu0 %v13510_v15  ;;  %v312_v15 = vld [vmem:[#allocation5 + $0x6d8] sm:$0xff] }
 0x1b8   :  { %6687 = vmatprep.subr.bf16.mxu0 %v13527_v23  ;;  %v13129_v20 = vcombine.high %v304_v13, %v312_v15  ;;  %v13639_v23 = vcombine.high %v815_v11, %v823_v12 }
 0x1b9   :  { %6770 = vmatpush1.bf16.msra.mxu1 %v13016_v25  ;;  %v831_v25 = vld [vmem:[#allocation5 + $0x1710] sm:$0xff] }
 0x1ba   :  { %6771 = vmatprep.subr.bf16.mxu1 %v13033_v53  ;;  %v13128_v53 = vcombine.low %v304_v13, %v312_v15  ;;  %v424_v15 = vld [vmem:[#allocation5 + $0xa58] sm:$0xff] }
 0x1bb   :  { %6688 = vmatpush1.bf16.msra.mxu0 %v13526_v26  ;;  %v839_v26 = vld [vmem:[#allocation5 + $0x1750] sm:$0xff] }
 0x1bc   :  { %6689 = vmatprep.subr.bf16.mxu0 %v13543_v30  ;;  %v13655_v29 = vcombine.high %v831_v25, %v839_v26  ;;  %v336_v30 = vld [vmem:[#allocation5 + $0x798] sm:$0xff]  ;;  %v13654_v37 = vcombine.low %v831_v25, %v839_v26 }
 0x1bd   :  { %6772 = vmatpush1.bf16.msra.mxu1 %v13032_v33  ;;  %v847_v33 = vld [vmem:[#allocation5 + $0x1790] sm:$0xff]  ;;  %v13161_v38 = vcombine.high %v336_v30, %v344_v31  ;;  %v432_v25 = vld [vmem:[#allocation5 + $0xa98] sm:$0xff] }
 0x1be   :  { %6773 = vmatprep.subr.bf16.mxu1 %v13049_v36  ;;  %v13144_v36 = vcombine.low %v320_v22, %v328_v24  ;;  %v440_v26 = vld [vmem:[#allocation5 + $0xad8] sm:$0xff] }
 0x1bf   :  { %6690 = vmatpush1.bf16.msra.mxu0 %v13542_v35  ;;  %v855_v35 = vld [vmem:[#allocation5 + $0x17d0] sm:$0xff] }
 0x1c0   :  { %6691 = vmatprep.subr.bf16.mxu0 %v13559_v40  ;;  %v13671_v39 = vcombine.high %v847_v33, %v855_v35  ;;  %v352_v40 = vld [vmem:[#allocation5 + $0x818] sm:$0xff]  ;;  %v13670_v45 = vcombine.low %v847_v33, %v855_v35 }
 0x1c1   :  { %6774 = vmatpush1.bf16.msra.mxu1 %v13048_v19  ;;  %v863_v19 = vld [vmem:[#allocation5 + $0x1810] sm:$0xff]  ;;  %v13177_v46 = vcombine.high %v352_v40, %v360_v41  ;;  %v448_v33 = vld [vmem:[#allocation5 + $0xb18] sm:$0xff] }
 0x1c2   :  { %6775 = vmatprep.subr.bf16.mxu1 %v13065_v44  ;;  %v13160_v44 = vcombine.low %v336_v30, %v344_v31  ;;  %v13257_v30 = vcombine.high %v432_v25, %v440_v26  ;;  %v456_v35 = vld [vmem:[#allocation5 + $0xb58] sm:$0xff] }
 0x1c3   :  { %6692 = vmatpush1.bf16.msra.mxu0 %v13558_v43  ;;  %v871_v43 = vld [vmem:[#allocation5 + $0x1850] sm:$0xff] }
 0x1c4   :  { %6693 = vmatprep.subr.bf16.mxu0 %v13575_v48  ;;  %v13687_v47 = vcombine.high %v863_v19, %v871_v43  ;;  %v368_v48 = vld [vmem:[#allocation5 + $0x898] sm:$0xff]  ;;  %v13686_v56 = vcombine.low %v863_v19, %v871_v43 }
 0x1c5   :  { %6776 = vmatpush1.bf16.msra.mxu1 %v13064_v51  ;;  %v879_v51 = vld [vmem:[#allocation5 + $0x1890] sm:$0xff]  ;;  %v13193_v57 = vcombine.high %v368_v48, %v376_v49  ;;  %v464_v19 = vld [vmem:[#allocation5 + $0xb98] sm:$0xff] }
 0x1c6   :  { %6777 = vmatprep.subr.bf16.mxu1 %v13081_v55  ;;  %v13176_v55 = vcombine.low %v352_v40, %v360_v41  ;;  %v13273_v40 = vcombine.high %v448_v33, %v456_v35  ;;  %v472_v43 = vld [vmem:[#allocation5 + $0xbd8] sm:$0xff] }
 0x1c7   :  { %6694 = vmatpush1.bf16.msra.mxu0 %v13574_v52  ;;  %v887_v52 = vld [vmem:[#allocation5 + $0x18d0] sm:$0xff] }
 0x1c8   :  { %6695 = vmatprep.subr.bf16.mxu0 %v13591_v62  ;;  %v13703_v59 = vcombine.high %v879_v51, %v887_v52  ;;  %v384_v62 = vld [vmem:[#allocation5 + $0x918] sm:$0xff]  ;;  %v13702_v3 = vcombine.low %v879_v51, %v887_v52 }
 0x1c9   :  { %6778 = vmatpush1.bf16.msra.mxu1 %v13080_v0  ;;  %v895_v0 = vld [vmem:[#allocation5 + $0x1910] sm:$0xff]  ;;  %v13209_v4 = vcombine.high %v384_v62, %v392_v63 }
 0x1ca   :  { %6779 = vmatprep.subr.bf16.mxu1 %v13097_v2  ;;  %v13192_v2 = vcombine.low %v368_v48, %v376_v49  ;;  %v13272_v49 = vcombine.low %v448_v33, %v456_v35  ;;  %v1055_v33 = vld [vmem:[#allocation5 + $0x1e10] sm:$0xff] }
 0x1cb   :  { %6696 = vmatpush1.bf16.msra.mxu0 %v13590_v1  ;;  %v903_v1 = vld [vmem:[#allocation5 + $0x1950] sm:$0xff] }
 0x1cc   :  { %6697 = vmatprep.subr.bf16.mxu0 %v13607_v6  ;;  %v13719_v5 = vcombine.high %v895_v0, %v903_v1  ;;  %v400_v6 = vld [vmem:[#allocation5 + $0x998] sm:$0xff]  ;;  %v13718_v11 = vcombine.low %v895_v0, %v903_v1  ;;  %v991_v0 = vld [vmem:[#allocation5 + $0x1c10] sm:$0xff] }
 0x1cd   :  { %6780 = vmatpush1.bf16.msra.mxu1 %v13096_v8  ;;  %v911_v8 = vld [vmem:[#allocation5 + $0x1990] sm:$0xff]  ;;  %v13225_v12 = vcombine.high %v400_v6, %v408_v7 }
 0x1ce   :  { %6781 = vmatprep.subr.bf16.mxu1 %v13113_v10  ;;  %v13208_v10 = vcombine.low %v384_v62, %v392_v63  ;;  %v480_v62 = vld [vmem:[#allocation5 + $0xc18] sm:$0xff]  ;;  %v999_v1 = vld [vmem:[#allocation5 + $0x1c50] sm:$0xff] }
 0x1cf   :  { %6698 = vmatpush1.bf16.msra.mxu0 %v13606_v9  ;;  %v919_v9 = vld [vmem:[#allocation5 + $0x19d0] sm:$0xff]  ;;  %v488_v63 = vld [vmem:[#allocation5 + $0xc58] sm:$0xff] }
 0x1d0   :  { %6699 = vmatprep.subr.bf16.mxu0 %v13623_v14  ;;  %v13735_v13 = vcombine.high %v911_v8, %v919_v9  ;;  %v416_v14 = vld [vmem:[#allocation5 + $0xa18] sm:$0xff]  ;;  %v13734_v22 = vcombine.low %v911_v8, %v919_v9  ;;  %v13304_v8 = vcombine.low %v480_v62, %v488_v63  ;;  %v13814_v9 = vcombine.low %v991_v0, %v999_v1  ;;  %v1063_v35 = vld [vmem:[#allocation5 + $0x1e50] sm:$0xff] }
 0x1d1   :  { %6782 = vmatpush1.bf16.msra.mxu1 %v13112_v17  ;;  %v927_v17 = vld [vmem:[#allocation5 + $0x1a10] sm:$0xff] }
 0x1d2   :  { %6783 = vmatprep.subr.bf16.mxu1 %v13129_v20  ;;  %v13224_v20 = vcombine.low %v400_v6, %v408_v7  ;;  %v1007_v6 = vld [vmem:[#allocation5 + $0x1c90] sm:$0xff] }
 0x1d3   :  { %6700 = vmatpush1.bf16.msra.mxu0 %v13622_v18  ;;  %v935_v18 = vld [vmem:[#allocation5 + $0x1a50] sm:$0xff] }
 0x1d4   :  { %6701 = vmatprep.subr.bf16.mxu0 %v13639_v23  ;;  %v13241_v23 = vcombine.high %v416_v14, %v424_v15  ;;  %v13751_v24 = vcombine.high %v927_v17, %v935_v18  ;;  %v1015_v7 = vld [vmem:[#allocation5 + $0x1cd0] sm:$0xff] }
 0x1d5   :  { %6784 = vmatpush1.bf16.msra.mxu1 %v13128_v53  ;;  %v943_v53 = vld [vmem:[#allocation5 + $0x1a90] sm:$0xff] }
 0x1d6   :  { %6785 = vmatprep.subr.bf16.mxu1 %v13145_v54  ;;  %v13240_v54 = vcombine.low %v416_v14, %v424_v15  ;;  %v1023_v14 = vld [vmem:[#allocation5 + $0x1d10] sm:$0xff] }
 0x1d7   :  { %6702 = vmatpush1.bf16.msra.mxu0 %v13638_v27  ;;  %v951_v27 = vld [vmem:[#allocation5 + $0x1ad0] sm:$0xff] }
 0x1d8   :  { %6703 = vmatprep.subr.bf16.mxu0 %v13655_v29  ;;  %v13750_v29 = vcombine.low %v927_v17, %v935_v18  ;;  %v13767_v31 = vcombine.high %v943_v53, %v951_v27  ;;  %v1031_v15 = vld [vmem:[#allocation5 + $0x1d50] sm:$0xff]  ;;  %v13830_v18 = vcombine.low %v1007_v6, %v1015_v7 }
 0x1d9   :  { %6786 = vmatpush1.bf16.msra.mxu1 %v13144_v36  ;;  %v959_v36 = vld [vmem:[#allocation5 + $0x1b10] sm:$0xff] }
 0x1da   :  { %6787 = vmatprep.subr.bf16.mxu1 %v13161_v38  ;;  %v13256_v38 = vcombine.low %v432_v25, %v440_v26  ;;  %v1039_v25 = vld [vmem:[#allocation5 + $0x1d90] sm:$0xff] }
 0x1db   :  { %6704 = vmatpush1.bf16.msra.mxu0 %v13654_v37  ;;  %v967_v37 = vld [vmem:[#allocation5 + $0x1b50] sm:$0xff] }
 0x1dc   :  { %6705 = vmatprep.subr.bf16.mxu0 %v13671_v39  ;;  %v13766_v39 = vcombine.low %v943_v53, %v951_v27  ;;  %v13783_v41 = vcombine.high %v959_v36, %v967_v37  ;;  %v1047_v26 = vld [vmem:[#allocation5 + $0x1dd0] sm:$0xff]  ;;  %v13846_v27 = vcombine.low %v1023_v14, %v1031_v15 }
 0x1dd   :  { %6788 = vmatpush1.bf16.msra.mxu1 %v13160_v44 }
 0x1de   :  { %6798 = vmatprep.subr.bf16.mxu1 %v13177_v46  ;;  %v983_v46 = vld [vmem:[#allocation5 + $0x1bd0] sm:$0xff] }
 0x1df   :  { %6706 = vmatpush1.bf16.msra.mxu0 %v13670_v45  ;;  %v975_v45 = vld [vmem:[#allocation5 + $0x1b90] sm:$0xff] }
 0x1e0   :  { %6716 = vmatprep.subr.bf16.mxu0 %v13687_v47  ;;  %6790 = vmatmul.mubr.bf16.vlgmr.msra.gmra.mrb[8].mxu1 %v15922_v16 }
 0x1e1   :  { %6799 = vmatpush1.bf16.msra.mxu1 %v13176_v55  ;;  %6830 = vmatprep.mubr.bf16.mxu1 %v15916_v61  ;;  %v13782_v55 = vcombine.low %v959_v36, %v967_v37  ;;  %v13862_v37 = vcombine.low %v1039_v25, %v1047_v26 }
 0x1e2   :  { %6708 = vmatmul.mubr.bf16.vlgmr.msra.gmra.mrb[4].mxu0 %v15942_v34  ;;  %6800 = vmatprep.subr.bf16.mxu1 %v13193_v57 }
 0x1e3   :  { %6717 = vmatpush1.bf16.msra.mxu0 %v13686_v56  ;;  %6748 = vmatprep.mubr.bf16.mxu0 %v15946_v42  ;;  %v13289_v56 = vcombine.high %v464_v19, %v472_v43 }
 0x1e4   :  { %6718 = vmatprep.subr.bf16.mxu0 %v13703_v59  ;;  %v13799_v59 = vcombine.high %v975_v45, %v983_v46 }
 0x1e5   :  { %6801 = vmatpush1.bf16.msra.mxu1 %v13192_v2  ;;  %v13798_v2 = vcombine.low %v975_v45, %v983_v46  ;;  %v13878_v45 = vcombine.low %v1055_v33, %v1063_v35 }
 0x1e6   :  { %6802 = vmatprep.subr.bf16.mxu1 %v13209_v4  ;;  %v496_v4 = vld [vmem:[#allocation5 + $0xc98] sm:$0xff] }
 0x1e7   :  { %6719 = vmatpush1.bf16.msra.mxu0 %v13702_v3  ;;  %v13305_v3 = vcombine.high %v480_v62, %v488_v63 }
 0x1e8   :  { %6720 = vmatprep.subr.bf16.mxu0 %v13719_v5  ;;  %v504_v5 = vld [vmem:[#allocation5 + $0xcd8] sm:$0xff] }
 0x1e9   :  { %6803 = vmatpush1.bf16.msra.mxu1 %v13208_v10  ;;  %v13321_v10 = vcombine.high %v496_v4, %v504_v5  ;;  %v13320_v17 = vcombine.low %v496_v4, %v504_v5 }
 0x1ea   :  { %6804 = vmatprep.subr.bf16.mxu1 %v13225_v12  ;;  %v512_v12 = vld [vmem:[#allocation5 + $0xd18] sm:$0xff] }
 0x1eb   :  { %6721 = vmatpush1.bf16.msra.mxu0 %v13718_v11  ;;  %v13831_v11 = vcombine.high %v1007_v6, %v1015_v7  ;;  %v608_v6 = vld [vmem:[#allocation5 + $0x1018] sm:$0xff] }
 0x1ec   :  { %6722 = vmatprep.subr.bf16.mxu0 %v13735_v13  ;;  %v520_v13 = vld [vmem:[#allocation5 + $0xd58] sm:$0xff] }
 0x1ed   :  { %6805 = vmatpush1.bf16.msra.mxu1 %v13224_v20  ;;  %v13337_v20 = vcombine.high %v512_v12, %v520_v13  ;;  %v13336_v53 = vcombine.low %v512_v12, %v520_v13  ;;  %v616_v7 = vld [vmem:[#allocation5 + $0x1058] sm:$0xff] }
 0x1ee   :  { %6806 = vmatprep.subr.bf16.mxu1 %v13241_v23  ;;  %v528_v23 = vld [vmem:[#allocation5 + $0xd98] sm:$0xff]  ;;  %v13433_v12 = vcombine.high %v608_v6, %v616_v7 }
 0x1ef   :  { %6723 = vmatpush1.bf16.msra.mxu0 %v13734_v22  ;;  %v13847_v22 = vcombine.high %v1023_v14, %v1031_v15  ;;  %v624_v14 = vld [vmem:[#allocation5 + $0x1098] sm:$0xff] }
 0x1f0   :  { %6724 = vmatprep.subr.bf16.mxu0 %v13751_v24  ;;  %v536_v24 = vld [vmem:[#allocation5 + $0xdd8] sm:$0xff] }
 0x1f1   :  { %6807 = vmatpush1.bf16.msra.mxu1 %v13240_v54  ;;  %v13353_v54 = vcombine.high %v528_v23, %v536_v24  ;;  %v13352_v36 = vcombine.low %v528_v23, %v536_v24  ;;  %v632_v15 = vld [vmem:[#allocation5 + $0x10d8] sm:$0xff] }
 0x1f2   :  { %6808 = vmatprep.subr.bf16.mxu1 %v13257_v30  ;;  %v544_v30 = vld [vmem:[#allocation5 + $0xe18] sm:$0xff]  ;;  %v13449_v23 = vcombine.high %v624_v14, %v632_v15 }
 0x1f3   :  { %6725 = vmatpush1.bf16.msra.mxu0 %v13750_v29  ;;  %v13863_v29 = vcombine.high %v1039_v25, %v1047_v26  ;;  %v640_v25 = vld [vmem:[#allocation5 + $0x1118] sm:$0xff] }
 0x1f4   :  { %6726 = vmatprep.subr.bf16.mxu0 %v13767_v31  ;;  %v552_v31 = vld [vmem:[#allocation5 + $0xe58] sm:$0xff] }
 0x1f5   :  { %v6422_v44 = vpop.f32.mrb[0].mxu0  ;;  %6809 = vmatpush1.bf16.msra.mxu1 %v13256_v38  ;;  %v13369_v38 = vcombine.high %v544_v30, %v552_v31  ;;  %v648_v26 = vld [vmem:[#allocation5 + $0x1158] sm:$0xff] }
 0x1f6   :  { %v15977_v47 = vadd.f32 %v6422_v44, %v15964_v60  ;;  %v6424_v48 = vpop.f32.mrb[1].mxu0  ;;  %6810 = vmatprep.subr.bf16.mxu1 %v13273_v40  ;;  %v13288_v60 = vcombine.low %v464_v19, %v472_v43  ;;  %v560_v40 = vld [vmem:[#allocation5 + $0xe98] sm:$0xff]  ;;  %v1071_v19 = vld [vmem:[#allocation5 + $0x1e90] sm:$0xff]  ;;  %v13368_v44 = vcombine.low %v544_v30, %v552_v31  ;;  %v13465_v30 = vcombine.high %v640_v25, %v648_v26 }
 0x1f7   :  { %v15980_v51 = vadd.f32 %v6424_v48, %v15966_v32  ;;  %v6426_v52 = vpop.f32.mrb[2].mxu0  ;;  %6727 = vmatpush1.bf16.msra.mxu0 %v13766_v39  ;;  %v13815_v32 = vcombine.high %v991_v0, %v999_v1  ;;  %v13879_v39 = vcombine.high %v1055_v33, %v1063_v35  ;;  %v1079_v43 = vld [vmem:[#allocation5 + $0x1ed0] sm:$0xff]  ;;  %v592_v0 = vld [vmem:[#allocation5 + $0xf98] sm:$0xff] }
 0x1f8   :  { %v6427_v57 = vpop.f32.mrb[3].mxu0  ;;  %6728 = vmatprep.subr.bf16.mxu0 %v13783_v41  ;;  %v568_v41 = vld [vmem:[#allocation5 + $0xed8] sm:$0xff]  ;;  %v13895_v48 = vcombine.high %v1071_v19, %v1079_v43 }
 0x1f9   :  { %6811 = vmatpush1.bf16.msra.mxu1 %v13272_v49  ;;  %v13385_v46 = vcombine.high %v560_v40, %v568_v41  ;;  %v576_v49 = vld [vmem:[#allocation5 + $0xf18] sm:$0xff]  ;;  %v13384_v57 = vcombine.low %v560_v40, %v568_v41 }
 0x1fa   :  { %6812 = vmatprep.subr.bf16.mxu1 %v13289_v56  ;;  %v584_v52 = vld [vmem:[#allocation5 + $0xf58] sm:$0xff]  ;;  %v1095_v56 = vld [vmem:[#allocation5 + $0x1f50] sm:$0xff] }
 0x1fb   :  { %6729 = vmatpush1.bf16.msra.mxu0 %v13782_v55  ;;  %v1087_v55 = vld [vmem:[#allocation5 + $0x1f10] sm:$0xff]  ;;  %v13401_v62 = vcombine.high %v576_v49, %v584_v52  ;;  %v600_v1 = vld [vmem:[#allocation5 + $0xfd8] sm:$0xff] }
 0x1fc   :  { %6730 = vmatprep.subr.bf16.mxu0 %v13799_v59  ;;  %v13894_v59 = vcombine.low %v1071_v19, %v1079_v43  ;;  %v13911_v63 = vcombine.high %v1087_v55, %v1095_v56  ;;  %v13417_v4 = vcombine.high %v592_v0, %v600_v1  ;;  %v656_v33 = vld [vmem:[#allocation5 + $0x1198] sm:$0xff] }
 0x1fd   :  { %6813 = vmatpush1.bf16.msra.mxu1 %v13288_v60  ;;  %v1103_v60 = vld [vmem:[#allocation5 + $0x1f90] sm:$0xff]  ;;  %v664_v35 = vld [vmem:[#allocation5 + $0x11d8] sm:$0xff] }
 0x1fe   :  { %6814 = vmatprep.subr.bf16.mxu1 %v13305_v3  ;;  %v13400_v3 = vcombine.low %v576_v49, %v584_v52  ;;  %v13481_v40 = vcombine.high %v656_v33, %v664_v35  ;;  %v672_v19 = vld [vmem:[#allocation5 + $0x1218] sm:$0xff] }
 0x1ff   :  { %6731 = vmatpush1.bf16.msra.mxu0 %v13798_v2  ;;  %v1111_v2 = vld [vmem:[#allocation5 + $0x1fd0] sm:$0xff]  ;;  %v680_v43 = vld [vmem:[#allocation5 + $0x1258] sm:$0xff] }
 0x200   :  { %6732 = vmatprep.subr.bf16.mxu0 %v13815_v32  ;;  %v13910_v32 = vcombine.low %v1087_v55, %v1095_v56  ;;  %v13927_v5 = vcombine.high %v1103_v60, %v1111_v2  ;;  %v13497_v49 = vcombine.high %v672_v19, %v680_v43  ;;  %v688_v55 = vld [vmem:[#allocation5 + $0x1298] sm:$0xff] }
 0x201   :  { %6815 = vmatpush1.bf16.msra.mxu1 %v13304_v8  ;;  %v97_v8 = vld [vmem:[#allocation5 + $0x20] sm:$0xff]  ;;  %v696_v56 = vld [vmem:[#allocation5 + $0x12d8] sm:$0xff] }
 0x202   :  { %6816 = vmatprep.subr.bf16.mxu1 %v13321_v10  ;;  %v13416_v10 = vcombine.low %v592_v0, %v600_v1  ;;  %v13513_v0 = vcombine.high %v688_v55, %v696_v56 }
 0x203   :  { %6733 = vmatpush1.bf16.msra.mxu0 %v13814_v9  ;;  %v105_v9 = vld [vmem:[#allocation5 + $0x60] sm:$0xff] }
 0x204   :  { %6734 = vmatprep.subr.bf16.mxu0 %v13831_v11  ;;  %v13926_v11 = vcombine.low %v1103_v60, %v1111_v2  ;;  %v12923_v13 = vcombine.high %v97_v8, %v105_v9  ;;  %v704_v60 = vld [vmem:[#allocation5 + $0x1318] sm:$0xff] }
 0x205   :  { %6817 = vmatpush1.bf16.msra.mxu1 %v13320_v17  ;;  %v113_v17 = vld [vmem:[#allocation5 + $0xa0] sm:$0xff]  ;;  %v712_v2 = vld [vmem:[#allocation5 + $0x1358] sm:$0xff] }
 0x206   :  { %6818 = vmatprep.subr.bf16.mxu1 %v13337_v20  ;;  %v13432_v20 = vcombine.low %v608_v6, %v616_v7  ;;  %v13529_v6 = vcombine.high %v704_v60, %v712_v2 }
 0x207   :  { %6735 = vmatpush1.bf16.msra.mxu0 %v13830_v18  ;;  %v121_v18 = vld [vmem:[#allocation5 + $0xe0] sm:$0xff] }
 0x208   :  { %6736 = vmatprep.subr.bf16.mxu0 %v13847_v22  ;;  %v12922_v22 = vcombine.low %v97_v8, %v105_v9  ;;  %v12939_v24 = vcombine.high %v113_v17, %v121_v18  ;;  %v720_v8 = vld [vmem:[#allocation5 + $0x1398] sm:$0xff] }
 0x209   :  { %6819 = vmatpush1.bf16.msra.mxu1 %v13336_v53  ;;  %v129_v53 = vld [vmem:[#allocation5 + $0x120] sm:$0xff]  ;;  %v728_v9 = vld [vmem:[#allocation5 + $0x13d8] sm:$0xff] }
 0x20a   :  { %6820 = vmatprep.subr.bf16.mxu1 %v13353_v54  ;;  %v13448_v54 = vcombine.low %v624_v14, %v632_v15  ;;  %v13545_v14 = vcombine.high %v720_v8, %v728_v9 }
 0x20b   :  { %6737 = vmatpush1.bf16.msra.mxu0 %v13846_v27  ;;  %v137_v27 = vld [vmem:[#allocation5 + $0x160] sm:$0xff] }
 0x20c   :  { %6738 = vmatprep.subr.bf16.mxu0 %v13863_v29  ;;  %v12938_v29 = vcombine.low %v113_v17, %v121_v18  ;;  %v12955_v31 = vcombine.high %v129_v53, %v137_v27  ;;  %v736_v17 = vld [vmem:[#allocation5 + $0x1418] sm:$0xff] }
 0x20d   :  { %6821 = vmatpush1.bf16.msra.mxu1 %v13352_v36  ;;  %v145_v36 = vld [vmem:[#allocation5 + $0x1a0] sm:$0xff]  ;;  %v744_v18 = vld [vmem:[#allocation5 + $0x1458] sm:$0xff] }
 0x20e   :  { %6822 = vmatprep.subr.bf16.mxu1 %v13369_v38  ;;  %v13464_v38 = vcombine.low %v640_v25, %v648_v26  ;;  %v13561_v25 = vcombine.high %v736_v17, %v744_v18 }
 0x20f   :  { %6739 = vmatpush1.bf16.msra.mxu0 %v13862_v37  ;;  %v153_v37 = vld [vmem:[#allocation5 + $0x1e0] sm:$0xff] }
 0x210   :  { %6740 = vmatprep.subr.bf16.mxu0 %v13879_v39  ;;  %v12954_v39 = vcombine.low %v129_v53, %v137_v27  ;;  %v12971_v41 = vcombine.high %v145_v36, %v153_v37  ;;  %v752_v53 = vld [vmem:[#allocation5 + $0x1498] sm:$0xff] }
 0x211   :  { %6823 = vmatpush1.bf16.msra.mxu1 %v13368_v44  ;;  %v161_v44 = vld [vmem:[#allocation5 + $0x220] sm:$0xff]  ;;  %v760_v27 = vld [vmem:[#allocation5 + $0x14d8] sm:$0xff] }
 0x212   :  { %6824 = vmatprep.subr.bf16.mxu1 %v13385_v46  ;;  %v13480_v46 = vcombine.low %v656_v33, %v664_v35  ;;  %v13577_v33 = vcombine.high %v752_v53, %v760_v27 }
 0x213   :  { %6741 = vmatpush1.bf16.msra.mxu0 %v13878_v45  ;;  %v169_v45 = vld [vmem:[#allocation5 + $0x260] sm:$0xff] }
 0x214   :  { %6742 = vmatprep.subr.bf16.mxu0 %v13895_v48  ;;  %v12970_v48 = vcombine.low %v145_v36, %v153_v37  ;;  %v12987_v52 = vcombine.high %v161_v44, %v169_v45  ;;  %v768_v36 = vld [vmem:[#allocation5 + $0x1518] sm:$0xff] }
 0x215   :  { %6825 = vmatpush1.bf16.msra.mxu1 %v13384_v57  ;;  %v177_v57 = vld [vmem:[#allocation5 + $0x2a0] sm:$0xff]  ;;  %v776_v37 = vld [vmem:[#allocation5 + $0x1558] sm:$0xff] }
 0x216   :  { %6826 = vmatprep.subr.bf16.mxu1 %v13401_v62  ;;  %v13496_v62 = vcombine.low %v672_v19, %v680_v43  ;;  %v13593_v19 = vcombine.high %v768_v36, %v776_v37 }
 0x217   :  { %6743 = vmatpush1.bf16.msra.mxu0 %v13894_v59  ;;  %v185_v59 = vld [vmem:[#allocation5 + $0x2e0] sm:$0xff] }
 0x218   :  { %6744 = vmatprep.subr.bf16.mxu0 %v13911_v63  ;;  %v12986_v63 = vcombine.low %v161_v44, %v169_v45  ;;  %v13003_v1 = vcombine.high %v177_v57, %v185_v59  ;;  %v784_v44 = vld [vmem:[#allocation5 + $0x1598] sm:$0xff] }
 0x219   :  { %6827 = vmatpush1.bf16.msra.mxu1 %v13400_v3  ;;  %v193_v3 = vld [vmem:[#allocation5 + $0x320] sm:$0xff]  ;;  %v792_v45 = vld [vmem:[#allocation5 + $0x15d8] sm:$0xff] }
 0x21a   :  { %6828 = vmatprep.subr.bf16.mxu1 %v13417_v4  ;;  %v13512_v4 = vcombine.low %v688_v55, %v696_v56  ;;  %v13609_v55 = vcombine.high %v784_v44, %v792_v45 }
 0x21b   :  { %6745 = vmatpush1.bf16.msra.mxu0 %v13910_v32  ;;  %v201_v32 = vld [vmem:[#allocation5 + $0x360] sm:$0xff] }
 0x21c   :  { %6746 = vmatprep.subr.bf16.mxu0 %v13927_v5  ;;  %v13002_v5 = vcombine.low %v177_v57, %v185_v59  ;;  %v13019_v7 = vcombine.high %v193_v3, %v201_v32  ;;  %v800_v57 = vld [vmem:[#allocation5 + $0x1618] sm:$0xff] }
 0x21d   :  { %6829 = vmatpush1.bf16.msra.mxu1 %v13416_v10  ;;  %v209_v10 = vld [vmem:[#allocation5 + $0x3a0] sm:$0xff]  ;;  %v808_v59 = vld [vmem:[#allocation5 + $0x1658] sm:$0xff] }
 0x21e   :  { %6839 = vmatprep.subr.bf16.mxu1 %v13433_v12  ;;  %v13528_v12 = vcombine.low %v704_v60, %v712_v2  ;;  %v13625_v60 = vcombine.high %v800_v57, %v808_v59 }
 0x21f   :  { %6747 = vmatpush1.bf16.msra.mxu0 %v13926_v11  ;;  %v217_v11 = vld [vmem:[#allocation5 + $0x3e0] sm:$0xff] }
 0x220   :  { %6921 = vmatprep.subr.bf16.mxu0 %v12923_v13  ;;  %6831 = vmatmul.mubr.bf16.vlgmr.msra.gmra.mrb[8].mxu1 %v15928_v21  ;;  %v13018_v13 = vcombine.low %v193_v3, %v201_v32  ;;  %v13035_v15 = vcombine.high %v209_v10, %v217_v11  ;;  %v816_v3 = vld [vmem:[#allocation5 + $0x1698] sm:$0xff] }
 0x221   :  { %6840 = vmatpush1.bf16.msra.mxu1 %v13432_v20  ;;  %6871 = vmatprep.mubr.bf16.mxu1 %v15932_v28  ;;  %v225_v20 = vld [vmem:[#allocation5 + $0x420] sm:$0xff]  ;;  %v824_v32 = vld [vmem:[#allocation5 + $0x16d8] sm:$0xff] }
 0x222   :  { %6749 = vmatmul.mubr.bf16.vlgmr.msra.gmra.mrb[4].mxu0 %v15954_v50  ;;  %6841 = vmatprep.subr.bf16.mxu1 %v13449_v23  ;;  %v13544_v23 = vcombine.low %v720_v8, %v728_v9  ;;  %v13641_v8 = vcombine.high %v816_v3, %v824_v32 }
 0x223   :  { %6922 = vmatpush1.bf16.msra.mxu0 %v12922_v22  ;;  %6953 = vmatprep.mubr.bf16.mxu0 %v15912_v58  ;;  %v233_v22 = vld [vmem:[#allocation5 + $0x460] sm:$0xff] }
 0x224   :  { %6923 = vmatprep.subr.bf16.mxu0 %v12939_v24  ;;  %v13034_v24 = vcombine.low %v209_v10, %v217_v11  ;;  %v13051_v26 = vcombine.high %v225_v20, %v233_v22  ;;  %v832_v10 = vld [vmem:[#allocation5 + $0x1718] sm:$0xff] }
 0x225   :  { %6842 = vmatpush1.bf16.msra.mxu1 %v13448_v54  ;;  %v241_v54 = vld [vmem:[#allocation5 + $0x4a0] sm:$0xff]  ;;  %v840_v11 = vld [vmem:[#allocation5 + $0x1758] sm:$0xff] }
 0x226   :  { %6843 = vmatprep.subr.bf16.mxu1 %v13465_v30  ;;  %v13560_v30 = vcombine.low %v736_v17, %v744_v18  ;;  %v13657_v17 = vcombine.high %v832_v10, %v840_v11 }
 0x227   :  { %6924 = vmatpush1.bf16.msra.mxu0 %v12938_v29  ;;  %v249_v29 = vld [vmem:[#allocation5 + $0x4e0] sm:$0xff] }
 0x228   :  { %6925 = vmatprep.subr.bf16.mxu0 %v12955_v31  ;;  %v13050_v31 = vcombine.low %v225_v20, %v233_v22  ;;  %v13067_v35 = vcombine.high %v241_v54, %v249_v29  ;;  %v848_v20 = vld [vmem:[#allocation5 + $0x1798] sm:$0xff] }
 0x229   :  { %6844 = vmatpush1.bf16.msra.mxu1 %v13464_v38  ;;  %v257_v38 = vld [vmem:[#allocation5 + $0x520] sm:$0xff]  ;;  %v856_v22 = vld [vmem:[#allocation5 + $0x17d8] sm:$0xff] }
 0x22a   :  { %6845 = vmatprep.subr.bf16.mxu1 %v13481_v40  ;;  %v13576_v40 = vcombine.low %v752_v53, %v760_v27  ;;  %v13673_v53 = vcombine.high %v848_v20, %v856_v22 }
 0x22b   :  { %6926 = vmatpush1.bf16.msra.mxu0 %v12954_v39  ;;  %v265_v39 = vld [vmem:[#allocation5 + $0x560] sm:$0xff] }
 0x22c   :  { %6927 = vmatprep.subr.bf16.mxu0 %v12971_v41  ;;  %v13066_v41 = vcombine.low %v241_v54, %v249_v29  ;;  %v13083_v43 = vcombine.high %v257_v38, %v265_v39  ;;  %v864_v54 = vld [vmem:[#allocation5 + $0x1818] sm:$0xff] }
 0x22d   :  { %6846 = vmatpush1.bf16.msra.mxu1 %v13480_v46  ;;  %v273_v46 = vld [vmem:[#allocation5 + $0x5a0] sm:$0xff]  ;;  %v872_v29 = vld [vmem:[#allocation5 + $0x1858] sm:$0xff] }
 0x22e   :  { %6847 = vmatprep.subr.bf16.mxu1 %v13497_v49  ;;  %v13592_v49 = vcombine.low %v768_v36, %v776_v37  ;;  %v13689_v36 = vcombine.high %v864_v54, %v872_v29 }
 0x22f   :  { %6928 = vmatpush1.bf16.msra.mxu0 %v12970_v48  ;;  %v281_v48 = vld [vmem:[#allocation5 + $0x5e0] sm:$0xff] }
 0x230   :  { %6929 = vmatprep.subr.bf16.mxu0 %v12987_v52  ;;  %v13082_v52 = vcombine.low %v257_v38, %v265_v39  ;;  %v13099_v56 = vcombine.high %v273_v46, %v281_v48  ;;  %v880_v38 = vld [vmem:[#allocation5 + $0x1898] sm:$0xff] }
 0x231   :  { %6848 = vmatpush1.bf16.msra.mxu1 %v13496_v62  ;;  %v289_v62 = vld [vmem:[#allocation5 + $0x620] sm:$0xff]  ;;  %v888_v39 = vld [vmem:[#allocation5 + $0x18d8] sm:$0xff] }
 0x232   :  { %6849 = vmatprep.subr.bf16.mxu1 %v13513_v0  ;;  %v13608_v0 = vcombine.low %v784_v44, %v792_v45  ;;  %v13705_v44 = vcombine.high %v880_v38, %v888_v39 }
 0x233   :  { %6930 = vmatpush1.bf16.msra.mxu0 %v12986_v63  ;;  %v297_v63 = vld [vmem:[#allocation5 + $0x660] sm:$0xff] }
 0x234   :  { %6931 = vmatprep.subr.bf16.mxu0 %v13003_v1  ;;  %v13098_v1 = vcombine.low %v273_v46, %v281_v48  ;;  %v13115_v2 = vcombine.high %v289_v62, %v297_v63  ;;  %v896_v46 = vld [vmem:[#allocation5 + $0x1918] sm:$0xff] }
 0x235   :  { %6850 = vmatpush1.bf16.msra.mxu1 %v13512_v4  ;;  %v305_v4 = vld [vmem:[#allocation5 + $0x6a0] sm:$0xff]  ;;  %v904_v48 = vld [vmem:[#allocation5 + $0x1958] sm:$0xff] }
 0x236   :  { %6851 = vmatprep.subr.bf16.mxu1 %v13529_v6  ;;  %v13624_v6 = vcombine.low %v800_v57, %v808_v59  ;;  %v13721_v57 = vcombine.high %v896_v46, %v904_v48 }
 0x237   :  { %6932 = vmatpush1.bf16.msra.mxu0 %v13002_v5  ;;  %v313_v5 = vld [vmem:[#allocation5 + $0x6e0] sm:$0xff] }
 0x238   :  { %6933 = vmatprep.subr.bf16.mxu0 %v13019_v7  ;;  %v13114_v7 = vcombine.low %v289_v62, %v297_v63  ;;  %v13131_v9 = vcombine.high %v305_v4, %v313_v5  ;;  %v912_v62 = vld [vmem:[#allocation5 + $0x1998] sm:$0xff] }
 0x239   :  { %6852 = vmatpush1.bf16.msra.mxu1 %v13528_v12  ;;  %v321_v12 = vld [vmem:[#allocation5 + $0x720] sm:$0xff]  ;;  %v920_v63 = vld [vmem:[#allocation5 + $0x19d8] sm:$0xff] }
 0x23a   :  { %6853 = vmatprep.subr.bf16.mxu1 %v13545_v14  ;;  %v13640_v14 = vcombine.low %v816_v3, %v824_v32  ;;  %v13737_v3 = vcombine.high %v912_v62, %v920_v63 }
 0x23b   :  { %6934 = vmatpush1.bf16.msra.mxu0 %v13018_v13  ;;  %v329_v13 = vld [vmem:[#allocation5 + $0x760] sm:$0xff] }
 0x23c   :  { %6935 = vmatprep.subr.bf16.mxu0 %v13035_v15  ;;  %v13130_v15 = vcombine.low %v305_v4, %v313_v5  ;;  %v13147_v18 = vcombine.high %v321_v12, %v329_v13  ;;  %v928_v4 = vld [vmem:[#allocation5 + $0x1a18] sm:$0xff] }
 0x23d   :  { %6854 = vmatpush1.bf16.msra.mxu1 %v13544_v23  ;;  %v337_v23 = vld [vmem:[#allocation5 + $0x7a0] sm:$0xff]  ;;  %v936_v5 = vld [vmem:[#allocation5 + $0x1a58] sm:$0xff] }
 0x23e   :  { %6855 = vmatprep.subr.bf16.mxu1 %v13561_v25  ;;  %v13656_v25 = vcombine.low %v832_v10, %v840_v11  ;;  %v13753_v10 = vcombine.high %v928_v4, %v936_v5 }
 0x23f   :  { %6936 = vmatpush1.bf16.msra.mxu0 %v13034_v24  ;;  %v345_v24 = vld [vmem:[#allocation5 + $0x7e0] sm:$0xff] }
 0x240   :  { %6937 = vmatprep.subr.bf16.mxu0 %v13051_v26  ;;  %v13146_v26 = vcombine.low %v321_v12, %v329_v13  ;;  %v13163_v27 = vcombine.high %v337_v23, %v345_v24  ;;  %v944_v12 = vld [vmem:[#allocation5 + $0x1a98] sm:$0xff] }
 0x241   :  { %6856 = vmatpush1.bf16.msra.mxu1 %v13560_v30  ;;  %v353_v30 = vld [vmem:[#allocation5 + $0x820] sm:$0xff]  ;;  %v952_v13 = vld [vmem:[#allocation5 + $0x1ad8] sm:$0xff] }
 0x242   :  { %6857 = vmatprep.subr.bf16.mxu1 %v13577_v33  ;;  %v13672_v33 = vcombine.low %v848_v20, %v856_v22  ;;  %v13769_v20 = vcombine.high %v944_v12, %v952_v13 }
 0x243   :  { %6938 = vmatpush1.bf16.msra.mxu0 %v13050_v31  ;;  %v361_v31 = vld [vmem:[#allocation5 + $0x860] sm:$0xff] }
 0x244   :  { %6939 = vmatprep.subr.bf16.mxu0 %v13067_v35  ;;  %v13162_v35 = vcombine.low %v337_v23, %v345_v24  ;;  %v13179_v37 = vcombine.high %v353_v30, %v361_v31  ;;  %v960_v23 = vld [vmem:[#allocation5 + $0x1b18] sm:$0xff] }
 0x245   :  { %6858 = vmatpush1.bf16.msra.mxu1 %v13576_v40  ;;  %v369_v40 = vld [vmem:[#allocation5 + $0x8a0] sm:$0xff]  ;;  %v968_v24 = vld [vmem:[#allocation5 + $0x1b58] sm:$0xff] }
 0x246   :  { %6859 = vmatprep.subr.bf16.mxu1 %v13593_v19  ;;  %v13688_v19 = vcombine.low %v864_v54, %v872_v29  ;;  %v13785_v54 = vcombine.high %v960_v23, %v968_v24 }
 0x247   :  { %6940 = vmatpush1.bf16.msra.mxu0 %v13066_v41  ;;  %v377_v41 = vld [vmem:[#allocation5 + $0x8e0] sm:$0xff] }
 0x248   :  { %6941 = vmatprep.subr.bf16.mxu0 %v13083_v43  ;;  %v13178_v43 = vcombine.low %v353_v30, %v361_v31  ;;  %v13195_v45 = vcombine.high %v369_v40, %v377_v41  ;;  %v976_v31 = vld [vmem:[#allocation5 + $0x1b98] sm:$0xff] }
 0x249   :  { %6860 = vmatpush1.bf16.msra.mxu1 %v13592_v49  ;;  %v385_v49 = vld [vmem:[#allocation5 + $0x920] sm:$0xff] }
 0x24a   :  { %6861 = vmatprep.subr.bf16.mxu1 %v13609_v55  ;;  %v13704_v55 = vcombine.low %v880_v38, %v888_v39  ;;  %v13784_v39 = vcombine.low %v960_v23, %v968_v24  ;;  %v545_v23 = vld [vmem:[#allocation5 + $0xe20] sm:$0xff] }
 0x24b   :  { %6942 = vmatpush1.bf16.msra.mxu0 %v13082_v52  ;;  %v393_v52 = vld [vmem:[#allocation5 + $0x960] sm:$0xff] }
 0x24c   :  { %6943 = vmatprep.subr.bf16.mxu0 %v13099_v56  ;;  %v13194_v56 = vcombine.low %v369_v40, %v377_v41  ;;  %v13211_v59 = vcombine.high %v385_v49, %v393_v52  ;;  %v553_v24 = vld [vmem:[#allocation5 + $0xe60] sm:$0xff] }
 0x24d   :  { %6862 = vmatpush1.bf16.msra.mxu1 %v13608_v0  ;;  %v401_v0 = vld [vmem:[#allocation5 + $0x9a0] sm:$0xff] }
 0x24e   :  { %6863 = vmatprep.subr.bf16.mxu1 %v13625_v60  ;;  %v13720_v60 = vcombine.low %v896_v46, %v904_v48  ;;  %v481_v46 = vld [vmem:[#allocation5 + $0xc20] sm:$0xff] }
 0x24f   :  { %6944 = vmatpush1.bf16.msra.mxu0 %v13098_v1  ;;  %v409_v1 = vld [vmem:[#allocation5 + $0x9e0] sm:$0xff] }
 0x250   :  { %6945 = vmatprep.subr.bf16.mxu0 %v13115_v2  ;;  %v13210_v2 = vcombine.low %v385_v49, %v393_v52  ;;  %v13227_v32 = vcombine.high %v401_v0, %v409_v1  ;;  %v489_v48 = vld [vmem:[#allocation5 + $0xc60] sm:$0xff] }
 0x251   :  { %6864 = vmatpush1.bf16.msra.mxu1 %v13624_v6  ;;  %v417_v6 = vld [vmem:[#allocation5 + $0xa20] sm:$0xff] }
 0x252   :  { %6865 = vmatprep.subr.bf16.mxu1 %v13641_v8  ;;  %v13736_v8 = vcombine.low %v912_v62, %v920_v63  ;;  %v497_v62 = vld [vmem:[#allocation5 + $0xca0] sm:$0xff] }
 0x253   :  { %6946 = vmatpush1.bf16.msra.mxu0 %v13114_v7  ;;  %v425_v7 = vld [vmem:[#allocation5 + $0xa60] sm:$0xff] }
 0x254   :  { %6947 = vmatprep.subr.bf16.mxu0 %v13131_v9  ;;  %v13226_v9 = vcombine.low %v401_v0, %v409_v1  ;;  %v13243_v11 = vcombine.high %v417_v6, %v425_v7  ;;  %v505_v63 = vld [vmem:[#allocation5 + $0xce0] sm:$0xff]  ;;  %v13306_v1 = vcombine.low %v481_v46, %v489_v48 }
 0x255   :  { %6866 = vmatpush1.bf16.msra.mxu1 %v13640_v14  ;;  %v433_v14 = vld [vmem:[#allocation5 + $0xaa0] sm:$0xff] }
 0x256   :  { %6867 = vmatprep.subr.bf16.mxu1 %v13657_v17  ;;  %v13752_v17 = vcombine.low %v928_v4, %v936_v5  ;;  %v513_v4 = vld [vmem:[#allocation5 + $0xd20] sm:$0xff] }
 0x257   :  { %6948 = vmatpush1.bf16.msra.mxu0 %v13130_v15  ;;  %v441_v15 = vld [vmem:[#allocation5 + $0xae0] sm:$0xff] }
 0x258   :  { %6949 = vmatprep.subr.bf16.mxu0 %v13147_v18  ;;  %v13242_v18 = vcombine.low %v417_v6, %v425_v7  ;;  %v13259_v22 = vcombine.high %v433_v14, %v441_v15  ;;  %v521_v5 = vld [vmem:[#allocation5 + $0xd60] sm:$0xff]  ;;  %v13322_v7 = vcombine.low %v497_v62, %v505_v63 }
 0x259   :  { %6868 = vmatpush1.bf16.msra.mxu1 %v13656_v25  ;;  %v449_v25 = vld [vmem:[#allocation5 + $0xb20] sm:$0xff] }
 0x25a   :  { %6869 = vmatprep.subr.bf16.mxu1 %v13673_v53  ;;  %v13768_v53 = vcombine.low %v944_v12, %v952_v13  ;;  %v529_v12 = vld [vmem:[#allocation5 + $0xda0] sm:$0xff] }
 0x25b   :  { %6950 = vmatpush1.bf16.msra.mxu0 %v13146_v26  ;;  %v457_v26 = vld [vmem:[#allocation5 + $0xb60] sm:$0xff] }
 0x25c   :  { %6951 = vmatprep.subr.bf16.mxu0 %v13163_v27  ;;  %v13258_v27 = vcombine.low %v433_v14, %v441_v15  ;;  %v13275_v30 = vcombine.high %v449_v25, %v457_v26  ;;  %v13274_v41 = vcombine.low %v449_v25, %v457_v26  ;;  %v537_v13 = vld [vmem:[#allocation5 + $0xde0] sm:$0xff]  ;;  %v13338_v15 = vcombine.low %v513_v4, %v521_v5 }
 0x25d   :  { %6870 = vmatpush1.bf16.msra.mxu1 %v13672_v33  ;;  %v984_v33 = vld [vmem:[#allocation5 + $0x1bd8] sm:$0xff]  ;;  %v13354_v26 = vcombine.low %v529_v12, %v537_v13 }
 0x25e   :  { %6880 = vmatprep.subr.bf16.mxu1 %v13689_v36  ;;  %v465_v36 = vld [vmem:[#allocation5 + $0xba0] sm:$0xff]  ;;  %v13800_v49 = vcombine.low %v976_v31, %v984_v33 }
 0x25f   :  { %6952 = vmatpush1.bf16.msra.mxu0 %v13162_v35 }
 0x260   :  { %6962 = vmatprep.subr.bf16.mxu0 %v13179_v37  ;;  %6872 = vmatmul.mubr.bf16.vlgmr.msra.gmra.mrb[8].mxu1 %v15942_v34  ;;  %v473_v37 = vld [vmem:[#allocation5 + $0xbe0] sm:$0xff] }
 0x261   :  { %6881 = vmatpush1.bf16.msra.mxu1 %v13688_v19  ;;  %6912 = vmatprep.mubr.bf16.mxu1 %v15946_v42  ;;  %v13801_v19 = vcombine.high %v976_v31, %v984_v33  ;;  %v13290_v52 = vcombine.low %v465_v36, %v473_v37  ;;  %v561_v31 = vld [vmem:[#allocation5 + $0xea0] sm:$0xff] }
 0x262   :  { %6954 = vmatmul.mubr.bf16.vlgmr.msra.gmra.mrb[8].mxu0 %v15922_v16  ;;  %6882 = vmatprep.subr.bf16.mxu1 %v13705_v44  ;;  %v992_v44 = vld [vmem:[#allocation5 + $0x1c18] sm:$0xff]  ;;  %v569_v33 = vld [vmem:[#allocation5 + $0xee0] sm:$0xff] }
 0x263   :  { %6963 = vmatpush1.bf16.msra.mxu0 %v13178_v43  ;;  %6994 = vmatprep.mubr.bf16.mxu0 %v15916_v61  ;;  %v13291_v43 = vcombine.high %v465_v36, %v473_v37  ;;  %v13370_v37 = vcombine.low %v545_v23, %v553_v24 }
 0x264   :  { %6964 = vmatprep.subr.bf16.mxu0 %v13195_v45  ;;  %v1000_v45 = vld [vmem:[#allocation5 + $0x1c58] sm:$0xff] }
 0x265   :  { %6883 = vmatpush1.bf16.msra.mxu1 %v13704_v55  ;;  %v13817_v55 = vcombine.high %v992_v44, %v1000_v45  ;;  %v13816_v0 = vcombine.low %v992_v44, %v1000_v45  ;;  %v13386_v45 = vcombine.low %v561_v31, %v569_v33 }
 0x266   :  { %6884 = vmatprep.subr.bf16.mxu1 %v13721_v57  ;;  %v1008_v57 = vld [vmem:[#allocation5 + $0x1c98] sm:$0xff] }
 0x267   :  { %6965 = vmatpush1.bf16.msra.mxu0 %v13194_v56  ;;  %v13307_v56 = vcombine.high %v481_v46, %v489_v48 }
 0x268   :  { %6966 = vmatprep.subr.bf16.mxu0 %v13211_v59  ;;  %v1016_v59 = vld [vmem:[#allocation5 + $0x1cd8] sm:$0xff] }
 0x269   :  { %6885 = vmatpush1.bf16.msra.mxu1 %v13720_v60  ;;  %v13833_v60 = vcombine.high %v1008_v57, %v1016_v59  ;;  %v13832_v6 = vcombine.low %v1008_v57, %v1016_v59 }
 0x26a   :  { %6886 = vmatprep.subr.bf16.mxu1 %v13737_v3  ;;  %v1024_v3 = vld [vmem:[#allocation5 + $0x1d18] sm:$0xff] }
 0x26b   :  { %6967 = vmatpush1.bf16.msra.mxu0 %v13210_v2  ;;  %v13323_v2 = vcombine.high %v497_v62, %v505_v63 }
 0x26c   :  { %6968 = vmatprep.subr.bf16.mxu0 %v13227_v32  ;;  %v1032_v32 = vld [vmem:[#allocation5 + $0x1d58] sm:$0xff] }
 0x26d   :  { %6887 = vmatpush1.bf16.msra.mxu1 %v13736_v8  ;;  %v13849_v8 = vcombine.high %v1024_v3, %v1032_v32  ;;  %v13848_v14 = vcombine.low %v1024_v3, %v1032_v32 }
 0x26e   :  { %6888 = vmatprep.subr.bf16.mxu1 %v13753_v10  ;;  %v1040_v10 = vld [vmem:[#allocation5 + $0x1d98] sm:$0xff] }
 0x26f   :  { %6969 = vmatpush1.bf16.msra.mxu0 %v13226_v9  ;;  %v13339_v9 = vcombine.high %v513_v4, %v521_v5 }
 0x270   :  { %6970 = vmatprep.subr.bf16.mxu0 %v13243_v11  ;;  %v1048_v11 = vld [vmem:[#allocation5 + $0x1dd8] sm:$0xff] }
 0x271   :  { %6889 = vmatpush1.bf16.msra.mxu1 %v13752_v17  ;;  %v13865_v17 = vcombine.high %v1040_v10, %v1048_v11  ;;  %v13864_v25 = vcombine.low %v1040_v10, %v1048_v11 }
 0x272   :  { %6890 = vmatprep.subr.bf16.mxu1 %v13769_v20  ;;  %v1056_v20 = vld [vmem:[#allocation5 + $0x1e18] sm:$0xff] }
 0x273   :  { %6971 = vmatpush1.bf16.msra.mxu0 %v13242_v18  ;;  %v15990_v29 = vpop.f32.mrb[4].mxu1  ;;  %v13355_v18 = vcombine.high %v529_v12, %v537_v13 }
 0x274   :  { %6972 = vmatprep.subr.bf16.mxu0 %v13259_v22  ;;  %v15992_v35 = vpop.f32.mrb[5].mxu1  ;;  %v1064_v22 = vld [vmem:[#allocation5 + $0x1e58] sm:$0xff] }
 0x275   :  { %v6590_v38 = vpop.f32.mrb[6].mxu1  ;;  %6891 = vmatpush1.bf16.msra.mxu1 %v13768_v53  ;;  %v13881_v53 = vcombine.high %v1056_v20, %v1064_v22  ;;  %v13880_v36 = vcombine.low %v1056_v20, %v1064_v22 }
 0x276   :  { %v6591_v40 = vpop.f32.mrb[7].mxu1  ;;  %6892 = vmatprep.subr.bf16.mxu1 %v13785_v54  ;;  %v1072_v54 = vld [vmem:[#allocation5 + $0x1e98] sm:$0xff] }
 0x277   :  { %6973 = vmatpush1.bf16.msra.mxu0 %v13258_v27  ;;  %v13371_v27 = vcombine.high %v545_v23, %v553_v24  ;;  %v1088_v40 = vld [vmem:[#allocation5 + $0x1f18] sm:$0xff] }
 0x278   :  { %6974 = vmatprep.subr.bf16.mxu0 %v13275_v30  ;;  %v1080_v30 = vld [vmem:[#allocation5 + $0x1ed8] sm:$0xff] }
 0x279   :  { %6893 = vmatpush1.bf16.msra.mxu1 %v13784_v39  ;;  %v13897_v38 = vcombine.high %v1072_v54, %v1080_v30  ;;  %v13387_v39 = vcombine.high %v561_v31, %v569_v33  ;;  %v13896_v44 = vcombine.low %v1072_v54, %v1080_v30 }
 0x27a   :  { %6894 = vmatprep.subr.bf16.mxu1 %v13801_v19  ;;  %v577_v19 = vld [vmem:[#allocation5 + $0xf20] sm:$0xff] }
 0x27b   :  { %6975 = vmatpush1.bf16.msra.mxu0 %v13274_v41  ;;  %v1096_v41 = vld [vmem:[#allocation5 + $0x1f58] sm:$0xff] }
 0x27c   :  { %6976 = vmatprep.subr.bf16.mxu0 %v13291_v43  ;;  %v585_v43 = vld [vmem:[#allocation5 + $0xf60] sm:$0xff]  ;;  %v13913_v46 = vcombine.high %v1088_v40, %v1096_v41  ;;  %v13912_v57 = vcombine.low %v1088_v40, %v1096_v41 }
 0x27d   :  { %6895 = vmatpush1.bf16.msra.mxu1 %v13800_v49  ;;  %v13403_v48 = vcombine.high %v577_v19, %v585_v43  ;;  %v1104_v49 = vld [vmem:[#allocation5 + $0x1f98] sm:$0xff]  ;;  %v13402_v59 = vcombine.low %v577_v19, %v585_v43 }
 0x27e   :  { %6896 = vmatprep.subr.bf16.mxu1 %v13817_v55  ;;  %v593_v55 = vld [vmem:[#allocation5 + $0xfa0] sm:$0xff] }
 0x27f   :  { %6977 = vmatpush1.bf16.msra.mxu0 %v13290_v52  ;;  %v1112_v52 = vld [vmem:[#allocation5 + $0x1fd8] sm:$0xff] }
 0x280   :  { %6978 = vmatprep.subr.bf16.mxu0 %v13307_v56  ;;  %v601_v56 = vld [vmem:[#allocation5 + $0xfe0] sm:$0xff]  ;;  %v13929_v62 = vcombine.high %v1104_v49, %v1112_v52  ;;  %v13928_v3 = vcombine.low %v1104_v49, %v1112_v52 }
 0x281   :  { %6897 = vmatpush1.bf16.msra.mxu1 %v13816_v0  ;;  %v13419_v63 = vcombine.high %v593_v55, %v601_v56  ;;  %v98_v0 = vld [vmem:[#allocation5 + $0x28] sm:$0xff]  ;;  %v13418_v32 = vcombine.low %v593_v55, %v601_v56 }
 0x282   :  { %6898 = vmatprep.subr.bf16.mxu1 %v13833_v60  ;;  %v609_v60 = vld [vmem:[#allocation5 + $0x1020] sm:$0xff] }
 0x283   :  { %6979 = vmatpush1.bf16.msra.mxu0 %v13306_v1  ;;  %v106_v1 = vld [vmem:[#allocation5 + $0x68] sm:$0xff] }
 0x284   :  { %6980 = vmatprep.subr.bf16.mxu0 %v13323_v2  ;;  %v617_v2 = vld [vmem:[#allocation5 + $0x1060] sm:$0xff]  ;;  %v12925_v4 = vcombine.high %v98_v0, %v106_v1  ;;  %v12924_v10 = vcombine.low %v98_v0, %v106_v1 }
 0x285   :  { %6899 = vmatpush1.bf16.msra.mxu1 %v13832_v6  ;;  %v13435_v5 = vcombine.high %v609_v60, %v617_v2  ;;  %v114_v6 = vld [vmem:[#allocation5 + $0xa8] sm:$0xff]  ;;  %v13434_v11 = vcombine.low %v609_v60, %v617_v2 }
 0x286   :  { %6900 = vmatprep.subr.bf16.mxu1 %v13849_v8  ;;  %v625_v8 = vld [vmem:[#allocation5 + $0x10a0] sm:$0xff] }
 0x287   :  { %6981 = vmatpush1.bf16.msra.mxu0 %v13322_v7  ;;  %v122_v7 = vld [vmem:[#allocation5 + $0xe8] sm:$0xff] }
 0x288   :  { %6982 = vmatprep.subr.bf16.mxu0 %v13339_v9  ;;  %v633_v9 = vld [vmem:[#allocation5 + $0x10e0] sm:$0xff]  ;;  %v12941_v12 = vcombine.high %v114_v6, %v122_v7  ;;  %v12940_v20 = vcombine.low %v114_v6, %v122_v7 }
 0x289   :  { %6901 = vmatpush1.bf16.msra.mxu1 %v13848_v14  ;;  %v13451_v13 = vcombine.high %v625_v8, %v633_v9  ;;  %v130_v14 = vld [vmem:[#allocation5 + $0x128] sm:$0xff]  ;;  %v13450_v22 = vcombine.low %v625_v8, %v633_v9 }
 0x28a   :  { %6902 = vmatprep.subr.bf16.mxu1 %v13865_v17  ;;  %v641_v17 = vld [vmem:[#allocation5 + $0x1120] sm:$0xff] }
 0x28b   :  { %6983 = vmatpush1.bf16.msra.mxu0 %v13338_v15  ;;  %v138_v15 = vld [vmem:[#allocation5 + $0x168] sm:$0xff] }
 0x28c   :  { %6984 = vmatprep.subr.bf16.mxu0 %v13355_v18  ;;  %v649_v18 = vld [vmem:[#allocation5 + $0x1160] sm:$0xff]  ;;  %v12957_v23 = vcombine.high %v130_v14, %v138_v15  ;;  %v12956_v54 = vcombine.low %v130_v14, %v138_v15 }
 0x28d   :  { %6903 = vmatpush1.bf16.msra.mxu1 %v13864_v25  ;;  %v13467_v24 = vcombine.high %v641_v17, %v649_v18  ;;  %v146_v25 = vld [vmem:[#allocation5 + $0x1a8] sm:$0xff]  ;;  %v13466_v30 = vcombine.low %v641_v17, %v649_v18 }
 0x28e   :  { %6904 = vmatprep.subr.bf16.mxu1 %v13881_v53  ;;  %v657_v53 = vld [vmem:[#allocation5 + $0x11a0] sm:$0xff] }
 0x28f   :  { %6985 = vmatpush1.bf16.msra.mxu0 %v13354_v26  ;;  %v154_v26 = vld [vmem:[#allocation5 + $0x1e8] sm:$0xff] }
 0x290   :  { %6986 = vmatprep.subr.bf16.mxu0 %v13371_v27  ;;  %v665_v27 = vld [vmem:[#allocation5 + $0x11e0] sm:$0xff]  ;;  %v12973_v31 = vcombine.high %v146_v25, %v154_v26  ;;  %v12972_v40 = vcombine.low %v146_v25, %v154_v26 }
 0x291   :  { %6905 = vmatpush1.bf16.msra.mxu1 %v13880_v36  ;;  %v13483_v33 = vcombine.high %v657_v53, %v665_v27  ;;  %v162_v36 = vld [vmem:[#allocation5 + $0x228] sm:$0xff]  ;;  %v13482_v41 = vcombine.low %v657_v53, %v665_v27 }
 0x292   :  { %6906 = vmatprep.subr.bf16.mxu1 %v13897_v38  ;;  %v673_v38 = vld [vmem:[#allocation5 + $0x1220] sm:$0xff] }
 0x293   :  { %6987 = vmatpush1.bf16.msra.mxu0 %v13370_v37  ;;  %v170_v37 = vld [vmem:[#allocation5 + $0x268] sm:$0xff] }
 0x294   :  { %6988 = vmatprep.subr.bf16.mxu0 %v13387_v39  ;;  %v681_v39 = vld [vmem:[#allocation5 + $0x1260] sm:$0xff]  ;;  %v12989_v19 = vcombine.high %v162_v36, %v170_v37  ;;  %v12988_v49 = vcombine.low %v162_v36, %v170_v37 }
 0x295   :  { %6907 = vmatpush1.bf16.msra.mxu1 %v13896_v44  ;;  %v13499_v43 = vcombine.high %v673_v38, %v681_v39  ;;  %v178_v44 = vld [vmem:[#allocation5 + $0x2a8] sm:$0xff]  ;;  %v13498_v52 = vcombine.low %v673_v38, %v681_v39 }
 0x296   :  { %6908 = vmatprep.subr.bf16.mxu1 %v13913_v46  ;;  %v689_v46 = vld [vmem:[#allocation5 + $0x12a0] sm:$0xff] }
 0x297   :  { %6989 = vmatpush1.bf16.msra.mxu0 %v13386_v45  ;;  %v186_v45 = vld [vmem:[#allocation5 + $0x2e8] sm:$0xff] }
 0x298   :  { %6990 = vmatprep.subr.bf16.mxu0 %v13403_v48  ;;  %v697_v48 = vld [vmem:[#allocation5 + $0x12e0] sm:$0xff]  ;;  %v13005_v55 = vcombine.high %v178_v44, %v186_v45  ;;  %v13004_v0 = vcombine.low %v178_v44, %v186_v45 }
 0x299   :  { %6909 = vmatpush1.bf16.msra.mxu1 %v13912_v57  ;;  %v13515_v56 = vcombine.high %v689_v46, %v697_v48  ;;  %v194_v57 = vld [vmem:[#allocation5 + $0x328] sm:$0xff]  ;;  %v13514_v1 = vcombine.low %v689_v46, %v697_v48 }
 0x29a   :  { %6910 = vmatprep.subr.bf16.mxu1 %v13929_v62  ;;  %v705_v62 = vld [vmem:[#allocation5 + $0x1320] sm:$0xff] }
 0x29b   :  { %6991 = vmatpush1.bf16.msra.mxu0 %v13402_v59  ;;  %v202_v59 = vld [vmem:[#allocation5 + $0x368] sm:$0xff] }
 0x29c   :  { %6992 = vmatprep.subr.bf16.mxu0 %v13419_v63  ;;  %v713_v63 = vld [vmem:[#allocation5 + $0x1360] sm:$0xff]  ;;  %v13021_v60 = vcombine.high %v194_v57, %v202_v59  ;;  %v13020_v6 = vcombine.low %v194_v57, %v202_v59 }
 0x29d   :  { %6911 = vmatpush1.bf16.msra.mxu1 %v13928_v3  ;;  %v13531_v2 = vcombine.high %v705_v62, %v713_v63  ;;  %v210_v3 = vld [vmem:[#allocation5 + $0x3a8] sm:$0xff]  ;;  %v13530_v7 = vcombine.low %v705_v62, %v713_v63 }
 0x29e   :  { %7085 = vmatprep.subr.bf16.mxu1 %v12925_v4  ;;  %v721_v4 = vld [vmem:[#allocation5 + $0x13a0] sm:$0xff] }
 0x29f   :  { %6993 = vmatpush1.bf16.msra.mxu0 %v13418_v32  ;;  %v218_v32 = vld [vmem:[#allocation5 + $0x3e8] sm:$0xff] }
 0x2a0   :  { %7003 = vmatprep.subr.bf16.mxu0 %v13435_v5  ;;  %6913 = vmatmul.mubr.bf16.vlgmr.msra.gmra.mrb[8].mxu1 %v15954_v50  ;;  %v729_v5 = vld [vmem:[#allocation5 + $0x13e0] sm:$0xff]  ;;  %v13037_v8 = vcombine.high %v210_v3, %v218_v32  ;;  %v13036_v14 = vcombine.low %v210_v3, %v218_v32 }
 0x2a1   :  { %7086 = vmatpush1.bf16.msra.mxu1 %v12924_v10  ;;  %7117 = vmatprep.mubr.bf16.mxu1 %v15912_v58  ;;  %v13547_v9 = vcombine.high %v721_v4, %v729_v5  ;;  %v226_v10 = vld [vmem:[#allocation5 + $0x428] sm:$0xff]  ;;  %v13546_v15 = vcombine.low %v721_v4, %v729_v5 }
 0x2a2   :  { %6995 = vmatmul.mubr.bf16.vlgmr.msra.gmra.mrb[8].mxu0 %v15928_v21  ;;  %7087 = vmatprep.subr.bf16.mxu1 %v12941_v12  ;;  %v737_v12 = vld [vmem:[#allocation5 + $0x1420] sm:$0xff] }
 0x2a3   :  { %7004 = vmatpush1.bf16.msra.mxu0 %v13434_v11  ;;  %7035 = vmatprep.mubr.bf16.mxu0 %v15932_v28  ;;  %v234_v11 = vld [vmem:[#allocation5 + $0x468] sm:$0xff] }
 0x2a4   :  { %7005 = vmatprep.subr.bf16.mxu0 %v13451_v13  ;;  %v745_v13 = vld [vmem:[#allocation5 + $0x1460] sm:$0xff]  ;;  %v13053_v17 = vcombine.high %v226_v10, %v234_v11  ;;  %v13052_v25 = vcombine.low %v226_v10, %v234_v11 }
 0x2a5   :  { %7088 = vmatpush1.bf16.msra.mxu1 %v12940_v20  ;;  %v13563_v18 = vcombine.high %v737_v12, %v745_v13  ;;  %v242_v20 = vld [vmem:[#allocation5 + $0x4a8] sm:$0xff]  ;;  %v13562_v26 = vcombine.low %v737_v12, %v745_v13 }
 0x2a6   :  { %7089 = vmatprep.subr.bf16.mxu1 %v12957_v23  ;;  %v753_v23 = vld [vmem:[#allocation5 + $0x14a0] sm:$0xff] }
 0x2a7   :  { %7006 = vmatpush1.bf16.msra.mxu0 %v13450_v22  ;;  %v250_v22 = vld [vmem:[#allocation5 + $0x4e8] sm:$0xff] }
 0x2a8   :  { %7007 = vmatprep.subr.bf16.mxu0 %v13467_v24  ;;  %v761_v24 = vld [vmem:[#allocation5 + $0x14e0] sm:$0xff]  ;;  %v13069_v53 = vcombine.high %v242_v20, %v250_v22  ;;  %v13068_v36 = vcombine.low %v242_v20, %v250_v22 }
 0x2a9   :  { %7090 = vmatpush1.bf16.msra.mxu1 %v12956_v54  ;;  %v13579_v27 = vcombine.high %v753_v23, %v761_v24  ;;  %v258_v54 = vld [vmem:[#allocation5 + $0x528] sm:$0xff]  ;;  %v13578_v37 = vcombine.low %v753_v23, %v761_v24 }
 0x2aa   :  { %7091 = vmatprep.subr.bf16.mxu1 %v12973_v31  ;;  %v769_v31 = vld [vmem:[#allocation5 + $0x1520] sm:$0xff] }
 0x2ab   :  { %7008 = vmatpush1.bf16.msra.mxu0 %v13466_v30  ;;  %v266_v30 = vld [vmem:[#allocation5 + $0x568] sm:$0xff] }
 0x2ac   :  { %7009 = vmatprep.subr.bf16.mxu0 %v13483_v33  ;;  %v777_v33 = vld [vmem:[#allocation5 + $0x1560] sm:$0xff]  ;;  %v13085_v38 = vcombine.high %v258_v54, %v266_v30  ;;  %v13084_v44 = vcombine.low %v258_v54, %v266_v30 }
 0x2ad   :  { %7092 = vmatpush1.bf16.msra.mxu1 %v12972_v40  ;;  %v13595_v39 = vcombine.high %v769_v31, %v777_v33  ;;  %v274_v40 = vld [vmem:[#allocation5 + $0x5a8] sm:$0xff]  ;;  %v13594_v45 = vcombine.low %v769_v31, %v777_v33 }
 0x2ae   :  { %7093 = vmatprep.subr.bf16.mxu1 %v12989_v19  ;;  %v785_v19 = vld [vmem:[#allocation5 + $0x15a0] sm:$0xff] }
 0x2af   :  { %7010 = vmatpush1.bf16.msra.mxu0 %v13482_v41  ;;  %v282_v41 = vld [vmem:[#allocation5 + $0x5e8] sm:$0xff] }
 0x2b0   :  { %7011 = vmatprep.subr.bf16.mxu0 %v13499_v43  ;;  %v793_v43 = vld [vmem:[#allocation5 + $0x15e0] sm:$0xff]  ;;  %v13101_v46 = vcombine.high %v274_v40, %v282_v41  ;;  %v13100_v57 = vcombine.low %v274_v40, %v282_v41 }
 0x2b1   :  { %7094 = vmatpush1.bf16.msra.mxu1 %v12988_v49  ;;  %v13611_v48 = vcombine.high %v785_v19, %v793_v43  ;;  %v290_v49 = vld [vmem:[#allocation5 + $0x628] sm:$0xff]  ;;  %v13610_v59 = vcombine.low %v785_v19, %v793_v43 }
 0x2b2   :  { %7095 = vmatprep.subr.bf16.mxu1 %v13005_v55  ;;  %v801_v55 = vld [vmem:[#allocation5 + $0x1620] sm:$0xff] }
 0x2b3   :  { %7012 = vmatpush1.bf16.msra.mxu0 %v13498_v52  ;;  %v298_v52 = vld [vmem:[#allocation5 + $0x668] sm:$0xff] }
 0x2b4   :  { %7013 = vmatprep.subr.bf16.mxu0 %v13515_v56  ;;  %v809_v56 = vld [vmem:[#allocation5 + $0x1660] sm:$0xff]  ;;  %v13117_v62 = vcombine.high %v290_v49, %v298_v52  ;;  %v13116_v3 = vcombine.low %v290_v49, %v298_v52 }
 0x2b5   :  { %7096 = vmatpush1.bf16.msra.mxu1 %v13004_v0  ;;  %v13627_v63 = vcombine.high %v801_v55, %v809_v56  ;;  %v306_v0 = vld [vmem:[#allocation5 + $0x6a8] sm:$0xff]  ;;  %v13626_v32 = vcombine.low %v801_v55, %v809_v56 }
 0x2b6   :  { %7097 = vmatprep.subr.bf16.mxu1 %v13021_v60  ;;  %v817_v60 = vld [vmem:[#allocation5 + $0x16a0] sm:$0xff] }
 0x2b7   :  { %7014 = vmatpush1.bf16.msra.mxu0 %v13514_v1  ;;  %v314_v1 = vld [vmem:[#allocation5 + $0x6e8] sm:$0xff] }
 0x2b8   :  { %7015 = vmatprep.subr.bf16.mxu0 %v13531_v2  ;;  %v825_v2 = vld [vmem:[#allocation5 + $0x16e0] sm:$0xff]  ;;  %v13133_v4 = vcombine.high %v306_v0, %v314_v1  ;;  %v13132_v10 = vcombine.low %v306_v0, %v314_v1 }
 0x2b9   :  { %7098 = vmatpush1.bf16.msra.mxu1 %v13020_v6  ;;  %v13643_v5 = vcombine.high %v817_v60, %v825_v2  ;;  %v322_v6 = vld [vmem:[#allocation5 + $0x728] sm:$0xff]  ;;  %v13642_v11 = vcombine.low %v817_v60, %v825_v2 }
 0x2ba   :  { %7099 = vmatprep.subr.bf16.mxu1 %v13037_v8  ;;  %v833_v8 = vld [vmem:[#allocation5 + $0x1720] sm:$0xff] }
 0x2bb   :  { %7016 = vmatpush1.bf16.msra.mxu0 %v13530_v7  ;;  %v330_v7 = vld [vmem:[#allocation5 + $0x768] sm:$0xff] }
 0x2bc   :  { %7017 = vmatprep.subr.bf16.mxu0 %v13547_v9  ;;  %v841_v9 = vld [vmem:[#allocation5 + $0x1760] sm:$0xff]  ;;  %v13149_v12 = vcombine.high %v322_v6, %v330_v7  ;;  %v13148_v20 = vcombine.low %v322_v6, %v330_v7 }
 0x2bd   :  { %7100 = vmatpush1.bf16.msra.mxu1 %v13036_v14  ;;  %v13659_v13 = vcombine.high %v833_v8, %v841_v9  ;;  %v338_v14 = vld [vmem:[#allocation5 + $0x7a8] sm:$0xff]  ;;  %v13658_v22 = vcombine.low %v833_v8, %v841_v9 }
 0x2be   :  { %7101 = vmatprep.subr.bf16.mxu1 %v13053_v17  ;;  %v849_v17 = vld [vmem:[#allocation5 + $0x17a0] sm:$0xff] }
 0x2bf   :  { %7018 = vmatpush1.bf16.msra.mxu0 %v13546_v15  ;;  %v346_v15 = vld [vmem:[#allocation5 + $0x7e8] sm:$0xff] }
 0x2c0   :  { %7019 = vmatprep.subr.bf16.mxu0 %v13563_v18  ;;  %v857_v18 = vld [vmem:[#allocation5 + $0x17e0] sm:$0xff]  ;;  %v13165_v23 = vcombine.high %v338_v14, %v346_v15  ;;  %v13164_v54 = vcombine.low %v338_v14, %v346_v15 }
 0x2c1   :  { %7102 = vmatpush1.bf16.msra.mxu1 %v13052_v25  ;;  %v13675_v24 = vcombine.high %v849_v17, %v857_v18  ;;  %v354_v25 = vld [vmem:[#allocation5 + $0x828] sm:$0xff]  ;;  %v13674_v30 = vcombine.low %v849_v17, %v857_v18 }
 0x2c2   :  { %7103 = vmatprep.subr.bf16.mxu1 %v13069_v53  ;;  %v865_v53 = vld [vmem:[#allocation5 + $0x1820] sm:$0xff] }
 0x2c3   :  { %7020 = vmatpush1.bf16.msra.mxu0 %v13562_v26  ;;  %v362_v26 = vld [vmem:[#allocation5 + $0x868] sm:$0xff] }
 0x2c4   :  { %7021 = vmatprep.subr.bf16.mxu0 %v13579_v27  ;;  %v873_v27 = vld [vmem:[#allocation5 + $0x1860] sm:$0xff]  ;;  %v13181_v31 = vcombine.high %v354_v25, %v362_v26  ;;  %v13180_v40 = vcombine.low %v354_v25, %v362_v26 }
 0x2c5   :  { %7104 = vmatpush1.bf16.msra.mxu1 %v13068_v36  ;;  %v13691_v33 = vcombine.high %v865_v53, %v873_v27  ;;  %v370_v36 = vld [vmem:[#allocation5 + $0x8a8] sm:$0xff]  ;;  %v13690_v41 = vcombine.low %v865_v53, %v873_v27 }
 0x2c6   :  { %7105 = vmatprep.subr.bf16.mxu1 %v13085_v38  ;;  %v881_v38 = vld [vmem:[#allocation5 + $0x18a0] sm:$0xff] }
 0x2c7   :  { %7022 = vmatpush1.bf16.msra.mxu0 %v13578_v37  ;;  %v378_v37 = vld [vmem:[#allocation5 + $0x8e8] sm:$0xff] }
 0x2c8   :  { %7023 = vmatprep.subr.bf16.mxu0 %v13595_v39  ;;  %v889_v39 = vld [vmem:[#allocation5 + $0x18e0] sm:$0xff]  ;;  %v13197_v19 = vcombine.high %v370_v36, %v378_v37  ;;  %v13196_v49 = vcombine.low %v370_v36, %v378_v37 }
 0x2c9   :  { %7106 = vmatpush1.bf16.msra.mxu1 %v13084_v44  ;;  %v13707_v43 = vcombine.high %v881_v38, %v889_v39  ;;  %v386_v44 = vld [vmem:[#allocation5 + $0x928] sm:$0xff]  ;;  %v13706_v52 = vcombine.low %v881_v38, %v889_v39  ;;  %v985_v36 = vld [vmem:[#allocation5 + $0x1be0] sm:$0xff] }
 0x2ca   :  { %7107 = vmatprep.subr.bf16.mxu1 %v13101_v46  ;;  %v897_v46 = vld [vmem:[#allocation5 + $0x1920] sm:$0xff] }
 0x2cb   :  { %7024 = vmatpush1.bf16.msra.mxu0 %v13594_v45  ;;  %v394_v45 = vld [vmem:[#allocation5 + $0x968] sm:$0xff] }
 0x2cc   :  { %7025 = vmatprep.subr.bf16.mxu0 %v13611_v48  ;;  %v905_v48 = vld [vmem:[#allocation5 + $0x1960] sm:$0xff]  ;;  %v13213_v55 = vcombine.high %v386_v44, %v394_v45  ;;  %v13212_v0 = vcombine.low %v386_v44, %v394_v45  ;;  %v482_v44 = vld [vmem:[#allocation5 + $0xc28] sm:$0xff] }
 0x2cd   :  { %7108 = vmatpush1.bf16.msra.mxu1 %v13100_v57  ;;  %v13723_v56 = vcombine.high %v897_v46, %v905_v48  ;;  %v402_v57 = vld [vmem:[#allocation5 + $0x9a8] sm:$0xff]  ;;  %v13722_v1 = vcombine.low %v897_v46, %v905_v48  ;;  %v993_v46 = vld [vmem:[#allocation5 + $0x1c20] sm:$0xff] }
 0x2ce   :  { %7109 = vmatprep.subr.bf16.mxu1 %v13117_v62  ;;  %v913_v62 = vld [vmem:[#allocation5 + $0x19a0] sm:$0xff]  ;;  %v490_v45 = vld [vmem:[#allocation5 + $0xc68] sm:$0xff] }
 0x2cf   :  { %7026 = vmatpush1.bf16.msra.mxu0 %v13610_v59  ;;  %v410_v59 = vld [vmem:[#allocation5 + $0x9e8] sm:$0xff]  ;;  %v1001_v48 = vld [vmem:[#allocation5 + $0x1c60] sm:$0xff] }
 0x2d0   :  { %7027 = vmatprep.subr.bf16.mxu0 %v13627_v63  ;;  %v921_v63 = vld [vmem:[#allocation5 + $0x19e0] sm:$0xff]  ;;  %v13229_v60 = vcombine.high %v402_v57, %v410_v59  ;;  %v13228_v6 = vcombine.low %v402_v57, %v410_v59  ;;  %v498_v57 = vld [vmem:[#allocation5 + $0xca8] sm:$0xff] }
 0x2d1   :  { %7110 = vmatpush1.bf16.msra.mxu1 %v13116_v3  ;;  %v13739_v2 = vcombine.high %v913_v62, %v921_v63  ;;  %v418_v3 = vld [vmem:[#allocation5 + $0xa28] sm:$0xff]  ;;  %v13738_v7 = vcombine.low %v913_v62, %v921_v63  ;;  %v1009_v62 = vld [vmem:[#allocation5 + $0x1ca0] sm:$0xff] }
 0x2d2   :  { %7111 = vmatprep.subr.bf16.mxu1 %v13133_v4  ;;  %v929_v4 = vld [vmem:[#allocation5 + $0x1a20] sm:$0xff]  ;;  %v506_v59 = vld [vmem:[#allocation5 + $0xce8] sm:$0xff] }
 0x2d3   :  { %7028 = vmatpush1.bf16.msra.mxu0 %v13626_v32  ;;  %v426_v32 = vld [vmem:[#allocation5 + $0xa68] sm:$0xff]  ;;  %v1017_v63 = vld [vmem:[#allocation5 + $0x1ce0] sm:$0xff] }
 0x2d4   :  { %7029 = vmatprep.subr.bf16.mxu0 %v13643_v5  ;;  %v937_v5 = vld [vmem:[#allocation5 + $0x1a60] sm:$0xff]  ;;  %v13245_v8 = vcombine.high %v418_v3, %v426_v32  ;;  %v13244_v14 = vcombine.low %v418_v3, %v426_v32  ;;  %v514_v3 = vld [vmem:[#allocation5 + $0xd28] sm:$0xff] }
 0x2d5   :  { %7112 = vmatpush1.bf16.msra.mxu1 %v13132_v10  ;;  %v13755_v9 = vcombine.high %v929_v4, %v937_v5  ;;  %v434_v10 = vld [vmem:[#allocation5 + $0xaa8] sm:$0xff]  ;;  %v13754_v15 = vcombine.low %v929_v4, %v937_v5  ;;  %v1025_v4 = vld [vmem:[#allocation5 + $0x1d20] sm:$0xff] }
 0x2d6   :  { %7113 = vmatprep.subr.bf16.mxu1 %v13149_v12  ;;  %v945_v12 = vld [vmem:[#allocation5 + $0x1aa0] sm:$0xff]  ;;  %v522_v32 = vld [vmem:[#allocation5 + $0xd68] sm:$0xff] }
 0x2d7   :  { %7030 = vmatpush1.bf16.msra.mxu0 %v13642_v11  ;;  %v442_v11 = vld [vmem:[#allocation5 + $0xae8] sm:$0xff]  ;;  %v1033_v5 = vld [vmem:[#allocation5 + $0x1d60] sm:$0xff] }
 0x2d8   :  { %7031 = vmatprep.subr.bf16.mxu0 %v13659_v13  ;;  %v953_v13 = vld [vmem:[#allocation5 + $0x1ae0] sm:$0xff]  ;;  %v13261_v17 = vcombine.high %v434_v10, %v442_v11  ;;  %v13260_v25 = vcombine.low %v434_v10, %v442_v11  ;;  %v530_v10 = vld [vmem:[#allocation5 + $0xda8] sm:$0xff] }
 0x2d9   :  { %7114 = vmatpush1.bf16.msra.mxu1 %v13148_v20  ;;  %v13771_v18 = vcombine.high %v945_v12, %v953_v13  ;;  %v450_v20 = vld [vmem:[#allocation5 + $0xb28] sm:$0xff]  ;;  %v13770_v26 = vcombine.low %v945_v12, %v953_v13  ;;  %v1041_v12 = vld [vmem:[#allocation5 + $0x1da0] sm:$0xff] }
 0x2da   :  { %7115 = vmatprep.subr.bf16.mxu1 %v13165_v23  ;;  %v961_v23 = vld [vmem:[#allocation5 + $0x1b20] sm:$0xff]  ;;  %v538_v11 = vld [vmem:[#allocation5 + $0xde8] sm:$0xff] }
 0x2db   :  { %7032 = vmatpush1.bf16.msra.mxu0 %v13658_v22  ;;  %v458_v22 = vld [vmem:[#allocation5 + $0xb68] sm:$0xff]  ;;  %v1049_v13 = vld [vmem:[#allocation5 + $0x1de0] sm:$0xff] }
 0x2dc   :  { %7033 = vmatprep.subr.bf16.mxu0 %v13675_v24  ;;  %v969_v24 = vld [vmem:[#allocation5 + $0x1b60] sm:$0xff]  ;;  %v13277_v53 = vcombine.high %v450_v20, %v458_v22  ;;  %v13276_v38 = vcombine.low %v450_v20, %v458_v22  ;;  %v546_v20 = vld [vmem:[#allocation5 + $0xe28] sm:$0xff] }
 0x2dd   :  { %7116 = vmatpush1.bf16.msra.mxu1 %v13164_v54  ;;  %v13787_v27 = vcombine.high %v961_v23, %v969_v24  ;;  %v466_v54 = vld [vmem:[#allocation5 + $0xba8] sm:$0xff] }
 0x2de   :  { %7126 = vmatprep.subr.bf16.mxu1 %v13181_v31  ;;  %v554_v22 = vld [vmem:[#allocation5 + $0xe68] sm:$0xff] }
 0x2df   :  { %7034 = vmatpush1.bf16.msra.mxu0 %v13674_v30  ;;  %v474_v30 = vld [vmem:[#allocation5 + $0xbe8] sm:$0xff] }
 0x2e0   :  { %7044 = vmatprep.subr.bf16.mxu0 %v13691_v33  ;;  %7118 = vmatmul.mubr.bf16.vlgmr.msra.gmra.mrb[12].mxu1 %v15922_v16  ;;  %v977_v33 = vld [vmem:[#allocation5 + $0x1ba0] sm:$0xff] }
 0x2e1   :  { %7127 = vmatpush1.bf16.msra.mxu1 %v13180_v40  ;;  %7158 = vmatprep.mubr.bf16.mxu1 %v15916_v61  ;;  %v13786_v40 = vcombine.low %v961_v23, %v969_v24  ;;  %v1057_v23 = vld [vmem:[#allocation5 + $0x1e20] sm:$0xff] }
 0x2e2   :  { %7036 = vmatmul.mubr.bf16.vlgmr.msra.gmra.mrb[8].mxu0 %v15942_v34  ;;  %7128 = vmatprep.subr.bf16.mxu1 %v13197_v19  ;;  %v1065_v24 = vld [vmem:[#allocation5 + $0x1e60] sm:$0xff] }
 0x2e3   :  { %7045 = vmatpush1.bf16.msra.mxu0 %v13690_v41  ;;  %7076 = vmatprep.mubr.bf16.mxu0 %v15946_v42  ;;  %v13293_v41 = vcombine.high %v466_v54, %v474_v30 }
 0x2e4   :  { %7046 = vmatprep.subr.bf16.mxu0 %v13707_v43  ;;  %v13803_v43 = vcombine.high %v977_v33, %v985_v36 }
 0x2e5   :  { %7129 = vmatpush1.bf16.msra.mxu1 %v13196_v49  ;;  %v13292_v49 = vcombine.low %v466_v54, %v474_v30  ;;  %v562_v54 = vld [vmem:[#allocation5 + $0xea8] sm:$0xff] }
 0x2e6   :  { %7130 = vmatprep.subr.bf16.mxu1 %v13213_v55  ;;  %v13309_v55 = vcombine.high %v482_v44, %v490_v45  ;;  %v570_v30 = vld [vmem:[#allocation5 + $0xee8] sm:$0xff] }
 0x2e7   :  { %7047 = vmatpush1.bf16.msra.mxu0 %v13706_v52  ;;  %v13802_v52 = vcombine.low %v977_v33, %v985_v36  ;;  %v1073_v33 = vld [vmem:[#allocation5 + $0x1ea0] sm:$0xff] }
 0x2e8   :  { %7048 = vmatprep.subr.bf16.mxu0 %v13723_v56  ;;  %v13819_v56 = vcombine.high %v993_v46, %v1001_v48  ;;  %v1081_v36 = vld [vmem:[#allocation5 + $0x1ee0] sm:$0xff] }
 0x2e9   :  { %7131 = vmatpush1.bf16.msra.mxu1 %v13212_v0  ;;  %v13308_v0 = vcombine.low %v482_v44, %v490_v45  ;;  %v1089_v44 = vld [vmem:[#allocation5 + $0x1f20] sm:$0xff] }
 0x2ea   :  { %7132 = vmatprep.subr.bf16.mxu1 %v13229_v60  ;;  %v13325_v60 = vcombine.high %v498_v57, %v506_v59  ;;  %v1097_v45 = vld [vmem:[#allocation5 + $0x1f60] sm:$0xff] }
 0x2eb   :  { %7049 = vmatpush1.bf16.msra.mxu0 %v13722_v1  ;;  %v13818_v1 = vcombine.low %v993_v46, %v1001_v48  ;;  %v13388_v46 = vcombine.low %v562_v54, %v570_v30  ;;  %v13898_v48 = vcombine.low %v1073_v33, %v1081_v36 }
 0x2ec   :  { %7050 = vmatprep.subr.bf16.mxu0 %v13739_v2  ;;  %v13835_v2 = vcombine.high %v1009_v62, %v1017_v63 }
 0x2ed   :  { %7133 = vmatpush1.bf16.msra.mxu1 %v13228_v6  ;;  %v13324_v6 = vcombine.low %v498_v57, %v506_v59  ;;  %v1105_v57 = vld [vmem:[#allocation5 + $0x1fa0] sm:$0xff] }
 0x2ee   :  { %7134 = vmatprep.subr.bf16.mxu1 %v13245_v8  ;;  %v13341_v8 = vcombine.high %v514_v3, %v522_v32  ;;  %v1113_v59 = vld [vmem:[#allocation5 + $0x1fe0] sm:$0xff] }
 0x2ef   :  { %7051 = vmatpush1.bf16.msra.mxu0 %v13738_v7  ;;  %v13834_v7 = vcombine.low %v1009_v62, %v1017_v63  ;;  %v13914_v63 = vcombine.low %v1089_v44, %v1097_v45 }
 0x2f0   :  { %7052 = vmatprep.subr.bf16.mxu0 %v13755_v9  ;;  %v13851_v9 = vcombine.high %v1025_v4, %v1033_v5 }
 0x2f1   :  { %7135 = vmatpush1.bf16.msra.mxu1 %v13244_v14  ;;  %v13340_v14 = vcombine.low %v514_v3, %v522_v32  ;;  %v99_v3 = vld [vmem:[#allocation5 + $0x30] sm:$0xff] }
 0x2f2   :  { %7136 = vmatprep.subr.bf16.mxu1 %v13261_v17  ;;  %v13357_v17 = vcombine.high %v530_v10, %v538_v11  ;;  %v107_v32 = vld [vmem:[#allocation5 + $0x70] sm:$0xff] }
 0x2f3   :  { %7053 = vmatpush1.bf16.msra.mxu0 %v13754_v15  ;;  %v13850_v15 = vcombine.low %v1025_v4, %v1033_v5  ;;  %v13930_v5 = vcombine.low %v1105_v57, %v1113_v59 }
 0x2f4   :  { %7054 = vmatprep.subr.bf16.mxu0 %v13771_v18  ;;  %v13867_v18 = vcombine.high %v1041_v12, %v1049_v13 }
 0x2f5   :  { %v16002_v31 = vpop.f32.mrb[4].mxu0  ;;  %7137 = vmatpush1.bf16.msra.mxu1 %v13260_v25  ;;  %v13356_v25 = vcombine.low %v530_v10, %v538_v11  ;;  %v115_v10 = vld [vmem:[#allocation5 + $0xb0] sm:$0xff] }
 0x2f6   :  { %v16004_v37 = vpop.f32.mrb[5].mxu0  ;;  %7138 = vmatprep.subr.bf16.mxu1 %v13277_v53  ;;  %v13373_v53 = vcombine.high %v546_v20, %v554_v22  ;;  %v123_v11 = vld [vmem:[#allocation5 + $0xf0] sm:$0xff] }
 0x2f7   :  { %v6754_v39 = vpop.f32.mrb[6].mxu0  ;;  %7055 = vmatpush1.bf16.msra.mxu0 %v13770_v26  ;;  %v13866_v26 = vcombine.low %v1041_v12, %v1049_v13  ;;  %v12926_v13 = vcombine.low %v99_v3, %v107_v32 }
 0x2f8   :  { %v6755_v19 = vpop.f32.mrb[7].mxu0  ;;  %7056 = vmatprep.subr.bf16.mxu0 %v13787_v27  ;;  %v13883_v27 = vcombine.high %v1057_v23, %v1065_v24  ;;  %v13882_v39 = vcombine.low %v1057_v23, %v1065_v24  ;;  %v12942_v24 = vcombine.low %v115_v10, %v123_v11 }
 0x2f9   :  { %7139 = vmatpush1.bf16.msra.mxu1 %v13276_v38  ;;  %v13372_v38 = vcombine.low %v546_v20, %v554_v22  ;;  %v578_v19 = vld [vmem:[#allocation5 + $0xf28] sm:$0xff]  ;;  %v131_v20 = vld [vmem:[#allocation5 + $0x130] sm:$0xff] }
 0x2fa   :  { %7140 = vmatprep.subr.bf16.mxu1 %v13293_v41  ;;  %v13899_v41 = vcombine.high %v1073_v33, %v1081_v36  ;;  %v139_v22 = vld [vmem:[#allocation5 + $0x170] sm:$0xff] }
 0x2fb   :  { %7057 = vmatpush1.bf16.msra.mxu0 %v13786_v40  ;;  %v13389_v40 = vcombine.high %v562_v54, %v570_v30  ;;  %v147_v54 = vld [vmem:[#allocation5 + $0x1b0] sm:$0xff]  ;;  %v12958_v36 = vcombine.low %v131_v20, %v139_v22 }
 0x2fc   :  { %7058 = vmatprep.subr.bf16.mxu0 %v13803_v43  ;;  %v586_v43 = vld [vmem:[#allocation5 + $0xf68] sm:$0xff]  ;;  %v155_v30 = vld [vmem:[#allocation5 + $0x1f0] sm:$0xff] }
 0x2fd   :  { %7141 = vmatpush1.bf16.msra.mxu1 %v13292_v49  ;;  %v13405_v49 = vcombine.high %v578_v19, %v586_v43  ;;  %v13404_v62 = vcombine.low %v578_v19, %v586_v43  ;;  %v163_v19 = vld [vmem:[#allocation5 + $0x230] sm:$0xff] }
 0x2fe   :  { %7142 = vmatprep.subr.bf16.mxu1 %v13309_v55  ;;  %v594_v55 = vld [vmem:[#allocation5 + $0xfa8] sm:$0xff]  ;;  %v171_v43 = vld [vmem:[#allocation5 + $0x270] sm:$0xff] }
 0x2ff   :  { %7059 = vmatpush1.bf16.msra.mxu0 %v13802_v52  ;;  %v13915_v52 = vcombine.high %v1089_v44, %v1097_v45  ;;  %v12974_v45 = vcombine.low %v147_v54, %v155_v30 }
 0x300   :  { %7060 = vmatprep.subr.bf16.mxu0 %v13819_v56  ;;  %v602_v56 = vld [vmem:[#allocation5 + $0xfe8] sm:$0xff] }
 0x301   :  { %7143 = vmatpush1.bf16.msra.mxu1 %v13308_v0  ;;  %v13421_v0 = vcombine.high %v594_v55, %v602_v56  ;;  %v13420_v4 = vcombine.low %v594_v55, %v602_v56  ;;  %v179_v55 = vld [vmem:[#allocation5 + $0x2b0] sm:$0xff] }
 0x302   :  { %7144 = vmatprep.subr.bf16.mxu1 %v13325_v60  ;;  %v610_v60 = vld [vmem:[#allocation5 + $0x1028] sm:$0xff]  ;;  %v187_v56 = vld [vmem:[#allocation5 + $0x2f0] sm:$0xff] }
 0x303   :  { %7061 = vmatpush1.bf16.msra.mxu0 %v13818_v1  ;;  %v13931_v1 = vcombine.high %v1105_v57, %v1113_v59  ;;  %v12990_v59 = vcombine.low %v163_v19, %v171_v43 }
 0x304   :  { %7062 = vmatprep.subr.bf16.mxu0 %v13835_v2  ;;  %v618_v2 = vld [vmem:[#allocation5 + $0x1068] sm:$0xff] }
 0x305   :  { %7145 = vmatpush1.bf16.msra.mxu1 %v13324_v6  ;;  %v13437_v6 = vcombine.high %v610_v60, %v618_v2  ;;  %v13436_v12 = vcombine.low %v610_v60, %v618_v2  ;;  %v195_v60 = vld [vmem:[#allocation5 + $0x330] sm:$0xff] }
 0x306   :  { %7146 = vmatprep.subr.bf16.mxu1 %v13341_v8  ;;  %v626_v8 = vld [vmem:[#allocation5 + $0x10a8] sm:$0xff]  ;;  %v203_v2 = vld [vmem:[#allocation5 + $0x370] sm:$0xff] }
 0x307   :  { %7063 = vmatpush1.bf16.msra.mxu0 %v13834_v7  ;;  %v12927_v7 = vcombine.high %v99_v3, %v107_v32  ;;  %v13006_v32 = vcombine.low %v179_v55, %v187_v56 }
 0x308   :  { %7064 = vmatprep.subr.bf16.mxu0 %v13851_v9  ;;  %v634_v9 = vld [vmem:[#allocation5 + $0x10e8] sm:$0xff] }
 0x309   :  { %7147 = vmatpush1.bf16.msra.mxu1 %v13340_v14  ;;  %v13453_v14 = vcombine.high %v626_v8, %v634_v9  ;;  %v13452_v23 = vcombine.low %v626_v8, %v634_v9  ;;  %v211_v8 = vld [vmem:[#allocation5 + $0x3b0] sm:$0xff] }
 0x30a   :  { %7148 = vmatprep.subr.bf16.mxu1 %v13357_v17  ;;  %v642_v17 = vld [vmem:[#allocation5 + $0x1128] sm:$0xff]  ;;  %v219_v9 = vld [vmem:[#allocation5 + $0x3f0] sm:$0xff] }
 0x30b   :  { %7065 = vmatpush1.bf16.msra.mxu0 %v13850_v15  ;;  %v12943_v15 = vcombine.high %v115_v10, %v123_v11  ;;  %v13022_v11 = vcombine.low %v195_v60, %v203_v2 }
 0x30c   :  { %7066 = vmatprep.subr.bf16.mxu0 %v13867_v18  ;;  %v650_v18 = vld [vmem:[#allocation5 + $0x1168] sm:$0xff] }
 0x30d   :  { %7149 = vmatpush1.bf16.msra.mxu1 %v13356_v25  ;;  %v13469_v25 = vcombine.high %v642_v17, %v650_v18  ;;  %v13468_v33 = vcombine.low %v642_v17, %v650_v18  ;;  %v227_v17 = vld [vmem:[#allocation5 + $0x430] sm:$0xff] }
 0x30e   :  { %7150 = vmatprep.subr.bf16.mxu1 %v13373_v53  ;;  %v658_v53 = vld [vmem:[#allocation5 + $0x11a8] sm:$0xff]  ;;  %v235_v18 = vld [vmem:[#allocation5 + $0x470] sm:$0xff] }
 0x30f   :  { %7067 = vmatpush1.bf16.msra.mxu0 %v13866_v26  ;;  %v12959_v26 = vcombine.high %v131_v20, %v139_v22  ;;  %v13038_v22 = vcombine.low %v211_v8, %v219_v9 }
 0x310   :  { %7068 = vmatprep.subr.bf16.mxu0 %v13883_v27  ;;  %v666_v27 = vld [vmem:[#allocation5 + $0x11e8] sm:$0xff] }
 0x311   :  { %7151 = vmatpush1.bf16.msra.mxu1 %v13372_v38  ;;  %v13485_v38 = vcombine.high %v658_v53, %v666_v27  ;;  %v13484_v44 = vcombine.low %v658_v53, %v666_v27  ;;  %v243_v53 = vld [vmem:[#allocation5 + $0x4b0] sm:$0xff] }
 0x312   :  { %7152 = vmatprep.subr.bf16.mxu1 %v13389_v40  ;;  %v674_v40 = vld [vmem:[#allocation5 + $0x1228] sm:$0xff]  ;;  %v251_v27 = vld [vmem:[#allocation5 + $0x4f0] sm:$0xff] }
 0x313   :  { %7069 = vmatpush1.bf16.msra.mxu0 %v13882_v39  ;;  %v12975_v39 = vcombine.high %v147_v54, %v155_v30  ;;  %v13054_v30 = vcombine.low %v227_v17, %v235_v18 }
 0x314   :  { %7070 = vmatprep.subr.bf16.mxu0 %v13899_v41  ;;  %v682_v41 = vld [vmem:[#allocation5 + $0x1268] sm:$0xff] }
 0x315   :  { %7153 = vmatpush1.bf16.msra.mxu1 %v13388_v46  ;;  %v13501_v46 = vcombine.high %v674_v40, %v682_v41  ;;  %v13500_v57 = vcombine.low %v674_v40, %v682_v41  ;;  %v259_v40 = vld [vmem:[#allocation5 + $0x530] sm:$0xff] }
 0x316   :  { %7154 = vmatprep.subr.bf16.mxu1 %v13405_v49  ;;  %v690_v49 = vld [vmem:[#allocation5 + $0x12a8] sm:$0xff]  ;;  %v267_v41 = vld [vmem:[#allocation5 + $0x570] sm:$0xff] }
 0x317   :  { %7071 = vmatpush1.bf16.msra.mxu0 %v13898_v48  ;;  %v12991_v48 = vcombine.high %v163_v19, %v171_v43  ;;  %v13070_v43 = vcombine.low %v243_v53, %v251_v27 }
 0x318   :  { %7072 = vmatprep.subr.bf16.mxu0 %v13915_v52  ;;  %v698_v52 = vld [vmem:[#allocation5 + $0x12e8] sm:$0xff] }
 0x319   :  { %7155 = vmatpush1.bf16.msra.mxu1 %v13404_v62  ;;  %v13517_v62 = vcombine.high %v690_v49, %v698_v52  ;;  %v13516_v3 = vcombine.low %v690_v49, %v698_v52  ;;  %v275_v49 = vld [vmem:[#allocation5 + $0x5b0] sm:$0xff] }
 0x31a   :  { %7156 = vmatprep.subr.bf16.mxu1 %v13421_v0  ;;  %v706_v0 = vld [vmem:[#allocation5 + $0x1328] sm:$0xff]  ;;  %v283_v52 = vld [vmem:[#allocation5 + $0x5f0] sm:$0xff] }
 0x31b   :  { %7073 = vmatpush1.bf16.msra.mxu0 %v13914_v63  ;;  %v13007_v63 = vcombine.high %v179_v55, %v187_v56  ;;  %v13086_v56 = vcombine.low %v259_v40, %v267_v41 }
 0x31c   :  { %7074 = vmatprep.subr.bf16.mxu0 %v13931_v1  ;;  %v714_v1 = vld [vmem:[#allocation5 + $0x1368] sm:$0xff] }
 0x31d   :  { %7157 = vmatpush1.bf16.msra.mxu1 %v13420_v4  ;;  %v13533_v4 = vcombine.high %v706_v0, %v714_v1  ;;  %v13532_v10 = vcombine.low %v706_v0, %v714_v1  ;;  %v291_v0 = vld [vmem:[#allocation5 + $0x630] sm:$0xff] }
 0x31e   :  { %7167 = vmatprep.subr.bf16.mxu1 %v13437_v6  ;;  %v722_v6 = vld [vmem:[#allocation5 + $0x13a8] sm:$0xff]  ;;  %v299_v1 = vld [vmem:[#allocation5 + $0x670] sm:$0xff] }
 0x31f   :  { %7075 = vmatpush1.bf16.msra.mxu0 %v13930_v5  ;;  %v13023_v5 = vcombine.high %v195_v60, %v203_v2  ;;  %v13102_v2 = vcombine.low %v275_v49, %v283_v52 }
 0x320   :  { %7249 = vmatprep.subr.bf16.mxu0 %v12927_v7  ;;  %7159 = vmatmul.mubr.bf16.vlgmr.msra.gmra.mrb[12].mxu1 %v15928_v21  ;;  %v730_v7 = vld [vmem:[#allocation5 + $0x13e8] sm:$0xff] }
 0x321   :  { %7168 = vmatpush1.bf16.msra.mxu1 %v13436_v12  ;;  %7199 = vmatprep.mubr.bf16.mxu1 %v15932_v28  ;;  %v13549_v12 = vcombine.high %v722_v6, %v730_v7  ;;  %v13548_v20 = vcombine.low %v722_v6, %v730_v7  ;;  %v307_v6 = vld [vmem:[#allocation5 + $0x6b0] sm:$0xff] }
 0x322   :  { %7077 = vmatmul.mubr.bf16.vlgmr.msra.gmra.mrb[8].mxu0 %v15954_v50  ;;  %7169 = vmatprep.subr.bf16.mxu1 %v13453_v14  ;;  %v738_v14 = vld [vmem:[#allocation5 + $0x1428] sm:$0xff]  ;;  %v315_v7 = vld [vmem:[#allocation5 + $0x6f0] sm:$0xff] }
 0x323   :  { %7250 = vmatpush1.bf16.msra.mxu0 %v12926_v13  ;;  %7281 = vmatprep.mubr.bf16.mxu0 %v15912_v58  ;;  %v13039_v13 = vcombine.high %v211_v8, %v219_v9  ;;  %v13118_v9 = vcombine.low %v291_v0, %v299_v1 }
 0x324   :  { %7251 = vmatprep.subr.bf16.mxu0 %v12943_v15  ;;  %v746_v15 = vld [vmem:[#allocation5 + $0x1468] sm:$0xff] }
 0x325   :  { %7170 = vmatpush1.bf16.msra.mxu1 %v13452_v23  ;;  %v13565_v23 = vcombine.high %v738_v14, %v746_v15  ;;  %v13564_v54 = vcombine.low %v738_v14, %v746_v15  ;;  %v323_v14 = vld [vmem:[#allocation5 + $0x730] sm:$0xff] }
 0x326   :  { %7171 = vmatprep.subr.bf16.mxu1 %v13469_v25  ;;  %v754_v25 = vld [vmem:[#allocation5 + $0x14a8] sm:$0xff]  ;;  %v331_v15 = vld [vmem:[#allocation5 + $0x770] sm:$0xff] }
 0x327   :  { %7252 = vmatpush1.bf16.msra.mxu0 %v12942_v24  ;;  %v13055_v24 = vcombine.high %v227_v17, %v235_v18  ;;  %v13134_v18 = vcombine.low %v307_v6, %v315_v7 }
 0x328   :  { %7253 = vmatprep.subr.bf16.mxu0 %v12959_v26  ;;  %v762_v26 = vld [vmem:[#allocation5 + $0x14e8] sm:$0xff] }
 0x329   :  { %7172 = vmatpush1.bf16.msra.mxu1 %v13468_v33  ;;  %v13581_v33 = vcombine.high %v754_v25, %v762_v26  ;;  %v13580_v19 = vcombine.low %v754_v25, %v762_v26  ;;  %v339_v25 = vld [vmem:[#allocation5 + $0x7b0] sm:$0xff] }
 0x32a   :  { %7173 = vmatprep.subr.bf16.mxu1 %v13485_v38  ;;  %v770_v38 = vld [vmem:[#allocation5 + $0x1528] sm:$0xff]  ;;  %v347_v26 = vld [vmem:[#allocation5 + $0x7f0] sm:$0xff] }
 0x32b   :  { %7254 = vmatpush1.bf16.msra.mxu0 %v12958_v36  ;;  %v13071_v36 = vcombine.high %v243_v53, %v251_v27  ;;  %v13150_v27 = vcombine.low %v323_v14, %v331_v15 }
 0x32c   :  { %7255 = vmatprep.subr.bf16.mxu0 %v12975_v39  ;;  %v778_v39 = vld [vmem:[#allocation5 + $0x1568] sm:$0xff] }
 0x32d   :  { %7174 = vmatpush1.bf16.msra.mxu1 %v13484_v44  ;;  %v13597_v44 = vcombine.high %v770_v38, %v778_v39  ;;  %v13596_v55 = vcombine.low %v770_v38, %v778_v39  ;;  %v355_v38 = vld [vmem:[#allocation5 + $0x830] sm:$0xff] }
 0x32e   :  { %7175 = vmatprep.subr.bf16.mxu1 %v13501_v46  ;;  %v786_v46 = vld [vmem:[#allocation5 + $0x15a8] sm:$0xff]  ;;  %v363_v39 = vld [vmem:[#allocation5 + $0x870] sm:$0xff] }
 0x32f   :  { %7256 = vmatpush1.bf16.msra.mxu0 %v12974_v45  ;;  %v13087_v45 = vcombine.high %v259_v40, %v267_v41  ;;  %v13166_v41 = vcombine.low %v339_v25, %v347_v26 }
 0x330   :  { %7257 = vmatprep.subr.bf16.mxu0 %v12991_v48  ;;  %v794_v48 = vld [vmem:[#allocation5 + $0x15e8] sm:$0xff] }
 0x331   :  { %7176 = vmatpush1.bf16.msra.mxu1 %v13500_v57  ;;  %v13613_v57 = vcombine.high %v786_v46, %v794_v48  ;;  %v13612_v60 = vcombine.low %v786_v46, %v794_v48  ;;  %v371_v46 = vld [vmem:[#allocation5 + $0x8b0] sm:$0xff] }
 0x332   :  { %7177 = vmatprep.subr.bf16.mxu1 %v13517_v62  ;;  %v802_v62 = vld [vmem:[#allocation5 + $0x1628] sm:$0xff]  ;;  %v379_v48 = vld [vmem:[#allocation5 + $0x8f0] sm:$0xff] }
 0x333   :  { %7258 = vmatpush1.bf16.msra.mxu0 %v12990_v59  ;;  %v13103_v59 = vcombine.high %v275_v49, %v283_v52  ;;  %v13182_v52 = vcombine.low %v355_v38, %v363_v39 }
 0x334   :  { %7259 = vmatprep.subr.bf16.mxu0 %v13007_v63  ;;  %v810_v63 = vld [vmem:[#allocation5 + $0x1668] sm:$0xff] }
 0x335   :  { %7178 = vmatpush1.bf16.msra.mxu1 %v13516_v3  ;;  %v13629_v3 = vcombine.high %v802_v62, %v810_v63  ;;  %v13628_v8 = vcombine.low %v802_v62, %v810_v63  ;;  %v387_v62 = vld [vmem:[#allocation5 + $0x930] sm:$0xff] }
 0x336   :  { %7179 = vmatprep.subr.bf16.mxu1 %v13533_v4  ;;  %v818_v4 = vld [vmem:[#allocation5 + $0x16a8] sm:$0xff]  ;;  %v395_v63 = vld [vmem:[#allocation5 + $0x970] sm:$0xff] }
 0x337   :  { %7260 = vmatpush1.bf16.msra.mxu0 %v13006_v32  ;;  %v13119_v32 = vcombine.high %v291_v0, %v299_v1  ;;  %v13198_v1 = vcombine.low %v371_v46, %v379_v48 }
 0x338   :  { %7261 = vmatprep.subr.bf16.mxu0 %v13023_v5  ;;  %v826_v5 = vld [vmem:[#allocation5 + $0x16e8] sm:$0xff] }
 0x339   :  { %7180 = vmatpush1.bf16.msra.mxu1 %v13532_v10  ;;  %v13645_v10 = vcombine.high %v818_v4, %v826_v5  ;;  %v13644_v17 = vcombine.low %v818_v4, %v826_v5  ;;  %v403_v4 = vld [vmem:[#allocation5 + $0x9b0] sm:$0xff] }
 0x33a   :  { %7181 = vmatprep.subr.bf16.mxu1 %v13549_v12  ;;  %v834_v12 = vld [vmem:[#allocation5 + $0x1728] sm:$0xff]  ;;  %v411_v5 = vld [vmem:[#allocation5 + $0x9f0] sm:$0xff] }
 0x33b   :  { %7262 = vmatpush1.bf16.msra.mxu0 %v13022_v11  ;;  %v13135_v11 = vcombine.high %v307_v6, %v315_v7  ;;  %v13214_v7 = vcombine.low %v387_v62, %v395_v63 }
 0x33c   :  { %7263 = vmatprep.subr.bf16.mxu0 %v13039_v13  ;;  %v842_v13 = vld [vmem:[#allocation5 + $0x1768] sm:$0xff] }
 0x33d   :  { %7182 = vmatpush1.bf16.msra.mxu1 %v13548_v20  ;;  %v13661_v20 = vcombine.high %v834_v12, %v842_v13  ;;  %v13660_v53 = vcombine.low %v834_v12, %v842_v13  ;;  %v419_v12 = vld [vmem:[#allocation5 + $0xa30] sm:$0xff] }
 0x33e   :  { %7183 = vmatprep.subr.bf16.mxu1 %v13565_v23  ;;  %v850_v23 = vld [vmem:[#allocation5 + $0x17a8] sm:$0xff]  ;;  %v427_v13 = vld [vmem:[#allocation5 + $0xa70] sm:$0xff] }
 0x33f   :  { %7264 = vmatpush1.bf16.msra.mxu0 %v13038_v22  ;;  %v13151_v22 = vcombine.high %v323_v14, %v331_v15  ;;  %v13230_v15 = vcombine.low %v403_v4, %v411_v5 }
 0x340   :  { %7265 = vmatprep.subr.bf16.mxu0 %v13055_v24  ;;  %v858_v24 = vld [vmem:[#allocation5 + $0x17e8] sm:$0xff] }
 0x341   :  { %7184 = vmatpush1.bf16.msra.mxu1 %v13564_v54  ;;  %v13677_v54 = vcombine.high %v850_v23, %v858_v24  ;;  %v13676_v40 = vcombine.low %v850_v23, %v858_v24  ;;  %v435_v23 = vld [vmem:[#allocation5 + $0xab0] sm:$0xff] }
 0x342   :  { %7185 = vmatprep.subr.bf16.mxu1 %v13581_v33  ;;  %v866_v33 = vld [vmem:[#allocation5 + $0x1828] sm:$0xff]  ;;  %v443_v24 = vld [vmem:[#allocation5 + $0xaf0] sm:$0xff] }
 0x343   :  { %7266 = vmatpush1.bf16.msra.mxu0 %v13054_v30  ;;  %v13167_v30 = vcombine.high %v339_v25, %v347_v26  ;;  %v13246_v26 = vcombine.low %v419_v12, %v427_v13 }
 0x344   :  { %7267 = vmatprep.subr.bf16.mxu0 %v13071_v36  ;;  %v874_v36 = vld [vmem:[#allocation5 + $0x1868] sm:$0xff] }
 0x345   :  { %7186 = vmatpush1.bf16.msra.mxu1 %v13580_v19  ;;  %v13693_v19 = vcombine.high %v866_v33, %v874_v36  ;;  %v13692_v49 = vcombine.low %v866_v33, %v874_v36  ;;  %v451_v33 = vld [vmem:[#allocation5 + $0xb30] sm:$0xff] }
 0x346   :  { %7187 = vmatprep.subr.bf16.mxu1 %v13597_v44  ;;  %v882_v44 = vld [vmem:[#allocation5 + $0x18a8] sm:$0xff]  ;;  %v459_v36 = vld [vmem:[#allocation5 + $0xb70] sm:$0xff] }
 0x347   :  { %7268 = vmatpush1.bf16.msra.mxu0 %v13070_v43  ;;  %v13183_v43 = vcombine.high %v355_v38, %v363_v39  ;;  %v13262_v39 = vcombine.low %v435_v23, %v443_v24 }
 0x348   :  { %7269 = vmatprep.subr.bf16.mxu0 %v13087_v45  ;;  %v890_v45 = vld [vmem:[#allocation5 + $0x18e8] sm:$0xff] }
 0x349   :  { %7188 = vmatpush1.bf16.msra.mxu1 %v13596_v55  ;;  %v13709_v55 = vcombine.high %v882_v44, %v890_v45  ;;  %v13708_v0 = vcombine.low %v882_v44, %v890_v45  ;;  %v986_v44 = vld [vmem:[#allocation5 + $0x1be8] sm:$0xff] }
 0x34a   :  { %7189 = vmatprep.subr.bf16.mxu1 %v13613_v57  ;;  %v898_v57 = vld [vmem:[#allocation5 + $0x1928] sm:$0xff] }
 0x34b   :  { %7270 = vmatpush1.bf16.msra.mxu0 %v13086_v56  ;;  %v13199_v56 = vcombine.high %v371_v46, %v379_v48  ;;  %v467_v46 = vld [vmem:[#allocation5 + $0xbb0] sm:$0xff] }
 0x34c   :  { %7271 = vmatprep.subr.bf16.mxu0 %v13103_v59  ;;  %v906_v59 = vld [vmem:[#allocation5 + $0x1968] sm:$0xff]  ;;  %v475_v48 = vld [vmem:[#allocation5 + $0xbf0] sm:$0xff] }
 0x34d   :  { %7190 = vmatpush1.bf16.msra.mxu1 %v13612_v60  ;;  %v13725_v60 = vcombine.high %v898_v57, %v906_v59  ;;  %v13724_v6 = vcombine.low %v898_v57, %v906_v59  ;;  %v13295_v59 = vcombine.high %v467_v46, %v475_v48 }
 0x34e   :  { %7191 = vmatprep.subr.bf16.mxu1 %v13629_v3  ;;  %v914_v3 = vld [vmem:[#allocation5 + $0x19a8] sm:$0xff] }
 0x34f   :  { %7272 = vmatpush1.bf16.msra.mxu0 %v13102_v2  ;;  %v13215_v2 = vcombine.high %v387_v62, %v395_v63  ;;  %v994_v62 = vld [vmem:[#allocation5 + $0x1c28] sm:$0xff] }
 0x350   :  { %7273 = vmatprep.subr.bf16.mxu0 %v13119_v32  ;;  %v922_v32 = vld [vmem:[#allocation5 + $0x19e8] sm:$0xff] }
 0x351   :  { %7192 = vmatpush1.bf16.msra.mxu1 %v13628_v8  ;;  %v13741_v8 = vcombine.high %v914_v3, %v922_v32  ;;  %v13740_v14 = vcombine.low %v914_v3, %v922_v32  ;;  %v1002_v63 = vld [vmem:[#allocation5 + $0x1c68] sm:$0xff] }
 0x352   :  { %7193 = vmatprep.subr.bf16.mxu1 %v13645_v10  ;;  %v930_v10 = vld [vmem:[#allocation5 + $0x1a28] sm:$0xff]  ;;  %v13821_v3 = vcombine.high %v994_v62, %v1002_v63 }
 0x353   :  { %7274 = vmatpush1.bf16.msra.mxu0 %v13118_v9  ;;  %v13231_v9 = vcombine.high %v403_v4, %v411_v5  ;;  %v1010_v4 = vld [vmem:[#allocation5 + $0x1ca8] sm:$0xff] }
 0x354   :  { %7275 = vmatprep.subr.bf16.mxu0 %v13135_v11  ;;  %v938_v11 = vld [vmem:[#allocation5 + $0x1a68] sm:$0xff] }
 0x355   :  { %7194 = vmatpush1.bf16.msra.mxu1 %v13644_v17  ;;  %v13757_v17 = vcombine.high %v930_v10, %v938_v11  ;;  %v13756_v25 = vcombine.low %v930_v10, %v938_v11  ;;  %v1018_v5 = vld [vmem:[#allocation5 + $0x1ce8] sm:$0xff] }
 0x356   :  { %7195 = vmatprep.subr.bf16.mxu1 %v13661_v20  ;;  %v946_v20 = vld [vmem:[#allocation5 + $0x1aa8] sm:$0xff]  ;;  %v13837_v10 = vcombine.high %v1010_v4, %v1018_v5 }
 0x357   :  { %7276 = vmatpush1.bf16.msra.mxu0 %v13134_v18  ;;  %v13247_v18 = vcombine.high %v419_v12, %v427_v13  ;;  %v1026_v12 = vld [vmem:[#allocation5 + $0x1d28] sm:$0xff] }
 0x358   :  { %7277 = vmatprep.subr.bf16.mxu0 %v13151_v22  ;;  %v954_v22 = vld [vmem:[#allocation5 + $0x1ae8] sm:$0xff] }
 0x359   :  { %7196 = vmatpush1.bf16.msra.mxu1 %v13660_v53  ;;  %v13773_v53 = vcombine.high %v946_v20, %v954_v22  ;;  %v13772_v38 = vcombine.low %v946_v20, %v954_v22  ;;  %v1034_v13 = vld [vmem:[#allocation5 + $0x1d68] sm:$0xff] }
 0x35a   :  { %7197 = vmatprep.subr.bf16.mxu1 %v13677_v54  ;;  %v962_v54 = vld [vmem:[#allocation5 + $0x1b28] sm:$0xff]  ;;  %v13853_v20 = vcombine.high %v1026_v12, %v1034_v13 }
 0x35b   :  { %7278 = vmatpush1.bf16.msra.mxu0 %v13150_v27  ;;  %v13263_v27 = vcombine.high %v435_v23, %v443_v24  ;;  %v1042_v23 = vld [vmem:[#allocation5 + $0x1da8] sm:$0xff] }
 0x35c   :  { %7279 = vmatprep.subr.bf16.mxu0 %v13167_v30  ;;  %v970_v30 = vld [vmem:[#allocation5 + $0x1b68] sm:$0xff] }
 0x35d   :  { %7198 = vmatpush1.bf16.msra.mxu1 %v13676_v40  ;;  %v13789_v40 = vcombine.high %v962_v54, %v970_v30  ;;  %v1050_v24 = vld [vmem:[#allocation5 + $0x1de8] sm:$0xff] }
 0x35e   :  { %7208 = vmatprep.subr.bf16.mxu1 %v13693_v19  ;;  %v13279_v19 = vcombine.high %v451_v33, %v459_v36 }
 0x35f   :  { %7280 = vmatpush1.bf16.msra.mxu0 %v13166_v41 }
 0x360   :  { %7290 = vmatprep.subr.bf16.mxu0 %v13183_v43  ;;  %7200 = vmatmul.mubr.bf16.vlgmr.msra.gmra.mrb[12].mxu1 %v15942_v34  ;;  %v978_v43 = vld [vmem:[#allocation5 + $0x1ba8] sm:$0xff] }
 0x361   :  { %7209 = vmatpush1.bf16.msra.mxu1 %v13692_v49  ;;  %7240 = vmatprep.mubr.bf16.mxu1 %v15946_v42  ;;  %v13805_v57 = vcombine.high %v978_v43, %v986_v44 }
 0x362   :  { %7282 = vmatmul.mubr.bf16.vlgmr.msra.gmra.mrb[12].mxu0 %v15922_v16  ;;  %7210 = vmatprep.subr.bf16.mxu1 %v13709_v55 }
 0x363   :  { %7291 = vmatpush1.bf16.msra.mxu0 %v13182_v52  ;;  %7322 = vmatprep.mubr.bf16.mxu0 %v15916_v61  ;;  %v13788_v52 = vcombine.low %v962_v54, %v970_v30  ;;  %v13869_v54 = vcombine.high %v1042_v23, %v1050_v24 }
 0x364   :  { %7292 = vmatprep.subr.bf16.mxu0 %v13199_v56  ;;  %v13278_v56 = vcombine.low %v451_v33, %v459_v36  ;;  %v1058_v33 = vld [vmem:[#allocation5 + $0x1e28] sm:$0xff] }
 0x365   :  { %7211 = vmatpush1.bf16.msra.mxu1 %v13708_v0  ;;  %v483_v0 = vld [vmem:[#allocation5 + $0xc30] sm:$0xff]  ;;  %v1066_v36 = vld [vmem:[#allocation5 + $0x1e68] sm:$0xff] }
 0x366   :  { %7212 = vmatprep.subr.bf16.mxu1 %v13725_v60  ;;  %v13804_v60 = vcombine.low %v978_v43, %v986_v44  ;;  %v13885_v43 = vcombine.high %v1058_v33, %v1066_v36 }
 0x367   :  { %7293 = vmatpush1.bf16.msra.mxu0 %v13198_v1  ;;  %v491_v1 = vld [vmem:[#allocation5 + $0xc70] sm:$0xff] }
 0x368   :  { %7294 = vmatprep.subr.bf16.mxu0 %v13215_v2  ;;  %v13294_v2 = vcombine.low %v467_v46, %v475_v48  ;;  %v13311_v32 = vcombine.high %v483_v0, %v491_v1  ;;  %v1074_v46 = vld [vmem:[#allocation5 + $0x1ea8] sm:$0xff] }
 0x369   :  { %7213 = vmatpush1.bf16.msra.mxu1 %v13724_v6  ;;  %v499_v6 = vld [vmem:[#allocation5 + $0xcb0] sm:$0xff]  ;;  %v1082_v48 = vld [vmem:[#allocation5 + $0x1ee8] sm:$0xff] }
 0x36a   :  { %7214 = vmatprep.subr.bf16.mxu1 %v13741_v8  ;;  %v13820_v8 = vcombine.low %v994_v62, %v1002_v63  ;;  %v1090_v62 = vld [vmem:[#allocation5 + $0x1f28] sm:$0xff] }
 0x36b   :  { %7295 = vmatpush1.bf16.msra.mxu0 %v13214_v7  ;;  %v507_v7 = vld [vmem:[#allocation5 + $0xcf0] sm:$0xff]  ;;  %v1098_v63 = vld [vmem:[#allocation5 + $0x1f68] sm:$0xff] }
 0x36c   :  { %7296 = vmatprep.subr.bf16.mxu0 %v13231_v9  ;;  %v13310_v9 = vcombine.low %v483_v0, %v491_v1  ;;  %v13327_v11 = vcombine.high %v499_v6, %v507_v7  ;;  %v579_v0 = vld [vmem:[#allocation5 + $0xf30] sm:$0xff] }
 0x36d   :  { %7215 = vmatpush1.bf16.msra.mxu1 %v13740_v14  ;;  %v515_v14 = vld [vmem:[#allocation5 + $0xd30] sm:$0xff] }
 0x36e   :  { %7216 = vmatprep.subr.bf16.mxu1 %v13757_v17  ;;  %v13836_v17 = vcombine.low %v1010_v4, %v1018_v5  ;;  %v587_v1 = vld [vmem:[#allocation5 + $0xf70] sm:$0xff]  ;;  %v1106_v4 = vld [vmem:[#allocation5 + $0x1fa8] sm:$0xff] }
 0x36f   :  { %7297 = vmatpush1.bf16.msra.mxu0 %v13230_v15  ;;  %v523_v15 = vld [vmem:[#allocation5 + $0xd70] sm:$0xff]  ;;  %v1114_v5 = vld [vmem:[#allocation5 + $0x1fe8] sm:$0xff] }
 0x370   :  { %7298 = vmatprep.subr.bf16.mxu0 %v13247_v18  ;;  %v13326_v18 = vcombine.low %v499_v6, %v507_v7  ;;  %v13343_v22 = vcombine.high %v515_v14, %v523_v15  ;;  %v595_v6 = vld [vmem:[#allocation5 + $0xfb0] sm:$0xff] }
 0x371   :  { %7217 = vmatpush1.bf16.msra.mxu1 %v13756_v25  ;;  %v531_v25 = vld [vmem:[#allocation5 + $0xdb0] sm:$0xff] }
 0x372   :  { %7218 = vmatprep.subr.bf16.mxu1 %v13773_v53  ;;  %v13852_v53 = vcombine.low %v1026_v12, %v1034_v13  ;;  %v603_v7 = vld [vmem:[#allocation5 + $0xff0] sm:$0xff]  ;;  %v100_v12 = vld [vmem:[#allocation5 + $0x38] sm:$0xff] }
 0x373   :  { %7299 = vmatpush1.bf16.msra.mxu0 %v13246_v26  ;;  %v16014_v41 = vpop.f32.mrb[8].mxu1  ;;  %v539_v26 = vld [vmem:[#allocation5 + $0xdf0] sm:$0xff]  ;;  %v108_v13 = vld [vmem:[#allocation5 + $0x78] sm:$0xff] }
 0x374   :  { %7300 = vmatprep.subr.bf16.mxu0 %v13263_v27  ;;  %v16016_v45 = vpop.f32.mrb[9].mxu1  ;;  %v13342_v27 = vcombine.low %v515_v14, %v523_v15  ;;  %v13359_v30 = vcombine.high %v531_v25, %v539_v26  ;;  %v611_v14 = vld [vmem:[#allocation5 + $0x1030] sm:$0xff] }
 0x375   :  { %v6918_v49 = vpop.f32.mrb[10].mxu1  ;;  %7219 = vmatpush1.bf16.msra.mxu1 %v13772_v38  ;;  %v547_v38 = vld [vmem:[#allocation5 + $0xe30] sm:$0xff] }
 0x376   :  { %v6919_v55 = vpop.f32.mrb[11].mxu1  ;;  %7220 = vmatprep.subr.bf16.mxu1 %v13789_v40  ;;  %v13868_v40 = vcombine.low %v1042_v23, %v1050_v24  ;;  %v563_v49 = vld [vmem:[#allocation5 + $0xeb0] sm:$0xff]  ;;  %v116_v23 = vld [vmem:[#allocation5 + $0xb8] sm:$0xff] }
 0x377   :  { %7301 = vmatpush1.bf16.msra.mxu0 %v13262_v39  ;;  %v555_v39 = vld [vmem:[#allocation5 + $0xe70] sm:$0xff]  ;;  %v13884_v55 = vcombine.low %v1058_v33, %v1066_v36  ;;  %v124_v24 = vld [vmem:[#allocation5 + $0xf8] sm:$0xff] }
 0x378   :  { %7302 = vmatprep.subr.bf16.mxu0 %v13279_v19  ;;  %v13358_v19 = vcombine.low %v531_v25, %v539_v26  ;;  %v13375_v44 = vcombine.high %v547_v38, %v555_v39  ;;  %v619_v15 = vld [vmem:[#allocation5 + $0x1070] sm:$0xff]  ;;  %v132_v33 = vld [vmem:[#allocation5 + $0x138] sm:$0xff] }
 0x379   :  { %7221 = vmatpush1.bf16.msra.mxu1 %v13788_v52  ;;  %v571_v52 = vld [vmem:[#allocation5 + $0xef0] sm:$0xff]  ;;  %v140_v36 = vld [vmem:[#allocation5 + $0x178] sm:$0xff] }
 0x37a   :  { %7222 = vmatprep.subr.bf16.mxu1 %v13805_v57  ;;  %v13901_v57 = vcombine.high %v1074_v46, %v1082_v48  ;;  %v627_v25 = vld [vmem:[#allocation5 + $0x10b0] sm:$0xff] }
 0x37b   :  { %7303 = vmatpush1.bf16.msra.mxu0 %v13278_v56  ;;  %v13374_v56 = vcombine.low %v547_v38, %v555_v39  ;;  %v635_v26 = vld [vmem:[#allocation5 + $0x10f0] sm:$0xff] }
 0x37c   :  { %7304 = vmatprep.subr.bf16.mxu0 %v13295_v59  ;;  %v13391_v59 = vcombine.high %v563_v49, %v571_v52  ;;  %v643_v38 = vld [vmem:[#allocation5 + $0x1130] sm:$0xff] }
 0x37d   :  { %7223 = vmatpush1.bf16.msra.mxu1 %v13804_v60  ;;  %v13900_v60 = vcombine.low %v1074_v46, %v1082_v48  ;;  %v651_v39 = vld [vmem:[#allocation5 + $0x1170] sm:$0xff]  ;;  %v148_v46 = vld [vmem:[#allocation5 + $0x1b8] sm:$0xff] }
 0x37e   :  { %7224 = vmatprep.subr.bf16.mxu1 %v13821_v3  ;;  %v13917_v3 = vcombine.high %v1090_v62, %v1098_v63  ;;  %v156_v48 = vld [vmem:[#allocation5 + $0x1f8] sm:$0xff] }
 0x37f   :  { %7305 = vmatpush1.bf16.msra.mxu0 %v13294_v2  ;;  %v13390_v2 = vcombine.low %v563_v49, %v571_v52  ;;  %v659_v49 = vld [vmem:[#allocation5 + $0x11b0] sm:$0xff] }
 0x380   :  { %7306 = vmatprep.subr.bf16.mxu0 %v13311_v32  ;;  %v13407_v32 = vcombine.high %v579_v0, %v587_v1  ;;  %v667_v52 = vld [vmem:[#allocation5 + $0x11f0] sm:$0xff] }
 0x381   :  { %7225 = vmatpush1.bf16.msra.mxu1 %v13820_v8  ;;  %v13916_v8 = vcombine.low %v1090_v62, %v1098_v63  ;;  %v164_v62 = vld [vmem:[#allocation5 + $0x238] sm:$0xff] }
 0x382   :  { %7226 = vmatprep.subr.bf16.mxu1 %v13837_v10  ;;  %v13933_v10 = vcombine.high %v1106_v4, %v1114_v5  ;;  %v172_v63 = vld [vmem:[#allocation5 + $0x278] sm:$0xff] }
 0x383   :  { %7307 = vmatpush1.bf16.msra.mxu0 %v13310_v9  ;;  %v13406_v9 = vcombine.low %v579_v0, %v587_v1  ;;  %v675_v0 = vld [vmem:[#allocation5 + $0x1230] sm:$0xff] }
 0x384   :  { %7308 = vmatprep.subr.bf16.mxu0 %v13327_v11  ;;  %v13423_v11 = vcombine.high %v595_v6, %v603_v7  ;;  %v683_v1 = vld [vmem:[#allocation5 + $0x1270] sm:$0xff] }
 0x385   :  { %7227 = vmatpush1.bf16.msra.mxu1 %v13836_v17  ;;  %v13932_v17 = vcombine.low %v1106_v4, %v1114_v5  ;;  %v188_v4 = vld [vmem:[#allocation5 + $0x2f8] sm:$0xff]  ;;  %v691_v5 = vld [vmem:[#allocation5 + $0x12b0] sm:$0xff] }
 0x386   :  { %7228 = vmatprep.subr.bf16.mxu1 %v13853_v20  ;;  %v12929_v20 = vcombine.high %v100_v12, %v108_v13 }
 0x387   :  { %7309 = vmatpush1.bf16.msra.mxu0 %v13326_v18  ;;  %v13422_v18 = vcombine.low %v595_v6, %v603_v7  ;;  %v699_v6 = vld [vmem:[#allocation5 + $0x12f0] sm:$0xff]  ;;  %v12992_v7 = vcombine.low %v164_v62, %v172_v63 }
 0x388   :  { %7310 = vmatprep.subr.bf16.mxu0 %v13343_v22  ;;  %v13439_v22 = vcombine.high %v611_v14, %v619_v15 }
 0x389   :  { %7229 = vmatpush1.bf16.msra.mxu1 %v13852_v53  ;;  %v12928_v53 = vcombine.low %v100_v12, %v108_v13  ;;  %v204_v12 = vld [vmem:[#allocation5 + $0x378] sm:$0xff]  ;;  %v707_v13 = vld [vmem:[#allocation5 + $0x1330] sm:$0xff] }
 0x38a   :  { %7230 = vmatprep.subr.bf16.mxu1 %v13869_v54  ;;  %v12945_v54 = vcombine.high %v116_v23, %v124_v24 }
 0x38b   :  { %7311 = vmatpush1.bf16.msra.mxu0 %v13342_v27  ;;  %v13438_v27 = vcombine.low %v611_v14, %v619_v15  ;;  %v715_v14 = vld [vmem:[#allocation5 + $0x1370] sm:$0xff] }
 0x38c   :  { %7312 = vmatprep.subr.bf16.mxu0 %v13359_v30  ;;  %v13455_v30 = vcombine.high %v627_v25, %v635_v26 }
 0x38d   :  { %7231 = vmatpush1.bf16.msra.mxu1 %v13868_v40  ;;  %v12944_v40 = vcombine.low %v116_v23, %v124_v24  ;;  %v220_v23 = vld [vmem:[#allocation5 + $0x3f8] sm:$0xff]  ;;  %v723_v24 = vld [vmem:[#allocation5 + $0x13b0] sm:$0xff] }
 0x38e   :  { %7232 = vmatprep.subr.bf16.mxu1 %v13885_v43  ;;  %v12961_v43 = vcombine.high %v132_v33, %v140_v36 }
 0x38f   :  { %7313 = vmatpush1.bf16.msra.mxu0 %v13358_v19  ;;  %v13454_v19 = vcombine.low %v627_v25, %v635_v26  ;;  %v731_v25 = vld [vmem:[#allocation5 + $0x13f0] sm:$0xff] }
 0x390   :  { %7314 = vmatprep.subr.bf16.mxu0 %v13375_v44  ;;  %v13471_v44 = vcombine.high %v643_v38, %v651_v39 }
 0x391   :  { %7233 = vmatpush1.bf16.msra.mxu1 %v13884_v55  ;;  %v12960_v55 = vcombine.low %v132_v33, %v140_v36  ;;  %v236_v33 = vld [vmem:[#allocation5 + $0x478] sm:$0xff]  ;;  %v739_v36 = vld [vmem:[#allocation5 + $0x1430] sm:$0xff] }
 0x392   :  { %7234 = vmatprep.subr.bf16.mxu1 %v13901_v57  ;;  %v12977_v57 = vcombine.high %v148_v46, %v156_v48 }
 0x393   :  { %7315 = vmatpush1.bf16.msra.mxu0 %v13374_v56  ;;  %v13470_v56 = vcombine.low %v643_v38, %v651_v39  ;;  %v747_v38 = vld [vmem:[#allocation5 + $0x1470] sm:$0xff] }
 0x394   :  { %7316 = vmatprep.subr.bf16.mxu0 %v13391_v59  ;;  %v13487_v59 = vcombine.high %v659_v49, %v667_v52 }
 0x395   :  { %7235 = vmatpush1.bf16.msra.mxu1 %v13900_v60  ;;  %v12976_v60 = vcombine.low %v148_v46, %v156_v48  ;;  %v252_v46 = vld [vmem:[#allocation5 + $0x4f8] sm:$0xff]  ;;  %v755_v48 = vld [vmem:[#allocation5 + $0x14b0] sm:$0xff] }
 0x396   :  { %7236 = vmatprep.subr.bf16.mxu1 %v13917_v3  ;;  %v12993_v3 = vcombine.high %v164_v62, %v172_v63  ;;  %v260_v62 = vld [vmem:[#allocation5 + $0x538] sm:$0xff] }
 0x397   :  { %7317 = vmatpush1.bf16.msra.mxu0 %v13390_v2  ;;  %v13486_v2 = vcombine.low %v659_v49, %v667_v52  ;;  %v763_v49 = vld [vmem:[#allocation5 + $0x14f0] sm:$0xff]  ;;  %v268_v63 = vld [vmem:[#allocation5 + $0x578] sm:$0xff] }
 0x398   :  { %7318 = vmatprep.subr.bf16.mxu0 %v13407_v32  ;;  %v180_v32 = vld [vmem:[#allocation5 + $0x2b8] sm:$0xff] }
 0x399   :  { %7237 = vmatpush1.bf16.msra.mxu1 %v13916_v8  ;;  %v13502_v8 = vcombine.low %v675_v0, %v683_v1  ;;  %v13008_v15 = vcombine.low %v180_v32, %v188_v4 }
 0x39a   :  { %7238 = vmatprep.subr.bf16.mxu1 %v13933_v10  ;;  %v13519_v10 = vcombine.high %v691_v5, %v699_v6 }
 0x39b   :  { %7319 = vmatpush1.bf16.msra.mxu0 %v13406_v9  ;;  %v13009_v9 = vcombine.high %v180_v32, %v188_v4  ;;  %v276_v4 = vld [vmem:[#allocation5 + $0x5b8] sm:$0xff] }
 0x39c   :  { %7320 = vmatprep.subr.bf16.mxu0 %v13423_v11  ;;  %v196_v11 = vld [vmem:[#allocation5 + $0x338] sm:$0xff] }
 0x39d   :  { %7239 = vmatpush1.bf16.msra.mxu1 %v13932_v17  ;;  %v13518_v17 = vcombine.low %v691_v5, %v699_v6  ;;  %v13024_v26 = vcombine.low %v196_v11, %v204_v12  ;;  %v284_v5 = vld [vmem:[#allocation5 + $0x5f8] sm:$0xff]  ;;  %v787_v6 = vld [vmem:[#allocation5 + $0x15b0] sm:$0xff] }
 0x39e   :  { %7413 = vmatprep.subr.bf16.mxu1 %v12929_v20  ;;  %v13535_v20 = vcombine.high %v707_v13, %v715_v14 }
 0x39f   :  { %7321 = vmatpush1.bf16.msra.mxu0 %v13422_v18  ;;  %v13025_v18 = vcombine.high %v196_v11, %v204_v12 }
 0x3a0   :  { %7331 = vmatprep.subr.bf16.mxu0 %v13439_v22  ;;  %7241 = vmatmul.mubr.bf16.vlgmr.msra.gmra.mrb[12].mxu1 %v15954_v50  ;;  %v212_v22 = vld [vmem:[#allocation5 + $0x3b8] sm:$0xff] }
 0x3a1   :  { %7414 = vmatpush1.bf16.msra.mxu1 %v12928_v53  ;;  %7445 = vmatprep.mubr.bf16.mxu1 %v15912_v58  ;;  %v13503_v58 = vcombine.high %v675_v0, %v683_v1  ;;  %v13534_v53 = vcombine.low %v707_v13, %v715_v14  ;;  %v13040_v39 = vcombine.low %v212_v22, %v220_v23  ;;  %v771_v0 = vld [vmem:[#allocation5 + $0x1530] sm:$0xff]  ;;  %v292_v13 = vld [vmem:[#allocation5 + $0x638] sm:$0xff] }
 0x3a2   :  { %7323 = vmatmul.mubr.bf16.vlgmr.msra.gmra.mrb[12].mxu0 %v15928_v21  ;;  %7415 = vmatprep.subr.bf16.mxu1 %v12945_v54  ;;  %v13551_v54 = vcombine.high %v723_v24, %v731_v25  ;;  %v779_v1 = vld [vmem:[#allocation5 + $0x1570] sm:$0xff]  ;;  %v300_v14 = vld [vmem:[#allocation5 + $0x678] sm:$0xff] }
 0x3a3   :  { %7332 = vmatpush1.bf16.msra.mxu0 %v13438_v27  ;;  %7363 = vmatprep.mubr.bf16.mxu0 %v15932_v28  ;;  %v13041_v27 = vcombine.high %v212_v22, %v220_v23  ;;  %v13599_v32 = vcombine.high %v771_v0, %v779_v1  ;;  %v13121_v22 = vcombine.high %v292_v13, %v300_v14 }
 0x3a4   :  { %7333 = vmatprep.subr.bf16.mxu0 %v13455_v30  ;;  %v228_v30 = vld [vmem:[#allocation5 + $0x438] sm:$0xff] }
 0x3a5   :  { %7416 = vmatpush1.bf16.msra.mxu1 %v12944_v40  ;;  %v13550_v40 = vcombine.low %v723_v24, %v731_v25  ;;  %v13056_v52 = vcombine.low %v228_v30, %v236_v33  ;;  %v308_v25 = vld [vmem:[#allocation5 + $0x6b8] sm:$0xff] }
 0x3a6   :  { %7417 = vmatprep.subr.bf16.mxu1 %v12961_v43  ;;  %v13567_v43 = vcombine.high %v739_v36, %v747_v38 }
 0x3a7   :  { %7334 = vmatpush1.bf16.msra.mxu0 %v13454_v19  ;;  %v13057_v19 = vcombine.high %v228_v30, %v236_v33 }
 0x3a8   :  { %7335 = vmatprep.subr.bf16.mxu0 %v13471_v44  ;;  %v244_v44 = vld [vmem:[#allocation5 + $0x4b8] sm:$0xff] }
 0x3a9   :  { %7418 = vmatpush1.bf16.msra.mxu1 %v12960_v55  ;;  %v13566_v55 = vcombine.low %v739_v36, %v747_v38 }
 0x3aa   :  { %7419 = vmatprep.subr.bf16.mxu1 %v12977_v57  ;;  %v7587_v57 = vrot.slane %v15980_v51, 4 }
 0x3ab   :  { %7336 = vmatpush1.bf16.msra.mxu0 %v13470_v56  ;;  %v13073_v56 = vcombine.high %v244_v44, %v252_v46 }
 0x3ac   :  { %7337 = vmatprep.subr.bf16.mxu0 %v13487_v59  ;;  %v13583_v59 = vcombine.high %v755_v48, %v763_v49 }
 0x3ad   :  { %7420 = vmatpush1.bf16.msra.mxu1 %v12976_v60  ;;  %v13072_v60 = vcombine.low %v244_v44, %v252_v46 }
 0x3ae   :  { %7421 = vmatprep.subr.bf16.mxu1 %v12993_v3  ;;  %v13089_v3 = vcombine.high %v260_v62, %v268_v63 }
 0x3af   :  { %7338 = vmatpush1.bf16.msra.mxu0 %v13486_v2  ;;  %v13582_v2 = vcombine.low %v755_v48, %v763_v49 }
 0x3b0   :  { %7339 = vmatprep.subr.bf16.mxu0 %v13503_v58  ;;  %v7588_v58 = vadd.f32 %v15980_v51, %v7587_v57  ;;  %v851_v57 = vld [vmem:[#allocation5 + $0x17b0] sm:$0xff] }
 0x3b1   :  { %7422 = vmatpush1.bf16.msra.mxu1 %v12992_v7  ;;  %v795_v7 = vld [vmem:[#allocation5 + $0x15f0] sm:$0xff] }
 0x3b2   :  { %7423 = vmatprep.subr.bf16.mxu1 %v13009_v9  ;;  %v13598_v9 = vcombine.low %v771_v0, %v779_v1  ;;  %v7589_v11 = vrot.slane %v7588_v58, 2  ;;  %v13615_v12 = vcombine.high %v787_v6, %v795_v7 }
 0x3b3   :  { %7340 = vmatpush1.bf16.msra.mxu0 %v13502_v8  ;;  %v13088_v8 = vcombine.low %v260_v62, %v268_v63 }
 0x3b4   :  { %7341 = vmatprep.subr.bf16.mxu0 %v13519_v10  ;;  %v13105_v10 = vcombine.high %v276_v4, %v284_v5  ;;  %v7590_v23 = vadd.f32 %v7589_v11, %v7588_v58  ;;  %v867_v58 = vld [vmem:[#allocation5 + $0x1830] sm:$0xff] }
 0x3b5   :  { %7424 = vmatpush1.bf16.msra.mxu1 %v13008_v15  ;;  %v803_v15 = vld [vmem:[#allocation5 + $0x1630] sm:$0xff] }
 0x3b6   :  { %7425 = vmatprep.subr.bf16.mxu1 %v13025_v18  ;;  %v13104_v18 = vcombine.low %v276_v4, %v284_v5  ;;  %v7591_v36 = vrot.slane %v7590_v23, 1  ;;  %v883_v11 = vld [vmem:[#allocation5 + $0x18b0] sm:$0xff] }
 0x3b7   :  { %7342 = vmatpush1.bf16.msra.mxu0 %v13518_v17  ;;  %v811_v17 = vld [vmem:[#allocation5 + $0x1670] sm:$0xff] }
 0x3b8   :  { %7343 = vmatprep.subr.bf16.mxu0 %v13535_v20  ;;  %v13614_v20 = vcombine.low %v787_v6, %v795_v7  ;;  %v13631_v24 = vcombine.high %v803_v15, %v811_v17  ;;  %v13630_v30 = vcombine.low %v803_v15, %v811_v17  ;;  %v7592_v49 = vadd.f32 %v7591_v36, %v7590_v23  ;;  %v907_v23 = vld [vmem:[#allocation5 + $0x1970] sm:$0xff] }
 0x3b9   :  { %7426 = vmatpush1.bf16.msra.mxu1 %v13024_v26  ;;  %v316_v26 = vld [vmem:[#allocation5 + $0x6f8] sm:$0xff]  ;;  %v923_v36 = vld [vmem:[#allocation5 + $0x19f0] sm:$0xff] }
 0x3ba   :  { %7427 = vmatprep.subr.bf16.mxu1 %v13041_v27  ;;  %v827_v27 = vld [vmem:[#allocation5 + $0x16f0] sm:$0xff]  ;;  %v13137_v33 = vcombine.high %v308_v25, %v316_v26  ;;  %v13136_v44 = vcombine.low %v308_v25, %v316_v26  ;;  %v7679_v1 = vmul.f32 0.125, %v7592_v49 }
 0x3bb   :  { %7344 = vmatpush1.bf16.msra.mxu0 %v13534_v53  ;;  %v819_v53 = vld [vmem:[#allocation5 + $0x16b0] sm:$0xff] }
 0x3bc   :  { %7345 = vmatprep.subr.bf16.mxu0 %v13551_v54  ;;  %v13120_v54 = vcombine.low %v292_v13, %v300_v14  ;;  %v13647_v38 = vcombine.high %v819_v53, %v827_v27  ;;  %v13646_v46 = vcombine.low %v819_v53, %v827_v27  ;;  %v16025_v7 = vsub.f32 %v15980_v51, %v7679_v1  ;;  %v396_v51 = vld [vmem:[#allocation5 + $0x978] sm:$0xff] }
 0x3bd   :  { %7428 = vmatpush1.bf16.msra.mxu1 %v13040_v39  ;;  %v324_v39 = vld [vmem:[#allocation5 + $0x738] sm:$0xff] }
 0x3be   :  { %7429 = vmatprep.subr.bf16.mxu1 %v13057_v19  ;;  %v835_v19 = vld [vmem:[#allocation5 + $0x1730] sm:$0xff]  ;;  %v7711_v17 = vmul.f32 %v16025_v7, %v16025_v7 }
 0x3bf   :  { %7346 = vmatpush1.bf16.msra.mxu0 %v13550_v40  ;;  %v332_v40 = vld [vmem:[#allocation5 + $0x778] sm:$0xff] }
 0x3c0   :  { %7347 = vmatprep.subr.bf16.mxu0 %v13567_v43  ;;  %v843_v43 = vld [vmem:[#allocation5 + $0x1770] sm:$0xff]  ;;  %v13153_v48 = vcombine.high %v324_v39, %v332_v40  ;;  %v13152_v62 = vcombine.low %v324_v39, %v332_v40  ;;  %v7732_v53 = vrot.slane %v7711_v17, 4 }
 0x3c1   :  { %7430 = vmatpush1.bf16.msra.mxu1 %v13056_v52  ;;  %v13663_v52 = vcombine.high %v835_v19, %v843_v43  ;;  %v13662_v63 = vcombine.low %v835_v19, %v843_v43  ;;  %v420_v43 = vld [vmem:[#allocation5 + $0xa38] sm:$0xff] }
 0x3c2   :  { %7431 = vmatprep.subr.bf16.mxu1 %v13073_v56  ;;  %v348_v56 = vld [vmem:[#allocation5 + $0x7f8] sm:$0xff]  ;;  %v7733_v40 = vadd.f32 %v7732_v53, %v7711_v17  ;;  %v987_v17 = vld [vmem:[#allocation5 + $0x1bf0] sm:$0xff] }
 0x3c3   :  { %7348 = vmatpush1.bf16.msra.mxu0 %v13566_v55  ;;  %v340_v55 = vld [vmem:[#allocation5 + $0x7b8] sm:$0xff] }
 0x3c4   :  { %7349 = vmatprep.subr.bf16.mxu0 %v13583_v59  ;;  %v859_v59 = vld [vmem:[#allocation5 + $0x17f0] sm:$0xff]  ;;  %v13169_v0 = vcombine.high %v340_v55, %v348_v56  ;;  %v13168_v4 = vcombine.low %v340_v55, %v348_v56  ;;  %v484_v53 = vld [vmem:[#allocation5 + $0xc38] sm:$0xff] }
 0x3c5   :  { %7432 = vmatpush1.bf16.msra.mxu1 %v13072_v60  ;;  %v13679_v60 = vcombine.high %v851_v57, %v859_v59  ;;  %v13678_v5 = vcombine.low %v851_v57, %v859_v59  ;;  %v436_v57 = vld [vmem:[#allocation5 + $0xab8] sm:$0xff] }
 0x3c6   :  { %7433 = vmatprep.subr.bf16.mxu1 %v13089_v3  ;;  %v364_v3 = vld [vmem:[#allocation5 + $0x878] sm:$0xff] }
 0x3c7   :  { %7350 = vmatpush1.bf16.msra.mxu0 %v13582_v2  ;;  %v356_v2 = vld [vmem:[#allocation5 + $0x838] sm:$0xff] }
 0x3c8   :  { %7351 = vmatprep.subr.bf16.mxu0 %v13599_v32  ;;  %v875_v32 = vld [vmem:[#allocation5 + $0x1870] sm:$0xff]  ;;  %v13185_v6 = vcombine.high %v356_v2, %v364_v3  ;;  %v13184_v13 = vcombine.low %v356_v2, %v364_v3  ;;  %v444_v59 = vld [vmem:[#allocation5 + $0xaf8] sm:$0xff] }
 0x3c9   :  { %7434 = vmatpush1.bf16.msra.mxu1 %v13088_v8  ;;  %v13695_v8 = vcombine.high %v867_v58, %v875_v32  ;;  %v13694_v14 = vcombine.low %v867_v58, %v875_v32  ;;  %v452_v58 = vld [vmem:[#allocation5 + $0xb38] sm:$0xff] }
 0x3ca   :  { %7435 = vmatprep.subr.bf16.mxu1 %v13105_v10  ;;  %v380_v10 = vld [vmem:[#allocation5 + $0x8f8] sm:$0xff] }
 0x3cb   :  { %7352 = vmatpush1.bf16.msra.mxu0 %v13598_v9  ;;  %v372_v9 = vld [vmem:[#allocation5 + $0x8b8] sm:$0xff] }
 0x3cc   :  { %7353 = vmatprep.subr.bf16.mxu0 %v13615_v12  ;;  %v891_v12 = vld [vmem:[#allocation5 + $0x18f0] sm:$0xff]  ;;  %v13201_v15 = vcombine.high %v372_v9, %v380_v10  ;;  %v460_v32 = vld [vmem:[#allocation5 + $0xb78] sm:$0xff] }
 0x3cd   :  { %7436 = vmatpush1.bf16.msra.mxu1 %v13104_v18  ;;  %v13711_v18 = vcombine.high %v883_v11, %v891_v12  ;;  %v13710_v25 = vcombine.low %v883_v11, %v891_v12  ;;  %v468_v12 = vld [vmem:[#allocation5 + $0xbb8] sm:$0xff] }
 0x3ce   :  { %7437 = vmatprep.subr.bf16.mxu1 %v13121_v22  ;;  %v899_v22 = vld [vmem:[#allocation5 + $0x1930] sm:$0xff] }
 0x3cf   :  { %7354 = vmatpush1.bf16.msra.mxu0 %v13614_v20  ;;  %v388_v20 = vld [vmem:[#allocation5 + $0x938] sm:$0xff]  ;;  %v13727_v27 = vcombine.high %v899_v22, %v907_v23 }
 0x3d0   :  { %7355 = vmatprep.subr.bf16.mxu0 %v13631_v24  ;;  %v13200_v24 = vcombine.low %v372_v9, %v380_v10  ;;  %v13217_v26 = vcombine.high %v388_v20, %v396_v51  ;;  %v13281_v9 = vcombine.high %v452_v58, %v460_v32 }
 0x3d1   :  { %7438 = vmatpush1.bf16.msra.mxu1 %v13120_v54  ;;  %v404_v54 = vld [vmem:[#allocation5 + $0x9b8] sm:$0xff] }
 0x3d2   :  { %7439 = vmatprep.subr.bf16.mxu1 %v13137_v33  ;;  %v915_v33 = vld [vmem:[#allocation5 + $0x19b0] sm:$0xff] }
 0x3d3   :  { %7356 = vmatpush1.bf16.msra.mxu0 %v13630_v30  ;;  %v412_v30 = vld [vmem:[#allocation5 + $0x9f8] sm:$0xff]  ;;  %v13743_v19 = vcombine.high %v915_v33, %v923_v36 }
 0x3d4   :  { %7357 = vmatprep.subr.bf16.mxu0 %v13647_v38  ;;  %v13726_v38 = vcombine.low %v899_v22, %v907_v23  ;;  %v13233_v39 = vcombine.high %v404_v54, %v412_v30  ;;  %v13232_v49 = vcombine.low %v404_v54, %v412_v30  ;;  %v995_v54 = vld [vmem:[#allocation5 + $0x1c30] sm:$0xff] }
 0x3d5   :  { %7440 = vmatpush1.bf16.msra.mxu1 %v13136_v44  ;;  %v428_v44 = vld [vmem:[#allocation5 + $0xa78] sm:$0xff]  ;;  %v1003_v30 = vld [vmem:[#allocation5 + $0x1c70] sm:$0xff] }
 0x3d6   :  { %7441 = vmatprep.subr.bf16.mxu1 %v13153_v48  ;;  %v939_v48 = vld [vmem:[#allocation5 + $0x1a70] sm:$0xff]  ;;  %v13249_v55 = vcombine.high %v420_v43, %v428_v44 }
 0x3d7   :  { %7358 = vmatpush1.bf16.msra.mxu0 %v13646_v46  ;;  %v931_v46 = vld [vmem:[#allocation5 + $0x1a30] sm:$0xff] }
 0x3d8   :  { %7359 = vmatprep.subr.bf16.mxu0 %v13663_v52  ;;  %v13742_v52 = vcombine.low %v915_v33, %v923_v36  ;;  %v13759_v56 = vcombine.high %v931_v46, %v939_v48  ;;  %v13758_v1 = vcombine.low %v931_v46, %v939_v48  ;;  %v7581_v48 = vrot.slane %v15977_v47, 4 }
 0x3d9   :  { %7442 = vmatpush1.bf16.msra.mxu1 %v13152_v62  ;;  %v947_v62 = vld [vmem:[#allocation5 + $0x1ab0] sm:$0xff] }
 0x3da   :  { %7443 = vmatprep.subr.bf16.mxu1 %v13169_v0  ;;  %v13248_v0 = vcombine.low %v420_v43, %v428_v44  ;;  %v1011_v43 = vld [vmem:[#allocation5 + $0x1cb0] sm:$0xff] }
 0x3db   :  { %7360 = vmatpush1.bf16.msra.mxu0 %v13662_v63  ;;  %v955_v63 = vld [vmem:[#allocation5 + $0x1af0] sm:$0xff] }
 0x3dc   :  { %7361 = vmatprep.subr.bf16.mxu0 %v13679_v60  ;;  %v13265_v60 = vcombine.high %v436_v57, %v444_v59  ;;  %v13775_v3 = vcombine.high %v947_v62, %v955_v63  ;;  %v1019_v44 = vld [vmem:[#allocation5 + $0x1cf0] sm:$0xff] }
 0x3dd   :  { %7444 = vmatpush1.bf16.msra.mxu1 %v13168_v4  ;;  %v963_v4 = vld [vmem:[#allocation5 + $0x1b30] sm:$0xff] }
 0x3de   :  { %7454 = vmatprep.subr.bf16.mxu1 %v13185_v6  ;;  %v13264_v6 = vcombine.low %v436_v57, %v444_v59  ;;  %v516_v57 = vld [vmem:[#allocation5 + $0xd38] sm:$0xff] }
 0x3df   :  { %7362 = vmatpush1.bf16.msra.mxu0 %v13678_v5  ;;  %v971_v5 = vld [vmem:[#allocation5 + $0x1b70] sm:$0xff]  ;;  %v524_v59 = vld [vmem:[#allocation5 + $0xd78] sm:$0xff] }
 0x3e0   :  { %7372 = vmatprep.subr.bf16.mxu0 %v13695_v8  ;;  %7446 = vmatmul.mubr.bf16.vlgmr.msra.gmra.mrb[16].mxu1 %v15922_v16  ;;  %v13216_v16 = vcombine.low %v388_v20, %v396_v51  ;;  %v13774_v8 = vcombine.low %v947_v62, %v955_v63  ;;  %v13791_v11 = vcombine.high %v963_v4, %v971_v5  ;;  %v7890_v62 = vlaneseq  ;;  %v1027_v63 = vld [vmem:[#allocation5 + $0x1d30] sm:$0xff] }
 0x3e1   :  { %7455 = vmatpush1.bf16.msra.mxu1 %v13184_v13  ;;  %7486 = vmatprep.mubr.bf16.mxu1 %v15916_v61  ;;  %v7734_v61 = vrot.slane %v7733_v40, 2  ;;  %v476_v13 = vld [vmem:[#allocation5 + $0xbf8] sm:$0xff]  ;;  %v13280_v20 = vcombine.low %v452_v58, %v460_v32  ;;  %v13790_v22 = vcombine.low %v963_v4, %v971_v5 }
 0x3e2   :  { %7364 = vmatmul.mubr.bf16.vlgmr.msra.gmra.mrb[12].mxu0 %v15942_v34  ;;  %7456 = vmatprep.subr.bf16.mxu1 %v13201_v15  ;;  %v979_v15 = vld [vmem:[#allocation5 + $0x1bb0] sm:$0xff]  ;;  %v13297_v23 = vcombine.high %v468_v12, %v476_v13  ;;  %v13296_v33 = vcombine.low %v468_v12, %v476_v13  ;;  %v532_v4 = vld [vmem:[#allocation5 + $0xdb8] sm:$0xff] }
 0x3e3   :  { %7373 = vmatpush1.bf16.msra.mxu0 %v13694_v14  ;;  %7404 = vmatprep.mubr.bf16.mxu0 %v15946_v42  ;;  %v7735_v2 = vadd.f32 %v7734_v61, %v7733_v40  ;;  %v13806_v36 = vcombine.low %v979_v15, %v987_v17  ;;  %v500_v40 = vld [vmem:[#allocation5 + $0xcb8] sm:$0xff]  ;;  %v7599_v61 = vrot.slane %v15992_v35, 4 }
 0x3e4   :  { %7374 = vmatprep.subr.bf16.mxu0 %v13711_v18  ;;  %v540_v5 = vld [vmem:[#allocation5 + $0xdf8] sm:$0xff] }
 0x3e5   :  { %7457 = vmatpush1.bf16.msra.mxu1 %v13200_v24  ;;  %v7736_v10 = vrot.slane %v7735_v2, 1  ;;  %v7600_v58 = vadd.f32 %v7599_v61, %v15992_v35  ;;  %v13361_v13 = vcombine.high %v532_v4, %v540_v5 }
 0x3e6   :  { %7458 = vmatprep.subr.bf16.mxu1 %v13217_v26  ;;  %v13807_v26 = vcombine.high %v979_v15, %v987_v17 }
 0x3e7   :  { %7375 = vmatpush1.bf16.msra.mxu0 %v13710_v25  ;;  %v7737_v24 = vadd.f32 %v7736_v10, %v7735_v2  ;;  %v13838_v2 = vcombine.low %v1011_v43, %v1019_v44  ;;  %v13344_v10 = vcombine.low %v516_v57, %v524_v59  ;;  %v7601_v15 = vrot.slane %v7600_v58, 2 }
 0x3e8   :  { %7376 = vmatprep.subr.bf16.mxu0 %v13727_v27  ;;  %v492_v27 = vld [vmem:[#allocation5 + $0xc78] sm:$0xff] }
 0x3e9   :  { %7459 = vmatpush1.bf16.msra.mxu1 %v13216_v16  ;;  %v13313_v16 = vcombine.high %v484_v53, %v492_v27  ;;  %v13312_v46 = vcombine.low %v484_v53, %v492_v27 }
 0x3ea   :  { %7460 = vmatprep.subr.bf16.mxu1 %v13233_v39  ;;  %v13823_v39 = vcombine.high %v995_v54, %v1003_v30 }
 0x3eb   :  { %7377 = vmatpush1.bf16.msra.mxu0 %v13726_v38  ;;  %v7823_v38 = vmul.f32 0.125, %v7737_v24 }
 0x3ec   :  { %7378 = vmatprep.subr.bf16.mxu0 %v13743_v19  ;;  %v508_v19 = vld [vmem:[#allocation5 + $0xcf8] sm:$0xff] }
 0x3ed   :  { %7461 = vmatpush1.bf16.msra.mxu1 %v13232_v49  ;;  %v13822_v49 = vcombine.low %v995_v54, %v1003_v30  ;;  %v7602_v30 = vadd.f32 %v7601_v15, %v7600_v58 }
 0x3ee   :  { %7462 = vmatprep.subr.bf16.mxu1 %v13249_v55  ;;  %v7839_v55 = vadd.f32 1e-05, %v7823_v38  ;;  %v1075_v38 = vld [vmem:[#allocation5 + $0x1eb0] sm:$0xff] }
 0x3ef   :  { %7379 = vmatpush1.bf16.msra.mxu0 %v13742_v52  ;;  %v13329_v52 = vcombine.high %v500_v40, %v508_v19 }
 0x3f0   :  { %7380 = vmatprep.subr.bf16.mxu0 %v13759_v56  ;;  %v13839_v56 = vcombine.high %v1011_v43, %v1019_v44  ;;  %15606 = vrsqrt.f32 %v7839_v55  ;;  %v7603_v55 = vrot.slane %v7602_v30, 1 }
 0x3f1   :  { %7463 = vmatpush1.bf16.msra.mxu1 %v13248_v0  ;;  %v1035_v0 = vld [vmem:[#allocation5 + $0x1d70] sm:$0xff] }
 0x3f2   :  { %7464 = vmatprep.subr.bf16.mxu1 %v13265_v60  ;;  %v7582_v60 = vadd.f32 %v15977_v47, %v7581_v48  ;;  %v13855_v32 = vcombine.high %v1027_v63, %v1035_v0  ;;  %v13854_v12 = vcombine.low %v1027_v63, %v1035_v0  ;;  %v1099_v63 = vld [vmem:[#allocation5 + $0x1f70] sm:$0xff] }
 0x3f3   :  { %7381 = vmatpush1.bf16.msra.mxu0 %v13758_v1  ;;  %v13328_v1 = vcombine.low %v500_v40, %v508_v19 }
 0x3f4   :  { %7382 = vmatprep.subr.bf16.mxu0 %v13775_v3  ;;  %v13345_v3 = vcombine.high %v516_v57, %v524_v59  ;;  %v588_v57 = vld [vmem:[#allocation5 + $0xf78] sm:$0xff] }
 0x3f5   :  { %v16033_v14 = vpop.f32.mrb[8].mxu0  ;;  %7465 = vmatpush1.bf16.msra.mxu1 %v13264_v6  ;;  %v16041_v6 = vshrl.u32 %v7890_v62, 7  ;;  %v1091_v62 = vld [vmem:[#allocation5 + $0x1f30] sm:$0xff] }
 0x3f6   :  { %v16035_v18 = vpop.f32.mrb[9].mxu0  ;;  %7466 = vmatprep.subr.bf16.mxu1 %v13281_v9  ;;  %v1051_v9 = vld [vmem:[#allocation5 + $0x1df0] sm:$0xff] }
 0x3f7   :  { %v7082_v51 = vpop.f32.mrb[10].mxu0  ;;  %7383 = vmatpush1.bf16.msra.mxu0 %v13774_v8  ;;  %v1043_v8 = vld [vmem:[#allocation5 + $0x1db0] sm:$0xff]  ;;  %v16044_v24 = vsub.s32 2, %v16041_v6  ;;  %v16051_v19 = vsub.s32 3, %v16041_v6  ;;  %v16054_v48 = vsub.s32 0, %v16041_v6 }
 0x3f8   :  { %v7083_v25 = vpop.f32.mrb[11].mxu0  ;;  %7384 = vmatprep.subr.bf16.mxu0 %v13791_v11  ;;  %v7583_v11 = vrot.slane %v7582_v60, 2  ;;  %v13871_v17 = vcombine.high %v1043_v8, %v1051_v9  ;;  %v556_v51 = vld [vmem:[#allocation5 + $0xe78] sm:$0xff]  ;;  %v13870_v27 = vcombine.low %v1043_v8, %v1051_v9  ;;  %v1107_v9 = vld [vmem:[#allocation5 + $0x1fb0] sm:$0xff] }
 0x3f9   :  { %7467 = vmatpush1.bf16.msra.mxu1 %v13280_v20  ;;  %v548_v20 = vld [vmem:[#allocation5 + $0xe38] sm:$0xff]  ;;  %v16046_v25 = vld [vmem:[#allocation10] sm:$0xff] }
 0x3fa   :  { %7468 = vmatprep.subr.bf16.mxu1 %v13297_v23  ;;  %v1067_v23 = vld [vmem:[#allocation5 + $0x1e70] sm:$0xff]  ;;  %v7584_v53 = vadd.f32 %v7583_v11, %v7582_v60  ;;  %v13377_v54 = vcombine.high %v548_v20, %v556_v51  ;;  %v7897_v40 = vrot.slane %v16046_v25, %v16044_v24  ;;  %v15607_v43 = vpop.eup %15606  ;;  %v13376_v44 = vcombine.low %v548_v20, %v556_v51  ;;  %v604_v8 = vld [vmem:[#allocation5 + $0xff8] sm:$0xff] }
 0x3fb   :  { %7385 = vmatpush1.bf16.msra.mxu0 %v13790_v22  ;;  %v1059_v22 = vld [vmem:[#allocation5 + $0x1e30] sm:$0xff]  ;;  %v7871_v59 = vmul.f32 %v15607_v43, %v16025_v7  ;;  %v13919_v7 = vcombine.high %v1091_v62, %v1099_v63 }
 0x3fc   :  { %7386 = vmatprep.subr.bf16.mxu0 %v13807_v26  ;;  %v13360_v26 = vcombine.low %v532_v4, %v540_v5  ;;  %v7977_v0 = vrot.slane %v7897_v40, %v16054_v48  ;;  %v7604_v4 = vadd.f32 %v7603_v55, %v7602_v30  ;;  %v596_v5 = vld [vmem:[#allocation5 + $0xfb8] sm:$0xff] }
 0x3fd   :  { %7469 = vmatpush1.bf16.msra.mxu1 %v13296_v33  ;;  %v13887_v33 = vcombine.high %v1059_v22, %v1067_v23  ;;  %v13425_v20 = vcombine.high %v596_v5, %v604_v8  ;;  %v636_v40 = vld [vmem:[#allocation5 + $0x10f8] sm:$0xff] }
 0x3fe   :  { %7470 = vmatprep.subr.bf16.mxu1 %v13313_v16  ;;  %v572_v16 = vld [vmem:[#allocation5 + $0xef8] sm:$0xff]  ;;  %v8035_v11 = vmul.f32 %v7977_v0, %v7871_v59  ;;  %v7681_v51 = vmul.f32 0.125, %v7604_v4  ;;  %v14729_v59 = vld [vmem:[#allocation7 + $0x20] ss:$16 sps:$4 sm:$0xff]   ;;  %v14734_v0 = vld [vmem:[#allocation7 + $0x44] ss:$16 sps:$4 sm:$0xff]  }
 0x3ff   :  { %7387 = vmatpush1.bf16.msra.mxu0 %v13806_v36  ;;  %v564_v36 = vld [vmem:[#allocation5 + $0xeb8] sm:$0xff] }
 0x400   :  { %7388 = vmatprep.subr.bf16.mxu0 %v13823_v39  ;;  %v1083_v39 = vld [vmem:[#allocation5 + $0x1ef0] sm:$0xff]  ;;  %v13392_v60 = vcombine.low %v564_v36, %v572_v16  ;;  %v652_v55 = vld [vmem:[#allocation5 + $0x1178] sm:$0xff] }
 0x401   :  { %7471 = vmatpush1.bf16.msra.mxu1 %v13312_v46  ;;  %v7585_v46 = vrot.slane %v7584_v53, 1  ;;  %v13903_v61 = vcombine.high %v1075_v38, %v1083_v39  ;;  %v13902_v58 = vcombine.low %v1075_v38, %v1083_v39  ;;  %v628_v39 = vld [vmem:[#allocation5 + $0x10b8] sm:$0xff] }
 0x402   :  { %7472 = vmatprep.subr.bf16.mxu1 %v13329_v52  ;;  %v13393_v52 = vcombine.high %v564_v36, %v572_v16  ;;  %v16068_v36 = vsub.f32 %v15992_v35, %v7681_v51  ;;  %v14728_v16 = vld [vmem:[#allocation7 + $0x4] ss:$16 sps:$4 sm:$0xff]  }
 0x403   :  { %7389 = vmatpush1.bf16.msra.mxu0 %v13822_v49  ;;  %v13886_v49 = vcombine.low %v1059_v22, %v1067_v23  ;;  %v612_v23 = vld [vmem:[#allocation5 + $0x1038] sm:$0xff]  ;;  %v14731_v35 = vld [vmem:[#allocation7 + $0x24] ss:$16 sps:$4 sm:$0xff]  }
 0x404   :  { %7390 = vmatprep.subr.bf16.mxu0 %v13839_v56  ;;  %v580_v56 = vld [vmem:[#allocation5 + $0xf38] sm:$0xff] }
 0x405   :  { %7473 = vmatpush1.bf16.msra.mxu1 %v13328_v1  ;;  %v8057_v1 = vrot.slane %v16046_v25, %v16051_v19 }
 0x406   :  { %7474 = vmatprep.subr.bf16.mxu1 %v13345_v3  ;;  %v16061_v3 = vsub.s32 1, %v16041_v6 }
 0x407   :  { %7391 = vmatpush1.bf16.msra.mxu0 %v13838_v2  ;;  %v7586_v2 = vadd.f32 %v7585_v46, %v7584_v53  ;;  %v7713_v46 = vmul.f32 %v16068_v36, %v16068_v36 }
 0x408   :  { %7392 = vmatprep.subr.bf16.mxu0 %v13855_v32  ;;  %v13409_v32 = vcombine.high %v580_v56, %v588_v57 }
 0x409   :  { %7475 = vmatpush1.bf16.msra.mxu1 %v13344_v10  ;;  %v1115_v10 = vld [vmem:[#allocation5 + $0x1ff0] sm:$0xff]  ;;  %v7678_v15 = vmul.f32 0.125, %v7586_v2 }
 0x40a   :  { %7476 = vmatprep.subr.bf16.mxu1 %v13361_v13  ;;  %v13408_v13 = vcombine.low %v580_v56, %v588_v57  ;;  %v13935_v22 = vcombine.high %v1107_v9, %v1115_v10  ;;  %v13934_v30 = vcombine.low %v1107_v9, %v1115_v10  ;;  %v13456_v56 = vcombine.low %v628_v39, %v636_v40 }
 0x40b   :  { %7393 = vmatpush1.bf16.msra.mxu0 %v13854_v12  ;;  %v8137_v12 = vrot.slane %v8057_v1, %v16061_v3  ;;  %v660_v1 = vld [vmem:[#allocation5 + $0x11b8] sm:$0xff] }
 0x40c   :  { %7394 = vmatprep.subr.bf16.mxu0 %v13871_v17  ;;  %v13918_v17 = vcombine.low %v1091_v62, %v1099_v63  ;;  %v7744_v63 = vrot.slane %v7713_v46, 4 }
 0x40d   :  { %7477 = vmatpush1.bf16.msra.mxu1 %v13360_v26  ;;  %v620_v26 = vld [vmem:[#allocation5 + $0x1078] sm:$0xff]  ;;  %v8195_v53 = vadd.f32 %v8137_v12, %v8035_v11  ;;  %v14735_v11 = vld [vmem:[#allocation7 + $0x60] ss:$16 sps:$4 sm:$0xff]  }
 0x40e   :  { %7478 = vmatprep.subr.bf16.mxu1 %v13377_v54  ;;  %v16065_v54 = vsub.f32 %v15977_v47, %v7678_v15  ;;  %v13440_v43 = vcombine.low %v612_v23, %v620_v26  ;;  %v14726_v47 = vld [vmem:[#allocation7] ss:$16 sps:$4 sm:$0xff]   ;;  %v7745_v4 = vadd.f32 %v7744_v63, %v7713_v46  ;;  %v692_v15 = vld [vmem:[#allocation5 + $0x12b8] sm:$0xff] }
 0x40f   :  { %7395 = vmatpush1.bf16.msra.mxu0 %v13870_v27  ;;  %v13424_v27 = vcombine.low %v596_v5, %v604_v8  ;;  %v8211_v38 = vmax.f32 %v8195_v53, 0.0  ;;  %v676_v5 = vld [vmem:[#allocation5 + $0x1238] sm:$0xff]  ;;  %v14743_v53 = vld [vmem:[#allocation7 + $0xa4] ss:$16 sps:$4 sm:$0xff]  }
 0x410   :  { %7396 = vmatprep.subr.bf16.mxu0 %v13887_v33  ;;  %v13441_v33 = vcombine.high %v612_v23, %v620_v26  ;;  %v684_v8 = vld [vmem:[#allocation5 + $0x1278] sm:$0xff] }
 0x411   :  { %7479 = vmatpush1.bf16.msra.mxu1 %v13376_v44  ;;  %v7710_v44 = vmul.f32 %v16065_v54, %v16065_v54  ;;  %v13505_v12 = vcombine.high %v676_v5, %v684_v8 }
 0x412   :  { %7480 = vmatprep.subr.bf16.mxu1 %v13393_v52  ;;  %v644_v52 = vld [vmem:[#allocation5 + $0x1138] sm:$0xff] }
 0x413   :  { %7397 = vmatpush1.bf16.msra.mxu0 %v13886_v49  ;;  %v13457_v49 = vcombine.high %v628_v39, %v636_v40  ;;  %v7726_v57 = vrot.slane %v7710_v44, 4  ;;  %v13473_v62 = vcombine.high %v644_v52, %v652_v55 }
 0x414   :  { %7398 = vmatprep.subr.bf16.mxu0 %v13903_v61  ;;  %v16075_v61 = vpack.c.bf16 %v8211_v38, %v8211_v38  ;;  %v14741_v38 = vld [vmem:[#allocation7 + $0xa0] ss:$16 sps:$4 sm:$0xff]  }
 0x415   :  { %7481 = vmatpush1.bf16.msra.mxu1 %v13392_v60  ;;  %v668_v60 = vld [vmem:[#allocation5 + $0x11f8] sm:$0xff]  ;;  %v7727_v2 = vadd.f32 %v7726_v57, %v7710_v44 }
 0x416   :  { %7482 = vmatprep.subr.bf16.mxu1 %v13409_v32  ;;  %v13489_v32 = vcombine.high %v660_v1, %v668_v60  ;;  %v13488_v9 = vcombine.low %v660_v1, %v668_v60  ;;  %v724_v44 = vld [vmem:[#allocation5 + $0x13b8] sm:$0xff] }
 0x417   :  { %7399 = vmatpush1.bf16.msra.mxu0 %v13902_v58  ;;  %v14732_v58 = vld [vmem:[#allocation7 + $0x40] ss:$16 sps:$4 sm:$0xff]   ;;  %v7728_v10 = vrot.slane %v7727_v2, 2  ;;  %v740_v57 = vld [vmem:[#allocation5 + $0x1438] sm:$0xff] }
 0x418   :  { %7400 = vmatprep.subr.bf16.mxu0 %v13919_v7  ;;  %v14737_v7 = vld [vmem:[#allocation7 + $0x64] ss:$16 sps:$4 sm:$0xff]  }
 0x419   :  { %7483 = vmatpush1.bf16.msra.mxu1 %v13408_v13  ;;  %v14740_v13 = vld [vmem:[#allocation7 + $0x84] ss:$16 sps:$4 sm:$0xff]   ;;  %v7729_v51 = vadd.f32 %v7728_v10, %v7727_v2  ;;  %v756_v2 = vld [vmem:[#allocation5 + $0x14b8] sm:$0xff] }
 0x41a   :  { %7484 = vmatprep.subr.bf16.mxu1 %v13425_v20  ;;  %v13504_v20 = vcombine.low %v676_v5, %v684_v8  ;;  %v7611_v5 = vrot.slane %v16004_v37, 4  ;;  %v14750_v8 = vld [vmem:[#allocation7 + $0x100] ss:$16 sps:$4 sm:$0xff]  }
 0x41b   :  { %7401 = vmatpush1.bf16.msra.mxu0 %v13918_v17  ;;  %v700_v17 = vld [vmem:[#allocation5 + $0x12f8] sm:$0xff] }
 0x41c   :  { %7402 = vmatprep.subr.bf16.mxu0 %v13935_v22  ;;  %v14738_v22 = vld [vmem:[#allocation7 + $0x80] ss:$16 sps:$4 sm:$0xff]   ;;  %v13521_v23 = vcombine.high %v692_v15, %v700_v17 }
 0x41d   :  { %7485 = vmatpush1.bf16.msra.mxu1 %v13424_v27  ;;  %v708_v27 = vld [vmem:[#allocation5 + $0x1338] sm:$0xff] }
 0x41e   :  { %7495 = vmatprep.subr.bf16.mxu1 %v13441_v33  ;;  %v13520_v33 = vcombine.low %v692_v15, %v700_v17  ;;  %v7612_v17 = vadd.f32 %v7611_v5, %v16004_v37  ;;  %v836_v5 = vld [vmem:[#allocation5 + $0x1738] sm:$0xff] }
 0x41f   :  { %7403 = vmatpush1.bf16.msra.mxu0 %v13934_v30  ;;  %v716_v30 = vld [vmem:[#allocation5 + $0x1378] sm:$0xff] }
 0x420   :  { %11314 = vmatprep.subr.bf16.mxu0 %v14728_v16  ;;  %7487 = vmatmul.mubr.bf16.vlgmr.msra.gmra.mrb[16].mxu1 %v15928_v21  ;;  %v13472_v21 = vcombine.low %v644_v52, %v652_v55  ;;  %v7730_v16 = vrot.slane %v7729_v51, 1  ;;  %v13537_v39 = vcombine.high %v708_v27, %v716_v30  ;;  %v13536_v46 = vcombine.low %v708_v27, %v716_v30 }
 0x421   :  { %7496 = vmatpush1.bf16.msra.mxu1 %v13440_v43  ;;  %7527 = vmatprep.mubr.bf16.mxu1 %v15932_v28  ;;  %v7746_v28 = vrot.slane %v7745_v4, 2  ;;  %v14746_v43 = vld [vmem:[#allocation7 + $0xc4] ss:$16 sps:$4 sm:$0xff]   ;;  %v7613_v30 = vrot.slane %v7612_v17, 2 }
 0x422   :  { %7405 = vmatmul.mubr.bf16.vlgmr.msra.gmra.mrb[12].mxu0 %v15954_v50  ;;  %7497 = vmatprep.subr.bf16.mxu1 %v13457_v49  ;;  %v7731_v49 = vadd.f32 %v7730_v16, %v7729_v51 }
 0x423   :  { %11315 = vmatpush1.bf16.msra.mxu0 %v14726_v47  ;;  %11346 = vmatprep.mubr.bf16.mxu0 %v16075_v61  ;;  %v7747_v26 = vadd.f32 %v7746_v28, %v7745_v4  ;;  %v732_v47 = vld [vmem:[#allocation5 + $0x13f8] sm:$0xff] }
 0x424   :  { %11316 = vmatprep.subr.bf16.mxu0 %v14731_v35  ;;  %v14744_v35 = vld [vmem:[#allocation7 + $0xc0] ss:$16 sps:$4 sm:$0xff]   ;;  %v13553_v52 = vcombine.high %v724_v44, %v732_v47  ;;  %v7822_v63 = vmul.f32 0.125, %v7731_v49  ;;  %v780_v28 = vld [vmem:[#allocation5 + $0x1578] sm:$0xff] }
 0x425   :  { %7498 = vmatpush1.bf16.msra.mxu1 %v13456_v56  ;;  %v7748_v40 = vrot.slane %v7747_v26, 1  ;;  %v14749_v56 = vld [vmem:[#allocation7 + $0xe4] ss:$16 sps:$4 sm:$0xff]   ;;  %v14759_v49 = vld [vmem:[#allocation7 + $0x160] ss:$16 sps:$4 sm:$0xff]  }
 0x426   :  { %7499 = vmatprep.subr.bf16.mxu1 %v13473_v62  ;;  %v13552_v62 = vcombine.low %v724_v44, %v732_v47  ;;  %v7838_v4 = vadd.f32 1e-05, %v7822_v63  ;;  %v16092_v63 = vsub.s32 7, %v16041_v6 }
 0x427   :  { %11317 = vmatpush1.bf16.msra.mxu0 %v14729_v59  ;;  %v7749_v55 = vadd.f32 %v7748_v40, %v7747_v26  ;;  %v748_v59 = vld [vmem:[#allocation5 + $0x1478] sm:$0xff] }
 0x428   :  { %11318 = vmatprep.subr.bf16.mxu0 %v14734_v0  ;;  %v14747_v0 = vld [vmem:[#allocation7 + $0xe0] ss:$16 sps:$4 sm:$0xff]   ;;  %v13569_v1 = vcombine.high %v740_v57, %v748_v59  ;;  %15608 = vrsqrt.f32 %v7838_v4  ;;  %v796_v26 = vld [vmem:[#allocation5 + $0x15f8] sm:$0xff] }
 0x429   :  { %7500 = vmatpush1.bf16.msra.mxu1 %v13472_v21  ;;  %v7825_v60 = vmul.f32 0.125, %v7749_v55  ;;  %v14752_v21 = vld [vmem:[#allocation7 + $0x104] ss:$16 sps:$4 sm:$0xff]   ;;  %v812_v40 = vld [vmem:[#allocation5 + $0x1678] sm:$0xff] }
 0x42a   :  { %7501 = vmatprep.subr.bf16.mxu1 %v13489_v32  ;;  %v13568_v32 = vcombine.low %v740_v57, %v748_v59  ;;  %v14764_v55 = vld [vmem:[#allocation7 + $0x184] ss:$16 sps:$4 sm:$0xff]   ;;  %v828_v57 = vld [vmem:[#allocation5 + $0x16f8] sm:$0xff] }
 0x42b   :  { %11319 = vmatpush1.bf16.msra.mxu0 %v14732_v58  ;;  %v764_v58 = vld [vmem:[#allocation5 + $0x14f8] sm:$0xff]  ;;  %v7841_v10 = vadd.f32 1e-05, %v7825_v60 }
 0x42c   :  { %11320 = vmatprep.subr.bf16.mxu0 %v14737_v7  ;;  %v7593_v7 = vrot.slane %v15990_v29, 4 }
 0x42d   :  { %7502 = vmatpush1.bf16.msra.mxu1 %v13488_v9  ;;  %v13585_v9 = vcombine.high %v756_v2, %v764_v58  ;;  %15610 = vrsqrt.f32 %v7841_v10 }
 0x42e   :  { %7503 = vmatprep.subr.bf16.mxu1 %v13505_v12  ;;  %v772_v12 = vld [vmem:[#allocation5 + $0x1538] sm:$0xff]  ;;  %v7594_v15 = vadd.f32 %v7593_v7, %v15990_v29  ;;  %v14767_v7 = vld [vmem:[#allocation7 + $0x1a4] ss:$16 sps:$4 sm:$0xff]  }
 0x42f   :  { %11321 = vmatpush1.bf16.msra.mxu0 %v14735_v11  ;;  %v14755_v11 = vld [vmem:[#allocation7 + $0x124] ss:$16 sps:$4 sm:$0xff]   ;;  %v13601_v51 = vcombine.high %v772_v12, %v780_v28 }
 0x430   :  { %11322 = vmatprep.subr.bf16.mxu0 %v14740_v13  ;;  %v13584_v13 = vcombine.low %v756_v2, %v764_v58  ;;  %v7595_v27 = vrot.slane %v7594_v15, 2  ;;  %v14762_v2 = vld [vmem:[#allocation7 + $0x180] ss:$16 sps:$4 sm:$0xff]  }
 0x431   :  { %7504 = vmatpush1.bf16.msra.mxu1 %v13504_v20  ;;  %v14753_v20 = vld [vmem:[#allocation7 + $0x120] ss:$16 sps:$4 sm:$0xff]  }
 0x432   :  { %7505 = vmatprep.subr.bf16.mxu1 %v13521_v23  ;;  %v788_v23 = vld [vmem:[#allocation5 + $0x15b8] sm:$0xff]  ;;  %v7596_v47 = vadd.f32 %v7595_v27, %v7594_v15  ;;  %v15609_v59 = vpop.eup %15608  ;;  %v14765_v15 = vld [vmem:[#allocation7 + $0x1a0] ss:$16 sps:$4 sm:$0xff]  }
 0x433   :  { %11323 = vmatpush1.bf16.msra.mxu0 %v14738_v22  ;;  %v14758_v22 = vld [vmem:[#allocation7 + $0x144] ss:$16 sps:$4 sm:$0xff]   ;;  %v13617_v16 = vcombine.high %v788_v23, %v796_v26  ;;  %v13616_v44 = vcombine.low %v788_v23, %v796_v26  ;;  %v860_v23 = vld [vmem:[#allocation5 + $0x17f8] sm:$0xff] }
 0x434   :  { %11324 = vmatprep.subr.bf16.mxu0 %v14743_v53  ;;  %v13600_v53 = vcombine.low %v772_v12, %v780_v28  ;;  %v7597_v60 = vrot.slane %v7596_v47, 1  ;;  %v8065_v12 = vrot.slane %v16046_v25, %v16092_v63 }
 0x435   :  { %7506 = vmatpush1.bf16.msra.mxu1 %v13520_v33  ;;  %v14756_v33 = vld [vmem:[#allocation7 + $0x140] ss:$16 sps:$4 sm:$0xff]  }
 0x436   :  { %7507 = vmatprep.subr.bf16.mxu1 %v13537_v39  ;;  %v804_v39 = vld [vmem:[#allocation5 + $0x1638] sm:$0xff] }
 0x437   :  { %11325 = vmatpush1.bf16.msra.mxu0 %v14741_v38  ;;  %v14761_v38 = vld [vmem:[#allocation7 + $0x164] ss:$16 sps:$4 sm:$0xff]  }
 0x438   :  { %11326 = vmatprep.subr.bf16.mxu0 %v14746_v43  ;;  %v16085_v43 = vsub.s32 6, %v16041_v6 }
 0x439   :  { %7508 = vmatpush1.bf16.msra.mxu1 %v13536_v46  ;;  %v7614_v46 = vadd.f32 %v7613_v30, %v7612_v17 }
 0x43a   :  { %7509 = vmatprep.subr.bf16.mxu1 %v13553_v52  ;;  %v7893_v52 = vrot.slane %v16046_v25, %v16054_v48 }
 0x43b   :  { %11327 = vmatpush1.bf16.msra.mxu0 %v14744_v35  ;;  %v13633_v35 = vcombine.high %v804_v39, %v812_v40 }
 0x43c   :  { %11328 = vmatprep.subr.bf16.mxu0 %v14749_v56  ;;  %v820_v56 = vld [vmem:[#allocation5 + $0x16b8] sm:$0xff]  ;;  %v7973_v4 = vrot.slane %v7893_v52, %v16054_v48 }
 0x43d   :  { %7510 = vmatpush1.bf16.msra.mxu1 %v13552_v62  ;;  %v7905_v62 = vrot.slane %v16046_v25, %v16085_v43  ;;  %v13649_v58 = vcombine.high %v820_v56, %v828_v57  ;;  %v13648_v28 = vcombine.low %v820_v56, %v828_v57 }
 0x43e   :  { %7511 = vmatprep.subr.bf16.mxu1 %v13569_v1  ;;  %v13632_v1 = vcombine.low %v804_v39, %v812_v40  ;;  %v14773_v39 = vld [vmem:[#allocation7 + $0x1e4] ss:$16 sps:$4 sm:$0xff]   ;;  %v868_v40 = vld [vmem:[#allocation5 + $0x1838] sm:$0xff] }
 0x43f   :  { %11329 = vmatpush1.bf16.msra.mxu0 %v14747_v0  ;;  %v15611_v0 = vpop.eup %15610 }
 0x440   :  { %11330 = vmatprep.subr.bf16.mxu0 %v14752_v21  ;;  %v7615_v21 = vrot.slane %v7614_v46, 1  ;;  %v7873_v10 = vmul.f32 %v15611_v0, %v16068_v36  ;;  %v884_v0 = vld [vmem:[#allocation5 + $0x18b8] sm:$0xff] }
 0x441   :  { %7512 = vmatpush1.bf16.msra.mxu1 %v13568_v32  ;;  %v7870_v32 = vmul.f32 %v15609_v59, %v16065_v54  ;;  %v14776_v59 = vld [vmem:[#allocation7 + $0x204] ss:$16 sps:$4 sm:$0xff]  }
 0x442   :  { %7513 = vmatprep.subr.bf16.mxu1 %v13585_v9  ;;  %v8053_v9 = vrot.slane %v16046_v25, %v16061_v3  ;;  %v7616_v54 = vadd.f32 %v7615_v21, %v7614_v46 }
 0x443   :  { %11331 = vmatpush1.bf16.msra.mxu0 %v14750_v8  ;;  %v844_v8 = vld [vmem:[#allocation5 + $0x1778] sm:$0xff] }
 0x444   :  { %11332 = vmatprep.subr.bf16.mxu0 %v14755_v11  ;;  %v7985_v11 = vrot.slane %v7905_v62, %v16054_v48  ;;  %v13665_v17 = vcombine.high %v836_v5, %v844_v8  ;;  %v8133_v36 = vrot.slane %v8053_v9, %v16061_v3  ;;  %v13664_v27 = vcombine.low %v836_v5, %v844_v8 }
 0x445   :  { %7514 = vmatpush1.bf16.msra.mxu1 %v13584_v13  ;;  %v7598_v13 = vadd.f32 %v7597_v60, %v7596_v47 }
 0x446   :  { %7515 = vmatprep.subr.bf16.mxu1 %v13601_v51  ;;  %v14770_v51 = vld [vmem:[#allocation7 + $0x1c4] ss:$16 sps:$4 sm:$0xff]   ;;  %v8037_v26 = vmul.f32 %v7985_v11, %v7873_v10  ;;  %v14777_v11 = vld [vmem:[#allocation7 + $0x220] ss:$16 sps:$4 sm:$0xff]  }
 0x447   :  { %11333 = vmatpush1.bf16.msra.mxu0 %v14753_v20  ;;  %v8034_v20 = vmul.f32 %v7973_v4, %v7870_v32  ;;  %v7680_v30 = vmul.f32 0.125, %v7598_v13  ;;  %v14779_v32 = vld [vmem:[#allocation7 + $0x224] ss:$16 sps:$4 sm:$0xff]   ;;  %v900_v4 = vld [vmem:[#allocation5 + $0x1938] sm:$0xff] }
 0x448   :  { %11334 = vmatprep.subr.bf16.mxu0 %v14758_v22  ;;  %v852_v22 = vld [vmem:[#allocation5 + $0x17b8] sm:$0xff] }
 0x449   :  { %7516 = vmatpush1.bf16.msra.mxu1 %v13600_v53  ;;  %v8145_v53 = vrot.slane %v8065_v12, %v16061_v3  ;;  %v8194_v47 = vadd.f32 %v8133_v36, %v8034_v20  ;;  %v916_v13 = vld [vmem:[#allocation5 + $0x19b8] sm:$0xff]  ;;  %v14780_v20 = vld [vmem:[#allocation7 + $0x240] ss:$16 sps:$4 sm:$0xff]  }
 0x44a   :  { %7517 = vmatprep.subr.bf16.mxu1 %v13617_v16  ;;  %v14768_v16 = vld [vmem:[#allocation7 + $0x1c0] ss:$16 sps:$4 sm:$0xff]   ;;  %v940_v36 = vld [vmem:[#allocation5 + $0x1a78] sm:$0xff] }
 0x44b   :  { %11335 = vmatpush1.bf16.msra.mxu0 %v14756_v33  ;;  %v7683_v33 = vmul.f32 0.125, %v7616_v54  ;;  %v8197_v46 = vadd.f32 %v8145_v53, %v8037_v26  ;;  %v8210_v57 = vmax.f32 %v8194_v47, 0.0  ;;  %v924_v54 = vld [vmem:[#allocation5 + $0x19f8] sm:$0xff]  ;;  %v14786_v47 = vld [vmem:[#allocation7 + $0x280] ss:$16 sps:$4 sm:$0xff]  }
 0x44c   :  { %11336 = vmatprep.subr.bf16.mxu0 %v14761_v38  ;;  %v13681_v38 = vcombine.high %v852_v22, %v860_v23  ;;  %v13744_v26 = vcombine.low %v916_v13, %v924_v54 }
 0x44d   :  { %7518 = vmatpush1.bf16.msra.mxu1 %v13616_v44  ;;  %v876_v44 = vld [vmem:[#allocation5 + $0x1878] sm:$0xff]  ;;  %v16108_v52 = vsub.f32 %v16004_v37, %v7683_v33  ;;  %v8213_v62 = vmax.f32 %v8197_v46, 0.0  ;;  %v14774_v37 = vld [vmem:[#allocation7 + $0x200] ss:$16 sps:$4 sm:$0xff]   ;;  %v14788_v33 = vld [vmem:[#allocation7 + $0x284] ss:$16 sps:$4 sm:$0xff]  }
 0x44e   :  { %7519 = vmatprep.subr.bf16.mxu1 %v13633_v35  ;;  %v16105_v35 = vsub.f32 %v15990_v29, %v7680_v30  ;;  %v13697_v56 = vcombine.high %v868_v40, %v876_v44  ;;  %v13696_v60 = vcombine.low %v868_v40, %v876_v44  ;;  %v14783_v30 = vld [vmem:[#allocation7 + $0x260] ss:$16 sps:$4 sm:$0xff]  }
 0x44f   :  { %11337 = vmatpush1.bf16.msra.mxu0 %v14759_v49  ;;  %v13680_v49 = vcombine.low %v852_v22, %v860_v23  ;;  %v7715_v29 = vmul.f32 %v16108_v52, %v16108_v52  ;;  %v16117_v5 = vpack.c.bf16 %v8213_v62, %v8213_v62  ;;  %v14785_v22 = vld [vmem:[#allocation7 + $0x264] ss:$16 sps:$4 sm:$0xff]   ;;  %v932_v23 = vld [vmem:[#allocation5 + $0x1a38] sm:$0xff] }
 0x450   :  { %11338 = vmatprep.subr.bf16.mxu0 %v14764_v55  ;;  %v14771_v55 = vld [vmem:[#allocation7 + $0x1e0] ss:$16 sps:$4 sm:$0xff]   ;;  %v7712_v21 = vmul.f32 %v16105_v35, %v16105_v35 }
 0x451   :  { %7520 = vmatpush1.bf16.msra.mxu1 %v13632_v1  ;;  %v892_v1 = vld [vmem:[#allocation5 + $0x18f8] sm:$0xff]  ;;  %v7756_v10 = vrot.slane %v7715_v29, 4 }
 0x452   :  { %7521 = vmatprep.subr.bf16.mxu1 %v13649_v58  ;;  %v13713_v58 = vcombine.high %v884_v0, %v892_v1  ;;  %v13712_v8 = vcombine.low %v884_v0, %v892_v1  ;;  %v7738_v9 = vrot.slane %v7712_v21, 4  ;;  %v14789_v0 = vld [vmem:[#allocation7 + $0x2a0] ss:$16 sps:$4 sm:$0xff]  }
 0x453   :  { %11339 = vmatpush1.bf16.msra.mxu0 %v14762_v2  ;;  %v16114_v2 = vpack.c.bf16 %v8210_v57, %v8210_v57 }
 0x454   :  { %11340 = vmatprep.subr.bf16.mxu0 %v14767_v7  ;;  %v908_v7 = vld [vmem:[#allocation5 + $0x1978] sm:$0xff] }
 0x455   :  { %7522 = vmatpush1.bf16.msra.mxu1 %v13648_v28  ;;  %v13729_v12 = vcombine.high %v900_v4, %v908_v7  ;;  %v14782_v28 = vld [vmem:[#allocation7 + $0x244] ss:$16 sps:$4 sm:$0xff]  }
 0x456   :  { %7523 = vmatprep.subr.bf16.mxu1 %v13665_v17  ;;  %v7757_v17 = vadd.f32 %v7756_v10, %v7715_v29  ;;  %v980_v29 = vld [vmem:[#allocation5 + $0x1bb8] sm:$0xff]  ;;  %v14792_v10 = vld [vmem:[#allocation7 + $0x2c0] ss:$16 sps:$4 sm:$0xff]  }
 0x457   :  { %11341 = vmatpush1.bf16.msra.mxu0 %v14765_v15  ;;  %v7739_v15 = vadd.f32 %v7738_v9, %v7712_v21  ;;  %v14794_v21 = vld [vmem:[#allocation7 + $0x2c4] ss:$16 sps:$4 sm:$0xff]  }
 0x458   :  { %11342 = vmatprep.subr.bf16.mxu0 %v14770_v51  ;;  %v13745_v51 = vcombine.high %v916_v13, %v924_v54  ;;  %v1004_v13 = vld [vmem:[#allocation5 + $0x1c78] sm:$0xff] }
 0x459   :  { %7524 = vmatpush1.bf16.msra.mxu1 %v13664_v27  ;;  %v7740_v53 = vrot.slane %v7739_v15, 2  ;;  %v7758_v27 = vrot.slane %v7757_v17, 2 }
 0x45a   :  { %7525 = vmatprep.subr.bf16.mxu1 %v13681_v38  ;;  %v956_v38 = vld [vmem:[#allocation5 + $0x1af8] sm:$0xff] }
 0x45b   :  { %11343 = vmatpush1.bf16.msra.mxu0 %v14768_v16  ;;  %v948_v16 = vld [vmem:[#allocation5 + $0x1ab8] sm:$0xff]  ;;  %v7741_v40 = vadd.f32 %v7740_v53, %v7739_v15  ;;  %v7759_v44 = vadd.f32 %v7758_v27, %v7757_v17  ;;  %v14795_v17 = vld [vmem:[#allocation7 + $0x2e0] ss:$16 sps:$4 sm:$0xff]  }
 0x45c   :  { %11344 = vmatprep.subr.bf16.mxu0 %v14773_v39  ;;  %v13760_v39 = vcombine.low %v932_v23, %v940_v36  ;;  %v13777_v46 = vcombine.high %v948_v16, %v956_v38  ;;  %v13776_v57 = vcombine.low %v948_v16, %v956_v38  ;;  %v14803_v16 = vld [vmem:[#allocation7 + $0x324] ss:$16 sps:$4 sm:$0xff]   ;;  %v1028_v38 = vld [vmem:[#allocation5 + $0x1d38] sm:$0xff] }
 0x45d   :  { %7526 = vmatpush1.bf16.msra.mxu1 %v13680_v49  ;;  %v14791_v49 = vld [vmem:[#allocation7 + $0x2a4] ss:$16 sps:$4 sm:$0xff]   ;;  %v7760_v62 = vrot.slane %v7759_v44, 1 }
 0x45e   :  { %7536 = vmatprep.subr.bf16.mxu1 %v13697_v56  ;;  %v972_v56 = vld [vmem:[#allocation5 + $0x1b78] sm:$0xff] }
 0x45f   :  { %11345 = vmatpush1.bf16.msra.mxu0 %v14771_v55  ;;  %v964_v55 = vld [vmem:[#allocation5 + $0x1b38] sm:$0xff] }
 0x460   :  { %11355 = vmatprep.subr.bf16.mxu0 %v14776_v59  ;;  %7528 = vmatmul.mubr.bf16.vlgmr.msra.gmra.mrb[16].mxu1 %v15942_v34  ;;  %v13728_v34 = vcombine.low %v900_v4, %v908_v7  ;;  %v7742_v59 = vrot.slane %v7741_v40, 1  ;;  %v13793_v1 = vcombine.high %v964_v55, %v972_v56  ;;  %v13792_v4 = vcombine.low %v964_v55, %v972_v56  ;;  %v14806_v55 = vld [vmem:[#allocation7 + $0x344] ss:$16 sps:$4 sm:$0xff]   ;;  %v1044_v56 = vld [vmem:[#allocation5 + $0x1db8] sm:$0xff] }
 0x461   :  { %7537 = vmatpush1.bf16.msra.mxu1 %v13696_v60  ;;  %7568 = vmatprep.mubr.bf16.mxu1 %v15946_v42  ;;  %v13761_v42 = vcombine.high %v932_v23, %v940_v36  ;;  %v1020_v23 = vld [vmem:[#allocation5 + $0x1cf8] sm:$0xff]  ;;  %v7605_v36 = vrot.slane %v16002_v31, 4 }
 0x462   :  { %11347 = vmatmul.mubr.bf16.vlgmr.msra.gmra.mrb[16].mxu0 %v16114_v2  ;;  %7538 = vmatprep.subr.bf16.mxu1 %v13713_v58  ;;  %v7743_v7 = vadd.f32 %v7742_v59, %v7741_v40 }
 0x463   :  { %11356 = vmatpush1.bf16.msra.mxu0 %v14774_v37  ;;  %11387 = vmatprep.mubr.bf16.mxu0 %v16117_v5  ;;  %v988_v37 = vld [vmem:[#allocation5 + $0x1bf8] sm:$0xff]  ;;  %v7606_v40 = vadd.f32 %v7605_v36, %v16002_v31  ;;  %v14810_v36 = vld [vmem:[#allocation7 + $0x380] ss:$16 sps:$4 sm:$0xff]  }
 0x464   :  { %11357 = vmatprep.subr.bf16.mxu0 %v14779_v32  ;;  %v13808_v54 = vcombine.low %v980_v29, %v988_v37 }
 0x465   :  { %7539 = vmatpush1.bf16.msra.mxu1 %v13712_v8  ;;  %v7761_v8 = vadd.f32 %v7760_v62, %v7759_v44  ;;  %v7607_v59 = vrot.slane %v7606_v40, 2 }
 0x466   :  { %7540 = vmatprep.subr.bf16.mxu1 %v13729_v12  ;;  %v14797_v12 = vld [vmem:[#allocation7 + $0x2e4] ss:$16 sps:$4 sm:$0xff]  }
 0x467   :  { %11358 = vmatpush1.bf16.msra.mxu0 %v14777_v11  ;;  %v13809_v11 = vcombine.high %v980_v29, %v988_v37  ;;  %v7827_v15 = vmul.f32 0.125, %v7761_v8  ;;  %v14809_v37 = vld [vmem:[#allocation7 + $0x364] ss:$16 sps:$4 sm:$0xff]   ;;  %v7608_v8 = vadd.f32 %v7607_v59, %v7606_v40 }
 0x468   :  { %11359 = vmatprep.subr.bf16.mxu0 %v14782_v28  ;;  %v996_v28 = vld [vmem:[#allocation5 + $0x1c38] sm:$0xff] }
 0x469   :  { %7541 = vmatpush1.bf16.msra.mxu1 %v13728_v34  ;;  %v7824_v34 = vmul.f32 0.125, %v7743_v7  ;;  %v7843_v27 = vadd.f32 1e-05, %v7827_v15  ;;  %v16133_v7 = vld [vmem:[#allocation10 + $0x8] sm:$0xff]  ;;  %v16138_v15 = vsub.s32 5, %v16041_v6 }
 0x46a   :  { %7542 = vmatprep.subr.bf16.mxu1 %v13745_v51  ;;  %v14800_v51 = vld [vmem:[#allocation7 + $0x304] ss:$16 sps:$4 sm:$0xff]   ;;  %v8073_v40 = vrot.slane %v16133_v7, %v16051_v19 }
 0x46b   :  { %11360 = vmatpush1.bf16.msra.mxu0 %v14780_v20  ;;  %v13825_v20 = vcombine.high %v996_v28, %v1004_v13  ;;  %v7840_v53 = vadd.f32 1e-05, %v7824_v34  ;;  %v1084_v34 = vld [vmem:[#allocation5 + $0x1ef8] sm:$0xff] }
 0x46c   :  { %11361 = vmatprep.subr.bf16.mxu0 %v14785_v22  ;;  %v1012_v22 = vld [vmem:[#allocation5 + $0x1cb8] sm:$0xff] }
 0x46d   :  { %7543 = vmatpush1.bf16.msra.mxu1 %v13744_v26  ;;  %v13824_v26 = vcombine.low %v996_v28, %v1004_v13  ;;  %v13840_v44 = vcombine.low %v1012_v22, %v1020_v23  ;;  %15612 = vrsqrt.f32 %v7840_v53  ;;  %v14812_v13 = vld [vmem:[#allocation7 + $0x384] ss:$16 sps:$4 sm:$0xff]  }
 0x46e   :  { %7544 = vmatprep.subr.bf16.mxu1 %v13761_v42  ;;  %v13841_v42 = vcombine.high %v1012_v22, %v1020_v23  ;;  %15614 = vrsqrt.f32 %v7843_v27  ;;  %v7609_v22 = vrot.slane %v7608_v8, 1 }
 0x46f   :  { %11362 = vmatpush1.bf16.msra.mxu0 %v14783_v30  ;;  %v14798_v30 = vld [vmem:[#allocation7 + $0x300] ss:$16 sps:$4 sm:$0xff]  }
 0x470   :  { %11363 = vmatprep.subr.bf16.mxu0 %v14788_v33  ;;  %v7623_v33 = vrot.slane %v16016_v45, 4 }
 0x471   :  { %7545 = vmatpush1.bf16.msra.mxu1 %v13760_v39  ;;  %v1036_v39 = vld [vmem:[#allocation5 + $0x1d78] sm:$0xff] }
 0x472   :  { %7546 = vmatprep.subr.bf16.mxu1 %v13777_v46  ;;  %v13857_v46 = vcombine.high %v1028_v38, %v1036_v39  ;;  %v13856_v62 = vcombine.low %v1028_v38, %v1036_v39 }
 0x473   :  { %11364 = vmatpush1.bf16.msra.mxu0 %v14786_v47  ;;  %v16122_v60 = vpop.f32.mrb[12].mxu1  ;;  %v14801_v47 = vld [vmem:[#allocation7 + $0x320] ss:$16 sps:$4 sm:$0xff]  }
 0x474   :  { %11365 = vmatprep.subr.bf16.mxu0 %v14791_v49  ;;  %v16124_v58 = vpop.f32.mrb[13].mxu1  ;;  %v7624_v49 = vadd.f32 %v7623_v33, %v16016_v45  ;;  %v1100_v33 = vld [vmem:[#allocation5 + $0x1f78] sm:$0xff] }
 0x475   :  { %v7246_v32 = vpop.f32.mrb[14].mxu1  ;;  %7547 = vmatpush1.bf16.msra.mxu1 %v13776_v57  ;;  %v1052_v57 = vld [vmem:[#allocation5 + $0x1df8] sm:$0xff] }
 0x476   :  { %v7247_v9 = vpop.f32.mrb[15].mxu1  ;;  %7548 = vmatprep.subr.bf16.mxu1 %v13793_v1  ;;  %v13873_v1 = vcombine.high %v1044_v56, %v1052_v57  ;;  %v7625_v29 = vrot.slane %v7624_v49, 2  ;;  %v1060_v32 = vld [vmem:[#allocation5 + $0x1e38] sm:$0xff] }
 0x477   :  { %11366 = vmatpush1.bf16.msra.mxu0 %v14789_v0  ;;  %v14804_v0 = vld [vmem:[#allocation7 + $0x340] ss:$16 sps:$4 sm:$0xff]   ;;  %v13872_v9 = vcombine.low %v1044_v56, %v1052_v57  ;;  %v14818_v56 = vld [vmem:[#allocation7 + $0x3c4] ss:$16 sps:$4 sm:$0xff]   ;;  %v1108_v57 = vld [vmem:[#allocation5 + $0x1fb8] sm:$0xff] }
 0x478   :  { %11367 = vmatprep.subr.bf16.mxu0 %v14794_v21  ;;  %v16131_v21 = vsub.s32 4, %v16041_v6  ;;  %v7626_v28 = vadd.f32 %v7625_v29, %v7624_v49  ;;  %v14815_v6 = vld [vmem:[#allocation7 + $0x3a4] ss:$16 sps:$4 sm:$0xff]   ;;  %v14816_v29 = vld [vmem:[#allocation7 + $0x3c0] ss:$16 sps:$4 sm:$0xff]  }
 0x479   :  { %7549 = vmatpush1.bf16.msra.mxu1 %v13792_v4  ;;  %v1068_v4 = vld [vmem:[#allocation5 + $0x1e78] sm:$0xff] }
 0x47a   :  { %7550 = vmatprep.subr.bf16.mxu1 %v13809_v11  ;;  %v13889_v11 = vcombine.high %v1060_v32, %v1068_v4  ;;  %v13888_v23 = vcombine.low %v1060_v32, %v1068_v4  ;;  %v14821_v4 = vld [vmem:[#allocation7 + $0x3e4] ss:$16 sps:$4 sm:$0xff]  }
 0x47b   :  { %11368 = vmatpush1.bf16.msra.mxu0 %v14792_v10  ;;  %v14807_v10 = vld [vmem:[#allocation7 + $0x360] ss:$16 sps:$4 sm:$0xff]  }
 0x47c   :  { %11369 = vmatprep.subr.bf16.mxu0 %v14797_v12  ;;  %v7901_v12 = vrot.slane %v16046_v25, %v16131_v21 }
 0x47d   :  { %7551 = vmatpush1.bf16.msra.mxu1 %v13808_v54  ;;  %v1076_v54 = vld [vmem:[#allocation5 + $0x1eb8] sm:$0xff] }
 0x47e   :  { %7552 = vmatprep.subr.bf16.mxu1 %v13825_v20  ;;  %v7913_v20 = vrot.slane %v16133_v7, %v16044_v24  ;;  %v7981_v27 = vrot.slane %v7901_v12, %v16054_v48  ;;  %v14819_v12 = vld [vmem:[#allocation7 + $0x3e0] ss:$16 sps:$4 sm:$0xff]  }
 0x47f   :  { %11370 = vmatpush1.bf16.msra.mxu0 %v14795_v17  ;;  %v15613_v17 = vpop.eup %15612 }
 0x480   :  { %11371 = vmatprep.subr.bf16.mxu0 %v14800_v51  ;;  %v15615_v51 = vpop.eup %15614  ;;  %v7872_v53 = vmul.f32 %v15613_v17, %v16105_v35  ;;  %v7993_v39 = vrot.slane %v7913_v20, %v16054_v48  ;;  %v13904_v35 = vcombine.low %v1076_v54, %v1084_v34 }
 0x481   :  { %7553 = vmatpush1.bf16.msra.mxu1 %v13824_v26  ;;  %v13905_v26 = vcombine.high %v1076_v54, %v1084_v34  ;;  %v7875_v38 = vmul.f32 %v15615_v51, %v16108_v52  ;;  %v14824_v34 = vld [vmem:[#allocation7 + $0x404] ss:$16 sps:$4 sm:$0xff]   ;;  %v14825_v51 = vld [vmem:[#allocation7 + $0x8] ss:$16 sps:$4 sm:$0xff]  }
 0x482   :  { %7554 = vmatprep.subr.bf16.mxu1 %v13841_v42  ;;  %v1092_v42 = vld [vmem:[#allocation5 + $0x1f38] sm:$0xff]  ;;  %v8036_v49 = vmul.f32 %v7981_v27, %v7872_v53 }
 0x483   :  { %11372 = vmatpush1.bf16.msra.mxu0 %v14798_v30  ;;  %v7627_v30 = vrot.slane %v7626_v28, 1  ;;  %v8039_v59 = vmul.f32 %v7993_v39, %v7875_v38  ;;  %v14831_v27 = vld [vmem:[#allocation7 + $0x28] ss:$16 sps:$4 sm:$0xff]   ;;  %v14834_v38 = vld [vmem:[#allocation7 + $0x440] ss:$16 sps:$4 sm:$0xff]  }
 0x484   :  { %11373 = vmatprep.subr.bf16.mxu0 %v14803_v16  ;;  %v8061_v16 = vrot.slane %v16046_v25, %v16138_v15  ;;  %v1116_v25 = vld [vmem:[#allocation5 + $0x1ff8] sm:$0xff] }
 0x485   :  { %7555 = vmatpush1.bf16.msra.mxu1 %v13840_v44  ;;  %v7610_v44 = vadd.f32 %v7609_v22, %v7608_v8  ;;  %v14845_v39 = vld [vmem:[#allocation7 + $0x6c] ss:$16 sps:$4 sm:$0xff]  }
 0x486   :  { %7556 = vmatprep.subr.bf16.mxu1 %v13857_v46  ;;  %v13921_v46 = vcombine.high %v1092_v42, %v1100_v33  ;;  %v8141_v52 = vrot.slane %v8061_v16, %v16061_v3  ;;  %v14837_v16 = vld [vmem:[#allocation7 + $0x48] ss:$16 sps:$4 sm:$0xff]  }
 0x487   :  { %11374 = vmatpush1.bf16.msra.mxu0 %v14801_v47  ;;  %v14813_v47 = vld [vmem:[#allocation7 + $0x3a0] ss:$16 sps:$4 sm:$0xff]  }
 0x488   :  { %11375 = vmatprep.subr.bf16.mxu0 %v14806_v55  ;;  %v7628_v55 = vadd.f32 %v7627_v30, %v7626_v28  ;;  %v8196_v8 = vadd.f32 %v8141_v52, %v8036_v49  ;;  %v14827_v28 = vld [vmem:[#allocation7 + $0xc] ss:$16 sps:$4 sm:$0xff]   ;;  %v14828_v30 = vld [vmem:[#allocation7 + $0x420] ss:$16 sps:$4 sm:$0xff]  }
 0x489   :  { %7557 = vmatpush1.bf16.msra.mxu1 %v13856_v62  ;;  %v8153_v62 = vrot.slane %v8073_v40, %v16061_v3  ;;  %v14857_v52 = vld [vmem:[#allocation7 + $0xac] ss:$16 sps:$4 sm:$0xff]  }
 0x48a   :  { %7558 = vmatprep.subr.bf16.mxu1 %v13873_v1  ;;  %v13920_v1 = vcombine.low %v1092_v42, %v1100_v33  ;;  %v7685_v32 = vmul.f32 0.125, %v7628_v55  ;;  %v8212_v54 = vmax.f32 %v8196_v8, 0.0  ;;  %v14836_v33 = vld [vmem:[#allocation7 + $0x444] ss:$16 sps:$4 sm:$0xff]  }
 0x48b   :  { %11376 = vmatpush1.bf16.msra.mxu0 %v14804_v0  ;;  %v7682_v0 = vmul.f32 0.125, %v7610_v44  ;;  %v14842_v44 = vld [vmem:[#allocation7 + $0x464] ss:$16 sps:$4 sm:$0xff]  }
 0x48c   :  { %11377 = vmatprep.subr.bf16.mxu0 %v14809_v37  ;;  %v13937_v37 = vcombine.high %v1108_v57, %v1116_v25  ;;  %v14848_v55 = vld [vmem:[#allocation7 + $0x484] ss:$16 sps:$4 sm:$0xff]  }
 0x48d   :  { %7559 = vmatpush1.bf16.msra.mxu1 %v13872_v9  ;;  %v8199_v9 = vadd.f32 %v8153_v62, %v8039_v59  ;;  %v14854_v62 = vld [vmem:[#allocation7 + $0x4a4] ss:$16 sps:$4 sm:$0xff]  }
 0x48e   :  { %7560 = vmatprep.subr.bf16.mxu1 %v13889_v11  ;;  %v13936_v11 = vcombine.low %v1108_v57, %v1116_v25  ;;  %v14849_v57 = vld [vmem:[#allocation7 + $0x88] ss:$16 sps:$4 sm:$0xff]   ;;  %v14846_v25 = vld [vmem:[#allocation7 + $0x480] ss:$16 sps:$4 sm:$0xff]  }
 0x48f   :  { %11378 = vmatpush1.bf16.msra.mxu0 %v14807_v10  ;;  %v16153_v10 = vsub.f32 %v16002_v31, %v7682_v0  ;;  %v8215_v17 = vmax.f32 %v8199_v9, 0.0  ;;  %v14822_v31 = vld [vmem:[#allocation7 + $0x400] ss:$16 sps:$4 sm:$0xff]   ;;  %v14861_v9 = vld [vmem:[#allocation7 + $0xc8] ss:$16 sps:$4 sm:$0xff]  }
 0x490   :  { %11379 = vmatprep.subr.bf16.mxu0 %v14812_v13  ;;  %v16156_v13 = vsub.f32 %v16016_v45, %v7685_v32  ;;  %v14830_v45 = vld [vmem:[#allocation7 + $0x424] ss:$16 sps:$4 sm:$0xff]  }
 0x491   :  { %7561 = vmatpush1.bf16.msra.mxu1 %v13888_v23  ;;  %v7714_v20 = vmul.f32 %v16153_v10, %v16153_v10  ;;  %v16162_v23 = vpack.c.bf16 %v8212_v54, %v8212_v54  ;;  %v14866_v54 = vld [vmem:[#allocation7 + $0x4e4] ss:$16 sps:$4 sm:$0xff]  }
 0x492   :  { %7562 = vmatprep.subr.bf16.mxu1 %v13905_v26  ;;  %v7717_v22 = vmul.f32 %v16156_v13, %v16156_v13  ;;  %v14833_v26 = vld [vmem:[#allocation7 + $0x2c] ss:$16 sps:$4 sm:$0xff]  }
 0x493   :  { %11380 = vmatpush1.bf16.msra.mxu0 %v14810_v36  ;;  %v16165_v36 = vpack.c.bf16 %v8215_v17, %v8215_v17  ;;  %v7750_v53 = vrot.slane %v7714_v20, 4  ;;  %v14867_v17 = vld [vmem:[#allocation7 + $0xe8] ss:$16 sps:$4 sm:$0xff]  }
 0x494   :  { %11381 = vmatprep.subr.bf16.mxu0 %v14815_v6  ;;  %v14839_v6 = vld [vmem:[#allocation7 + $0x4c] ss:$16 sps:$4 sm:$0xff]   ;;  %v7768_v42 = vrot.slane %v7717_v22, 4 }
 0x495   :  { %7563 = vmatpush1.bf16.msra.mxu1 %v13904_v35 }
 0x496   :  { %7564 = vmatprep.subr.bf16.mxu1 %v13921_v46  ;;  %v7769_v40 = vadd.f32 %v7768_v42, %v7717_v22  ;;  %v14840_v46 = vld [vmem:[#allocation7 + $0x460] ss:$16 sps:$4 sm:$0xff]   ;;  %v14872_v22 = vld [vmem:[#allocation7 + $0x504] ss:$16 sps:$4 sm:$0xff]   ;;  %v7635_v42 = vrot.slane %v16035_v18, 4 }
 0x497   :  { %11382 = vmatpush1.bf16.msra.mxu0 %v14813_v47  ;;  %v14843_v47 = vld [vmem:[#allocation7 + $0x68] ss:$16 sps:$4 sm:$0xff]  }
 0x498   :  { %11383 = vmatprep.subr.bf16.mxu0 %v14818_v56  ;;  %v7770_v49 = vrot.slane %v7769_v40, 2 }
 0x499   :  { %7565 = vmatpush1.bf16.msra.mxu1 %v13920_v1  ;;  %v14855_v1 = vld [vmem:[#allocation7 + $0xa8] ss:$16 sps:$4 sm:$0xff]  }
 0x49a   :  { %7566 = vmatprep.subr.bf16.mxu1 %v13937_v37  ;;  %v7771_v59 = vadd.f32 %v7770_v49, %v7769_v40  ;;  %v14863_v37 = vld [vmem:[#allocation7 + $0xcc] ss:$16 sps:$4 sm:$0xff]   ;;  %v7636_v40 = vadd.f32 %v7635_v42, %v16035_v18  ;;  %v14909_v42 = vld [vmem:[#allocation7 + $0x1c8] ss:$16 sps:$4 sm:$0xff]  }
 0x49b   :  { %11384 = vmatpush1.bf16.msra.mxu0 %v14816_v29  ;;  %v14852_v29 = vld [vmem:[#allocation7 + $0x4a0] ss:$16 sps:$4 sm:$0xff]  }
 0x49c   :  { %11385 = vmatprep.subr.bf16.mxu0 %v14821_v4  ;;  %v7772_v32 = vrot.slane %v7771_v59, 1  ;;  %v14860_v4 = vld [vmem:[#allocation7 + $0x4c4] ss:$16 sps:$4 sm:$0xff]   ;;  %v7637_v49 = vrot.slane %v7636_v40, 2 }
 0x49d   :  { %7567 = vmatpush1.bf16.msra.mxu1 %v13936_v11  ;;  %v14858_v11 = vld [vmem:[#allocation7 + $0x4c0] ss:$16 sps:$4 sm:$0xff]  }
 0x49e   :  { %11642 = vmatprep.subr.bf16.mxu1 %v14827_v28  ;;  %v7773_v28 = vadd.f32 %v7772_v32, %v7771_v59  ;;  %v7909_v59 = vrot.slane %v16133_v7, %v16054_v48  ;;  %v14897_v32 = vld [vmem:[#allocation7 + $0x188] ss:$16 sps:$4 sm:$0xff]  }
 0x49f   :  { %11386 = vmatpush1.bf16.msra.mxu0 %v14819_v12  ;;  %v14869_v12 = vld [vmem:[#allocation7 + $0xec] ss:$16 sps:$4 sm:$0xff]  }
 0x4a0   :  { %11396 = vmatprep.subr.bf16.mxu0 %v14824_v34  ;;  %7569 = vmatmul.mubr.bf16.vlgmr.msra.gmra.mrb[16].mxu1 %v15954_v50  ;;  %v7751_v50 = vadd.f32 %v7750_v53, %v7714_v20  ;;  %v14864_v20 = vld [vmem:[#allocation7 + $0x4e0] ss:$16 sps:$4 sm:$0xff]   ;;  %v7617_v53 = vrot.slane %v16014_v41, 4 }
 0x4a1   :  { %11643 = vmatpush1.bf16.msra.mxu1 %v14825_v51  ;;  %11674 = vmatprep.mubr.bf16.mxu1 %v16075_v61  ;;  %v14851_v61 = vld [vmem:[#allocation7 + $0x8c] ss:$16 sps:$4 sm:$0xff]  }
 0x4a2   :  { %11388 = vmatmul.mubr.bf16.vlgmr.msra.gmra.mrb[16].mxu0 %v16162_v23  ;;  %11644 = vmatprep.subr.bf16.mxu1 %v14833_v26  ;;  %v7752_v35 = vrot.slane %v7751_v50, 2  ;;  %v14875_v51 = vld [vmem:[#allocation7 + $0x10c] ss:$16 sps:$4 sm:$0xff]   ;;  %v14873_v26 = vld [vmem:[#allocation7 + $0x108] ss:$16 sps:$4 sm:$0xff]  }
 0x4a3   :  { %11397 = vmatpush1.bf16.msra.mxu0 %v14822_v31  ;;  %11428 = vmatprep.mubr.bf16.mxu0 %v16165_v36  ;;  %v7829_v31 = vmul.f32 0.125, %v7773_v28 }
 0x4a4   :  { %11398 = vmatprep.subr.bf16.mxu0 %v14830_v45  ;;  %v7753_v56 = vadd.f32 %v7752_v35, %v7751_v50  ;;  %v14879_v50 = vld [vmem:[#allocation7 + $0x128] ss:$16 sps:$4 sm:$0xff]  }
 0x4a5   :  { %11645 = vmatpush1.bf16.msra.mxu1 %v14831_v27  ;;  %v14870_v27 = vld [vmem:[#allocation7 + $0x500] ss:$16 sps:$4 sm:$0xff]   ;;  %v14885_v35 = vld [vmem:[#allocation7 + $0x148] ss:$16 sps:$4 sm:$0xff]  }
 0x4a6   :  { %11646 = vmatprep.subr.bf16.mxu1 %v14839_v6  ;;  %v7754_v0 = vrot.slane %v7753_v56, 1  ;;  %v7845_v6 = vadd.f32 1e-05, %v7829_v31  ;;  %v14903_v31 = vld [vmem:[#allocation7 + $0x1a8] ss:$16 sps:$4 sm:$0xff]  }
 0x4a7   :  { %11399 = vmatpush1.bf16.msra.mxu0 %v14828_v30  ;;  %v14881_v30 = vld [vmem:[#allocation7 + $0x12c] ss:$16 sps:$4 sm:$0xff]  }
 0x4a8   :  { %11400 = vmatprep.subr.bf16.mxu0 %v14836_v33  ;;  %v7755_v8 = vadd.f32 %v7754_v0, %v7753_v56  ;;  %v14878_v33 = vld [vmem:[#allocation7 + $0x524] ss:$16 sps:$4 sm:$0xff]   ;;  %v14891_v56 = vld [vmem:[#allocation7 + $0x168] ss:$16 sps:$4 sm:$0xff]  }
 0x4a9   :  { %11647 = vmatpush1.bf16.msra.mxu1 %v14837_v16  ;;  %v7618_v16 = vadd.f32 %v7617_v53, %v16014_v41  ;;  %v14896_v0 = vld [vmem:[#allocation7 + $0x584] ss:$16 sps:$4 sm:$0xff]  }
 0x4aa   :  { %11648 = vmatprep.subr.bf16.mxu1 %v14845_v39  ;;  %v7826_v34 = vmul.f32 0.125, %v7755_v8  ;;  %v14887_v39 = vld [vmem:[#allocation7 + $0x14c] ss:$16 sps:$4 sm:$0xff]   ;;  %v14894_v8 = vld [vmem:[#allocation7 + $0x580] ss:$16 sps:$4 sm:$0xff]  }
 0x4ab   :  { %11401 = vmatpush1.bf16.msra.mxu0 %v14834_v38  ;;  %v14876_v38 = vld [vmem:[#allocation7 + $0x520] ss:$16 sps:$4 sm:$0xff]  }
 0x4ac   :  { %11402 = vmatprep.subr.bf16.mxu0 %v14842_v44  ;;  %v7842_v45 = vadd.f32 1e-05, %v7826_v34  ;;  %v14884_v44 = vld [vmem:[#allocation7 + $0x544] ss:$16 sps:$4 sm:$0xff]   ;;  %v8069_v34 = vrot.slane %v16133_v7, %v16061_v3 }
 0x4ad   :  { %11649 = vmatpush1.bf16.msra.mxu1 %v14843_v47  ;;  %v7619_v47 = vrot.slane %v7618_v16, 2 }
 0x4ae   :  { %11650 = vmatprep.subr.bf16.mxu1 %v14851_v61  ;;  %15616 = vrsqrt.f32 %v7842_v45  ;;  %v14893_v61 = vld [vmem:[#allocation7 + $0x16c] ss:$16 sps:$4 sm:$0xff]  }
 0x4af   :  { %11403 = vmatpush1.bf16.msra.mxu0 %v14840_v46  ;;  %15618 = vrsqrt.f32 %v7845_v6  ;;  %v14882_v46 = vld [vmem:[#allocation7 + $0x540] ss:$16 sps:$4 sm:$0xff]   ;;  %v14911_v45 = vld [vmem:[#allocation7 + $0x1cc] ss:$16 sps:$4 sm:$0xff]  }
 0x4b0   :  { %11404 = vmatprep.subr.bf16.mxu0 %v14848_v55  ;;  %v14890_v55 = vld [vmem:[#allocation7 + $0x564] ss:$16 sps:$4 sm:$0xff]  }
 0x4b1   :  { %11651 = vmatpush1.bf16.msra.mxu1 %v14849_v57  ;;  %v7620_v57 = vadd.f32 %v7619_v47, %v7618_v16  ;;  %v14917_v16 = vld [vmem:[#allocation7 + $0x1ec] ss:$16 sps:$4 sm:$0xff]  }
 0x4b2   :  { %11652 = vmatprep.subr.bf16.mxu1 %v14857_v52  ;;  %v14899_v52 = vld [vmem:[#allocation7 + $0x18c] ss:$16 sps:$4 sm:$0xff]  }
 0x4b3   :  { %11405 = vmatpush1.bf16.msra.mxu0 %v14846_v25  ;;  %v14888_v25 = vld [vmem:[#allocation7 + $0x560] ss:$16 sps:$4 sm:$0xff]  }
 0x4b4   :  { %11406 = vmatprep.subr.bf16.mxu0 %v14854_v62  ;;  %v7638_v62 = vadd.f32 %v7637_v49, %v7636_v40 }
 0x4b5   :  { %11653 = vmatpush1.bf16.msra.mxu1 %v14855_v1 }
 0x4b6   :  { %11654 = vmatprep.subr.bf16.mxu1 %v14863_v37  ;;  %v7639_v28 = vrot.slane %v7638_v62, 1 }
 0x4b7   :  { %11407 = vmatpush1.bf16.msra.mxu0 %v14852_v29  ;;  %v7921_v29 = vrot.slane %v16133_v7, %v16085_v43 }
 0x4b8   :  { %11408 = vmatprep.subr.bf16.mxu0 %v14860_v4  ;;  %v15617_v1 = vpop.eup %15616  ;;  %v7621_v4 = vrot.slane %v7620_v57, 1  ;;  %v7640_v53 = vadd.f32 %v7639_v28, %v7638_v62  ;;  %v14941_v28 = vld [vmem:[#allocation7 + $0x26c] ss:$16 sps:$4 sm:$0xff]  }
 0x4b9   :  { %11655 = vmatpush1.bf16.msra.mxu1 %v14861_v9  ;;  %v15619_v37 = vpop.eup %15618  ;;  %v14905_v9 = vld [vmem:[#allocation7 + $0x1ac] ss:$16 sps:$4 sm:$0xff]  }
 0x4ba   :  { %11656 = vmatprep.subr.bf16.mxu1 %v14869_v12  ;;  %v7989_v12 = vrot.slane %v7909_v59, %v16054_v48  ;;  %v14918_v59 = vld [vmem:[#allocation7 + $0x600] ss:$16 sps:$4 sm:$0xff]  }
 0x4bb   :  { %11409 = vmatpush1.bf16.msra.mxu0 %v14858_v11  ;;  %v7874_v11 = vmul.f32 %v15617_v1, %v16153_v10  ;;  %v14900_v10 = vld [vmem:[#allocation7 + $0x5a0] ss:$16 sps:$4 sm:$0xff]   ;;  %v14929_v1 = vld [vmem:[#allocation7 + $0x22c] ss:$16 sps:$4 sm:$0xff]  }
 0x4bc   :  { %11410 = vmatprep.subr.bf16.mxu0 %v14866_v54  ;;  %v14902_v54 = vld [vmem:[#allocation7 + $0x5a4] ss:$16 sps:$4 sm:$0xff]  }
 0x4bd   :  { %11657 = vmatpush1.bf16.msra.mxu1 %v14867_v17  ;;  %v7877_v17 = vmul.f32 %v15619_v37, %v16156_v13 }
 0x4be   :  { %11658 = vmatprep.subr.bf16.mxu1 %v14875_v51  ;;  %v8081_v51 = vrot.slane %v16133_v7, %v16092_v63 }
 0x4bf   :  { %11411 = vmatpush1.bf16.msra.mxu0 %v14864_v20  ;;  %v8001_v20 = vrot.slane %v7921_v29, %v16054_v48  ;;  %v14927_v29 = vld [vmem:[#allocation7 + $0x228] ss:$16 sps:$4 sm:$0xff]  }
 0x4c0   :  { %11412 = vmatprep.subr.bf16.mxu0 %v14872_v22  ;;  %v7622_v22 = vadd.f32 %v7621_v4, %v7620_v57  ;;  %v8161_v13 = vrot.slane %v8081_v51, %v16061_v3  ;;  %v14935_v4 = vld [vmem:[#allocation7 + $0x24c] ss:$16 sps:$4 sm:$0xff]   ;;  %v14936_v51 = vld [vmem:[#allocation7 + $0x660] ss:$16 sps:$4 sm:$0xff]  }
 0x4c1   :  { %11659 = vmatpush1.bf16.msra.mxu1 %v14873_v26  ;;  %v8038_v26 = vmul.f32 %v7989_v12, %v7874_v11  ;;  %v8041_v6 = vmul.f32 %v8001_v20, %v7877_v17  ;;  %v14930_v12 = vld [vmem:[#allocation7 + $0x640] ss:$16 sps:$4 sm:$0xff]   ;;  %v14939_v17 = vld [vmem:[#allocation7 + $0x268] ss:$16 sps:$4 sm:$0xff]  }
 0x4c2   :  { %11660 = vmatprep.subr.bf16.mxu1 %v14881_v30  ;;  %v8149_v30 = vrot.slane %v8069_v34, %v16061_v3  ;;  %v14938_v34 = vld [vmem:[#allocation7 + $0x664] ss:$16 sps:$4 sm:$0xff]  }
 0x4c3   :  { %11413 = vmatpush1.bf16.msra.mxu0 %v14870_v27  ;;  %v14908_v27 = vld [vmem:[#allocation7 + $0x5c4] ss:$16 sps:$4 sm:$0xff]  }
 0x4c4   :  { %11414 = vmatprep.subr.bf16.mxu0 %v14878_v33  ;;  %v7684_v33 = vmul.f32 0.125, %v7622_v22  ;;  %v8198_v40 = vadd.f32 %v8149_v30, %v8038_v26  ;;  %v14944_v22 = vld [vmem:[#allocation7 + $0x684] ss:$16 sps:$4 sm:$0xff]   ;;  %v14942_v26 = vld [vmem:[#allocation7 + $0x680] ss:$16 sps:$4 sm:$0xff]  }
 0x4c5   :  { %11661 = vmatpush1.bf16.msra.mxu1 %v14879_v50  ;;  %v14906_v50 = vld [vmem:[#allocation7 + $0x5c0] ss:$16 sps:$4 sm:$0xff]   ;;  %v14950_v30 = vld [vmem:[#allocation7 + $0x6a4] ss:$16 sps:$4 sm:$0xff]  }
 0x4c6   :  { %11662 = vmatprep.subr.bf16.mxu1 %v14887_v39  ;;  %v14914_v39 = vld [vmem:[#allocation7 + $0x5e4] ss:$16 sps:$4 sm:$0xff]   ;;  %v16189_v47 = vsub.f32 %v16014_v41, %v7684_v33  ;;  %v14959_v33 = vld [vmem:[#allocation7 + $0x2cc] ss:$16 sps:$4 sm:$0xff]  }
 0x4c7   :  { %11415 = vmatpush1.bf16.msra.mxu0 %v14876_v38  ;;  %v7687_v38 = vmul.f32 0.125, %v7640_v53  ;;  %v14953_v53 = vld [vmem:[#allocation7 + $0x2ac] ss:$16 sps:$4 sm:$0xff]  }
 0x4c8   :  { %11416 = vmatprep.subr.bf16.mxu0 %v14884_v44  ;;  %v8201_v44 = vadd.f32 %v8161_v13, %v8041_v6  ;;  %v14951_v6 = vld [vmem:[#allocation7 + $0x2a8] ss:$16 sps:$4 sm:$0xff]  }
 0x4c9   :  { %11663 = vmatpush1.bf16.msra.mxu1 %v14885_v35  ;;  %v14915_v35 = vld [vmem:[#allocation7 + $0x1e8] ss:$16 sps:$4 sm:$0xff]   ;;  %v16192_v49 = vsub.f32 %v16035_v18, %v7687_v38  ;;  %v14926_v18 = vld [vmem:[#allocation7 + $0x624] ss:$16 sps:$4 sm:$0xff]  }
 0x4ca   :  { %11664 = vmatprep.subr.bf16.mxu1 %v14893_v61  ;;  %v14923_v61 = vld [vmem:[#allocation7 + $0x20c] ss:$16 sps:$4 sm:$0xff]   ;;  %v8217_v57 = vmax.f32 %v8201_v44, 0.0 }
 0x4cb   :  { %11417 = vmatpush1.bf16.msra.mxu0 %v14882_v46  ;;  %v14912_v46 = vld [vmem:[#allocation7 + $0x5e0] ss:$16 sps:$4 sm:$0xff]   ;;  %v7719_v41 = vmul.f32 %v16192_v49, %v16192_v49 }
 0x4cc   :  { %11418 = vmatprep.subr.bf16.mxu0 %v14890_v55  ;;  %v8214_v55 = vmax.f32 %v8198_v40, 0.0  ;;  %v14957_v40 = vld [vmem:[#allocation7 + $0x2c8] ss:$16 sps:$4 sm:$0xff]  }
 0x4cd   :  { %11665 = vmatpush1.bf16.msra.mxu1 %v14891_v56  ;;  %v14920_v56 = vld [vmem:[#allocation7 + $0x604] ss:$16 sps:$4 sm:$0xff]  }
 0x4ce   :  { %11666 = vmatprep.subr.bf16.mxu1 %v14899_v52  ;;  %v7716_v52 = vmul.f32 %v16189_v47, %v16189_v47  ;;  %v16198_v62 = vpack.c.bf16 %v8214_v55, %v8214_v55 }
 0x4cf   :  { %11419 = vmatpush1.bf16.msra.mxu0 %v14888_v25  ;;  %v14921_v25 = vld [vmem:[#allocation7 + $0x208] ss:$16 sps:$4 sm:$0xff]  }
 0x4d0   :  { %11420 = vmatprep.subr.bf16.mxu0 %v14896_v0  ;;  %v16201_v0 = vpack.c.bf16 %v8217_v57, %v8217_v57  ;;  %v7762_v37 = vrot.slane %v7716_v52, 4  ;;  %v14962_v57 = vld [vmem:[#allocation7 + $0x6e4] ss:$16 sps:$4 sm:$0xff]  }
 0x4d1   :  { %11667 = vmatpush1.bf16.msra.mxu1 %v14897_v32  ;;  %v14924_v32 = vld [vmem:[#allocation7 + $0x620] ss:$16 sps:$4 sm:$0xff]  }
 0x4d2   :  { %11668 = vmatprep.subr.bf16.mxu1 %v14905_v9  ;;  %v14932_v9 = vld [vmem:[#allocation7 + $0x644] ss:$16 sps:$4 sm:$0xff]   ;;  %v7763_v11 = vadd.f32 %v7762_v37, %v7716_v52  ;;  %v14969_v37 = vld [vmem:[#allocation7 + $0x308] ss:$16 sps:$4 sm:$0xff]  }
 0x4d3   :  { %11421 = vmatpush1.bf16.msra.mxu0 %v14894_v8  ;;  %v7780_v8 = vrot.slane %v7719_v41, 4 }
 0x4d4   :  { %11422 = vmatprep.subr.bf16.mxu0 %v14902_v54  ;;  %v7764_v20 = vrot.slane %v7763_v11, 2 }
 0x4d5   :  { %11669 = vmatpush1.bf16.msra.mxu1 %v14903_v31  ;;  %v7781_v54 = vadd.f32 %v7780_v8, %v7719_v41  ;;  %v14971_v41 = vld [vmem:[#allocation7 + $0x30c] ss:$16 sps:$4 sm:$0xff]  }
 0x4d6   :  { %11670 = vmatprep.subr.bf16.mxu1 %v14911_v45  ;;  %v7765_v45 = vadd.f32 %v7764_v20, %v7763_v11  ;;  %v14977_v8 = vld [vmem:[#allocation7 + $0x32c] ss:$16 sps:$4 sm:$0xff]   ;;  %v14974_v11 = vld [vmem:[#allocation7 + $0x724] ss:$16 sps:$4 sm:$0xff]  }
 0x4d7   :  { %11423 = vmatpush1.bf16.msra.mxu0 %v14900_v10  ;;  %v7782_v31 = vrot.slane %v7781_v54, 2  ;;  %v14945_v10 = vld [vmem:[#allocation7 + $0x288] ss:$16 sps:$4 sm:$0xff]   ;;  %v14980_v20 = vld [vmem:[#allocation7 + $0x744] ss:$16 sps:$4 sm:$0xff]  }
 0x4d8   :  { %11424 = vmatprep.subr.bf16.mxu0 %v14908_v27  ;;  %v7766_v13 = vrot.slane %v7765_v45, 1 }
 0x4d9   :  { %11671 = vmatpush1.bf16.msra.mxu1 %v14909_v42  ;;  %v7783_v27 = vadd.f32 %v7782_v31, %v7781_v54  ;;  %v14948_v42 = vld [vmem:[#allocation7 + $0x6a0] ss:$16 sps:$4 sm:$0xff]  }
 0x4da   :  { %11672 = vmatprep.subr.bf16.mxu1 %v14917_v16  ;;  %v14956_v16 = vld [vmem:[#allocation7 + $0x6c4] ss:$16 sps:$4 sm:$0xff]   ;;  %v7767_v44 = vadd.f32 %v7766_v13, %v7765_v45  ;;  %v14972_v54 = vld [vmem:[#allocation7 + $0x720] ss:$16 sps:$4 sm:$0xff]   ;;  %v7917_v13 = vrot.slane %v16133_v7, %v16131_v21 }
 0x4db   :  { %11425 = vmatpush1.bf16.msra.mxu0 %v14906_v50  ;;  %v7784_v50 = vrot.slane %v7783_v27, 1  ;;  %v14978_v31 = vld [vmem:[#allocation7 + $0x740] ss:$16 sps:$4 sm:$0xff]   ;;  %v14986_v45 = vld [vmem:[#allocation7 + $0x764] ss:$16 sps:$4 sm:$0xff]  }
 0x4dc   :  { %11426 = vmatprep.subr.bf16.mxu0 %v14914_v39  ;;  %v7828_v52 = vmul.f32 0.125, %v7767_v44 }
 0x4dd   :  { %11673 = vmatpush1.bf16.msra.mxu1 %v14915_v35  ;;  %v7785_v55 = vadd.f32 %v7784_v50, %v7783_v27  ;;  %v14987_v27 = vld [vmem:[#allocation7 + $0x368] ss:$16 sps:$4 sm:$0xff]  }
 0x4de   :  { %11683 = vmatprep.subr.bf16.mxu1 %v14923_v61  ;;  %v14965_v61 = vld [vmem:[#allocation7 + $0x2ec] ss:$16 sps:$4 sm:$0xff]  }
 0x4df   :  { %11427 = vmatpush1.bf16.msra.mxu0 %v14912_v46  ;;  %v14954_v46 = vld [vmem:[#allocation7 + $0x6c0] ss:$16 sps:$4 sm:$0xff]  }
 0x4e0   :  { %11437 = vmatprep.subr.bf16.mxu0 %v14920_v56  ;;  %11675 = vmatmul.mubr.bf16.vlgmr.msra.gmra.mrb[20].mxu1 %v16114_v2  ;;  %v14933_v2 = vld [vmem:[#allocation7 + $0x248] ss:$16 sps:$4 sm:$0xff]  }
 0x4e1   :  { %11684 = vmatpush1.bf16.msra.mxu1 %v14921_v25  ;;  %11715 = vmatprep.mubr.bf16.mxu1 %v16117_v5  ;;  %v14947_v5 = vld [vmem:[#allocation7 + $0x28c] ss:$16 sps:$4 sm:$0xff]   ;;  %v14963_v25 = vld [vmem:[#allocation7 + $0x2e8] ss:$16 sps:$4 sm:$0xff]  }
 0x4e2   :  { %11429 = vmatmul.mubr.bf16.vlgmr.msra.gmra.mrb[16].mxu0 %v16198_v62  ;;  %11685 = vmatprep.subr.bf16.mxu1 %v14929_v1  ;;  %v14968_v1 = vld [vmem:[#allocation7 + $0x704] ss:$16 sps:$4 sm:$0xff]  }
 0x4e3   :  { %11438 = vmatpush1.bf16.msra.mxu0 %v14918_v59  ;;  %11469 = vmatprep.mubr.bf16.mxu0 %v16201_v0  ;;  %v14960_v59 = vld [vmem:[#allocation7 + $0x6e0] ss:$16 sps:$4 sm:$0xff]  }
 0x4e4   :  { %11439 = vmatprep.subr.bf16.mxu0 %v14926_v18  ;;  %v7831_v18 = vmul.f32 0.125, %v7785_v55 }
 0x4e5   :  { %11686 = vmatpush1.bf16.msra.mxu1 %v14927_v29  ;;  %v7629_v29 = vrot.slane %v16033_v14, 4 }
 0x4e6   :  { %11687 = vmatprep.subr.bf16.mxu1 %v14935_v4  ;;  %v14966_v4 = vld [vmem:[#allocation7 + $0x700] ss:$16 sps:$4 sm:$0xff]  }
 0x4e7   :  { %11440 = vmatpush1.bf16.msra.mxu0 %v14924_v32  ;;  %v7844_v32 = vadd.f32 1e-05, %v7828_v52  ;;  %v8077_v52 = vrot.slane %v16133_v7, %v16138_v15 }
 0x4e8   :  { %11441 = vmatprep.subr.bf16.mxu0 %v14932_v9  ;;  %v7847_v9 = vadd.f32 1e-05, %v7831_v18 }
 0x4e9   :  { %11688 = vmatpush1.bf16.msra.mxu1 %v14933_v2  ;;  %v7647_v2 = vrot.slane %v16124_v58, 4  ;;  %15620 = vrsqrt.f32 %v7844_v32  ;;  %v8157_v7 = vrot.slane %v8077_v52, %v16061_v3  ;;  %v15034_v52 = vld [vmem:[#allocation7 + $0x864] ss:$16 sps:$4 sm:$0xff]  }
 0x4ea   :  { %11689 = vmatprep.subr.bf16.mxu1 %v14941_v28  ;;  %v14975_v28 = vld [vmem:[#allocation7 + $0x328] ss:$16 sps:$4 sm:$0xff]   ;;  %15622 = vrsqrt.f32 %v7847_v9 }
 0x4eb   :  { %11442 = vmatpush1.bf16.msra.mxu0 %v14930_v12  ;;  %v7630_v12 = vadd.f32 %v7629_v29, %v16033_v14  ;;  %v14999_v29 = vld [vmem:[#allocation7 + $0x3a8] ss:$16 sps:$4 sm:$0xff]  }
 0x4ec   :  { %11443 = vmatprep.subr.bf16.mxu0 %v14938_v34  ;;  %v14983_v34 = vld [vmem:[#allocation7 + $0x34c] ss:$16 sps:$4 sm:$0xff]  }
 0x4ed   :  { %11690 = vmatpush1.bf16.msra.mxu1 %v14939_v17  ;;  %v7648_v17 = vadd.f32 %v7647_v2, %v16124_v58 }
 0x4ee   :  { %11691 = vmatprep.subr.bf16.mxu1 %v14947_v5  ;;  %v14981_v5 = vld [vmem:[#allocation7 + $0x348] ss:$16 sps:$4 sm:$0xff]  }
 0x4ef   :  { %11444 = vmatpush1.bf16.msra.mxu0 %v14936_v51  ;;  %v7631_v51 = vrot.slane %v7630_v12, 2 }
 0x4f0   :  { %11445 = vmatprep.subr.bf16.mxu0 %v14944_v22  ;;  %v14989_v22 = vld [vmem:[#allocation7 + $0x36c] ss:$16 sps:$4 sm:$0xff]  }
 0x4f1   :  { %11692 = vmatpush1.bf16.msra.mxu1 %v14945_v10  ;;  %v7649_v10 = vrot.slane %v7648_v17, 2 }
 0x4f2   :  { %11693 = vmatprep.subr.bf16.mxu1 %v14953_v53  ;;  %v7632_v53 = vadd.f32 %v7631_v51, %v7630_v12  ;;  %v15002_v12 = vld [vmem:[#allocation7 + $0x7c0] ss:$16 sps:$4 sm:$0xff]  }
 0x4f3   :  { %11446 = vmatpush1.bf16.msra.mxu0 %v14942_v26  ;;  %v16214_v26 = vld [vmem:[#allocation10 + $0x10] sm:$0xff]  ;;  %v15621_v50 = vpop.eup %15620 }
 0x4f4   :  { %11447 = vmatprep.subr.bf16.mxu0 %v14950_v30  ;;  %v14984_v30 = vld [vmem:[#allocation7 + $0x760] ss:$16 sps:$4 sm:$0xff]   ;;  %v7633_v44 = vrot.slane %v7632_v53, 1  ;;  %v7876_v55 = vmul.f32 %v15621_v50, %v16189_v47  ;;  %v8089_v18 = vrot.slane %v16214_v26, %v16051_v19  ;;  %v15025_v50 = vld [vmem:[#allocation7 + $0x42c] ss:$16 sps:$4 sm:$0xff]  }
 0x4f5   :  { %v16206_v38 = vpop.f32.mrb[12].mxu0  ;;  %11694 = vmatpush1.bf16.msra.mxu1 %v14951_v6  ;;  %v14995_v6 = vld [vmem:[#allocation7 + $0x38c] ss:$16 sps:$4 sm:$0xff]   ;;  %v14996_v47 = vld [vmem:[#allocation7 + $0x7a0] ss:$16 sps:$4 sm:$0xff]  }
 0x4f6   :  { %v16208_v39 = vpop.f32.mrb[13].mxu0  ;;  %11695 = vmatprep.subr.bf16.mxu1 %v14959_v33  ;;  %v14992_v33 = vld [vmem:[#allocation7 + $0x784] ss:$16 sps:$4 sm:$0xff]  }
 0x4f7   :  { %v7410_v35 = vpop.f32.mrb[14].mxu0  ;;  %11448 = vmatpush1.bf16.msra.mxu0 %v14948_v42  ;;  %v7650_v42 = vadd.f32 %v7649_v10, %v7648_v17 }
 0x4f8   :  { %v7411_v56 = vpop.f32.mrb[15].mxu0  ;;  %11449 = vmatprep.subr.bf16.mxu0 %v14956_v16  ;;  %v7929_v16 = vrot.slane %v16214_v26, %v16044_v24  ;;  %v14993_v35 = vld [vmem:[#allocation7 + $0x388] ss:$16 sps:$4 sm:$0xff]  }
 0x4f9   :  { %11696 = vmatpush1.bf16.msra.mxu1 %v14957_v40  ;;  %v15623_v40 = vpop.eup %15622  ;;  %v7997_v56 = vrot.slane %v7917_v13, %v16054_v48 }
 0x4fa   :  { %11697 = vmatprep.subr.bf16.mxu1 %v14965_v61  ;;  %v15001_v61 = vld [vmem:[#allocation7 + $0x3ac] ss:$16 sps:$4 sm:$0xff]  }
 0x4fb   :  { %11450 = vmatpush1.bf16.msra.mxu0 %v14954_v46  ;;  %v14990_v46 = vld [vmem:[#allocation7 + $0x780] ss:$16 sps:$4 sm:$0xff]   ;;  %v8040_v32 = vmul.f32 %v7997_v56, %v7876_v55  ;;  %v15029_v55 = vld [vmem:[#allocation7 + $0x448] ss:$16 sps:$4 sm:$0xff]  }
 0x4fc   :  { %11451 = vmatprep.subr.bf16.mxu0 %v14962_v57  ;;  %v7651_v57 = vrot.slane %v7650_v42, 1  ;;  %v15026_v56 = vld [vmem:[#allocation7 + $0x840] ss:$16 sps:$4 sm:$0xff]  }
 0x4fd   :  { %11698 = vmatpush1.bf16.msra.mxu1 %v14963_v25  ;;  %v14998_v25 = vld [vmem:[#allocation7 + $0x7a4] ss:$16 sps:$4 sm:$0xff]   ;;  %v8200_v17 = vadd.f32 %v8157_v7, %v8040_v32  ;;  %v15038_v32 = vld [vmem:[#allocation7 + $0x880] ss:$16 sps:$4 sm:$0xff]  }
 0x4fe   :  { %11699 = vmatprep.subr.bf16.mxu1 %v14971_v41  ;;  %v8009_v41 = vrot.slane %v7929_v16, %v16054_v48  ;;  %v15046_v7 = vld [vmem:[#allocation7 + $0x8a4] ss:$16 sps:$4 sm:$0xff]  }
 0x4ff   :  { %11452 = vmatpush1.bf16.msra.mxu0 %v14960_v59  ;;  %v7879_v59 = vmul.f32 %v15623_v40, %v16192_v49  ;;  %v8169_v49 = vrot.slane %v8089_v18, %v16061_v3  ;;  %v15023_v40 = vld [vmem:[#allocation7 + $0x428] ss:$16 sps:$4 sm:$0xff]   ;;  %v15032_v18 = vld [vmem:[#allocation7 + $0x860] ss:$16 sps:$4 sm:$0xff]  }
 0x500   :  { %11453 = vmatprep.subr.bf16.mxu0 %v14968_v1  ;;  %v7634_v1 = vadd.f32 %v7633_v44, %v7632_v53  ;;  %v15016_v53 = vld [vmem:[#allocation7 + $0x804] ss:$16 sps:$4 sm:$0xff]   ;;  %v15020_v44 = vld [vmem:[#allocation7 + $0x820] ss:$16 sps:$4 sm:$0xff]  }
 0x501   :  { %11700 = vmatpush1.bf16.msra.mxu1 %v14969_v37  ;;  %v15007_v37 = vld [vmem:[#allocation7 + $0x3cc] ss:$16 sps:$4 sm:$0xff]   ;;  %v8043_v9 = vmul.f32 %v8009_v41, %v7879_v59  ;;  %v15035_v41 = vld [vmem:[#allocation7 + $0x468] ss:$16 sps:$4 sm:$0xff]  }
 0x502   :  { %11701 = vmatprep.subr.bf16.mxu1 %v14977_v8  ;;  %v15004_v8 = vld [vmem:[#allocation7 + $0x7c4] ss:$16 sps:$4 sm:$0xff]   ;;  %v7686_v2 = vmul.f32 0.125, %v7634_v1 }
 0x503   :  { %11454 = vmatpush1.bf16.msra.mxu0 %v14966_v4  ;;  %v7652_v4 = vadd.f32 %v7651_v57, %v7650_v42  ;;  %v15037_v57 = vld [vmem:[#allocation7 + $0x46c] ss:$16 sps:$4 sm:$0xff]  }
 0x504   :  { %11455 = vmatprep.subr.bf16.mxu0 %v14974_v11  ;;  %v15005_v11 = vld [vmem:[#allocation7 + $0x3c8] ss:$16 sps:$4 sm:$0xff]   ;;  %v16231_v51 = vsub.f32 %v16033_v14, %v7686_v2  ;;  %v15014_v14 = vld [vmem:[#allocation7 + $0x800] ss:$16 sps:$4 sm:$0xff]  }
 0x505   :  { %11702 = vmatpush1.bf16.msra.mxu1 %v14975_v28  ;;  %v15013_v28 = vld [vmem:[#allocation7 + $0x3ec] ss:$16 sps:$4 sm:$0xff]   ;;  %v15044_v2 = vld [vmem:[#allocation7 + $0x8a0] ss:$16 sps:$4 sm:$0xff]  }
 0x506   :  { %11703 = vmatprep.subr.bf16.mxu1 %v14983_v34  ;;  %v15010_v34 = vld [vmem:[#allocation7 + $0x7e4] ss:$16 sps:$4 sm:$0xff]  }
 0x507   :  { %11456 = vmatpush1.bf16.msra.mxu0 %v14972_v54  ;;  %v7689_v54 = vmul.f32 0.125, %v7652_v4  ;;  %v15049_v4 = vld [vmem:[#allocation7 + $0x4ac] ss:$16 sps:$4 sm:$0xff]  }
 0x508   :  { %11457 = vmatprep.subr.bf16.mxu0 %v14980_v20  ;;  %v8203_v20 = vadd.f32 %v8169_v49, %v8043_v9  ;;  %v15047_v49 = vld [vmem:[#allocation7 + $0x4a8] ss:$16 sps:$4 sm:$0xff]  }
 0x509   :  { %11704 = vmatpush1.bf16.msra.mxu1 %v14981_v5  ;;  %v15011_v5 = vld [vmem:[#allocation7 + $0x3e8] ss:$16 sps:$4 sm:$0xff]   ;;  %v16234_v10 = vsub.f32 %v16124_v58, %v7689_v54  ;;  %v15022_v58 = vld [vmem:[#allocation7 + $0x824] ss:$16 sps:$4 sm:$0xff]  }
 0x50a   :  { %11705 = vmatprep.subr.bf16.mxu1 %v14989_v22  ;;  %v15019_v22 = vld [vmem:[#allocation7 + $0x40c] ss:$16 sps:$4 sm:$0xff]  }
 0x50b   :  { %11458 = vmatpush1.bf16.msra.mxu0 %v14978_v31  ;;  %v15008_v31 = vld [vmem:[#allocation7 + $0x7e0] ss:$16 sps:$4 sm:$0xff]   ;;  %v7721_v13 = vmul.f32 %v16234_v10, %v16234_v10 }
 0x50c   :  { %11459 = vmatprep.subr.bf16.mxu0 %v14986_v45  ;;  %v8216_v45 = vmax.f32 %v8200_v17, 0.0  ;;  %v15050_v17 = vld [vmem:[#allocation7 + $0x8c0] ss:$16 sps:$4 sm:$0xff]  }
 0x50d   :  { %11706 = vmatpush1.bf16.msra.mxu1 %v14987_v27  ;;  %v8219_v27 = vmax.f32 %v8203_v20, 0.0  ;;  %v15061_v20 = vld [vmem:[#allocation7 + $0x4ec] ss:$16 sps:$4 sm:$0xff]  }
 0x50e   :  { %11707 = vmatprep.subr.bf16.mxu1 %v14995_v6  ;;  %v15017_v6 = vld [vmem:[#allocation7 + $0x408] ss:$16 sps:$4 sm:$0xff]   ;;  %v16240_v42 = vpack.c.bf16 %v8216_v45, %v8216_v45 }
 0x50f   :  { %11460 = vmatpush1.bf16.msra.mxu0 %v14984_v30  ;;  %v7718_v30 = vmul.f32 %v16231_v51, %v16231_v51  ;;  %v15059_v45 = vld [vmem:[#allocation7 + $0x4e8] ss:$16 sps:$4 sm:$0xff]  }
 0x510   :  { %11461 = vmatprep.subr.bf16.mxu0 %v14992_v33  ;;  %v16243_v33 = vpack.c.bf16 %v8219_v27, %v8219_v27  ;;  %v15067_v27 = vld [vmem:[#allocation7 + $0x50c] ss:$16 sps:$4 sm:$0xff]  }
 0x511   :  { %11708 = vmatpush1.bf16.msra.mxu1 %v14993_v35  ;;  %v7774_v16 = vrot.slane %v7718_v30, 4  ;;  %v15031_v35 = vld [vmem:[#allocation7 + $0x44c] ss:$16 sps:$4 sm:$0xff]  }
 0x512   :  { %11709 = vmatprep.subr.bf16.mxu1 %v15001_v61  ;;  %v15028_v61 = vld [vmem:[#allocation7 + $0x844] ss:$16 sps:$4 sm:$0xff]  }
 0x513   :  { %11462 = vmatpush1.bf16.msra.mxu0 %v14990_v46  ;;  %v7792_v46 = vrot.slane %v7721_v13, 4 }
 0x514   :  { %11463 = vmatprep.subr.bf16.mxu0 %v14998_v25 }
 0x515   :  { %11710 = vmatpush1.bf16.msra.mxu1 %v14999_v29  ;;  %v7793_v25 = vadd.f32 %v7792_v46, %v7721_v13  ;;  %v15040_v29 = vld [vmem:[#allocation7 + $0x884] ss:$16 sps:$4 sm:$0xff]   ;;  %v15065_v13 = vld [vmem:[#allocation7 + $0x508] ss:$16 sps:$4 sm:$0xff]  }
 0x516   :  { %11711 = vmatprep.subr.bf16.mxu1 %v15007_v37  ;;  %v15041_v37 = vld [vmem:[#allocation7 + $0x488] ss:$16 sps:$4 sm:$0xff]  }
 0x517   :  { %11464 = vmatpush1.bf16.msra.mxu0 %v14996_v47  ;;  %v7794_v1 = vrot.slane %v7793_v25, 2  ;;  %v15071_v46 = vld [vmem:[#allocation7 + $0x528] ss:$16 sps:$4 sm:$0xff]  }
 0x518   :  { %11465 = vmatprep.subr.bf16.mxu0 %v15004_v8 }
 0x519   :  { %11712 = vmatpush1.bf16.msra.mxu1 %v15005_v11  ;;  %v7795_v8 = vadd.f32 %v7794_v1, %v7793_v25  ;;  %v15055_v11 = vld [vmem:[#allocation7 + $0x4cc] ss:$16 sps:$4 sm:$0xff]   ;;  %v15077_v25 = vld [vmem:[#allocation7 + $0x548] ss:$16 sps:$4 sm:$0xff]  }
 0x51a   :  { %11713 = vmatprep.subr.bf16.mxu1 %v15013_v28  ;;  %v15052_v28 = vld [vmem:[#allocation7 + $0x8c4] ss:$16 sps:$4 sm:$0xff]   ;;  %v15083_v1 = vld [vmem:[#allocation7 + $0x568] ss:$16 sps:$4 sm:$0xff]  }
 0x51b   :  { %11466 = vmatpush1.bf16.msra.mxu0 %v15002_v12  ;;  %v7796_v12 = vrot.slane %v7795_v8, 1 }
 0x51c   :  { %11467 = vmatprep.subr.bf16.mxu0 %v15010_v34  ;;  %v15053_v34 = vld [vmem:[#allocation7 + $0x4c8] ss:$16 sps:$4 sm:$0xff]  }
 0x51d   :  { %11714 = vmatpush1.bf16.msra.mxu1 %v15011_v5  ;;  %v7797_v5 = vadd.f32 %v7796_v12, %v7795_v8  ;;  %v15088_v8 = vld [vmem:[#allocation7 + $0x984] ss:$16 sps:$4 sm:$0xff]   ;;  %v15086_v12 = vld [vmem:[#allocation7 + $0x980] ss:$16 sps:$4 sm:$0xff]  }
 0x51e   :  { %11724 = vmatprep.subr.bf16.mxu1 %v15019_v22 }
 0x51f   :  { %11468 = vmatpush1.bf16.msra.mxu0 %v15008_v31  ;;  %v15058_v31 = vld [vmem:[#allocation7 + $0x8e4] ss:$16 sps:$4 sm:$0xff]  }
 0x520   :  { %11478 = vmatprep.subr.bf16.mxu0 %v15016_v53  ;;  %11716 = vmatmul.mubr.bf16.vlgmr.msra.gmra.mrb[20].mxu1 %v16162_v23  ;;  %v7775_v23 = vadd.f32 %v7774_v16, %v7718_v30  ;;  %v15056_v53 = vld [vmem:[#allocation7 + $0x8e0] ss:$16 sps:$4 sm:$0xff]   ;;  %v7833_v30 = vmul.f32 0.125, %v7797_v5  ;;  %v15073_v16 = vld [vmem:[#allocation7 + $0x52c] ss:$16 sps:$4 sm:$0xff]   ;;  %v8085_v5 = vrot.slane %v16214_v26, %v16061_v3 }
 0x521   :  { %11725 = vmatpush1.bf16.msra.mxu1 %v15017_v6  ;;  %11756 = vmatprep.mubr.bf16.mxu1 %v16165_v36  ;;  %v15043_v36 = vld [vmem:[#allocation7 + $0x48c] ss:$16 sps:$4 sm:$0xff]   ;;  %v15064_v6 = vld [vmem:[#allocation7 + $0x904] ss:$16 sps:$4 sm:$0xff]  }
 0x522   :  { %11470 = vmatmul.mubr.bf16.vlgmr.msra.gmra.mrb[16].mxu0 %v16240_v42  ;;  %11726 = vmatprep.subr.bf16.mxu1 %v15025_v50  ;;  %v7776_v59 = vrot.slane %v7775_v23, 2  ;;  %v15062_v50 = vld [vmem:[#allocation7 + $0x900] ss:$16 sps:$4 sm:$0xff]  }
 0x523   :  { %11479 = vmatpush1.bf16.msra.mxu0 %v15014_v14  ;;  %11510 = vmatprep.mubr.bf16.mxu0 %v16243_v33 }
 0x524   :  { %11480 = vmatprep.subr.bf16.mxu0 %v15022_v58  ;;  %v7777_v47 = vadd.f32 %v7776_v59, %v7775_v23  ;;  %v7641_v58 = vrot.slane %v16122_v60, 4  ;;  %v15068_v23 = vld [vmem:[#allocation7 + $0x920] ss:$16 sps:$4 sm:$0xff]  }
 0x525   :  { %11727 = vmatpush1.bf16.msra.mxu1 %v15023_v40  ;;  %v7849_v40 = vadd.f32 1e-05, %v7833_v30  ;;  %v15074_v59 = vld [vmem:[#allocation7 + $0x940] ss:$16 sps:$4 sm:$0xff]   ;;  %v15103_v30 = vld [vmem:[#allocation7 + $0x5cc] ss:$16 sps:$4 sm:$0xff]  }
 0x526   :  { %11728 = vmatprep.subr.bf16.mxu1 %v15031_v35  ;;  %v7778_v9 = vrot.slane %v7777_v47, 1  ;;  %v15070_v35 = vld [vmem:[#allocation7 + $0x924] ss:$16 sps:$4 sm:$0xff]  }
 0x527   :  { %11481 = vmatpush1.bf16.msra.mxu0 %v15020_v44  ;;  %v7659_v44 = vrot.slane %v16208_v39, 4 }
 0x528   :  { %11482 = vmatprep.subr.bf16.mxu0 %v15028_v61  ;;  %v7779_v54 = vadd.f32 %v7778_v9, %v7777_v47  ;;  %v7642_v61 = vadd.f32 %v7641_v58, %v16122_v60  ;;  %v15080_v47 = vld [vmem:[#allocation7 + $0x960] ss:$16 sps:$4 sm:$0xff]   ;;  %v7937_v9 = vrot.slane %v16214_v26, %v16085_v43  ;;  %v8165_v58 = vrot.slane %v8085_v5, %v16061_v3 }
 0x529   :  { %11729 = vmatpush1.bf16.msra.mxu1 %v15029_v55  ;;  %v15079_v55 = vld [vmem:[#allocation7 + $0x54c] ss:$16 sps:$4 sm:$0xff]  }
 0x52a   :  { %11730 = vmatprep.subr.bf16.mxu1 %v15037_v57  ;;  %v7830_v22 = vmul.f32 0.125, %v7779_v54  ;;  %v15076_v57 = vld [vmem:[#allocation7 + $0x944] ss:$16 sps:$4 sm:$0xff]  }
 0x52b   :  { %11483 = vmatpush1.bf16.msra.mxu0 %v15026_v56  ;;  %v7660_v56 = vadd.f32 %v7659_v44, %v16208_v39  ;;  %v15098_v44 = vld [vmem:[#allocation7 + $0x9c0] ss:$16 sps:$4 sm:$0xff]  }
 0x52c   :  { %11484 = vmatprep.subr.bf16.mxu0 %v15034_v52  ;;  %v7846_v14 = vadd.f32 1e-05, %v7830_v22  ;;  %v7643_v52 = vrot.slane %v7642_v61, 2  ;;  %v8017_v22 = vrot.slane %v7937_v9, %v16054_v48  ;;  %v15116_v9 = vld [vmem:[#allocation7 + $0xa20] ss:$16 sps:$4 sm:$0xff]  }
 0x52d   :  { %11731 = vmatpush1.bf16.msra.mxu1 %v15035_v41  ;;  %v15085_v41 = vld [vmem:[#allocation7 + $0x56c] ss:$16 sps:$4 sm:$0xff]  }
 0x52e   :  { %11732 = vmatprep.subr.bf16.mxu1 %v15043_v36  ;;  %15624 = vrsqrt.f32 %v7846_v14  ;;  %v15082_v36 = vld [vmem:[#allocation7 + $0x964] ss:$16 sps:$4 sm:$0xff]  }
 0x52f   :  { %11485 = vmatpush1.bf16.msra.mxu0 %v15032_v18  ;;  %15626 = vrsqrt.f32 %v7849_v40  ;;  %v7661_v18 = vrot.slane %v7660_v56, 2 }
 0x530   :  { %11486 = vmatprep.subr.bf16.mxu0 %v15040_v29  ;;  %v7644_v29 = vadd.f32 %v7643_v52, %v7642_v61  ;;  %v15106_v61 = vld [vmem:[#allocation7 + $0x9e4] ss:$16 sps:$4 sm:$0xff]   ;;  %v15115_v52 = vld [vmem:[#allocation7 + $0x60c] ss:$16 sps:$4 sm:$0xff]  }
 0x531   :  { %11733 = vmatpush1.bf16.msra.mxu1 %v15041_v37  ;;  %v15091_v37 = vld [vmem:[#allocation7 + $0x58c] ss:$16 sps:$4 sm:$0xff]  }
 0x532   :  { %11734 = vmatprep.subr.bf16.mxu1 %v15049_v4  ;;  %v7662_v4 = vadd.f32 %v7661_v18, %v7660_v56  ;;  %v15107_v56 = vld [vmem:[#allocation7 + $0x5e8] ss:$16 sps:$4 sm:$0xff]   ;;  %v15112_v18 = vld [vmem:[#allocation7 + $0xa04] ss:$16 sps:$4 sm:$0xff]  }
 0x533   :  { %11487 = vmatpush1.bf16.msra.mxu0 %v15038_v32  ;;  %v7925_v32 = vrot.slane %v16214_v26, %v16054_v48 }
 0x534   :  { %11488 = vmatprep.subr.bf16.mxu0 %v15046_v7 }
 0x535   :  { %11735 = vmatpush1.bf16.msra.mxu1 %v15047_v49 }
 0x536   :  { %11736 = vmatprep.subr.bf16.mxu1 %v15055_v11  ;;  %v7645_v11 = vrot.slane %v7644_v29, 1 }
 0x537   :  { %11489 = vmatpush1.bf16.msra.mxu0 %v15044_v2  ;;  %v15089_v2 = vld [vmem:[#allocation7 + $0x588] ss:$16 sps:$4 sm:$0xff]  }
 0x538   :  { %11490 = vmatprep.subr.bf16.mxu0 %v15052_v28  ;;  %v15625_v7 = vpop.eup %15624  ;;  %v15097_v28 = vld [vmem:[#allocation7 + $0x5ac] ss:$16 sps:$4 sm:$0xff]  }
 0x539   :  { %11737 = vmatpush1.bf16.msra.mxu1 %v15053_v34  ;;  %v15627_v49 = vpop.eup %15626  ;;  %v7878_v54 = vmul.f32 %v15625_v7, %v16231_v51  ;;  %v8005_v34 = vrot.slane %v7925_v32, %v16054_v48  ;;  %v15092_v51 = vld [vmem:[#allocation7 + $0x9a0] ss:$16 sps:$4 sm:$0xff]  }
 0x53a   :  { %11738 = vmatprep.subr.bf16.mxu1 %v15061_v20  ;;  %v15094_v20 = vld [vmem:[#allocation7 + $0x9a4] ss:$16 sps:$4 sm:$0xff]  }
 0x53b   :  { %11491 = vmatpush1.bf16.msra.mxu0 %v15050_v17  ;;  %v7663_v17 = vrot.slane %v7662_v4, 1 }
 0x53c   :  { %11492 = vmatprep.subr.bf16.mxu0 %v15058_v31  ;;  %v7881_v31 = vmul.f32 %v15627_v49, %v16234_v10  ;;  %v15127_v49 = vld [vmem:[#allocation7 + $0x64c] ss:$16 sps:$4 sm:$0xff]  }
 0x53d   :  { %11739 = vmatpush1.bf16.msra.mxu1 %v15059_v45  ;;  %v8097_v45 = vrot.slane %v16214_v26, %v16092_v63  ;;  %v7664_v14 = vadd.f32 %v7663_v17, %v7662_v4  ;;  %v15121_v4 = vld [vmem:[#allocation7 + $0x62c] ss:$16 sps:$4 sm:$0xff]   ;;  %v15130_v17 = vld [vmem:[#allocation7 + $0xa64] ss:$16 sps:$4 sm:$0xff]  }
 0x53e   :  { %11740 = vmatprep.subr.bf16.mxu1 %v15067_v27  ;;  %v7646_v27 = vadd.f32 %v7645_v11, %v7644_v29  ;;  %v15124_v11 = vld [vmem:[#allocation7 + $0xa44] ss:$16 sps:$4 sm:$0xff]  }
 0x53f   :  { %11493 = vmatpush1.bf16.msra.mxu0 %v15056_v53  ;;  %v15095_v53 = vld [vmem:[#allocation7 + $0x5a8] ss:$16 sps:$4 sm:$0xff]   ;;  %v8177_v10 = vrot.slane %v8097_v45, %v16061_v3  ;;  %v15136_v45 = vld [vmem:[#allocation7 + $0xa84] ss:$16 sps:$4 sm:$0xff]  }
 0x540   :  { %11494 = vmatprep.subr.bf16.mxu0 %v15064_v6  ;;  %v8042_v6 = vmul.f32 %v8005_v34, %v7878_v54  ;;  %v7688_v40 = vmul.f32 0.125, %v7646_v27  ;;  %v15133_v54 = vld [vmem:[#allocation7 + $0x66c] ss:$16 sps:$4 sm:$0xff]  }
 0x541   :  { %11741 = vmatpush1.bf16.msra.mxu1 %v15065_v13  ;;  %v15100_v13 = vld [vmem:[#allocation7 + $0x9c4] ss:$16 sps:$4 sm:$0xff]  }
 0x542   :  { %11742 = vmatprep.subr.bf16.mxu1 %v15073_v16  ;;  %v15101_v16 = vld [vmem:[#allocation7 + $0x5c8] ss:$16 sps:$4 sm:$0xff]  }
 0x543   :  { %11495 = vmatpush1.bf16.msra.mxu0 %v15062_v50  ;;  %v8045_v50 = vmul.f32 %v8017_v22, %v7881_v31  ;;  %v15128_v31 = vld [vmem:[#allocation7 + $0xa60] ss:$16 sps:$4 sm:$0xff]  }
 0x544   :  { %11496 = vmatprep.subr.bf16.mxu0 %v15070_v35  ;;  %v15109_v35 = vld [vmem:[#allocation7 + $0x5ec] ss:$16 sps:$4 sm:$0xff]  }
 0x545   :  { %11743 = vmatpush1.bf16.msra.mxu1 %v15071_v46  ;;  %v7691_v46 = vmul.f32 0.125, %v7664_v14  ;;  %v15142_v14 = vld [vmem:[#allocation7 + $0xaa4] ss:$16 sps:$4 sm:$0xff]  }
 0x546   :  { %11744 = vmatprep.subr.bf16.mxu1 %v15079_v55  ;;  %v8205_v55 = vadd.f32 %v8177_v10, %v8045_v50  ;;  %v15140_v50 = vld [vmem:[#allocation7 + $0xaa0] ss:$16 sps:$4 sm:$0xff]   ;;  %v15151_v10 = vld [vmem:[#allocation7 + $0x6cc] ss:$16 sps:$4 sm:$0xff]  }
 0x547   :  { %11497 = vmatpush1.bf16.msra.mxu0 %v15068_v23  ;;  %v8202_v23 = vadd.f32 %v8165_v58, %v8042_v6 }
 0x548   :  { %11498 = vmatprep.subr.bf16.mxu0 %v15076_v57  ;;  %v16267_v57 = vsub.f32 %v16122_v60, %v7688_v40 }
 0x549   :  { %11745 = vmatpush1.bf16.msra.mxu1 %v15077_v25  ;;  %v15104_v25 = vld [vmem:[#allocation7 + $0x9e0] ss:$16 sps:$4 sm:$0xff]  }
 0x54a   :  { %11746 = vmatprep.subr.bf16.mxu1 %v15085_v41  ;;  %v8218_v41 = vmax.f32 %v8202_v23, 0.0  ;;  %v7720_v29 = vmul.f32 %v16267_v57, %v16267_v57 }
 0x54b   :  { %11499 = vmatpush1.bf16.msra.mxu0 %v15074_v59  ;;  %v16270_v59 = vsub.f32 %v16208_v39, %v7691_v46  ;;  %v15118_v39 = vld [vmem:[#allocation7 + $0xa24] ss:$16 sps:$4 sm:$0xff]  }
 0x54c   :  { %11500 = vmatprep.subr.bf16.mxu0 %v15082_v36  ;;  %v8221_v36 = vmax.f32 %v8205_v55, 0.0  ;;  %v7786_v7 = vrot.slane %v7720_v29, 4 }
 0x54d   :  { %11747 = vmatpush1.bf16.msra.mxu1 %v15083_v1  ;;  %v15113_v1 = vld [vmem:[#allocation7 + $0x608] ss:$16 sps:$4 sm:$0xff]   ;;  %v7723_v60 = vmul.f32 %v16270_v59, %v16270_v59 }
 0x54e   :  { %11748 = vmatprep.subr.bf16.mxu1 %v15091_v37  ;;  %v16276_v37 = vpack.c.bf16 %v8218_v41, %v8218_v41  ;;  %v16279_v32 = vpack.c.bf16 %v8221_v36, %v8221_v36  ;;  %v15154_v41 = vld [vmem:[#allocation7 + $0xae4] ss:$16 sps:$4 sm:$0xff]  }
 0x54f   :  { %11501 = vmatpush1.bf16.msra.mxu0 %v15080_v47  ;;  %v15110_v47 = vld [vmem:[#allocation7 + $0xa00] ss:$16 sps:$4 sm:$0xff]  }
 0x550   :  { %11502 = vmatprep.subr.bf16.mxu0 %v15088_v8  ;;  %v15119_v8 = vld [vmem:[#allocation7 + $0x628] ss:$16 sps:$4 sm:$0xff]  }
 0x551   :  { %11749 = vmatpush1.bf16.msra.mxu1 %v15089_v2  ;;  %v7804_v2 = vrot.slane %v7723_v60, 4 }
 0x552   :  { %11750 = vmatprep.subr.bf16.mxu1 %v15097_v28  ;;  %v15122_v28 = vld [vmem:[#allocation7 + $0xa40] ss:$16 sps:$4 sm:$0xff]  }
 0x553   :  { %11503 = vmatpush1.bf16.msra.mxu0 %v15086_v12  ;;  %v7787_v12 = vadd.f32 %v7786_v7, %v7720_v29  ;;  %v7805_v34 = vadd.f32 %v7804_v2, %v7723_v60  ;;  %v15163_v29 = vld [vmem:[#allocation7 + $0x70c] ss:$16 sps:$4 sm:$0xff]   ;;  %v15160_v60 = vld [vmem:[#allocation7 + $0xb04] ss:$16 sps:$4 sm:$0xff]   ;;  %v15158_v7 = vld [vmem:[#allocation7 + $0xb00] ss:$16 sps:$4 sm:$0xff]  }
 0x554   :  { %11504 = vmatprep.subr.bf16.mxu0 %v15094_v20  ;;  %v15131_v20 = vld [vmem:[#allocation7 + $0x668] ss:$16 sps:$4 sm:$0xff]  }
 0x555   :  { %11751 = vmatpush1.bf16.msra.mxu1 %v15095_v53  ;;  %v7788_v5 = vrot.slane %v7787_v12, 2  ;;  %v7806_v22 = vrot.slane %v7805_v34, 2  ;;  %v15137_v53 = vld [vmem:[#allocation7 + $0x688] ss:$16 sps:$4 sm:$0xff]  }
 0x556   :  { %11752 = vmatprep.subr.bf16.mxu1 %v15103_v30  ;;  %v15145_v30 = vld [vmem:[#allocation7 + $0x6ac] ss:$16 sps:$4 sm:$0xff]  }
 0x557   :  { %11505 = vmatpush1.bf16.msra.mxu0 %v15092_v51  ;;  %v7789_v27 = vadd.f32 %v7788_v5, %v7787_v12  ;;  %v15134_v51 = vld [vmem:[#allocation7 + $0xa80] ss:$16 sps:$4 sm:$0xff]   ;;  %v7807_v6 = vadd.f32 %v7806_v22, %v7805_v34  ;;  %v15167_v12 = vld [vmem:[#allocation7 + $0x728] ss:$16 sps:$4 sm:$0xff]  }
 0x558   :  { %11506 = vmatprep.subr.bf16.mxu0 %v15100_v13  ;;  %v15143_v13 = vld [vmem:[#allocation7 + $0x6a8] ss:$16 sps:$4 sm:$0xff]  }
 0x559   :  { %11753 = vmatpush1.bf16.msra.mxu1 %v15101_v16  ;;  %v7790_v58 = vrot.slane %v7789_v27, 1  ;;  %v7808_v16 = vrot.slane %v7807_v6, 1  ;;  %v15173_v5 = vld [vmem:[#allocation7 + $0x748] ss:$16 sps:$4 sm:$0xff]  }
 0x55a   :  { %11754 = vmatprep.subr.bf16.mxu1 %v15109_v35 }
 0x55b   :  { %11507 = vmatpush1.bf16.msra.mxu0 %v15098_v44  ;;  %v15148_v44 = vld [vmem:[#allocation7 + $0xac4] ss:$16 sps:$4 sm:$0xff]   ;;  %v7791_v23 = vadd.f32 %v7790_v58, %v7789_v27 }
 0x55c   :  { %11508 = vmatprep.subr.bf16.mxu0 %v15106_v61  ;;  %v15149_v61 = vld [vmem:[#allocation7 + $0x6c8] ss:$16 sps:$4 sm:$0xff]   ;;  %v15184_v58 = vld [vmem:[#allocation7 + $0xb84] ss:$16 sps:$4 sm:$0xff]  }
 0x55d   :  { %11755 = vmatpush1.bf16.msra.mxu1 %v15107_v56  ;;  %v15146_v56 = vld [vmem:[#allocation7 + $0xac0] ss:$16 sps:$4 sm:$0xff]   ;;  %v7832_v36 = vmul.f32 0.125, %v7791_v23  ;;  %v15193_v23 = vld [vmem:[#allocation7 + $0x7ac] ss:$16 sps:$4 sm:$0xff]  }
 0x55e   :  { %11765 = vmatprep.subr.bf16.mxu1 %v15115_v52  ;;  %v7809_v52 = vadd.f32 %v7808_v16, %v7807_v6  ;;  %v15187_v6 = vld [vmem:[#allocation7 + $0x78c] ss:$16 sps:$4 sm:$0xff]  }
 0x55f   :  { %11509 = vmatpush1.bf16.msra.mxu0 %v15104_v25  ;;  %v15157_v25 = vld [vmem:[#allocation7 + $0x6ec] ss:$16 sps:$4 sm:$0xff]  }
 0x560   :  { %11519 = vmatprep.subr.bf16.mxu0 %v15112_v18  ;;  %11757 = vmatmul.mubr.bf16.vlgmr.msra.gmra.mrb[20].mxu1 %v16198_v62  ;;  %v15125_v62 = vld [vmem:[#allocation7 + $0x648] ss:$16 sps:$4 sm:$0xff]  }
 0x561   :  { %11766 = vmatpush1.bf16.msra.mxu1 %v15113_v1  ;;  %11797 = vmatprep.mubr.bf16.mxu1 %v16201_v0  ;;  %v15139_v0 = vld [vmem:[#allocation7 + $0x68c] ss:$16 sps:$4 sm:$0xff]   ;;  %v15155_v18 = vld [vmem:[#allocation7 + $0x6e8] ss:$16 sps:$4 sm:$0xff]   ;;  %v15152_v1 = vld [vmem:[#allocation7 + $0xae0] ss:$16 sps:$4 sm:$0xff]  }
 0x562   :  { %11511 = vmatmul.mubr.bf16.vlgmr.msra.gmra.mrb[16].mxu0 %v16276_v37  ;;  %11767 = vmatprep.subr.bf16.mxu1 %v15121_v4  ;;  %v15161_v4 = vld [vmem:[#allocation7 + $0x708] ss:$16 sps:$4 sm:$0xff]  }
 0x563   :  { %11520 = vmatpush1.bf16.msra.mxu0 %v15110_v47  ;;  %11551 = vmatprep.mubr.bf16.mxu0 %v16279_v32  ;;  %v7835_v47 = vmul.f32 0.125, %v7809_v52  ;;  %v15190_v52 = vld [vmem:[#allocation7 + $0xba4] ss:$16 sps:$4 sm:$0xff]  }
 0x564   :  { %11521 = vmatprep.subr.bf16.mxu0 %v15118_v39  ;;  %v7653_v39 = vrot.slane %v16206_v38, 4 }
 0x565   :  { %11768 = vmatpush1.bf16.msra.mxu1 %v15119_v8  ;;  %v7848_v8 = vadd.f32 1e-05, %v7832_v36 }
 0x566   :  { %11769 = vmatprep.subr.bf16.mxu1 %v15127_v49  ;;  %v7851_v49 = vadd.f32 1e-05, %v7835_v47  ;;  %v15191_v47 = vld [vmem:[#allocation7 + $0x7a8] ss:$16 sps:$4 sm:$0xff]  }
 0x567   :  { %11522 = vmatpush1.bf16.msra.mxu0 %v15116_v9  ;;  %v15169_v9 = vld [vmem:[#allocation7 + $0x72c] ss:$16 sps:$4 sm:$0xff]   ;;  %15628 = vrsqrt.f32 %v7848_v8  ;;  %v15196_v8 = vld [vmem:[#allocation7 + $0xbc4] ss:$16 sps:$4 sm:$0xff]  }
 0x568   :  { %11523 = vmatprep.subr.bf16.mxu0 %v15124_v11  ;;  %v15166_v11 = vld [vmem:[#allocation7 + $0xb24] ss:$16 sps:$4 sm:$0xff]   ;;  %15630 = vrsqrt.f32 %v7851_v49  ;;  %v15197_v49 = vld [vmem:[#allocation7 + $0x7c8] ss:$16 sps:$4 sm:$0xff]  }
 0x569   :  { %11770 = vmatpush1.bf16.msra.mxu1 %v15125_v62  ;;  %v7654_v62 = vadd.f32 %v7653_v39, %v16206_v38 }
 0x56a   :  { %11771 = vmatprep.subr.bf16.mxu1 %v15133_v54  ;;  %v15175_v54 = vld [vmem:[#allocation7 + $0x74c] ss:$16 sps:$4 sm:$0xff]  }
 0x56b   :  { %11524 = vmatpush1.bf16.msra.mxu0 %v15122_v28  ;;  %v15164_v28 = vld [vmem:[#allocation7 + $0xb20] ss:$16 sps:$4 sm:$0xff]  }
 0x56c   :  { %11525 = vmatprep.subr.bf16.mxu0 %v15130_v17  ;;  %v15172_v17 = vld [vmem:[#allocation7 + $0xb44] ss:$16 sps:$4 sm:$0xff]  }
 0x56d   :  { %11772 = vmatpush1.bf16.msra.mxu1 %v15131_v20  ;;  %v7655_v20 = vrot.slane %v7654_v62, 2 }
 0x56e   :  { %11773 = vmatprep.subr.bf16.mxu1 %v15139_v0  ;;  %v15181_v0 = vld [vmem:[#allocation7 + $0x76c] ss:$16 sps:$4 sm:$0xff]  }
 0x56f   :  { %11526 = vmatpush1.bf16.msra.mxu0 %v15128_v31  ;;  %v15170_v31 = vld [vmem:[#allocation7 + $0xb40] ss:$16 sps:$4 sm:$0xff]   ;;  %v7656_v27 = vadd.f32 %v7655_v20, %v7654_v62 }
 0x570   :  { %11527 = vmatprep.subr.bf16.mxu0 %v15136_v45  ;;  %v15178_v45 = vld [vmem:[#allocation7 + $0xb64] ss:$16 sps:$4 sm:$0xff]   ;;  %v15200_v20 = vld [vmem:[#allocation7 + $0xbe0] ss:$16 sps:$4 sm:$0xff]  }
 0x571   :  { %11774 = vmatpush1.bf16.msra.mxu1 %v15137_v53  ;;  %v16292_v53 = vld [vmem:[#allocation10 + $0x18] sm:$0xff] }
 0x572   :  { %11775 = vmatprep.subr.bf16.mxu1 %v15145_v30  ;;  %v15176_v30 = vld [vmem:[#allocation7 + $0xb60] ss:$16 sps:$4 sm:$0xff]  }
 0x573   :  { %11528 = vmatpush1.bf16.msra.mxu0 %v15134_v51  ;;  %v16284_v40 = vpop.f32.mrb[16].mxu1  ;;  %v15179_v51 = vld [vmem:[#allocation7 + $0x768] ss:$16 sps:$4 sm:$0xff]  }
 0x574   :  { %11529 = vmatprep.subr.bf16.mxu0 %v15142_v14  ;;  %v16286_v35 = vpop.f32.mrb[17].mxu1  ;;  %v7933_v14 = vrot.slane %v16214_v26, %v16131_v21 }
 0x575   :  { %v7574_v46 = vpop.f32.mrb[18].mxu1  ;;  %11776 = vmatpush1.bf16.msra.mxu1 %v15143_v13  ;;  %v7671_v2 = vrot.slane %v16286_v35, 4 }
 0x576   :  { %v7575_v55 = vpop.f32.mrb[19].mxu1  ;;  %11777 = vmatprep.subr.bf16.mxu1 %v15151_v10  ;;  %v7945_v10 = vrot.slane %v16292_v53, %v16044_v24  ;;  %v15185_v46 = vld [vmem:[#allocation7 + $0x788] ss:$16 sps:$4 sm:$0xff]  }
 0x577   :  { %11530 = vmatpush1.bf16.msra.mxu0 %v15140_v50  ;;  %v7672_v34 = vadd.f32 %v7671_v2, %v16286_v35  ;;  %v15629_v50 = vpop.eup %15628  ;;  %v15194_v2 = vld [vmem:[#allocation7 + $0xbc0] ss:$16 sps:$4 sm:$0xff]  }
 0x578   :  { %11531 = vmatprep.subr.bf16.mxu0 %v15148_v44  ;;  %v15631_v16 = vpop.eup %15630  ;;  %v7657_v44 = vrot.slane %v7656_v27, 1  ;;  %v7880_v55 = vmul.f32 %v15629_v50, %v16267_v57  ;;  %v8025_v36 = vrot.slane %v7945_v10, %v16054_v48  ;;  %v15188_v57 = vld [vmem:[#allocation7 + $0xba0] ss:$16 sps:$4 sm:$0xff]   ;;  %v15215_v50 = vld [vmem:[#allocation7 + $0x828] ss:$16 sps:$4 sm:$0xff]  }
 0x579   :  { %11778 = vmatpush1.bf16.msra.mxu1 %v15149_v61  ;;  %v7673_v22 = vrot.slane %v7672_v34, 2  ;;  %v15182_v61 = vld [vmem:[#allocation7 + $0xb80] ss:$16 sps:$4 sm:$0xff]  }
 0x57a   :  { %11779 = vmatprep.subr.bf16.mxu1 %v15157_v25  ;;  %v15212_v10 = vld [vmem:[#allocation7 + $0xc20] ss:$16 sps:$4 sm:$0xff]  }
 0x57b   :  { %11532 = vmatpush1.bf16.msra.mxu0 %v15146_v56  ;;  %v7674_v13 = vadd.f32 %v7673_v22, %v7672_v34  ;;  %v8013_v56 = vrot.slane %v7933_v14, %v16054_v48  ;;  %v15208_v22 = vld [vmem:[#allocation7 + $0xc04] ss:$16 sps:$4 sm:$0xff]  }
 0x57c   :  { %11533 = vmatprep.subr.bf16.mxu0 %v15154_v41  ;;  %v8093_v41 = vrot.slane %v16214_v26, %v16138_v15 }
 0x57d   :  { %11780 = vmatpush1.bf16.msra.mxu1 %v15155_v18  ;;  %v7675_v25 = vrot.slane %v7674_v13, 1  ;;  %v7883_v18 = vmul.f32 %v15631_v16, %v16270_v59  ;;  %v8044_v39 = vmul.f32 %v8013_v56, %v7880_v55  ;;  %v15223_v16 = vld [vmem:[#allocation7 + $0x84c] ss:$16 sps:$4 sm:$0xff]  }
 0x57e   :  { %11781 = vmatprep.subr.bf16.mxu1 %v15163_v29  ;;  %v7658_v29 = vadd.f32 %v7657_v44, %v7656_v27  ;;  %v8173_v26 = vrot.slane %v8093_v41, %v16061_v3  ;;  %v15229_v55 = vld [vmem:[#allocation7 + $0x86c] ss:$16 sps:$4 sm:$0xff]   ;;  %v15227_v41 = vld [vmem:[#allocation7 + $0x868] ss:$16 sps:$4 sm:$0xff]  }
 0x57f   :  { %11534 = vmatpush1.bf16.msra.mxu0 %v15152_v1  ;;  %v8105_v1 = vrot.slane %v16292_v53, %v16051_v19 }
 0x580   :  { %11535 = vmatprep.subr.bf16.mxu0 %v15160_v60  ;;  %v15199_v60 = vld [vmem:[#allocation7 + $0x7cc] ss:$16 sps:$4 sm:$0xff]  }
 0x581   :  { %11782 = vmatpush1.bf16.msra.mxu1 %v15161_v4  ;;  %v7676_v4 = vadd.f32 %v7675_v25, %v7674_v13  ;;  %v8185_v59 = vrot.slane %v8105_v1, %v16061_v3  ;;  %v15217_v13 = vld [vmem:[#allocation7 + $0x82c] ss:$16 sps:$4 sm:$0xff]   ;;  %v15226_v25 = vld [vmem:[#allocation7 + $0xc64] ss:$16 sps:$4 sm:$0xff]  }
 0x582   :  { %11783 = vmatprep.subr.bf16.mxu1 %v15169_v9  ;;  %v7690_v9 = vmul.f32 0.125, %v7658_v29  ;;  %v15232_v1 = vld [vmem:[#allocation7 + $0xc84] ss:$16 sps:$4 sm:$0xff]  }
 0x583   :  { %11536 = vmatpush1.bf16.msra.mxu0 %v15158_v7  ;;  %v8047_v7 = vmul.f32 %v8025_v36, %v7883_v18  ;;  %v7693_v62 = vmul.f32 0.125, %v7676_v4  ;;  %v15224_v18 = vld [vmem:[#allocation7 + $0xc60] ss:$16 sps:$4 sm:$0xff]   ;;  %v15238_v4 = vld [vmem:[#allocation7 + $0xca4] ss:$16 sps:$4 sm:$0xff]  }
 0x584   :  { %11537 = vmatprep.subr.bf16.mxu0 %v15166_v11  ;;  %v15205_v11 = vld [vmem:[#allocation7 + $0x7ec] ss:$16 sps:$4 sm:$0xff]   ;;  %v16309_v34 = vsub.f32 %v16206_v38, %v7690_v9  ;;  %v15206_v38 = vld [vmem:[#allocation7 + $0xc00] ss:$16 sps:$4 sm:$0xff]  }
 0x585   :  { %11784 = vmatpush1.bf16.msra.mxu1 %v15167_v12  ;;  %v15202_v12 = vld [vmem:[#allocation7 + $0xbe4] ss:$16 sps:$4 sm:$0xff]  }
 0x586   :  { %11785 = vmatprep.subr.bf16.mxu1 %v15175_v54  ;;  %v8207_v54 = vadd.f32 %v8185_v59, %v8047_v7  ;;  %v7722_v27 = vmul.f32 %v16309_v34, %v16309_v34  ;;  %v15236_v7 = vld [vmem:[#allocation7 + $0xca0] ss:$16 sps:$4 sm:$0xff]   ;;  %v15247_v59 = vld [vmem:[#allocation7 + $0x8cc] ss:$16 sps:$4 sm:$0xff]  }
 0x587   :  { %11538 = vmatpush1.bf16.msra.mxu0 %v15164_v28  ;;  %v8204_v28 = vadd.f32 %v8173_v26, %v8044_v39  ;;  %v15239_v26 = vld [vmem:[#allocation7 + $0x8a8] ss:$16 sps:$4 sm:$0xff]  }
 0x588   :  { %11539 = vmatprep.subr.bf16.mxu0 %v15172_v17  ;;  %v15203_v17 = vld [vmem:[#allocation7 + $0x7e8] ss:$16 sps:$4 sm:$0xff]  }
 0x589   :  { %11786 = vmatpush1.bf16.msra.mxu1 %v15173_v5  ;;  %v15211_v5 = vld [vmem:[#allocation7 + $0x80c] ss:$16 sps:$4 sm:$0xff]  }
 0x58a   :  { %11787 = vmatprep.subr.bf16.mxu1 %v15181_v0  ;;  %v8220_v0 = vmax.f32 %v8204_v28, 0.0 }
 0x58b   :  { %11540 = vmatpush1.bf16.msra.mxu0 %v15170_v31  ;;  %v16312_v31 = vsub.f32 %v16286_v35, %v7693_v62  ;;  %v15214_v35 = vld [vmem:[#allocation7 + $0xc24] ss:$16 sps:$4 sm:$0xff]   ;;  %v15242_v62 = vld [vmem:[#allocation7 + $0xcc0] ss:$16 sps:$4 sm:$0xff]  }
 0x58c   :  { %11541 = vmatprep.subr.bf16.mxu0 %v15178_v45  ;;  %v8223_v45 = vmax.f32 %v8207_v54, 0.0  ;;  %v15250_v54 = vld [vmem:[#allocation7 + $0xce4] ss:$16 sps:$4 sm:$0xff]  }
 0x58d   :  { %11788 = vmatpush1.bf16.msra.mxu1 %v15179_v51  ;;  %v15209_v51 = vld [vmem:[#allocation7 + $0x808] ss:$16 sps:$4 sm:$0xff]  }
 0x58e   :  { %11789 = vmatprep.subr.bf16.mxu1 %v15187_v6  ;;  %v16318_v6 = vpack.c.bf16 %v8220_v0, %v8220_v0  ;;  %v16321_v14 = vpack.c.bf16 %v8223_v45, %v8223_v45  ;;  %v15259_v0 = vld [vmem:[#allocation7 + $0x90c] ss:$16 sps:$4 sm:$0xff]   ;;  %v15256_v45 = vld [vmem:[#allocation7 + $0xd04] ss:$16 sps:$4 sm:$0xff]  }
 0x58f   :  { %11542 = vmatpush1.bf16.msra.mxu0 %v15176_v30  ;;  %v7725_v30 = vmul.f32 %v16312_v31, %v16312_v31 }
 0x590   :  { %11543 = vmatprep.subr.bf16.mxu0 %v15184_v58  ;;  %v7798_v58 = vrot.slane %v7722_v27, 4 }
 0x591   :  { %11790 = vmatpush1.bf16.msra.mxu1 %v15185_v46  ;;  %v7816_v44 = vrot.slane %v7725_v30, 4  ;;  %v15220_v46 = vld [vmem:[#allocation7 + $0xc44] ss:$16 sps:$4 sm:$0xff]  }
 0x592   :  { %11791 = vmatprep.subr.bf16.mxu1 %v15193_v23  ;;  %v15218_v23 = vld [vmem:[#allocation7 + $0xc40] ss:$16 sps:$4 sm:$0xff]  }
 0x593   :  { %11544 = vmatpush1.bf16.msra.mxu0 %v15182_v61  ;;  %v15221_v61 = vld [vmem:[#allocation7 + $0x848] ss:$16 sps:$4 sm:$0xff]   ;;  %v7817_v56 = vadd.f32 %v7816_v44, %v7725_v30  ;;  %v15254_v30 = vld [vmem:[#allocation7 + $0xd00] ss:$16 sps:$4 sm:$0xff]   ;;  %v15271_v44 = vld [vmem:[#allocation7 + $0x94c] ss:$16 sps:$4 sm:$0xff]  }
 0x594   :  { %11545 = vmatprep.subr.bf16.mxu0 %v15190_v52 }
 0x595   :  { %11792 = vmatpush1.bf16.msra.mxu1 %v15191_v47  ;;  %v7818_v36 = vrot.slane %v7817_v56, 2  ;;  %v15233_v47 = vld [vmem:[#allocation7 + $0x888] ss:$16 sps:$4 sm:$0xff]  }
 0x596   :  { %11793 = vmatprep.subr.bf16.mxu1 %v15199_v60  ;;  %v15241_v60 = vld [vmem:[#allocation7 + $0x8ac] ss:$16 sps:$4 sm:$0xff]  }
 0x597   :  { %11546 = vmatpush1.bf16.msra.mxu0 %v15188_v57  ;;  %v15230_v57 = vld [vmem:[#allocation7 + $0xc80] ss:$16 sps:$4 sm:$0xff]   ;;  %v7819_v39 = vadd.f32 %v7818_v36, %v7817_v56  ;;  %v15274_v56 = vld [vmem:[#allocation7 + $0xd64] ss:$16 sps:$4 sm:$0xff]  }
 0x598   :  { %11547 = vmatprep.subr.bf16.mxu0 %v15196_v8  ;;  %v15280_v36 = vld [vmem:[#allocation7 + $0xd84] ss:$16 sps:$4 sm:$0xff]  }
 0x599   :  { %11794 = vmatpush1.bf16.msra.mxu1 %v15197_v49  ;;  %v7820_v9 = vrot.slane %v7819_v39, 1  ;;  %v15244_v49 = vld [vmem:[#allocation7 + $0xcc4] ss:$16 sps:$4 sm:$0xff]  }
 0x59a   :  { %11795 = vmatprep.subr.bf16.mxu1 %v15205_v11  ;;  %v15245_v11 = vld [vmem:[#allocation7 + $0x8c8] ss:$16 sps:$4 sm:$0xff]  }
 0x59b   :  { %11548 = vmatpush1.bf16.msra.mxu0 %v15194_v2  ;;  %v7821_v28 = vadd.f32 %v7820_v9, %v7819_v39  ;;  %v15278_v39 = vld [vmem:[#allocation7 + $0xd80] ss:$16 sps:$4 sm:$0xff]  }
 0x59c   :  { %11549 = vmatprep.subr.bf16.mxu0 %v15202_v12  ;;  %v15253_v12 = vld [vmem:[#allocation7 + $0x8ec] ss:$16 sps:$4 sm:$0xff]  }
 0x59d   :  { %11796 = vmatpush1.bf16.msra.mxu1 %v15203_v17 }
 0x59e   :  { %11806 = vmatprep.subr.bf16.mxu1 %v15211_v5  ;;  %v15248_v5 = vld [vmem:[#allocation7 + $0xce0] ss:$16 sps:$4 sm:$0xff]  }
 0x59f   :  { %11550 = vmatpush1.bf16.msra.mxu0 %v15200_v20  ;;  %v15251_v20 = vld [vmem:[#allocation7 + $0x8e8] ss:$16 sps:$4 sm:$0xff]  }
 0x5a0   :  { %11560 = vmatprep.subr.bf16.mxu0 %v15208_v22  ;;  %11798 = vmatmul.mubr.bf16.vlgmr.msra.gmra.mrb[20].mxu1 %v16240_v42  ;;  %v7799_v42 = vadd.f32 %v7798_v58, %v7722_v27  ;;  %v7837_v22 = vmul.f32 0.125, %v7821_v28  ;;  %v15262_v58 = vld [vmem:[#allocation7 + $0xd24] ss:$16 sps:$4 sm:$0xff]  }
 0x5a1   :  { %11807 = vmatpush1.bf16.msra.mxu1 %v15209_v51  ;;  %11838 = vmatprep.mubr.bf16.mxu1 %v16243_v33  ;;  %v15235_v33 = vld [vmem:[#allocation7 + $0x88c] ss:$16 sps:$4 sm:$0xff]   ;;  %v15257_v51 = vld [vmem:[#allocation7 + $0x908] ss:$16 sps:$4 sm:$0xff]  }
 0x5a2   :  { %11552 = vmatmul.mubr.bf16.vlgmr.msra.gmra.mrb[16].mxu0 %v16318_v6  ;;  %11808 = vmatprep.subr.bf16.mxu1 %v15217_v13  ;;  %v7800_v52 = vrot.slane %v7799_v42, 2  ;;  %v7853_v13 = vadd.f32 1e-05, %v7837_v22  ;;  %v15290_v22 = vld [vmem:[#allocation7 + $0xdc0] ss:$16 sps:$4 sm:$0xff]  }
 0x5a3   :  { %11561 = vmatpush1.bf16.msra.mxu0 %v15206_v38  ;;  %11592 = vmatprep.mubr.bf16.mxu0 %v16321_v14  ;;  %v7665_v38 = vrot.slane %v16284_v40, 4 }
 0x5a4   :  { %11562 = vmatprep.subr.bf16.mxu0 %v15214_v35  ;;  %v7801_v29 = vadd.f32 %v7800_v52, %v7799_v42  ;;  %v15265_v35 = vld [vmem:[#allocation7 + $0x92c] ss:$16 sps:$4 sm:$0xff]   ;;  %v15269_v42 = vld [vmem:[#allocation7 + $0x948] ss:$16 sps:$4 sm:$0xff]  }
 0x5a5   :  { %11809 = vmatpush1.bf16.msra.mxu1 %v15215_v50  ;;  %v15263_v50 = vld [vmem:[#allocation7 + $0x928] ss:$16 sps:$4 sm:$0xff]  }
 0x5a6   :  { %11810 = vmatprep.subr.bf16.mxu1 %v15223_v16  ;;  %v7802_v8 = vrot.slane %v7801_v29, 1  ;;  %v15260_v16 = vld [vmem:[#allocation7 + $0xd20] ss:$16 sps:$4 sm:$0xff]  }
 0x5a7   :  { %11563 = vmatpush1.bf16.msra.mxu0 %v15212_v10  ;;  %v7666_v10 = vadd.f32 %v7665_v38, %v16284_v40 }
 0x5a8   :  { %11564 = vmatprep.subr.bf16.mxu0 %v15220_v46  ;;  %v7803_v2 = vadd.f32 %v7802_v8, %v7801_v29  ;;  %v15268_v46 = vld [vmem:[#allocation7 + $0xd44] ss:$16 sps:$4 sm:$0xff]   ;;  %v7953_v29 = vrot.slane %v16292_v53, %v16085_v43 }
 0x5a9   :  { %11811 = vmatpush1.bf16.msra.mxu1 %v15221_v61  ;;  %v7667_v61 = vrot.slane %v7666_v10, 2 }
 0x5aa   :  { %11812 = vmatprep.subr.bf16.mxu1 %v15229_v55  ;;  %v7834_v17 = vmul.f32 0.125, %v7803_v2  ;;  %v15277_v55 = vld [vmem:[#allocation7 + $0x96c] ss:$16 sps:$4 sm:$0xff]   ;;  %v8113_v2 = vrot.slane %v16292_v53, %v16092_v63 }
 0x5ab   :  { %11565 = vmatpush1.bf16.msra.mxu0 %v15218_v23  ;;  %v15266_v23 = vld [vmem:[#allocation7 + $0xd40] ss:$16 sps:$4 sm:$0xff]   ;;  %v7668_v52 = vadd.f32 %v7667_v61, %v7666_v10  ;;  %v15304_v10 = vld [vmem:[#allocation7 + $0xe04] ss:$16 sps:$4 sm:$0xff]  }
 0x5ac   :  { %11566 = vmatprep.subr.bf16.mxu0 %v15226_v25  ;;  %v7850_v27 = vadd.f32 1e-05, %v7834_v17  ;;  %v15275_v25 = vld [vmem:[#allocation7 + $0x968] ss:$16 sps:$4 sm:$0xff]  }
 0x5ad   :  { %11813 = vmatpush1.bf16.msra.mxu1 %v15227_v41  ;;  %v15272_v41 = vld [vmem:[#allocation7 + $0xd60] ss:$16 sps:$4 sm:$0xff]  }
 0x5ae   :  { %11814 = vmatprep.subr.bf16.mxu1 %v15235_v33  ;;  %15632 = vrsqrt.f32 %v7850_v27  ;;  %v7941_v33 = vrot.slane %v16292_v53, %v16054_v48  ;;  %v15298_v27 = vld [vmem:[#allocation7 + $0xde4] ss:$16 sps:$4 sm:$0xff]  }
 0x5af   :  { %11567 = vmatpush1.bf16.msra.mxu0 %v15224_v18  ;;  %15634 = vrsqrt.f32 %v7853_v13  ;;  %v15283_v18 = vld [vmem:[#allocation7 + $0x98c] ss:$16 sps:$4 sm:$0xff]   ;;  %v15296_v13 = vld [vmem:[#allocation7 + $0xde0] ss:$16 sps:$4 sm:$0xff]  }
 0x5b0   :  { %11568 = vmatprep.subr.bf16.mxu0 %v15232_v1 }
 0x5b1   :  { %11815 = vmatpush1.bf16.msra.mxu1 %v15233_v47 }
 0x5b2   :  { %11816 = vmatprep.subr.bf16.mxu1 %v15241_v60  ;;  %v7669_v60 = vrot.slane %v7668_v52, 1 }
 0x5b3   :  { %11569 = vmatpush1.bf16.msra.mxu0 %v15230_v57  ;;  %v15281_v57 = vld [vmem:[#allocation7 + $0x988] ss:$16 sps:$4 sm:$0xff]  }
 0x5b4   :  { %11570 = vmatprep.subr.bf16.mxu0 %v15238_v4  ;;  %v15289_v4 = vld [vmem:[#allocation7 + $0x9ac] ss:$16 sps:$4 sm:$0xff]  }
 0x5b5   :  { %11817 = vmatpush1.bf16.msra.mxu1 %v15239_v26  ;;  %v8021_v26 = vrot.slane %v7941_v33, %v16054_v48 }
 0x5b6   :  { %11818 = vmatprep.subr.bf16.mxu1 %v15247_v59  ;;  %v8101_v59 = vrot.slane %v16292_v53, %v16061_v3 }
 0x5b7   :  { %11571 = vmatpush1.bf16.msra.mxu0 %v15236_v7  ;;  %v15286_v7 = vld [vmem:[#allocation7 + $0xda4] ss:$16 sps:$4 sm:$0xff]  }
 0x5b8   :  { %11572 = vmatprep.subr.bf16.mxu0 %v15244_v49  ;;  %v15633_v1 = vpop.eup %15632  ;;  %v8033_v49 = vrot.slane %v7953_v29, %v16054_v48  ;;  %v8181_v17 = vrot.slane %v8101_v59, %v16061_v3  ;;  %v15322_v29 = vld [vmem:[#allocation7 + $0xe64] ss:$16 sps:$4 sm:$0xff]  }
 0x5b9   :  { %11819 = vmatpush1.bf16.msra.mxu1 %v15245_v11  ;;  %v15635_v47 = vpop.eup %15634  ;;  %v7882_v8 = vmul.f32 %v15633_v1, %v16309_v34  ;;  %v15287_v11 = vld [vmem:[#allocation7 + $0x9a8] ss:$16 sps:$4 sm:$0xff]   ;;  %v15295_v34 = vld [vmem:[#allocation7 + $0x9cc] ss:$16 sps:$4 sm:$0xff]   ;;  %v15334_v59 = vld [vmem:[#allocation7 + $0xea4] ss:$16 sps:$4 sm:$0xff]  }
 0x5ba   :  { %11820 = vmatprep.subr.bf16.mxu1 %v15253_v12  ;;  %v7885_v9 = vmul.f32 %v15635_v47, %v16312_v31  ;;  %v15284_v12 = vld [vmem:[#allocation7 + $0xda0] ss:$16 sps:$4 sm:$0xff]   ;;  %v8193_v31 = vrot.slane %v8113_v2, %v16061_v3  ;;  %v15325_v1 = vld [vmem:[#allocation7 + $0xa6c] ss:$16 sps:$4 sm:$0xff]   ;;  %v15323_v47 = vld [vmem:[#allocation7 + $0xa68] ss:$16 sps:$4 sm:$0xff]  }
 0x5bb   :  { %11573 = vmatpush1.bf16.msra.mxu0 %v15242_v62  ;;  %v7670_v62 = vadd.f32 %v7669_v60, %v7668_v52  ;;  %v8046_v28 = vmul.f32 %v8021_v26, %v7882_v8  ;;  %v15308_v52 = vld [vmem:[#allocation7 + $0xe20] ss:$16 sps:$4 sm:$0xff]  }
 0x5bc   :  { %11574 = vmatprep.subr.bf16.mxu0 %v15250_v54  ;;  %v15292_v54 = vld [vmem:[#allocation7 + $0xdc4] ss:$16 sps:$4 sm:$0xff]   ;;  %v15320_v60 = vld [vmem:[#allocation7 + $0xe60] ss:$16 sps:$4 sm:$0xff]  }
 0x5bd   :  { %11821 = vmatpush1.bf16.msra.mxu1 %v15251_v20  ;;  %v8049_v20 = vmul.f32 %v8033_v49, %v7885_v9  ;;  %v15326_v26 = vld [vmem:[#allocation7 + $0xe80] ss:$16 sps:$4 sm:$0xff]   ;;  %v15335_v9 = vld [vmem:[#allocation7 + $0xaa8] ss:$16 sps:$4 sm:$0xff]  }
 0x5be   :  { %11822 = vmatprep.subr.bf16.mxu1 %v15259_v0  ;;  %v7692_v0 = vmul.f32 0.125, %v7670_v62  ;;  %v15332_v2 = vld [vmem:[#allocation7 + $0xea0] ss:$16 sps:$4 sm:$0xff]   ;;  %v15340_v62 = vld [vmem:[#allocation7 + $0xec4] ss:$16 sps:$4 sm:$0xff]  }
 0x5bf   :  { %11575 = vmatpush1.bf16.msra.mxu0 %v15248_v5  ;;  %v15293_v5 = vld [vmem:[#allocation7 + $0x9c8] ss:$16 sps:$4 sm:$0xff]   ;;  %v8209_v38 = vadd.f32 %v8193_v31, %v8049_v20 }
 0x5c0   :  { %11576 = vmatprep.subr.bf16.mxu0 %v15256_v45  ;;  %v15301_v45 = vld [vmem:[#allocation7 + $0x9ec] ss:$16 sps:$4 sm:$0xff]   ;;  %v15347_v20 = vld [vmem:[#allocation7 + $0xae8] ss:$16 sps:$4 sm:$0xff]  }
 0x5c1   :  { %11823 = vmatpush1.bf16.msra.mxu1 %v15257_v51  ;;  %v8206_v51 = vadd.f32 %v8181_v17, %v8046_v28  ;;  %v15338_v28 = vld [vmem:[#allocation7 + $0xec0] ss:$16 sps:$4 sm:$0xff]   ;;  %v15346_v17 = vld [vmem:[#allocation7 + $0xee4] ss:$16 sps:$4 sm:$0xff]  }
 0x5c2   :  { %11824 = vmatprep.subr.bf16.mxu1 %v15265_v35  ;;  %v16343_v35 = vsub.f32 %v16284_v40, %v7692_v0  ;;  %v15310_v40 = vld [vmem:[#allocation7 + $0xe24] ss:$16 sps:$4 sm:$0xff]   ;;  %v15355_v0 = vld [vmem:[#allocation7 + $0xb0c] ss:$16 sps:$4 sm:$0xff]  }
 0x5c3   :  { %11577 = vmatpush1.bf16.msra.mxu0 %v15254_v30  ;;  %v15299_v30 = vld [vmem:[#allocation7 + $0x9e8] ss:$16 sps:$4 sm:$0xff]  }
 0x5c4   :  { %11578 = vmatprep.subr.bf16.mxu0 %v15262_v58  ;;  %v15307_v58 = vld [vmem:[#allocation7 + $0xa0c] ss:$16 sps:$4 sm:$0xff]  }
 0x5c5   :  { %11825 = vmatpush1.bf16.msra.mxu1 %v15263_v50  ;;  %v8222_v50 = vmax.f32 %v8206_v51, 0.0  ;;  %v15350_v51 = vld [vmem:[#allocation7 + $0xf00] ss:$16 sps:$4 sm:$0xff]  }
 0x5c6   :  { %11826 = vmatprep.subr.bf16.mxu1 %v15271_v44  ;;  %v15305_v44 = vld [vmem:[#allocation7 + $0xa08] ss:$16 sps:$4 sm:$0xff]  }
 0x5c7   :  { %11579 = vmatpush1.bf16.msra.mxu0 %v15260_v16  ;;  %v8225_v16 = vmax.f32 %v8209_v38, 0.0  ;;  %v16347_v61 = vpack.c.bf16 %v8222_v50, %v8222_v50  ;;  %v15361_v38 = vld [vmem:[#allocation7 + $0xb2c] ss:$16 sps:$4 sm:$0xff]  }
 0x5c8   :  { %11580 = vmatprep.subr.bf16.mxu0 %v15268_v46  ;;  %v7724_v46 = vmul.f32 %v16343_v35, %v16343_v35  ;;  %v15367_v50 = vld [vmem:[#allocation7 + $0xb4c] ss:$16 sps:$4 sm:$0xff]  }
 0x5c9   :  { %11827 = vmatpush1.bf16.msra.mxu1 %v15269_v42  ;;  %v15302_v42 = vld [vmem:[#allocation7 + $0xe00] ss:$16 sps:$4 sm:$0xff]  }
 0x5ca   :  { %11828 = vmatprep.subr.bf16.mxu1 %v15277_v55  ;;  %v15313_v55 = vld [vmem:[#allocation7 + $0xa2c] ss:$16 sps:$4 sm:$0xff]  }
 0x5cb   :  { %11581 = vmatpush1.bf16.msra.mxu0 %v15266_v23  ;;  %v16350_v23 = vpack.c.bf16 %v8225_v16, %v8225_v16  ;;  %v15365_v16 = vld [vmem:[#allocation7 + $0xb48] ss:$16 sps:$4 sm:$0xff]  }
 0x5cc   :  { %11582 = vmatprep.subr.bf16.mxu0 %v15274_v56  ;;  %v15311_v56 = vld [vmem:[#allocation7 + $0xa28] ss:$16 sps:$4 sm:$0xff]  }
 0x5cd   :  { %11829 = vmatpush1.bf16.msra.mxu1 %v15275_v25  ;;  %v7810_v25 = vrot.slane %v7724_v46, 4 }
 0x5ce   :  { %11830 = vmatprep.subr.bf16.mxu1 %v15283_v18  ;;  %v15316_v18 = vld [vmem:[#allocation7 + $0xe44] ss:$16 sps:$4 sm:$0xff]  }
 0x5cf   :  { %11583 = vmatpush1.bf16.msra.mxu0 %v15272_v41  ;;  %v15319_v41 = vld [vmem:[#allocation7 + $0xa4c] ss:$16 sps:$4 sm:$0xff]   ;;  %v7811_v33 = vadd.f32 %v7810_v25, %v7724_v46  ;;  %v7949_v25 = vrot.slane %v16292_v53, %v16131_v21 }
 0x5d0   :  { %11584 = vmatprep.subr.bf16.mxu0 %v15280_v36  ;;  %v15314_v36 = vld [vmem:[#allocation7 + $0xe40] ss:$16 sps:$4 sm:$0xff]   ;;  %v15373_v46 = vld [vmem:[#allocation7 + $0xb6c] ss:$16 sps:$4 sm:$0xff]  }
 0x5d1   :  { %11831 = vmatpush1.bf16.msra.mxu1 %v15281_v57  ;;  %v7812_v57 = vrot.slane %v7811_v33, 2 }
 0x5d2   :  { %11832 = vmatprep.subr.bf16.mxu1 %v15289_v4  ;;  %v15329_v4 = vld [vmem:[#allocation7 + $0xa88] ss:$16 sps:$4 sm:$0xff]  }
 0x5d3   :  { %11585 = vmatpush1.bf16.msra.mxu0 %v15278_v39  ;;  %v15331_v39 = vld [vmem:[#allocation7 + $0xa8c] ss:$16 sps:$4 sm:$0xff]   ;;  %v7813_v8 = vadd.f32 %v7812_v57, %v7811_v33  ;;  %v15383_v57 = vld [vmem:[#allocation7 + $0xba8] ss:$16 sps:$4 sm:$0xff]  }
 0x5d4   :  { %11586 = vmatprep.subr.bf16.mxu0 %v15286_v7  ;;  %v15337_v7 = vld [vmem:[#allocation7 + $0xaac] ss:$16 sps:$4 sm:$0xff]  }
 0x5d5   :  { %11833 = vmatpush1.bf16.msra.mxu1 %v15287_v11  ;;  %v7814_v49 = vrot.slane %v7813_v8, 1  ;;  %v15343_v11 = vld [vmem:[#allocation7 + $0xacc] ss:$16 sps:$4 sm:$0xff]  }
 0x5d6   :  { %11834 = vmatprep.subr.bf16.mxu1 %v15295_v34  ;;  %v15385_v33 = vld [vmem:[#allocation7 + $0xbac] ss:$16 sps:$4 sm:$0xff]  }
 0x5d7   :  { %11587 = vmatpush1.bf16.msra.mxu0 %v15284_v12  ;;  %v15341_v12 = vld [vmem:[#allocation7 + $0xac8] ss:$16 sps:$4 sm:$0xff]   ;;  %v7815_v34 = vadd.f32 %v7814_v49, %v7813_v8  ;;  %v15392_v49 = vld [vmem:[#allocation7 + $0xfe0] ss:$16 sps:$4 sm:$0xff]  }
 0x5d8   :  { %11588 = vmatprep.subr.bf16.mxu0 %v15292_v54  ;;  %v15349_v54 = vld [vmem:[#allocation7 + $0xaec] ss:$16 sps:$4 sm:$0xff]  }
 0x5d9   :  { %11835 = vmatpush1.bf16.msra.mxu1 %v15293_v5  ;;  %v7836_v31 = vmul.f32 0.125, %v7815_v34  ;;  %v15344_v5 = vld [vmem:[#allocation7 + $0xee0] ss:$16 sps:$4 sm:$0xff]  }
 0x5da   :  { %11836 = vmatprep.subr.bf16.mxu1 %v15301_v45  ;;  %v15353_v45 = vld [vmem:[#allocation7 + $0xb08] ss:$16 sps:$4 sm:$0xff]  }
 0x5db   :  { %11589 = vmatpush1.bf16.msra.mxu0 %v15290_v22  ;;  %v15352_v22 = vld [vmem:[#allocation7 + $0xf04] ss:$16 sps:$4 sm:$0xff]  }
 0x5dc   :  { %11590 = vmatprep.subr.bf16.mxu0 %v15298_v27  ;;  %v7852_v27 = vadd.f32 1e-05, %v7836_v31  ;;  %v15406_v31 = vld [vmem:[#allocation7 + $0xc4c] ss:$16 sps:$4 sm:$0xff]  }
 0x5dd   :  { %11837 = vmatpush1.bf16.msra.mxu1 %v15299_v30  ;;  %v15358_v30 = vld [vmem:[#allocation7 + $0xf24] ss:$16 sps:$4 sm:$0xff]  }
 0x5de   :  { %11847 = vmatprep.subr.bf16.mxu1 %v15307_v58  ;;  %15636 = vrsqrt.f32 %v7852_v27  ;;  %v15356_v58 = vld [vmem:[#allocation7 + $0xf20] ss:$16 sps:$4 sm:$0xff]   ;;  %v15410_v27 = vld [vmem:[#allocation7 + $0xc88] ss:$16 sps:$4 sm:$0xff]  }
 0x5df   :  { %11591 = vmatpush1.bf16.msra.mxu0 %v15296_v13  ;;  %v15359_v13 = vld [vmem:[#allocation7 + $0xb28] ss:$16 sps:$4 sm:$0xff]  }
 0x5e0   :  { %11601 = vmatprep.subr.bf16.mxu0 %v15304_v10  ;;  %11839 = vmatmul.mubr.bf16.vlgmr.msra.gmra.mrb[20].mxu1 %v16276_v37  ;;  %v15317_v37 = vld [vmem:[#allocation7 + $0xa48] ss:$16 sps:$4 sm:$0xff]   ;;  %v15364_v10 = vld [vmem:[#allocation7 + $0xf44] ss:$16 sps:$4 sm:$0xff]  }
 0x5e1   :  { %11848 = vmatpush1.bf16.msra.mxu1 %v15305_v44  ;;  %11879 = vmatprep.mubr.bf16.mxu1 %v16279_v32  ;;  %v15328_v32 = vld [vmem:[#allocation7 + $0xe84] ss:$16 sps:$4 sm:$0xff]   ;;  %v15362_v44 = vld [vmem:[#allocation7 + $0xf40] ss:$16 sps:$4 sm:$0xff]  }
 0x5e2   :  { %11593 = vmatmul.mubr.bf16.vlgmr.msra.gmra.mrb[16].mxu0 %v16347_v61  ;;  %11849 = vmatprep.subr.bf16.mxu1 %v15313_v55  ;;  %v15368_v55 = vld [vmem:[#allocation7 + $0xf60] ss:$16 sps:$4 sm:$0xff]  }
 0x5e3   :  { %11602 = vmatpush1.bf16.msra.mxu0 %v15302_v42  ;;  %11633 = vmatprep.mubr.bf16.mxu0 %v16350_v23  ;;  %v15370_v42 = vld [vmem:[#allocation7 + $0xf64] ss:$16 sps:$4 sm:$0xff]  }
 0x5e4   :  { %11603 = vmatprep.subr.bf16.mxu0 %v15310_v40  ;;  %v15371_v40 = vld [vmem:[#allocation7 + $0xb68] ss:$16 sps:$4 sm:$0xff]  }
 0x5e5   :  { %11850 = vmatpush1.bf16.msra.mxu1 %v15311_v56  ;;  %v15379_v56 = vld [vmem:[#allocation7 + $0xb8c] ss:$16 sps:$4 sm:$0xff]  }
 0x5e6   :  { %11851 = vmatprep.subr.bf16.mxu1 %v15319_v41 }
 0x5e7   :  { %11604 = vmatpush1.bf16.msra.mxu0 %v15308_v52  ;;  %v15376_v52 = vld [vmem:[#allocation7 + $0xf84] ss:$16 sps:$4 sm:$0xff]  }
 0x5e8   :  { %11605 = vmatprep.subr.bf16.mxu0 %v15316_v18  ;;  %v15637_v41 = vpop.eup %15636  ;;  %v15377_v18 = vld [vmem:[#allocation7 + $0xb88] ss:$16 sps:$4 sm:$0xff]  }
 0x5e9   :  { %11852 = vmatpush1.bf16.msra.mxu1 %v15317_v37  ;;  %v15374_v37 = vld [vmem:[#allocation7 + $0xf80] ss:$16 sps:$4 sm:$0xff]  }
 0x5ea   :  { %11853 = vmatprep.subr.bf16.mxu1 %v15325_v1  ;;  %v8029_v1 = vrot.slane %v7949_v25, %v16054_v48  ;;  %v15434_v25 = vld [vmem:[#allocation7 + $0xd88] ss:$16 sps:$4 sm:$0xff]  }
 0x5eb   :  { %11606 = vmatpush1.bf16.msra.mxu0 %v15314_v36  ;;  %v7884_v36 = vmul.f32 %v15637_v41, %v16343_v35  ;;  %v15389_v35 = vld [vmem:[#allocation7 + $0xbc8] ss:$16 sps:$4 sm:$0xff]  }
 0x5ec   :  { %11607 = vmatprep.subr.bf16.mxu0 %v15322_v29  ;;  %v15382_v29 = vld [vmem:[#allocation7 + $0xfa4] ss:$16 sps:$4 sm:$0xff]   ;;  %v15437_v41 = vld [vmem:[#allocation7 + $0xda8] ss:$16 sps:$4 sm:$0xff]  }
 0x5ed   :  { %11854 = vmatpush1.bf16.msra.mxu1 %v15323_v47  ;;  %v8109_v47 = vrot.slane %v16292_v53, %v16138_v15 }
 0x5ee   :  { %11855 = vmatprep.subr.bf16.mxu1 %v15331_v39  ;;  %v15391_v39 = vld [vmem:[#allocation7 + $0xbcc] ss:$16 sps:$4 sm:$0xff]  }
 0x5ef   :  { %11608 = vmatpush1.bf16.msra.mxu0 %v15320_v60  ;;  %v15380_v60 = vld [vmem:[#allocation7 + $0xfa0] ss:$16 sps:$4 sm:$0xff]   ;;  %v8189_v8 = vrot.slane %v8109_v47, %v16061_v3  ;;  %v15451_v47 = vld [vmem:[#allocation7 + $0xe2c] ss:$16 sps:$4 sm:$0xff]  }
 0x5f0   :  { %11609 = vmatprep.subr.bf16.mxu0 %v15328_v32  ;;  %v8048_v32 = vmul.f32 %v8029_v1, %v7884_v36  ;;  %v15443_v36 = vld [vmem:[#allocation7 + $0xde8] ss:$16 sps:$4 sm:$0xff]   ;;  %v15448_v1 = vld [vmem:[#allocation7 + $0xe0c] ss:$16 sps:$4 sm:$0xff]  }
 0x5f1   :  { %11856 = vmatpush1.bf16.msra.mxu1 %v15329_v4  ;;  %v15388_v4 = vld [vmem:[#allocation7 + $0xfc4] ss:$16 sps:$4 sm:$0xff]  }
 0x5f2   :  { %11857 = vmatprep.subr.bf16.mxu1 %v15337_v7  ;;  %v15397_v7 = vld [vmem:[#allocation7 + $0xbec] ss:$16 sps:$4 sm:$0xff]   ;;  %v8208_v53 = vadd.f32 %v8189_v8, %v8048_v32 }
 0x5f3   :  { %11610 = vmatpush1.bf16.msra.mxu0 %v15326_v26  ;;  %v15386_v26 = vld [vmem:[#allocation7 + $0xfc0] ss:$16 sps:$4 sm:$0xff]   ;;  %v15457_v32 = vld [vmem:[#allocation7 + $0xe6c] ss:$16 sps:$4 sm:$0xff]  }
 0x5f4   :  { %11611 = vmatprep.subr.bf16.mxu0 %v15334_v59  ;;  %v15394_v59 = vld [vmem:[#allocation7 + $0xfe4] ss:$16 sps:$4 sm:$0xff]   ;;  %v15460_v8 = vld [vmem:[#allocation7 + $0xe8c] ss:$16 sps:$4 sm:$0xff]  }
 0x5f5   :  { %11858 = vmatpush1.bf16.msra.mxu1 %v15335_v9  ;;  %v15395_v9 = vld [vmem:[#allocation7 + $0xbe8] ss:$16 sps:$4 sm:$0xff]  }
 0x5f6   :  { %11859 = vmatprep.subr.bf16.mxu1 %v15343_v11  ;;  %v8224_v11 = vmax.f32 %v8208_v53, 0.0  ;;  %v15469_v53 = vld [vmem:[#allocation7 + $0xeec] ss:$16 sps:$4 sm:$0xff]  }
 0x5f7   :  { %11612 = vmatpush1.bf16.msra.mxu0 %v15332_v2  ;;  %v15400_v2 = vld [vmem:[#allocation7 + $0xc0c] ss:$16 sps:$4 sm:$0xff]  }
 0x5f8   :  { %11613 = vmatprep.subr.bf16.mxu0 %v15340_v62  ;;  %v15398_v62 = vld [vmem:[#allocation7 + $0xc08] ss:$16 sps:$4 sm:$0xff]   ;;  %v16362_v34 = vpack.c.bf16 %v8224_v11, %v8224_v11  ;;  %v15472_v11 = vld [vmem:[#allocation7 + $0xf0c] ss:$16 sps:$4 sm:$0xff]  }
 0x5f9   :  { %11860 = vmatpush1.bf16.msra.mxu1 %v15341_v12  ;;  %v15403_v12 = vld [vmem:[#allocation7 + $0xc2c] ss:$16 sps:$4 sm:$0xff]  }
 0x5fa   :  { %11861 = vmatprep.subr.bf16.mxu1 %v15349_v54  ;;  %v15496_v54 = vld [vmem:[#allocation8 + $0x4] ss:$8 sps:$4 sm:$0xff]  }
 0x5fb   :  { %11614 = vmatpush1.bf16.msra.mxu0 %v15338_v28  ;;  %v15494_v28 = vld [vmem:[#allocation8] ss:$8 sps:$4 sm:$0xff]  }
 0x5fc   :  { %11615 = vmatprep.subr.bf16.mxu0 %v15346_v17  ;;  %v15401_v17 = vld [vmem:[#allocation7 + $0xc28] ss:$16 sps:$4 sm:$0xff]  }
 0x5fd   :  { %11862 = vmatpush1.bf16.msra.mxu1 %v15347_v20  ;;  %v15499_v20 = vld [vmem:[#allocation8 + $0x14] ss:$8 sps:$4 sm:$0xff]  }
 0x5fe   :  { %11863 = vmatprep.subr.bf16.mxu1 %v15355_v0  ;;  %v15404_v0 = vld [vmem:[#allocation7 + $0xc48] ss:$16 sps:$4 sm:$0xff]  }
 0x5ff   :  { %11616 = vmatpush1.bf16.msra.mxu0 %v15344_v5  ;;  %v15497_v5 = vld [vmem:[#allocation8 + $0x10] ss:$8 sps:$4 sm:$0xff]  }
 0x600   :  { %11617 = vmatprep.subr.bf16.mxu0 %v15352_v22  ;;  %v15409_v22 = vld [vmem:[#allocation7 + $0xc6c] ss:$16 sps:$4 sm:$0xff]  }
 0x601   :  { %11864 = vmatpush1.bf16.msra.mxu1 %v15353_v45  ;;  %v15412_v45 = vld [vmem:[#allocation7 + $0xc8c] ss:$16 sps:$4 sm:$0xff]  }
 0x602   :  { %11865 = vmatprep.subr.bf16.mxu1 %v15361_v38  ;;  %v15418_v38 = vld [vmem:[#allocation7 + $0xccc] ss:$16 sps:$4 sm:$0xff]  }
 0x603   :  { %11618 = vmatpush1.bf16.msra.mxu0 %v15350_v51  ;;  %v15415_v51 = vld [vmem:[#allocation7 + $0xcac] ss:$16 sps:$4 sm:$0xff]  }
 0x604   :  { %11619 = vmatprep.subr.bf16.mxu0 %v15358_v30  ;;  %v15416_v30 = vld [vmem:[#allocation7 + $0xcc8] ss:$16 sps:$4 sm:$0xff]  }
 0x605   :  { %11866 = vmatpush1.bf16.msra.mxu1 %v15359_v13  ;;  %v15421_v13 = vld [vmem:[#allocation7 + $0xcec] ss:$16 sps:$4 sm:$0xff]  }
 0x606   :  { %11867 = vmatprep.subr.bf16.mxu1 %v15367_v50  ;;  %v15424_v50 = vld [vmem:[#allocation7 + $0xd0c] ss:$16 sps:$4 sm:$0xff]  }
 0x607   :  { %11620 = vmatpush1.bf16.msra.mxu0 %v15356_v58  ;;  %v15419_v58 = vld [vmem:[#allocation7 + $0xce8] ss:$16 sps:$4 sm:$0xff]  }
 0x608   :  { %11621 = vmatprep.subr.bf16.mxu0 %v15364_v10  ;;  %v15422_v10 = vld [vmem:[#allocation7 + $0xd08] ss:$16 sps:$4 sm:$0xff]  }
 0x609   :  { %11868 = vmatpush1.bf16.msra.mxu1 %v15365_v16  ;;  %v15427_v16 = vld [vmem:[#allocation7 + $0xd2c] ss:$16 sps:$4 sm:$0xff]  }
 0x60a   :  { %11869 = vmatprep.subr.bf16.mxu1 %v15373_v46  ;;  %v15430_v46 = vld [vmem:[#allocation7 + $0xd4c] ss:$16 sps:$4 sm:$0xff]  }
 0x60b   :  { %11622 = vmatpush1.bf16.msra.mxu0 %v15362_v44  ;;  %v15425_v44 = vld [vmem:[#allocation7 + $0xd28] ss:$16 sps:$4 sm:$0xff]  }
 0x60c   :  { %11623 = vmatprep.subr.bf16.mxu0 %v15370_v42  ;;  %v15428_v42 = vld [vmem:[#allocation7 + $0xd48] ss:$16 sps:$4 sm:$0xff]  }
 0x60d   :  { %11870 = vmatpush1.bf16.msra.mxu1 %v15371_v40  ;;  %v15433_v40 = vld [vmem:[#allocation7 + $0xd6c] ss:$16 sps:$4 sm:$0xff]  }
 0x60e   :  { %11871 = vmatprep.subr.bf16.mxu1 %v15379_v56  ;;  %v15436_v56 = vld [vmem:[#allocation7 + $0xd8c] ss:$16 sps:$4 sm:$0xff]  }
 0x60f   :  { %11624 = vmatpush1.bf16.msra.mxu0 %v15368_v55  ;;  %v15431_v55 = vld [vmem:[#allocation7 + $0xd68] ss:$16 sps:$4 sm:$0xff]  }
 0x610   :  { %11625 = vmatprep.subr.bf16.mxu0 %v15376_v52  ;;  %v15439_v52 = vld [vmem:[#allocation7 + $0xdac] ss:$16 sps:$4 sm:$0xff]  }
 0x611   :  { %11872 = vmatpush1.bf16.msra.mxu1 %v15377_v18  ;;  %v15442_v18 = vld [vmem:[#allocation7 + $0xdcc] ss:$16 sps:$4 sm:$0xff]  }
 0x612   :  { %11873 = vmatprep.subr.bf16.mxu1 %v15385_v33  ;;  %v15445_v33 = vld [vmem:[#allocation7 + $0xdec] ss:$16 sps:$4 sm:$0xff]  }
 0x613   :  { %11626 = vmatpush1.bf16.msra.mxu0 %v15374_v37  ;;  %v15440_v37 = vld [vmem:[#allocation7 + $0xdc8] ss:$16 sps:$4 sm:$0xff]  }
 0x614   :  { %11627 = vmatprep.subr.bf16.mxu0 %v15382_v29  ;;  %v15446_v29 = vld [vmem:[#allocation7 + $0xe08] ss:$16 sps:$4 sm:$0xff]  }
 0x615   :  { %11874 = vmatpush1.bf16.msra.mxu1 %v15383_v57  ;;  %v15449_v57 = vld [vmem:[#allocation7 + $0xe28] ss:$16 sps:$4 sm:$0xff]  }
 0x616   :  { %11875 = vmatprep.subr.bf16.mxu1 %v15391_v39  ;;  %v15452_v39 = vld [vmem:[#allocation7 + $0xe48] ss:$16 sps:$4 sm:$0xff]  }
 0x617   :  { %11628 = vmatpush1.bf16.msra.mxu0 %v15380_v60  ;;  %v15454_v60 = vld [vmem:[#allocation7 + $0xe4c] ss:$16 sps:$4 sm:$0xff]  }
 0x618   :  { %11629 = vmatprep.subr.bf16.mxu0 %v15388_v4  ;;  %v15455_v4 = vld [vmem:[#allocation7 + $0xe68] ss:$16 sps:$4 sm:$0xff]  }
 0x619   :  { %11876 = vmatpush1.bf16.msra.mxu1 %v15389_v35  ;;  %v15458_v35 = vld [vmem:[#allocation7 + $0xe88] ss:$16 sps:$4 sm:$0xff]  }
 0x61a   :  { %11877 = vmatprep.subr.bf16.mxu1 %v15397_v7  ;;  %v15466_v7 = vld [vmem:[#allocation7 + $0xecc] ss:$16 sps:$4 sm:$0xff]  }
 0x61b   :  { %11630 = vmatpush1.bf16.msra.mxu0 %v15386_v26  ;;  %v15463_v26 = vld [vmem:[#allocation7 + $0xeac] ss:$16 sps:$4 sm:$0xff]  }
 0x61c   :  { %11631 = vmatprep.subr.bf16.mxu0 %v15394_v59  ;;  %v15502_v59 = vld [vmem:[#allocation8 + $0x24] ss:$8 sps:$4 sm:$0xff]  }
 0x61d   :  { %11878 = vmatpush1.bf16.msra.mxu1 %v15395_v9  ;;  %v15500_v9 = vld [vmem:[#allocation8 + $0x20] ss:$8 sps:$4 sm:$0xff]  }
 0x61e   :  { %11888 = vmatprep.subr.bf16.mxu1 %v15400_v2  ;;  %v15505_v2 = vld [vmem:[#allocation8 + $0x34] ss:$8 sps:$4 sm:$0xff]  }
 0x61f   :  { %11632 = vmatpush1.bf16.msra.mxu0 %v15392_v49  ;;  %v15467_v49 = vld [vmem:[#allocation7 + $0xee8] ss:$16 sps:$4 sm:$0xff]  }
 0x620   :  { %11880 = vmatmul.mubr.bf16.vlgmr.msra.gmra.mrb[20].mxu1 %v16318_v6  ;;  %12520 = vmatprep.subr.bf16.mxu0 %v15496_v54  ;;  %v15407_v6 = vld [vmem:[#allocation7 + $0xc68] ss:$16 sps:$4 sm:$0xff]   ;;  %v15475_v54 = vld [vmem:[#allocation7 + $0xf2c] ss:$16 sps:$4 sm:$0xff]  }
 0x621   :  { %11889 = vmatpush1.bf16.msra.mxu1 %v15398_v62  ;;  %11920 = vmatprep.mubr.bf16.mxu1 %v16321_v14  ;;  %v15413_v14 = vld [vmem:[#allocation7 + $0xca8] ss:$16 sps:$4 sm:$0xff]  }
 0x622   :  { %11634 = vmatmul.mubr.bf16.vlgmr.msra.gmra.mrb[16].mxu0 %v16362_v34  ;;  %11890 = vmatprep.subr.bf16.mxu1 %v15403_v12  ;;  %v15503_v62 = vld [vmem:[#allocation8 + $0x30] ss:$8 sps:$4 sm:$0xff]  }
 0x623   :  { %12521 = vmatpush1.bf16.msra.mxu0 %v15494_v28  ;;  %v15470_v12 = vld [vmem:[#allocation7 + $0xf08] ss:$16 sps:$4 sm:$0xff]   ;;  %v15508_v28 = vld [vmem:[#allocation8 + $0x44] ss:$8 sps:$4 sm:$0xff]  }
 0x624   :  { %12522 = vmatprep.subr.bf16.mxu0 %v15499_v20  ;;  %v15473_v20 = vld [vmem:[#allocation7 + $0xf28] ss:$16 sps:$4 sm:$0xff]  }
 0x625   :  { %11891 = vmatpush1.bf16.msra.mxu1 %v15401_v17  ;;  %v15506_v17 = vld [vmem:[#allocation8 + $0x40] ss:$8 sps:$4 sm:$0xff]  }
 0x626   :  { %11892 = vmatprep.subr.bf16.mxu1 %v15406_v31  ;;  %v15511_v31 = vld [vmem:[#allocation8 + $0x54] ss:$8 sps:$4 sm:$0xff]  }
 0x627   :  { %12523 = vmatpush1.bf16.msra.mxu0 %v15497_v5  ;;  %v15478_v5 = vld [vmem:[#allocation7 + $0xf4c] ss:$16 sps:$4 sm:$0xff]  }
 0x628   :  { %12524 = vmatprep.subr.bf16.mxu0 %v15502_v59 }
 0x629   :  { %11893 = vmatpush1.bf16.msra.mxu1 %v15404_v0  ;;  %v15509_v0 = vld [vmem:[#allocation8 + $0x50] ss:$8 sps:$4 sm:$0xff]  }
 0x62a   :  { %11894 = vmatprep.subr.bf16.mxu1 %v15409_v22  ;;  %v15476_v22 = vld [vmem:[#allocation7 + $0xf48] ss:$16 sps:$4 sm:$0xff]  }
 0x62b   :  { %12525 = vmatpush1.bf16.msra.mxu0 %v15500_v9 }
 0x62c   :  { %12526 = vmatprep.subr.bf16.mxu0 %v15505_v2 }
 0x62d   :  { %11895 = vmatpush1.bf16.msra.mxu1 %v15407_v6  ;;  %v15514_v6 = vld [vmem:[#allocation8 + $0x64] ss:$8 sps:$4 sm:$0xff]  }
 0x62e   :  { %11896 = vmatprep.subr.bf16.mxu1 %v15412_v45  ;;  %v15481_v45 = vld [vmem:[#allocation7 + $0xf6c] ss:$16 sps:$4 sm:$0xff]  }
 0x62f   :  { %12527 = vmatpush1.bf16.msra.mxu0 %v15503_v62 }
 0x630   :  { %12528 = vmatprep.subr.bf16.mxu0 %v15508_v28 }
 0x631   :  { %11897 = vmatpush1.bf16.msra.mxu1 %v15410_v27  ;;  %v15512_v27 = vld [vmem:[#allocation8 + $0x60] ss:$8 sps:$4 sm:$0xff]  }
 0x632   :  { %11898 = vmatprep.subr.bf16.mxu1 %v15415_v51  ;;  %v15479_v51 = vld [vmem:[#allocation7 + $0xf68] ss:$16 sps:$4 sm:$0xff]  }
 0x633   :  { %12529 = vmatpush1.bf16.msra.mxu0 %v15506_v17 }
 0x634   :  { %12530 = vmatprep.subr.bf16.mxu0 %v15511_v31 }
 0x635   :  { %11899 = vmatpush1.bf16.msra.mxu1 %v15413_v14  ;;  %v15517_v14 = vld [vmem:[#allocation8 + $0x74] ss:$8 sps:$4 sm:$0xff]  }
 0x636   :  { %11900 = vmatprep.subr.bf16.mxu1 %v15418_v38  ;;  %v15484_v38 = vld [vmem:[#allocation7 + $0xf8c] ss:$16 sps:$4 sm:$0xff]  }
 0x637   :  { %12531 = vmatpush1.bf16.msra.mxu0 %v15509_v0 }
 0x638   :  { %12532 = vmatprep.subr.bf16.mxu0 %v15514_v6 }
 0x639   :  { %11901 = vmatpush1.bf16.msra.mxu1 %v15416_v30  ;;  %v15515_v30 = vld [vmem:[#allocation8 + $0x70] ss:$8 sps:$4 sm:$0xff]  }
 0x63a   :  { %11902 = vmatprep.subr.bf16.mxu1 %v15421_v13  ;;  %v15482_v13 = vld [vmem:[#allocation7 + $0xf88] ss:$16 sps:$4 sm:$0xff]  }
 0x63b   :  { %12533 = vmatpush1.bf16.msra.mxu0 %v15512_v27 }
 0x63c   :  { %12534 = vmatprep.subr.bf16.mxu0 %v15517_v14 }
 0x63d   :  { %11903 = vmatpush1.bf16.msra.mxu1 %v15419_v58  ;;  %v15520_v58 = vld [vmem:[#allocation8 + $0x84] ss:$8 sps:$4 sm:$0xff]  }
 0x63e   :  { %11904 = vmatprep.subr.bf16.mxu1 %v15424_v50  ;;  %v15487_v50 = vld [vmem:[#allocation7 + $0xfac] ss:$16 sps:$4 sm:$0xff]  }
 0x63f   :  { %12535 = vmatpush1.bf16.msra.mxu0 %v15515_v30 }
 0x640   :  { %12536 = vmatprep.subr.bf16.mxu0 %v15520_v58 }
 0x641   :  { %11905 = vmatpush1.bf16.msra.mxu1 %v15422_v10  ;;  %v15518_v10 = vld [vmem:[#allocation8 + $0x80] ss:$8 sps:$4 sm:$0xff]  }
 0x642   :  { %11906 = vmatprep.subr.bf16.mxu1 %v15427_v16  ;;  %v15485_v16 = vld [vmem:[#allocation7 + $0xfa8] ss:$16 sps:$4 sm:$0xff]  }
 0x643   :  { %12537 = vmatpush1.bf16.msra.mxu0 %v15518_v10 }
 0x645   :  { %11907 = vmatpush1.bf16.msra.mxu1 %v15425_v44  ;;  %v15523_v44 = vld [vmem:[#allocation8 + $0x94] ss:$8 sps:$4 sm:$0xff]  }
 0x646   :  { %11908 = vmatprep.subr.bf16.mxu1 %v15430_v46  ;;  %v15490_v46 = vld [vmem:[#allocation7 + $0xfcc] ss:$16 sps:$4 sm:$0xff]   ;;  %12538 = vmatprep.subr.bf16.mxu0 %v15523_v44 }
 0x649   :  { %11909 = vmatpush1.bf16.msra.mxu1 %v15428_v42  ;;  %v15521_v42 = vld [vmem:[#allocation8 + $0x90] ss:$8 sps:$4 sm:$0xff]  }
 0x64a   :  { %11910 = vmatprep.subr.bf16.mxu1 %v15433_v40  ;;  %12539 = vmatpush1.bf16.msra.mxu0 %v15521_v42  ;;  %v15488_v40 = vld [vmem:[#allocation7 + $0xfc8] ss:$16 sps:$4 sm:$0xff]  }
 0x64d   :  { %11911 = vmatpush1.bf16.msra.mxu1 %v15431_v55  ;;  %v15526_v55 = vld [vmem:[#allocation8 + $0xa4] ss:$8 sps:$4 sm:$0xff]  }
 0x64e   :  { %11912 = vmatprep.subr.bf16.mxu1 %v15436_v56  ;;  %v15493_v56 = vld [vmem:[#allocation7 + $0xfec] ss:$16 sps:$4 sm:$0xff]   ;;  %12540 = vmatprep.subr.bf16.mxu0 %v15526_v55 }
 0x651   :  { %11913 = vmatpush1.bf16.msra.mxu1 %v15434_v25  ;;  %v15524_v25 = vld [vmem:[#allocation8 + $0xa0] ss:$8 sps:$4 sm:$0xff]  }
 0x652   :  { %11914 = vmatprep.subr.bf16.mxu1 %v15439_v52  ;;  %12541 = vmatpush1.bf16.msra.mxu0 %v15524_v25  ;;  %v15491_v52 = vld [vmem:[#allocation7 + $0xfe8] ss:$16 sps:$4 sm:$0xff]  }
 0x655   :  { %11915 = vmatpush1.bf16.msra.mxu1 %v15437_v41  ;;  %v15529_v41 = vld [vmem:[#allocation8 + $0xb4] ss:$8 sps:$4 sm:$0xff]  }
 0x656   :  { %11916 = vmatprep.subr.bf16.mxu1 %v15442_v18  ;;  %v15527_v18 = vld [vmem:[#allocation8 + $0xb0] ss:$8 sps:$4 sm:$0xff]   ;;  %12542 = vmatprep.subr.bf16.mxu0 %v15529_v41 }
 0x657   :  { %12543 = vmatpush1.bf16.msra.mxu0 %v15527_v18 }
 0x659   :  { %11917 = vmatpush1.bf16.msra.mxu1 %v15440_v37  ;;  %v15532_v37 = vld [vmem:[#allocation8 + $0xc4] ss:$8 sps:$4 sm:$0xff]  }
 0x65a   :  { %11918 = vmatprep.subr.bf16.mxu1 %v15445_v33  ;;  %v15530_v33 = vld [vmem:[#allocation8 + $0xc0] ss:$8 sps:$4 sm:$0xff]   ;;  %12544 = vmatprep.subr.bf16.mxu0 %v15532_v37 }
 0x65b   :  { %12545 = vmatpush1.bf16.msra.mxu0 %v15530_v33 }
 0x65d   :  { %11919 = vmatpush1.bf16.msra.mxu1 %v15443_v36  ;;  %v15535_v36 = vld [vmem:[#allocation8 + $0xd4] ss:$8 sps:$4 sm:$0xff]  }
 0x65e   :  { %11929 = vmatprep.subr.bf16.mxu1 %v15448_v1  ;;  %v15533_v1 = vld [vmem:[#allocation8 + $0xd0] ss:$8 sps:$4 sm:$0xff]   ;;  %12546 = vmatprep.subr.bf16.mxu0 %v15535_v36 }
 0x65f   :  { %12547 = vmatpush1.bf16.msra.mxu0 %v15533_v1 }
 0x660   :  { %11921 = vmatmul.mubr.bf16.vlgmr.msra.gmra.mrb[20].mxu1 %v16347_v61  ;;  %v15461_v61 = vld [vmem:[#allocation7 + $0xea8] ss:$16 sps:$4 sm:$0xff]  }
 0x661   :  { %11930 = vmatpush1.bf16.msra.mxu1 %v15446_v29  ;;  %11961 = vmatprep.mubr.bf16.mxu1 %v16350_v23  ;;  %v15464_v23 = vld [vmem:[#allocation7 + $0xec8] ss:$16 sps:$4 sm:$0xff]  }
 0x662   :  { %11931 = vmatprep.subr.bf16.mxu1 %v15451_v47  ;;  %v15536_v29 = vld [vmem:[#allocation8 + $0xe0] ss:$8 sps:$4 sm:$0xff]   ;;  %v15538_v47 = vld [vmem:[#allocation8 + $0xe4] ss:$8 sps:$4 sm:$0xff]  }
 0x663   :  { %12548 = vmatprep.subr.bf16.mxu0 %v15538_v47 }
 0x664   :  { %12549 = vmatpush1.bf16.msra.mxu0 %v15536_v29 }
 0x665   :  { %11932 = vmatpush1.bf16.msra.mxu1 %v15449_v57  ;;  %v15541_v57 = vld [vmem:[#allocation8 + $0xf4] ss:$8 sps:$4 sm:$0xff]  }
 0x666   :  { %11933 = vmatprep.subr.bf16.mxu1 %v15454_v60  ;;  %v15539_v60 = vld [vmem:[#allocation8 + $0xf0] ss:$8 sps:$4 sm:$0xff]   ;;  %12550 = vmatprep.subr.bf16.mxu0 %v15541_v57 }
 0x668   :  { %12551 = vmatpush1.bf16.msra.mxu0 %v15539_v60 }
 0x669   :  { %11934 = vmatpush1.bf16.msra.mxu1 %v15452_v39  ;;  %v15544_v39 = vld [vmem:[#allocation8 + $0x104] ss:$8 sps:$4 sm:$0xff]  }
 0x66a   :  { %11935 = vmatprep.subr.bf16.mxu1 %v15457_v32  ;;  %12561 = vmatprep.subr.bf16.mxu0 %v15544_v39 }
 0x66d   :  { %11936 = vmatpush1.bf16.msra.mxu1 %v15455_v4 }
 0x66e   :  { %11937 = vmatprep.subr.bf16.mxu1 %v15460_v8 }
 0x671   :  { %11938 = vmatpush1.bf16.msra.mxu1 %v15458_v35 }
 0x672   :  { %11939 = vmatprep.subr.bf16.mxu1 %v15463_v26 }
 0x675   :  { %11940 = vmatpush1.bf16.msra.mxu1 %v15461_v61 }
 0x676   :  { %11941 = vmatprep.subr.bf16.mxu1 %v15466_v7 }
 0x679   :  { %11942 = vmatpush1.bf16.msra.mxu1 %v15464_v23 }
 0x67a   :  { %11943 = vmatprep.subr.bf16.mxu1 %v15469_v53 }
 0x67d   :  { %11944 = vmatpush1.bf16.msra.mxu1 %v15467_v49 }
 0x67e   :  { %11945 = vmatprep.subr.bf16.mxu1 %v15472_v11 }
 0x681   :  { %11946 = vmatpush1.bf16.msra.mxu1 %v15470_v12 }
 0x682   :  { %11947 = vmatprep.subr.bf16.mxu1 %v15475_v54 }
 0x685   :  { %11948 = vmatpush1.bf16.msra.mxu1 %v15473_v20 }
 0x686   :  { %11949 = vmatprep.subr.bf16.mxu1 %v15478_v5 }
 0x689   :  { %11950 = vmatpush1.bf16.msra.mxu1 %v15476_v22 }
 0x68a   :  { %11951 = vmatprep.subr.bf16.mxu1 %v15481_v45 }
 0x68d   :  { %11952 = vmatpush1.bf16.msra.mxu1 %v15479_v51 }
 0x68e   :  { %11953 = vmatprep.subr.bf16.mxu1 %v15484_v38 }
 0x691   :  { %11954 = vmatpush1.bf16.msra.mxu1 %v15482_v13 }
 0x692   :  { %11955 = vmatprep.subr.bf16.mxu1 %v15487_v50 }
 0x695   :  { %11956 = vmatpush1.bf16.msra.mxu1 %v15485_v16 }
 0x696   :  { %11957 = vmatprep.subr.bf16.mxu1 %v15490_v46  ;;  %v16370_v46 = vld [vmem:[#allocation10 + $0x20] sm:$0xff] }
 0x697   :  { %v12051_v42 = vrot.slane %v16370_v46, %v16054_v48  ;;  %v12091_v55 = vrot.slane %v16370_v46, %v16061_v3 }
 0x699   :  { %11958 = vmatpush1.bf16.msra.mxu1 %v15488_v40  ;;  %v12055_v40 = vrot.slane %v16370_v46, %v16044_v24  ;;  %v12071_v25 = vrot.slane %v12051_v42, %v16054_v48  ;;  %v12111_v33 = vrot.slane %v12091_v55, %v16061_v3 }
 0x69a   :  { %11959 = vmatprep.subr.bf16.mxu1 %v15493_v56  ;;  %v12095_v56 = vrot.slane %v16370_v46, %v16051_v19 }
 0x69b   :  { %v12075_v41 = vrot.slane %v12055_v40, %v16054_v48 }
 0x69c   :  { %v12115_v1 = vrot.slane %v12095_v56, %v16061_v3 }
 0x69d   :  { %11960 = vmatpush1.bf16.msra.mxu1 %v15491_v52 }
 0x6a0   :  { %11962 = vmatmul.mubr.bf16.vlgmr.msra.gmra.mrb[20].mxu1 %v16362_v34 }
 0x6f5   :  { %v11635_v32 = vpop.f32.mrb[16].mxu0 }
 0x6f6   :  { %v11971_v4 = vrot.slane %v11635_v32, 4  ;;  %v11637_v8 = vpop.f32.mrb[17].mxu0 }
 0x6f7   :  { %v11977_v35 = vrot.slane %v11637_v8, 4  ;;  %v11639_v34 = vpop.f32.mrb[18].mxu0 }
 0x6f8   :  { %v11972_v26 = vadd.f32 %v11971_v4, %v11635_v32  ;;  %v11640_v61 = vpop.f32.mrb[19].mxu0  ;;  %v15547_v34 = vld [vmem:[#allocation8 + $0x114] ss:$8 sps:$4 sm:$0xff]  }
 0x6f9   :  { %v11978_v7 = vadd.f32 %v11977_v35, %v11637_v8  ;;  %v15550_v61 = vld [vmem:[#allocation8 + $0x124] ss:$8 sps:$4 sm:$0xff]  }
 0x6fa   :  { %v11973_v23 = vrot.slane %v11972_v26, 2 }
 0x6fb   :  { %v11979_v59 = vrot.slane %v11978_v7, 2 }
 0x6fc   :  { %v11974_v53 = vadd.f32 %v11973_v23, %v11972_v26  ;;  %v15545_v26 = vld [vmem:[#allocation8 + $0x110] ss:$8 sps:$4 sm:$0xff]   ;;  %v15553_v23 = vld [vmem:[#allocation8 + $0x134] ss:$8 sps:$4 sm:$0xff]  }
 0x6fd   :  { %v11980_v9 = vadd.f32 %v11979_v59, %v11978_v7  ;;  %v15548_v7 = vld [vmem:[#allocation8 + $0x120] ss:$8 sps:$4 sm:$0xff]   ;;  %v15551_v59 = vld [vmem:[#allocation8 + $0x130] ss:$8 sps:$4 sm:$0xff]  }
 0x6fe   :  { %v11975_v49 = vrot.slane %v11974_v53, 1 }
 0x6ff   :  { %v11981_v2 = vrot.slane %v11980_v9, 1 }
 0x700   :  { %v11976_v11 = vadd.f32 %v11975_v49, %v11974_v53  ;;  %v15556_v53 = vld [vmem:[#allocation8 + $0x144] ss:$8 sps:$4 sm:$0xff]   ;;  %v15559_v49 = vld [vmem:[#allocation8 + $0x154] ss:$8 sps:$4 sm:$0xff]  }
 0x701   :  { %v11982_v62 = vadd.f32 %v11981_v2, %v11980_v9  ;;  %v15554_v9 = vld [vmem:[#allocation8 + $0x140] ss:$8 sps:$4 sm:$0xff]   ;;  %v15557_v2 = vld [vmem:[#allocation8 + $0x150] ss:$8 sps:$4 sm:$0xff]  }
 0x702   :  { %v11995_v12 = vmul.f32 0.125, %v11976_v11  ;;  %v15562_v11 = vld [vmem:[#allocation8 + $0x164] ss:$8 sps:$4 sm:$0xff]  }
 0x703   :  { %v11996_v28 = vmul.f32 0.125, %v11982_v62  ;;  %v15560_v62 = vld [vmem:[#allocation8 + $0x160] ss:$8 sps:$4 sm:$0xff]  }
 0x704   :  { %v11999_v54 = vsub.f32 %v11635_v32, %v11995_v12  ;;  %v15565_v12 = vld [vmem:[#allocation8 + $0x174] ss:$8 sps:$4 sm:$0xff]  }
 0x705   :  { %v12000_v17 = vsub.f32 %v11637_v8, %v11996_v28  ;;  %v15542_v8 = vld [vmem:[#allocation8 + $0x100] ss:$8 sps:$4 sm:$0xff]   ;;  %v15563_v28 = vld [vmem:[#allocation8 + $0x170] ss:$8 sps:$4 sm:$0xff]  }
 0x706   :  { %v12003_v20 = vmul.f32 %v11999_v54, %v11999_v54 }
 0x707   :  { %v12004_v31 = vmul.f32 %v12000_v17, %v12000_v17 }
 0x708   :  { %v12007_v5 = vrot.slane %v12003_v20, 4 }
 0x709   :  { %v12013_v0 = vrot.slane %v12004_v31, 4 }
 0x70a   :  { %v12008_v22 = vadd.f32 %v12007_v5, %v12003_v20  ;;  %v15571_v20 = vld [vmem:[#allocation8 + $0x194] ss:$8 sps:$4 sm:$0xff]   ;;  %v15574_v5 = vld [vmem:[#allocation8 + $0x1a4] ss:$8 sps:$4 sm:$0xff]  }
 0x70b   :  { %v12014_v6 = vadd.f32 %v12013_v0, %v12004_v31  ;;  %v15569_v31 = vld [vmem:[#allocation8 + $0x190] ss:$8 sps:$4 sm:$0xff]   ;;  %v15572_v0 = vld [vmem:[#allocation8 + $0x1a0] ss:$8 sps:$4 sm:$0xff]  }
 0x70c   :  { %v12009_v45 = vrot.slane %v12008_v22, 2 }
 0x70d   :  { %v12015_v27 = vrot.slane %v12014_v6, 2 }
 0x70e   :  { %v12010_v51 = vadd.f32 %v12009_v45, %v12008_v22  ;;  %v15577_v22 = vld [vmem:[#allocation8 + $0x1b4] ss:$8 sps:$4 sm:$0xff]   ;;  %v15580_v45 = vld [vmem:[#allocation8 + $0x1c4] ss:$8 sps:$4 sm:$0xff]  }
 0x70f   :  { %v12016_v14 = vadd.f32 %v12015_v27, %v12014_v6  ;;  %v15575_v6 = vld [vmem:[#allocation8 + $0x1b0] ss:$8 sps:$4 sm:$0xff]   ;;  %v15578_v27 = vld [vmem:[#allocation8 + $0x1c0] ss:$8 sps:$4 sm:$0xff]  }
 0x710   :  { %v12011_v38 = vrot.slane %v12010_v51, 1 }
 0x711   :  { %v12017_v30 = vrot.slane %v12016_v14, 1 }
 0x712   :  { %v12012_v13 = vadd.f32 %v12011_v38, %v12010_v51  ;;  %v15583_v51 = vld [vmem:[#allocation8 + $0x1d4] ss:$8 sps:$4 sm:$0xff]   ;;  %v15586_v38 = vld [vmem:[#allocation8 + $0x1e4] ss:$8 sps:$4 sm:$0xff]  }
 0x713   :  { %v12018_v58 = vadd.f32 %v12017_v30, %v12016_v14  ;;  %v15581_v14 = vld [vmem:[#allocation8 + $0x1d0] ss:$8 sps:$4 sm:$0xff]   ;;  %v15584_v30 = vld [vmem:[#allocation8 + $0x1e0] ss:$8 sps:$4 sm:$0xff]  }
 0x714   :  { %v12031_v50 = vmul.f32 0.125, %v12012_v13  ;;  %v15589_v13 = vld [vmem:[#allocation8 + $0x1f4] ss:$8 sps:$4 sm:$0xff]  }
 0x715   :  { %v12032_v10 = vmul.f32 0.125, %v12018_v58  ;;  %v15587_v58 = vld [vmem:[#allocation8 + $0x1f0] ss:$8 sps:$4 sm:$0xff]  }
 0x716   :  { %v12035_v16 = vadd.f32 1e-05, %v12031_v50 }
 0x717   :  { %v12036_v44 = vadd.f32 1e-05, %v12032_v10 }
 0x718   :  { %15638 = vrsqrt.f32 %v12035_v16 }
 0x719   :  { %15640 = vrsqrt.f32 %v12036_v44 }
 0x722   :  { %v15639_v52 = vpop.eup %15638 }
 0x723   :  { %v15641_v18 = vpop.eup %15640  ;;  %v12043_v37 = vmul.f32 %v15639_v52, %v11999_v54  ;;  %v15568_v54 = vld [vmem:[#allocation8 + $0x184] ss:$8 sps:$4 sm:$0xff]  }
 0x724   :  { %v12044_v36 = vmul.f32 %v15641_v18, %v12000_v17  ;;  %v15566_v17 = vld [vmem:[#allocation8 + $0x180] ss:$8 sps:$4 sm:$0xff]  }
 0x725   :  { %v12084_v29 = vmul.f32 %v12071_v25, %v12043_v37 }
 0x726   :  { %v12085_v47 = vmul.f32 %v12075_v41, %v12044_v36 }
 0x727   :  { %v12124_v57 = vadd.f32 %v12111_v33, %v12084_v29 }
 0x728   :  { %v12125_v60 = vadd.f32 %v12115_v1, %v12085_v47 }
 0x729   :  { %v12128_v39 = vmax.f32 %v12124_v57, 0.0 }
 0x72a   :  { %v12129_v32 = vmax.f32 %v12125_v60, 0.0 }
 0x72b   :  { %v12132_v35 = vpack.c.bf16 %v12128_v39, %v12128_v39 }
 0x72c   :  { %v12133_v4 = vpack.c.bf16 %v12129_v32, %v12129_v32 }
 0x72e   :  { %12552 = vmatprep.mubr.bf16.mxu0 %v12133_v4 }
 0x72f   :  { %12553 = vmatmul.mubr.bf16.vlgmr.msra.gmra.mrb[20].mxu0 %v12132_v35 }
 0x730   :  { %12562 = vmatpush1.bf16.msra.mxu0 %v15542_v8 }
 0x731   :  { %12563 = vmatprep.subr.bf16.mxu0 %v15547_v34 }
 0x734   :  { %12564 = vmatpush1.bf16.msra.mxu0 %v15545_v26 }
 0x735   :  { %12565 = vmatprep.subr.bf16.mxu0 %v15550_v61 }
 0x738   :  { %12566 = vmatpush1.bf16.msra.mxu0 %v15548_v7 }
 0x739   :  { %12567 = vmatprep.subr.bf16.mxu0 %v15553_v23 }
 0x73c   :  { %12568 = vmatpush1.bf16.msra.mxu0 %v15551_v59 }
 0x73d   :  { %12569 = vmatprep.subr.bf16.mxu0 %v15556_v53 }
 0x740   :  { %12570 = vmatpush1.bf16.msra.mxu0 %v15554_v9 }
 0x741   :  { %12571 = vmatprep.subr.bf16.mxu0 %v15559_v49 }
 0x744   :  { %12572 = vmatpush1.bf16.msra.mxu0 %v15557_v2 }
 0x745   :  { %12573 = vmatprep.subr.bf16.mxu0 %v15562_v11 }
 0x748   :  { %12574 = vmatpush1.bf16.msra.mxu0 %v15560_v62 }
 0x749   :  { %12575 = vmatprep.subr.bf16.mxu0 %v15565_v12 }
 0x74c   :  { %12576 = vmatpush1.bf16.msra.mxu0 %v15563_v28  ;;  %v12059_v28 = vrot.slane %v16370_v46, %v16131_v21 }
 0x74d   :  { %12577 = vmatprep.subr.bf16.mxu0 %v15568_v54  ;;  %v12063_v54 = vrot.slane %v16370_v46, %v16085_v43 }
 0x750   :  { %12578 = vmatpush1.bf16.msra.mxu0 %v15566_v17  ;;  %v12099_v17 = vrot.slane %v16370_v46, %v16138_v15 }
 0x751   :  { %12579 = vmatprep.subr.bf16.mxu0 %v15571_v20  ;;  %v12103_v20 = vrot.slane %v16370_v46, %v16092_v63  ;;  %v15590_v46 = vld [vmem:[%s16473_s4 + $0x40] sm:$0xff]  }
 0x752   :  { %14530 = vmatprep.subr.bf16.mxu1 %v15590_v46 }
 0x753   :  { %v12123_v21 = vrot.slane %v12103_v20, %v16061_v3 }
 0x754   :  { %12580 = vmatpush1.bf16.msra.mxu0 %v15569_v31  ;;  %v12079_v31 = vrot.slane %v12059_v28, %v16054_v48 }
 0x755   :  { %12581 = vmatprep.subr.bf16.mxu0 %v15574_v5 }
 0x758   :  { %12582 = vmatpush1.bf16.msra.mxu0 %v15572_v0  ;;  %v12083_v0 = vrot.slane %v12063_v54, %v16054_v48 }
 0x759   :  { %12583 = vmatprep.subr.bf16.mxu0 %v15577_v22 }
 0x75c   :  { %12584 = vmatpush1.bf16.msra.mxu0 %v15575_v6 }
 0x75d   :  { %12585 = vmatprep.subr.bf16.mxu0 %v15580_v45  ;;  %v12119_v45 = vrot.slane %v12099_v17, %v16061_v3 }
 0x760   :  { %12586 = vmatpush1.bf16.msra.mxu0 %v15578_v27 }
 0x761   :  { %12587 = vmatprep.subr.bf16.mxu0 %v15583_v51 }
 0x764   :  { %12588 = vmatpush1.bf16.msra.mxu0 %v15581_v14 }
 0x765   :  { %12589 = vmatprep.subr.bf16.mxu0 %v15586_v38 }
 0x768   :  { %12590 = vmatpush1.bf16.msra.mxu0 %v15584_v30 }
 0x769   :  { %12591 = vmatprep.subr.bf16.mxu0 %v15589_v13 }
 0x76c   :  { %12592 = vmatpush1.bf16.msra.mxu0 %v15587_v58  ;;  %v15591_v58 = vld [vmem:[%s16473_s4] sm:$0xff]  }
 0x76d   :  { %14531 = vmatpush3.bf16.msra.mxu1 %v15591_v58 }
 0x773   :  { %v11963_v50 = vpop.f32.mrb[20].mxu1 }
 0x774   :  { %v11983_v10 = vrot.slane %v11963_v50, 4  ;;  %v11965_v16 = vpop.f32.mrb[21].mxu1 }
 0x775   :  { %v11989_v44 = vrot.slane %v11965_v16, 4  ;;  %v11967_v42 = vpop.f32.mrb[22].mxu1 }
 0x776   :  { %v11984_v40 = vadd.f32 %v11983_v10, %v11963_v50  ;;  %v11968_v55 = vpop.f32.mrb[23].mxu1  ;;  %v15593_v10 = vld [vmem:[%s16473_s4 + $0x8] sm:$0xff]   ;;  %v15596_v42 = vld [vmem:[%s16473_s4 + $0x58] sm:$0xff]  }
 0x777   :  { %v11990_v56 = vadd.f32 %v11989_v44, %v11965_v16  ;;  %v15595_v44 = vld [vmem:[%s16473_s4 + $0x10] sm:$0xff]   ;;  %v15598_v55 = vld [vmem:[%s16473_s4 + $0x60] sm:$0xff]  }
 0x778   :  { %v11985_v25 = vrot.slane %v11984_v40, 2 }
 0x779   :  { %v11991_v52 = vrot.slane %v11990_v56, 2 }
 0x77a   :  { %v11986_v41 = vadd.f32 %v11985_v25, %v11984_v40  ;;  %v15597_v40 = vld [vmem:[%s16473_s4 + $0x18] sm:$0xff]   ;;  %v15600_v25 = vld [vmem:[%s16473_s4 + $0x68] sm:$0xff]  }
 0x77b   :  { %v11992_v18 = vadd.f32 %v11991_v52, %v11990_v56  ;;  %v15599_v56 = vld [vmem:[%s16473_s4 + $0x20] sm:$0xff]   ;;  %v15601_v52 = vld [vmem:[%s16473_s4 + $0x28] sm:$0xff]  }
 0x77c   :  { %v11987_v37 = vrot.slane %v11986_v41, 1 }
 0x77d   :  { %v11993_v33 = vrot.slane %v11992_v18, 1 }
 0x77e   :  { %v11988_v36 = vadd.f32 %v11987_v37, %v11986_v41  ;;  %v15602_v41 = vld [vmem:[%s16473_s4 + $0x70] sm:$0xff]   ;;  %v15604_v37 = vld [vmem:[%s16473_s4 + $0x78] sm:$0xff]  }
 0x77f   :  { %v11994_v1 = vadd.f32 %v11993_v33, %v11992_v18  ;;  %v15603_v18 = vld [vmem:[%s16473_s4 + $0x30] sm:$0xff]   ;;  %v15605_v33 = vld [vmem:[%s16473_s4 + $0x38] sm:$0xff]  }
 0x780   :  { %v11997_v29 = vmul.f32 0.125, %v11988_v36 }
 0x781   :  { %v11998_v47 = vmul.f32 0.125, %v11994_v1 }
 0x782   :  { %v12001_v57 = vsub.f32 %v11963_v50, %v11997_v29  ;;  %v15592_v50 = vld [vmem:[%s16473_s4 + $0x48] sm:$0xff]  }
 0x783   :  { %v12002_v60 = vsub.f32 %v11965_v16, %v11998_v47  ;;  %14532 = vmatprep.subr.bf16.mxu1 %v15592_v50  ;;  %v15594_v16 = vld [vmem:[%s16473_s4 + $0x50] sm:$0xff]   ;;  %s15803_s4 = smov [#allocation11]  }
 0x784   :  { %v12005_v39 = vmul.f32 %v12001_v57, %v12001_v57  ;;  %14533 = vmatpush3.bf16.msra.mxu1 %v15593_v10  ;;  %s12895_s11 = sshll.u32 %s15803_s4, 4  ;;  %s12896_s11 = int_to_ptr.vmem [resolvable:$true] %s12895_s11 }
 0x785   :  { %v12006_v32 = vmul.f32 %v12002_v60, %v12002_v60  ;;  %14534 = vmatprep.subr.bf16.mxu1 %v15594_v16  ;;  %s15762_s12 = scalar_lea.vmem %s12896_s11, 128  ;;  %p15767_p13 = scmp.lt.s32.totalorder %s12896_s11, %s12896_s11 }
 0x786   :  { %v12019_v4 = vrot.slane %v12005_v39, 4  ;;  %p15763_p12 = scmp.ne.s32.totalorder %s12896_s11, %s15762_s12  ;;  %p15768_p0 = scmp.lt.s32.totalorder %s15762_s12, %s15762_s12 }
 0x787   :  { %v12025_v8 = vrot.slane %v12006_v32, 4 }
 0x788   :  { %v12020_v35 = vadd.f32 %v12019_v4, %v12005_v39  ;;  %14535 = vmatpush3.bf16.msra.mxu1 %v15595_v44  ;;  %p15769_p1 = por %p15768_p0, %p15767_p13 }
 0x789   :  { %v12026_v34 = vadd.f32 %v12025_v8, %v12006_v32  ;;  %14536 = vmatprep.subr.bf16.mxu1 %v15596_v42 }
 0x78a   :  { %v12021_v26 = vrot.slane %v12020_v35, 2  ;;  %p15770_p2 = pnand %p15769_p1, %p15763_p12 }
 0x78b   :  { %v12027_v61 = vrot.slane %v12026_v34, 2 }
 0x78c   :  { %v12022_v7 = vadd.f32 %v12021_v26, %v12020_v35  ;;  %14537 = vmatpush3.bf16.msra.mxu1 %v15597_v40 }
 0x78d   :  { %v12028_v23 = vadd.f32 %v12027_v61, %v12026_v34  ;;  %14538 = vmatprep.subr.bf16.mxu1 %v15598_v55 }
 0x78e   :  { %v12023_v59 = vrot.slane %v12022_v7, 1 }
 0x78f   :  { %v12029_v53 = vrot.slane %v12028_v23, 1 }
 0x790   :  { %v12024_v9 = vadd.f32 %v12023_v59, %v12022_v7  ;;  %14539 = vmatpush3.bf16.msra.mxu1 %v15599_v56 }
 0x791   :  { %v12030_v49 = vadd.f32 %v12029_v53, %v12028_v23  ;;  %14540 = vmatprep.subr.bf16.mxu1 %v15600_v25 }
 0x792   :  { %v12033_v2 = vmul.f32 0.125, %v12024_v9 }
 0x793   :  { %v12034_v11 = vmul.f32 0.125, %v12030_v49 }
 0x794   :  { %v12037_v62 = vadd.f32 1e-05, %v12033_v2  ;;  %14541 = vmatpush3.bf16.msra.mxu1 %v15601_v52 }
 0x795   :  { %v12038_v12 = vadd.f32 1e-05, %v12034_v11  ;;  %14542 = vmatprep.subr.bf16.mxu1 %v15602_v41 }
 0x796   :  { %15642 = vrsqrt.f32 %v12037_v62 }
 0x797   :  { %15644 = vrsqrt.f32 %v12038_v12 }
 0x798   :  { %14543 = vmatpush3.bf16.msra.mxu1 %v15603_v18 }
 0x799   :  { %14544 = vmatprep.subr.bf16.mxu1 %v15604_v37 }
 0x79c   :  { %14545 = vmatpush3.bf16.msra.mxu1 %v15605_v33 }
 0x7a0   :  { %v15643_v5 = vpop.eup %15642 }
 0x7a1   :  { %v15645_v22 = vpop.eup %15644  ;;  %v12045_v6 = vmul.f32 %v15643_v5, %v12001_v57 }
 0x7a2   :  { %v12046_v27 = vmul.f32 %v15645_v22, %v12002_v60 }
 0x7a3   :  { %v12086_v51 = vmul.f32 %v12079_v31, %v12045_v6 }
 0x7a4   :  { %v12087_v43 = vmul.f32 %v12083_v0, %v12046_v27 }
 0x7a5   :  { %v12126_v14 = vadd.f32 %v12119_v45, %v12086_v51 }
 0x7a6   :  { %v12127_v38 = vadd.f32 %v12123_v21, %v12087_v43 }
 0x7a7   :  { %v12130_v15 = vmax.f32 %v12126_v14, 0.0  ;;  %v12602_v14 = vld [vmem:[#allocation10 + $0x28] sm:$0xf] }
 0x7a8   :  { %v12131_v30 = vmax.f32 %v12127_v38, 0.0  ;;  %v12645_v38 = vrot.slane %v12602_v14, %v16054_v48 }
 0x7a9   :  { %v12134_v63 = vpack.c.bf16 %v12130_v15, %v12130_v15  ;;  %v12649_v15 = vrot.slane %v12602_v14, %v16044_v24 }
 0x7aa   :  { %v12135_v13 = vpack.c.bf16 %v12131_v30, %v12131_v30  ;;  %v12665_v30 = vrot.slane %v12602_v14, %v16061_v3 }
 0x7ab   :  { %v12659_v58 = vrot.slane %v12649_v15, %v16054_v48 }
 0x7ac   :  { %12593 = vmatprep.mubr.bf16.mxu0 %v12135_v13  ;;  %v12669_v13 = vrot.slane %v12602_v14, %v16051_v19  ;;  %v12675_v16 = vrot.slane %v12665_v30, %v16061_v3 }
 0x7ad   :  { %12594 = vmatmul.mubr.bf16.vlgmr.msra.gmra.mrb[20].mxu0 %v12134_v63  ;;  %v12655_v63 = vrot.slane %v12645_v38, %v16054_v48 }
 0x7ae   :  { %v12679_v42 = vrot.slane %v12669_v13, %v16061_v3 }
 0x880   :  { %v12595_v36 = vpop.f32.mrb[20].mxu0 }
 0x881   :  { %v12603_v1 = vrot.slane %v12595_v36, 4  ;;  %v12597_v29 = vpop.f32.mrb[21].mxu0 }
 0x882   :  { %v12609_v47 = vrot.slane %v12597_v29, 4  ;;  %v12599_v57 = vpop.f32.mrb[22].mxu0 }
 0x883   :  { %v12604_v60 = vadd.f32 %v12603_v1, %v12595_v36  ;;  %v12600_v39 = vpop.f32.mrb[23].mxu0 }
 0x884   :  { %v12610_v32 = vadd.f32 %v12609_v47, %v12597_v29 }
 0x885   :  { %v12605_v4 = vrot.slane %v12604_v60, 2 }
 0x886   :  { %v12611_v8 = vrot.slane %v12610_v32, 2 }
 0x887   :  { %v12606_v35 = vadd.f32 %v12605_v4, %v12604_v60 }
 0x888   :  { %v12612_v34 = vadd.f32 %v12611_v8, %v12610_v32 }
 0x889   :  { %v12607_v26 = vrot.slane %v12606_v35, 1 }
 0x88a   :  { %v12613_v61 = vrot.slane %v12612_v34, 1 }
 0x88b   :  { %v12608_v7 = vadd.f32 %v12607_v26, %v12606_v35 }
 0x88c   :  { %v12614_v23 = vadd.f32 %v12613_v61, %v12612_v34 }
 0x88d   :  { %v12615_v59 = vmul.f32 0.125, %v12608_v7 }
 0x88e   :  { %v12616_v53 = vmul.f32 0.125, %v12614_v23 }
 0x88f   :  { %v12617_v9 = vsub.f32 %v12595_v36, %v12615_v59 }
 0x890   :  { %v12618_v49 = vsub.f32 %v12597_v29, %v12616_v53 }
 0x891   :  { %v12619_v2 = vmul.f32 %v12617_v9, %v12617_v9 }
 0x892   :  { %v12620_v11 = vmul.f32 %v12618_v49, %v12618_v49 }
 0x893   :  { %v12621_v62 = vrot.slane %v12619_v2, 4 }
 0x894   :  { %v12627_v12 = vrot.slane %v12620_v11, 4 }
 0x895   :  { %v12622_v28 = vadd.f32 %v12621_v62, %v12619_v2 }
 0x896   :  { %v12628_v54 = vadd.f32 %v12627_v12, %v12620_v11  ;;  %v12854_v11 = vld [vmem:[#allocation10 + $0x2c] sm:$0x3] }
 0x897   :  { %v12623_v17 = vrot.slane %v12622_v28, 2  ;;  %v12880_v62 = vrot.slane %v12854_v11, %v16054_v48 }
 0x898   :  { %v12629_v20 = vrot.slane %v12628_v54, 2 }
 0x899   :  { %v12624_v31 = vadd.f32 %v12623_v17, %v12622_v28 }
 0x89a   :  { %v12630_v5 = vadd.f32 %v12629_v20, %v12628_v54  ;;  %v12885_v54 = vrot.slane %v12854_v11, %v16061_v3 }
 0x89b   :  { %v12625_v0 = vrot.slane %v12624_v31, 1 }
 0x89c   :  { %v12631_v22 = vrot.slane %v12630_v5, 1 }
 0x89d   :  { %v12626_v6 = vadd.f32 %v12625_v0, %v12624_v31 }
 0x89e   :  { %v12632_v45 = vadd.f32 %v12631_v22, %v12630_v5 }
 0x89f   :  { %v12633_v27 = vmul.f32 0.125, %v12626_v6 }
 0x8a0   :  { %v12634_v21 = vmul.f32 0.125, %v12632_v45 }
 0x8a1   :  { %v12635_v51 = vadd.f32 1e-05, %v12633_v27 }
 0x8a2   :  { %v12636_v43 = vadd.f32 1e-05, %v12634_v21 }
 0x8a3   :  { %15646 = vrsqrt.f32 %v12635_v51 }
 0x8a4   :  { %15648 = vrsqrt.f32 %v12636_v43 }
 0x8ad   :  { %v15647_v46 = vpop.eup %15646 }
 0x8ae   :  { %v15649_v50 = vpop.eup %15648  ;;  %v12639_v10 = vmul.f32 %v15647_v46, %v12617_v9 }
 0x8af   :  { %v12640_v44 = vmul.f32 %v15649_v50, %v12618_v49 }
 0x8b0   :  { %v12660_v40 = vmul.f32 %v12655_v63, %v12639_v10 }
 0x8b1   :  { %v12661_v55 = vmul.f32 %v12659_v58, %v12640_v44 }
 0x8b2   :  { %v12680_v56 = vadd.f32 %v12675_v16, %v12660_v40 }
 0x8b3   :  { %v12681_v24 = vadd.f32 %v12679_v42, %v12661_v55 }
 0x8b4   :  { %v12682_v25 = vmax.f32 %v12680_v56, 0.0 }
 0x8b5   :  { %v12683_v52 = vmax.f32 %v12681_v24, 0.0 }
 0x8b6   :  { %v12684_v19 = vpack.c.bf16 %v12682_v25, %v12682_v25 }
 0x8b7   :  { %v12685_v41 = vpack.c.bf16 %v12683_v52, %v12683_v52 }
 0x8b9   :  { %12846 = vmatprep.mubr.bf16.mxu1 %v12685_v41 }
 0x8ba   :  { %12847 = vmatmul.mubr.bf16.vlgmr.msra.gmra.mrb[24].mxu1 %v12684_v19 }
 0x98d   :  { %v14546_v18 = vpop.f32.mrb[24].mxu1 }
 0x98e   :  { %v14547_v37 = vpop.f32.mrb[25].mxu1 }
 0x98f   :  { %v14548_v33 = vadd.f32 %v14547_v37, %v14546_v18  ;;  %v14549_v36 = vpop.f32.mrb[26].mxu1 }
 0x990   :  { %v14550_v1 = vpop.f32.mrb[27].mxu1 }
 0x991   :  { %v12856_v29 = vsel %vm12855_vm0, %v14548_v33, 0.0 }
 0x992   :  { %v12857_v47 = vrot.slane %v12856_v29, 4 }
 0x994   :  { %v12858_v57 = vadd.f32 %v12857_v47, %v12856_v29 }
 0x996   :  { %v12859_v60 = vrot.slane %v12858_v57, 2 }
 0x998   :  { %v12860_v39 = vadd.f32 %v12859_v60, %v12858_v57 }
 0x99a   :  { %v12861_v32 = vrot.slane %v12860_v39, 1 }
 0x99c   :  { %v12862_v4 = vadd.f32 %v12861_v32, %v12860_v39 }
 0x99e   :  { %v12863_v8 = vmul.f32 0.125, %v12862_v4 }
 0x9a0   :  { %v12864_v35 = vsub.f32 %v14548_v33, %v12863_v8 }
 0x9a2   :  { %v12865_v34 = vmul.f32 %v12864_v35, %v12864_v35 }
 0x9a4   :  { %v12866_v26 = vsel %vm12855_vm0, %v12865_v34, 0.0 }
 0x9a5   :  { %v12867_v61 = vrot.slane %v12866_v26, 4 }
 0x9a7   :  { %v12868_v7 = vadd.f32 %v12867_v61, %v12866_v26 }
 0x9a9   :  { %v12869_v23 = vrot.slane %v12868_v7, 2 }
 0x9ab   :  { %v12870_v59 = vadd.f32 %v12869_v23, %v12868_v7 }
 0x9ad   :  { %v12871_v53 = vrot.slane %v12870_v59, 1 }
 0x9af   :  { %v12872_v9 = vadd.f32 %v12871_v53, %v12870_v59 }
 0x9b1   :  { %v12873_v49 = vmul.f32 0.125, %v12872_v9 }
 0x9b3   :  { %v12874_v2 = vadd.f32 1e-05, %v12873_v49 }
 0x9b5   :  { %15650 = vrsqrt.f32 %v12874_v2 }
 0x9bf   :  { %v15651_v12 = vpop.eup %15650 }
 0x9c0   :  { %v12876_v28 = vmul.f32 %v15651_v12, %v12864_v35 }
 0x9c2   :  { %v12881_v17 = vmul.f32 %v12880_v62, %v12876_v28 }
 0x9c4   :  { %v12886_v20 = vadd.f32 %v12885_v54, %v12881_v17 }
 0x9c6   :  { %v12887_v31 = vmax.f32 %v12886_v20, 0.0 }
 0x9c8   :  { %12888 = vst.msk [vmem:[#allocation11] sm:$0xff] %vm12855_vm0, %v12887_v31 }
 0x9c9   :  { %15773 = shalt.err (!%p15770_p2)
}
 0x9ca   :  { %s15774_s15 = scalar_lea.hbm %s16475_s6, 128 }
 0x9cb   :  { %p15775_p3 = scmp.ne.s32.totalorder %s16475_s6, %s15774_s15  ;;  %p15778_p4 = scmp.lt.u32.totalorder %s15774_s15, %s16475_s6 }
 0x9cd   :  { %p15780_p5 = pnand %p15778_p4, %p15775_p3 }
 0x9cf   :  { %15783 = shalt.err (!%p15780_p5)
}
 0x9d0   :  { %12898 = dma.vmem_to_hbm [thread:$0]  %s12896_s11, 128, %s16475_s6, [#allocation4]  }
 0x9d1   :  { %15790 = dma.done.wait [#allocation4], 128  }
 0x9d2   :  { %15791 = vsyncadd [#allocation4], 4294967168 }
 0x9d3   :  { %12902 = vsyncpa [#allocation3], 1 }
 0x9d4   :  { %12903 = vsyncpa [#allocation6], 1 }
 0x9d5   :  { %12904 = vsyncpa [#allocation9], 1 }
 0x9d6   :  { %12905 = vsyncpa [#allocation4], 1 }

</bundles_post_ra>
